<compile_context>
chip_gen: v7x
topology: tpu7x:2x2x1
jax: 0.10.0
libtpu: 0.0.40
codegen_flags: <defaults>
</compile_context>

<pallas_src>
import jax
import jax.numpy as jnp
from jax.experimental import pallas as pl
from jax.experimental.pallas import tpu as pltpu

# ---------------- model hyper-parameters (from BeatsODE2.__init__) ----------
IN_DIM = 2
OUT_DIM = 2
SEQ_LEN = 12
TIME_1, STEP_1 = 1.0, 0.25
NFE = round(TIME_1 / STEP_1)                          # 4
MAX_KERNEL = 7
RECEPTIVE_FIELD = NFE * (MAX_KERNEL - 1) + OUT_DIM    # 26
CONV_DIM = 32
END_DIM = 128
N_STACKS, N_BLOCKS = 3, 3
NB = N_STACKS * N_BLOCKS                              # 9 BeatsBlocks
KERNEL_SET = (2, 3, 6, 7)
CGP_ALPHA = 0.1
CGP_DEPTH = 2
LN_EPS = 1e-5
# first real input time step that the kept inception outputs can see
INPUT_OFFSET = SEQ_LEN - (MAX_KERNEL - 1) - OUT_DIM   # 4
GATE_W = OUT_DIM * CONV_DIM                           # 64 lanes (both kept positions)

assert IN_DIM == OUT_DIM, "residual update requires in_dim == out_dim"


# ---------------- fused kernel (one grid step == one batch sample) ----------
def fused_beats_kernel(x_ref, p1_ref, p2_ref,
                       wfg_ref, bfg_ref, g1_ref, g2_ref, gb_ref,
                       dw1_ref, db1_ref, w2_ref, b2_ref,
                       out_ref):
    f32 = jnp.float32
    n_nodes = p1_ref.shape[0]
    p1 = p1_ref[...]                                   # (N, N) rownorm(adj+I)^T
    p2 = p2_ref[...]                                   # (N, N) rownorm(adj^T+I)^T

    # running backcast residual / forecast accumulator for this sample,
    # one (N, SEQ_LEN) slab per channel (channel c <-> kept time position c).
    s = [x_ref[0, c] for c in range(IN_DIM)]
    f = [jnp.zeros((n_nodes, SEQ_LEN), f32) for _ in range(OUT_DIM)]

    for blk in range(NB):                              # 9 BeatsBlocks, unrolled
        # ---- folded start_conv + front-pad + dilated inception (gated) ----
        # ONE (N,12)@(12,128) matmul per input channel; lanes are
        # [filter_pos0 | filter_pos1 | gate_pos0 | gate_pos1].
        acc = bfg_ref[blk]                             # (1, 4*CONV_DIM)
        for c in range(IN_DIM):
            acc = acc + jnp.dot(s[c], wfg_ref[blk, c],
                                preferred_element_type=f32)
        filt = jnp.tanh(acc[:, :GATE_W])
        gate = jax.nn.sigmoid(acc[:, GATE_W:])
        gated = filt * gate                            # (N, 64): [pos0 | pos1]
        # TODO(synk): F.dropout(p=0.3) runs in training (stochastic) mode in the
        # reference; implemented as identity (inference behaviour).

        # ---- CGP: per-sample (N,N) propagation, both kept positions together ----
        h1 = gated
        h2 = gated
        for _ in range(CGP_DEPTH):
            h1 = CGP_ALPHA * gated + (1.0 - CGP_ALPHA) * jnp.dot(
                p1, h1, preferred_element_type=f32)
            h2 = CGP_ALPHA * gated + (1.0 - CGP_ALPHA) * jnp.dot(
                p2, h2, preferred_element_type=f32)
        hg = (jnp.dot(h1, g1_ref[blk], preferred_element_type=f32)
              + jnp.dot(h2, g2_ref[blk], preferred_element_type=f32)
              + gb_ref[blk])                           # (N, 64)

        # ---- layer_norm over all non-batch dims (no affine), eps=1e-5 ----
        mean = jnp.mean(hg, keepdims=True)             # (1, 1)
        dev = hg - mean
        var = jnp.mean(dev * dev, keepdims=True)
        normed = dev * jax.lax.rsqrt(var + LN_EPS)

        # ---- fused decoders: row-stack the two positions, 2 matmuls total ----
        nstack = jnp.concatenate(
            [normed[:, pos * CONV_DIM:(pos + 1) * CONV_DIM]
             for pos in range(OUT_DIM)], axis=0)       # (OUT_DIM*N, 32)
        d1 = jnp.maximum(
            jnp.dot(nstack, dw1_ref[blk], preferred_element_type=f32)
            + db1_ref[blk], 0.0)                       # (OUT_DIM*N, 256)
        y2 = (jnp.dot(d1, w2_ref[blk], preferred_element_type=f32)
              + b2_ref[blk])                           # (OUT_DIM*N, 24) = [bc | fc]

        for pos in range(OUT_DIM):
            rows = slice(pos * n_nodes, (pos + 1) * n_nodes)
            s[pos] = s[pos] - y2[rows, :SEQ_LEN]       # backcast residual update
            f[pos] = f[pos] + y2[rows, SEQ_LEN:]       # forecast accumulation

    for pos in range(OUT_DIM):
        out_ref[0, pos] = f[pos]


# ---------------- wrapper ----------------------------------------------------
@jax.jit
def beats_ode2_forward(backcast, adj_mx, packed):
    """BeatsODE2.forward.  backcast: (B, IN_DIM, N, SEQ_LEN) -> (B, SEQ_LEN, N, OUT_DIM)."""
    B, C, N, T = backcast.shape
    assert C == IN_DIM and T == SEQ_LEN
    x = backcast.astype(jnp.float32)

    # per-sample graph propagation operators (shared by all blocks / samples)
    eye_n = jnp.eye(N, dtype=jnp.float32)
    a1 = adj_mx.astype(jnp.float32) + eye_n
    a1 = a1 / jnp.sum(a1, axis=1, keepdims=True)
    a2 = adj_mx.T.astype(jnp.float32) + eye_n
    a2 = a2 / jnp.sum(a2, axis=1, keepdims=True)
    p1 = a1.T
    p2 = a2.T

    def whole(arr):
        return pl.BlockSpec(arr.shape, lambda b, n=arr.ndim: (0,) * n)

    out = pl.pallas_call(
        fused_beats_kernel,
        out_shape=jax.ShapeDtypeStruct((B, OUT_DIM, N, SEQ_LEN), jnp.float32),
        grid=(B,),
        in_specs=[
            pl.BlockSpec((1, IN_DIM, N, SEQ_LEN), lambda b: (b, 0, 0, 0)),
            whole(p1), whole(p2),
            whole(packed["wfg"]), whole(packed["bfg"]),
            whole(packed["g1"]), whole(packed["g2"]), whole(packed["gb"]),
            whole(packed["dw1"]), whole(packed["db1"]),
            whole(packed["w2"]), whole(packed["b2"]),
        ],
        out_specs=pl.BlockSpec((1, OUT_DIM, N, SEQ_LEN), lambda b: (b, 0, 0, 0)),
        compiler_params=pltpu.CompilerParams(dimension_semantics=("parallel",)),
    )(x, p1, p2,
      packed["wfg"], packed["bfg"], packed["g1"], packed["g2"], packed["gb"],
      packed["dw1"], packed["db1"], packed["w2"], packed["b2"])

    # (B, OUT_DIM, N, SEQ_LEN) -> (B, SEQ_LEN, N, OUT_DIM)
    return jnp.transpose(out, (0, 3, 2, 1))


# ---------------- parameter init (deterministic, synthetic) -----------------
def _w(key, shape, scale):
    return jax.random.normal(key, shape, jnp.float32) * scale


def _make_inception_weights(key):
    """Assemble the 4 dilated convs (cout=8 each, kernels 2/3/6/7, dilation 1)
       into per-tap effective (Cin, Cout) matrices weff[o], o in [0,6]."""
    keys = jax.random.split(key, len(KERNEL_SET) + 1)
    weff = jnp.zeros((MAX_KERNEL, CONV_DIM, CONV_DIM), jnp.float32)
    cper = CONV_DIM // len(KERNEL_SET)
    for g, ksz in enumerate(KERNEL_SET):
        wg = _w(keys[g], (cper, CONV_DIM, ksz), 1.0 / (CONV_DIM * ksz) ** 0.5)
        for p in range(ksz):
            o = MAX_KERNEL - ksz + p
            weff = weff.at[o, :, g * cper:(g + 1) * cper].set(wg[:, :, p].T)
    bias = _w(keys[-1], (1, CONV_DIM), 0.1)
    return weff, bias


def init_block_params(key):
    ks = jax.random.split(key, 16)
    p = {}
    p["start_w"] = _w(ks[0], (IN_DIM, CONV_DIM), 1.0 / IN_DIM ** 0.5)
    p["start_b"] = _w(ks[1], (1, CONV_DIM), 0.1)
    p["Wf"], p["bf"] = _make_inception_weights(ks[2])
    p["Wg"], p["bg"] = _make_inception_weights(ks[3])
    p["g1_w"] = _w(ks[4], (CONV_DIM, CONV_DIM), 1.0 / CONV_DIM ** 0.5)
    p["g1_b"] = _w(ks[5], (1, CONV_DIM), 0.1)
    p["g2_w"] = _w(ks[6], (CONV_DIM, CONV_DIM), 1.0 / CONV_DIM ** 0.5)
    p["g2_b"] = _w(ks[7], (1, CONV_DIM), 0.1)
    p["bc_w1"] = _w(ks[8], (CONV_DIM, END_DIM), 1.0 / CONV_DIM ** 0.5)
    p["bc_b1"] = _w(ks[9], (1, END_DIM), 0.1)
    p["bc_w2"] = _w(ks[10], (END_DIM, SEQ_LEN), 1.0 / END_DIM ** 0.5)
    p["bc_b2"] = _w(ks[11], (1, SEQ_LEN), 0.1)
    p["fc_w1"] = _w(ks[12], (CONV_DIM, END_DIM), 1.0 / CONV_DIM ** 0.5)
    p["fc_b1"] = _w(ks[13], (1, END_DIM), 0.1)
    p["fc_w2"] = _w(ks[14], (END_DIM, SEQ_LEN), 1.0 / END_DIM ** 0.5)
    p["fc_b2"] = _w(ks[15], (1, SEQ_LEN), 0.1)
    return p


# ---------------- fold + pack parameters for the fused kernel ---------------
def _fold_inception(start_w, weff):
    """Fold start_conv(1x1) + front zero-pad + 7-tap inception into per
    (kept-position, input-channel) weights of shape (SEQ_LEN, CONV_DIM)."""
    w = jnp.zeros((OUT_DIM * IN_DIM, SEQ_LEN, CONV_DIM), jnp.float32)
    for pos in range(OUT_DIM):
        for c in range(IN_DIM):
            for o in range(MAX_KERNEL):
                t_in = INPUT_OFFSET + pos + o
                if 0 <= t_in < SEQ_LEN:          # taps outside land on the pad
                    w = w.at[pos * IN_DIM + c, t_in, :].set(start_w[c] @ weff[o])
    return w


def pack_params(all_params):
    wfg, bfg, g1, g2, gb, dw1, db1, w2, b2 = ([] for _ in range(9))
    eye_p = jnp.eye(OUT_DIM, dtype=jnp.float32)
    for p in all_params:
        Wf = _fold_inception(p["start_w"], p["Wf"])   # (OUT_DIM*IN_DIM, 12, 32)
        Wg = _fold_inception(p["start_w"], p["Wg"])
        bff = p["bf"] + p["start_b"] @ jnp.sum(p["Wf"], axis=0)   # (1, 32)
        bgf = p["bg"] + p["start_b"] @ jnp.sum(p["Wg"], axis=0)
        # per input channel: lanes [f_pos0 | f_pos1 | g_pos0 | g_pos1]  (12, 128)
        per_c = []
        for c in range(IN_DIM):
            cols = ([Wf[pos * IN_DIM + c] for pos in range(OUT_DIM)]
                    + [Wg[pos * IN_DIM + c] for pos in range(OUT_DIM)])
            per_c.append(jnp.concatenate(cols, axis=1))
        wfg.append(jnp.stack(per_c, axis=0))                          # (IN_DIM, 12, 128)
        bfg.append(jnp.concatenate([bff] * OUT_DIM + [bgf] * OUT_DIM, axis=1))  # (1, 128)
        # CGP output 1x1 convs: block-diagonal over the two kept positions
        g1.append(jnp.kron(eye_p, p["g1_w"]))                         # (64, 64)
        g2.append(jnp.kron(eye_p, p["g2_w"]))
        gb.append(jnp.tile(p["g1_b"] + p["g2_b"], (1, OUT_DIM)))      # (1, 64)
        # decoders: shared stage-1, block-diagonal stage-2 producing [bc | fc]
        dw1.append(jnp.concatenate([p["bc_w1"], p["fc_w1"]], axis=1))  # (32, 256)
        db1.append(jnp.concatenate([p["bc_b1"], p["fc_b1"]], axis=1))  # (1, 256)
        w2b = jnp.zeros((2 * END_DIM, 2 * SEQ_LEN), jnp.float32)
        w2b = w2b.at[:END_DIM, :SEQ_LEN].set(p["bc_w2"])
        w2b = w2b.at[END_DIM:, SEQ_LEN:].set(p["fc_w2"])
        w2.append(w2b)                                                 # (256, 24)
        b2.append(jnp.concatenate([p["bc_b2"], p["fc_b2"]], axis=1))   # (1, 24)

    stk = lambda xs: jnp.stack(xs, axis=0)
    return {"wfg": stk(wfg), "bfg": stk(bfg), "g1": stk(g1), "g2": stk(g2),
            "gb": stk(gb), "dw1": stk(dw1), "db1": stk(db1),
            "w2": stk(w2), "b2": stk(b2)}


# ---------------- driver -----------------------------------------------------
if __name__ == "__main__":
    key = jax.random.PRNGKey(0)
    B, N = 2, 8
    kx, ka, kp = jax.random.split(key, 3)
    backcast = jax.random.normal(kx, (B, IN_DIM, N, SEQ_LEN), jnp.float32)
    adj_mx = jax.nn.softmax(jax.random.normal(ka, (N, N), jnp.float32), axis=-1)
    all_params = [init_block_params(k) for k in jax.random.split(kp, NB)]
    packed = pack_params(all_params)

    out = beats_ode2_forward(backcast, adj_mx, packed)
    jax.block_until_ready(out)
    assert out.shape == (B, SEQ_LEN, N, OUT_DIM), out.shape
    assert bool(jnp.all(jnp.isfinite(out)))
    print("KERNEL_OK")
</pallas_src>

<mosaic_0001>
module attributes {stable_mosaic.version = 11 : i64} {
  func.func @fused_beats_kernel(%arg0: i32, %arg1: memref<1x2x8x12xf32, #tpu.memory_space<vmem>>, %arg2: memref<8x8xf32, #tpu.memory_space<vmem>>, %arg3: memref<8x8xf32, #tpu.memory_space<vmem>>, %arg4: memref<9x2x12x128xf32, #tpu.memory_space<vmem>>, %arg5: memref<9x1x128xf32, #tpu.memory_space<vmem>>, %arg6: memref<9x64x64xf32, #tpu.memory_space<vmem>>, %arg7: memref<9x64x64xf32, #tpu.memory_space<vmem>>, %arg8: memref<9x1x64xf32, #tpu.memory_space<vmem>>, %arg9: memref<9x32x256xf32, #tpu.memory_space<vmem>>, %arg10: memref<9x1x256xf32, #tpu.memory_space<vmem>>, %arg11: memref<9x256x24xf32, #tpu.memory_space<vmem>>, %arg12: memref<9x1x24xf32, #tpu.memory_space<vmem>>, %arg13: memref<1x2x8x12xf32, #tpu.memory_space<vmem>>) attributes {dimension_semantics = [#tpu.dimension_semantics<parallel>], iteration_bounds = array<i64: 2>, scalar_prefetch = 0 : i64, scratch_operands = 0 : i64, tpu.core_type = #tpu.core_type<tc>, window_params = [{transform_indices = @transform_0, window_bounds = array<i64: 1, 2, 8, 12>}, {pipeline_mode = #tpu.pipeline_mode<synchronous>, transform_indices = @transform_1, window_bounds = array<i64: 8, 8>}, {pipeline_mode = #tpu.pipeline_mode<synchronous>, transform_indices = @transform_2, window_bounds = array<i64: 8, 8>}, {pipeline_mode = #tpu.pipeline_mode<synchronous>, transform_indices = @transform_3, window_bounds = array<i64: 9, 2, 12, 128>}, {pipeline_mode = #tpu.pipeline_mode<synchronous>, transform_indices = @transform_4, window_bounds = array<i64: 9, 1, 128>}, {pipeline_mode = #tpu.pipeline_mode<synchronous>, transform_indices = @transform_5, window_bounds = array<i64: 9, 64, 64>}, {pipeline_mode = #tpu.pipeline_mode<synchronous>, transform_indices = @transform_6, window_bounds = array<i64: 9, 64, 64>}, {pipeline_mode = #tpu.pipeline_mode<synchronous>, transform_indices = @transform_7, window_bounds = array<i64: 9, 1, 64>}, {pipeline_mode = #tpu.pipeline_mode<synchronous>, transform_indices = @transform_8, window_bounds = array<i64: 9, 32, 256>}, {pipeline_mode = #tpu.pipeline_mode<synchronous>, transform_indices = @transform_9, window_bounds = array<i64: 9, 1, 256>}, {pipeline_mode = #tpu.pipeline_mode<synchronous>, transform_indices = @transform_10, window_bounds = array<i64: 9, 256, 24>}, {pipeline_mode = #tpu.pipeline_mode<synchronous>, transform_indices = @transform_11, window_bounds = array<i64: 9, 1, 24>}, {transform_indices = @transform_12, window_bounds = array<i64: 1, 2, 8, 12>}]} {
    %c0 = arith.constant 0 : index
    %c0_0 = arith.constant 0 : index
    %0 = vector.load %arg2[%c0, %c0_0] : memref<8x8xf32, #tpu.memory_space<vmem>>, vector<8x8xf32>
    %c0_1 = arith.constant 0 : index
    %c0_2 = arith.constant 0 : index
    %1 = vector.load %arg3[%c0_1, %c0_2] : memref<8x8xf32, #tpu.memory_space<vmem>>, vector<8x8xf32>
    %c0_3 = arith.constant 0 : index
    %c0_4 = arith.constant 0 : index
    %c0_5 = arith.constant 0 : index
    %c0_6 = arith.constant 0 : index
    %2 = vector.load %arg1[%c0_3, %c0_4, %c0_5, %c0_6] : memref<1x2x8x12xf32, #tpu.memory_space<vmem>>, vector<1x1x8x12xf32>
    %3 = vector.shape_cast %2 : vector<1x1x8x12xf32> to vector<8x12xf32>
    %c0_7 = arith.constant 0 : index
    %c1 = arith.constant 1 : index
    %c0_8 = arith.constant 0 : index
    %c0_9 = arith.constant 0 : index
    %4 = vector.load %arg1[%c0_7, %c1, %c0_8, %c0_9] : memref<1x2x8x12xf32, #tpu.memory_space<vmem>>, vector<1x1x8x12xf32>
    %5 = vector.shape_cast %4 : vector<1x1x8x12xf32> to vector<8x12xf32>
    %cst = arith.constant 0.000000e+00 : f32
    %6 = vector.broadcast %cst : f32 to vector<8x12xf32>
    %cst_10 = arith.constant 0.000000e+00 : f32
    %7 = vector.broadcast %cst_10 : f32 to vector<8x12xf32>
    %c0_11 = arith.constant 0 : index
    %c0_12 = arith.constant 0 : index
    %c0_13 = arith.constant 0 : index
    %8 = vector.load %arg5[%c0_11, %c0_12, %c0_13] : memref<9x1x128xf32, #tpu.memory_space<vmem>>, vector<1x1x128xf32>
    %9 = vector.shape_cast %8 : vector<1x1x128xf32> to vector<1x128xf32>
    %c0_14 = arith.constant 0 : index
    %c0_15 = arith.constant 0 : index
    %c0_16 = arith.constant 0 : index
    %c0_17 = arith.constant 0 : index
    %10 = vector.load %arg4[%c0_14, %c0_15, %c0_16, %c0_17] : memref<9x2x12x128xf32, #tpu.memory_space<vmem>>, vector<1x1x12x128xf32>
    %11 = vector.shape_cast %10 : vector<1x1x12x128xf32> to vector<12x128xf32>
    %cst_18 = arith.constant dense<0.000000e+00> : vector<8x128xf32>
    %12 = tpu.matmul %3, %11, %cst_18 {dimension_numbers = #tpu.dot_dimension_numbers<[1], [0], [0], [1], [0, 0, 1, 1], [], []>} : vector<8x12xf32>, vector<12x128xf32>, vector<8x128xf32> -> vector<8x128xf32>
    %13 = vector.broadcast %9 : vector<1x128xf32> to vector<8x128xf32>
    %14 = arith.addf %13, %12 : vector<8x128xf32>
    %c0_19 = arith.constant 0 : index
    %c1_20 = arith.constant 1 : index
    %c0_21 = arith.constant 0 : index
    %c0_22 = arith.constant 0 : index
    %15 = vector.load %arg4[%c0_19, %c1_20, %c0_21, %c0_22] : memref<9x2x12x128xf32, #tpu.memory_space<vmem>>, vector<1x1x12x128xf32>
    %16 = vector.shape_cast %15 : vector<1x1x12x128xf32> to vector<12x128xf32>
    %cst_23 = arith.constant dense<0.000000e+00> : vector<8x128xf32>
    %17 = tpu.matmul %5, %16, %cst_23 {dimension_numbers = #tpu.dot_dimension_numbers<[1], [0], [0], [1], [0, 0, 1, 1], [], []>} : vector<8x12xf32>, vector<12x128xf32>, vector<8x128xf32> -> vector<8x128xf32>
    %18 = arith.addf %14, %17 : vector<8x128xf32>
    %19 = vector.extract_strided_slice %18 {offsets = [0, 0], sizes = [8, 64], strides = [1, 1]} : vector<8x128xf32> to vector<8x64xf32>
    %20 = math.tanh %19 : vector<8x64xf32>
    %21 = vector.extract_strided_slice %18 {offsets = [0, 64], sizes = [8, 64], strides = [1, 1]} : vector<8x128xf32> to vector<8x64xf32>
    %22 = arith.negf %21 : vector<8x64xf32>
    %23 = math.exp %22 : vector<8x64xf32>
    %cst_24 = arith.constant 1.000000e+00 : f32
    %24 = vector.broadcast %cst_24 : f32 to vector<8x64xf32>
    %25 = arith.addf %24, %23 : vector<8x64xf32>
    %26 = arith.divf %24, %25 : vector<8x64xf32>
    %27 = arith.mulf %20, %26 : vector<8x64xf32>
    %cst_25 = arith.constant 1.000000e-01 : f32
    %28 = vector.broadcast %cst_25 : f32 to vector<8x64xf32>
    %29 = arith.mulf %28, %27 : vector<8x64xf32>
    %cst_26 = arith.constant dense<0.000000e+00> : vector<8x64xf32>
    %30 = tpu.matmul %0, %27, %cst_26 {dimension_numbers = #tpu.dot_dimension_numbers<[1], [0], [0], [1], [0, 0, 1, 1], [], []>} : vector<8x8xf32>, vector<8x64xf32>, vector<8x64xf32> -> vector<8x64xf32>
    %cst_27 = arith.constant 0.899999976 : f32
    %31 = vector.broadcast %cst_27 : f32 to vector<8x64xf32>
    %32 = arith.mulf %31, %30 : vector<8x64xf32>
    %33 = arith.addf %29, %32 : vector<8x64xf32>
    %cst_28 = arith.constant 1.000000e-01 : f32
    %34 = vector.broadcast %cst_28 : f32 to vector<8x64xf32>
    %35 = arith.mulf %34, %27 : vector<8x64xf32>
    %cst_29 = arith.constant dense<0.000000e+00> : vector<8x64xf32>
    %36 = tpu.matmul %1, %27, %cst_29 {dimension_numbers = #tpu.dot_dimension_numbers<[1], [0], [0], [1], [0, 0, 1, 1], [], []>} : vector<8x8xf32>, vector<8x64xf32>, vector<8x64xf32> -> vector<8x64xf32>
    %cst_30 = arith.constant 0.899999976 : f32
    %37 = vector.broadcast %cst_30 : f32 to vector<8x64xf32>
    %38 = arith.mulf %37, %36 : vector<8x64xf32>
    %39 = arith.addf %35, %38 : vector<8x64xf32>
    %cst_31 = arith.constant 1.000000e-01 : f32
    %40 = vector.broadcast %cst_31 : f32 to vector<8x64xf32>
    %41 = arith.mulf %40, %27 : vector<8x64xf32>
    %cst_32 = arith.constant dense<0.000000e+00> : vector<8x64xf32>
    %42 = tpu.matmul %0, %33, %cst_32 {dimension_numbers = #tpu.dot_dimension_numbers<[1], [0], [0], [1], [0, 0, 1, 1], [], []>} : vector<8x8xf32>, vector<8x64xf32>, vector<8x64xf32> -> vector<8x64xf32>
    %cst_33 = arith.constant 0.899999976 : f32
    %43 = vector.broadcast %cst_33 : f32 to vector<8x64xf32>
    %44 = arith.mulf %43, %42 : vector<8x64xf32>
    %45 = arith.addf %41, %44 : vector<8x64xf32>
    %cst_34 = arith.constant 1.000000e-01 : f32
    %46 = vector.broadcast %cst_34 : f32 to vector<8x64xf32>
    %47 = arith.mulf %46, %27 : vector<8x64xf32>
    %cst_35 = arith.constant dense<0.000000e+00> : vector<8x64xf32>
    %48 = tpu.matmul %1, %39, %cst_35 {dimension_numbers = #tpu.dot_dimension_numbers<[1], [0], [0], [1], [0, 0, 1, 1], [], []>} : vector<8x8xf32>, vector<8x64xf32>, vector<8x64xf32> -> vector<8x64xf32>
    %cst_36 = arith.constant 0.899999976 : f32
    %49 = vector.broadcast %cst_36 : f32 to vector<8x64xf32>
    %50 = arith.mulf %49, %48 : vector<8x64xf32>
    %51 = arith.addf %47, %50 : vector<8x64xf32>
    %c0_37 = arith.constant 0 : index
    %c0_38 = arith.constant 0 : index
    %c0_39 = arith.constant 0 : index
    %52 = vector.load %arg6[%c0_37, %c0_38, %c0_39] : memref<9x64x64xf32, #tpu.memory_space<vmem>>, vector<1x64x64xf32>
    %53 = vector.shape_cast %52 : vector<1x64x64xf32> to vector<64x64xf32>
    %cst_40 = arith.constant dense<0.000000e+00> : vector<8x64xf32>
    %54 = tpu.matmul %45, %53, %cst_40 {dimension_numbers = #tpu.dot_dimension_numbers<[1], [0], [0], [1], [0, 0, 1, 1], [], []>} : vector<8x64xf32>, vector<64x64xf32>, vector<8x64xf32> -> vector<8x64xf32>
    %c0_41 = arith.constant 0 : index
    %c0_42 = arith.constant 0 : index
    %c0_43 = arith.constant 0 : index
    %55 = vector.load %arg7[%c0_41, %c0_42, %c0_43] : memref<9x64x64xf32, #tpu.memory_space<vmem>>, vector<1x64x64xf32>
    %56 = vector.shape_cast %55 : vector<1x64x64xf32> to vector<64x64xf32>
    %cst_44 = arith.constant dense<0.000000e+00> : vector<8x64xf32>
    %57 = tpu.matmul %51, %56, %cst_44 {dimension_numbers = #tpu.dot_dimension_numbers<[1], [0], [0], [1], [0, 0, 1, 1], [], []>} : vector<8x64xf32>, vector<64x64xf32>, vector<8x64xf32> -> vector<8x64xf32>
    %58 = arith.addf %54, %57 : vector<8x64xf32>
    %c0_45 = arith.constant 0 : index
    %c0_46 = arith.constant 0 : index
    %c0_47 = arith.constant 0 : index
    %59 = vector.load %arg8[%c0_45, %c0_46, %c0_47] : memref<9x1x64xf32, #tpu.memory_space<vmem>>, vector<1x1x64xf32>
    %60 = vector.shape_cast %59 : vector<1x1x64xf32> to vector<1x64xf32>
    %61 = vector.broadcast %60 : vector<1x64xf32> to vector<8x64xf32>
    %62 = arith.addf %58, %61 : vector<8x64xf32>
    %63 = vector.shape_cast %62 : vector<8x64xf32> to vector<1x8x64xf32>
    %cst_48 = arith.constant dense<0.000000e+00> : vector<1xf32>
    %64 = vector.multi_reduction <add>, %63, %cst_48 [1, 2] : vector<1x8x64xf32> to vector<1xf32>
    %65 = vector.shape_cast %64 : vector<1xf32> to vector<1x1x1xf32>
    %66 = vector.extract %65[0, 0, 0] : f32 from vector<1x1x1xf32>
    %67 = vector.broadcast %66 : f32 to vector<1x1xf32>
    %cst_49 = arith.constant 5.120000e+02 : f32
    %68 = vector.broadcast %cst_49 : f32 to vector<1x1xf32>
    %69 = arith.divf %67, %68 : vector<1x1xf32>
    %70 = vector.broadcast %69 : vector<1x1xf32> to vector<8x64xf32>
    %71 = arith.subf %62, %70 : vector<8x64xf32>
    %72 = arith.mulf %71, %71 : vector<8x64xf32>
    %73 = vector.shape_cast %72 : vector<8x64xf32> to vector<1x8x64xf32>
    %cst_50 = arith.constant dense<0.000000e+00> : vector<1xf32>
    %74 = vector.multi_reduction <add>, %73, %cst_50 [1, 2] : vector<1x8x64xf32> to vector<1xf32>
    %75 = vector.shape_cast %74 : vector<1xf32> to vector<1x1x1xf32>
    %76 = vector.extract %75[0, 0, 0] : f32 from vector<1x1x1xf32>
    %77 = vector.broadcast %76 : f32 to vector<1x1xf32>
    %cst_51 = arith.constant 5.120000e+02 : f32
    %78 = vector.broadcast %cst_51 : f32 to vector<1x1xf32>
    %79 = arith.divf %77, %78 : vector<1x1xf32>
    %cst_52 = arith.constant 9.99999974E-6 : f32
    %80 = vector.broadcast %cst_52 : f32 to vector<1x1xf32>
    %81 = arith.addf %79, %80 : vector<1x1xf32>
    %82 = math.rsqrt %81 : vector<1x1xf32>
    %83 = vector.broadcast %82 : vector<1x1xf32> to vector<8x64xf32>
    %84 = arith.mulf %71, %83 : vector<8x64xf32>
    %85 = vector.extract_strided_slice %84 {offsets = [0, 0], sizes = [8, 32], strides = [1, 1]} : vector<8x64xf32> to vector<8x32xf32>
    %86 = vector.extract_strided_slice %84 {offsets = [0, 32], sizes = [8, 32], strides = [1, 1]} : vector<8x64xf32> to vector<8x32xf32>
    %87 = tpu.concatenate %85, %86 in 0 : vector<8x32xf32>, vector<8x32xf32> -> vector<16x32xf32>
    %c0_53 = arith.constant 0 : index
    %c0_54 = arith.constant 0 : index
    %c0_55 = arith.constant 0 : index
    %88 = vector.load %arg9[%c0_53, %c0_54, %c0_55] : memref<9x32x256xf32, #tpu.memory_space<vmem>>, vector<1x32x256xf32>
    %89 = vector.shape_cast %88 : vector<1x32x256xf32> to vector<32x256xf32>
    %cst_56 = arith.constant dense<0.000000e+00> : vector<16x256xf32>
    %90 = tpu.matmul %87, %89, %cst_56 {dimension_numbers = #tpu.dot_dimension_numbers<[1], [0], [0], [1], [0, 0, 1, 1], [], []>} : vector<16x32xf32>, vector<32x256xf32>, vector<16x256xf32> -> vector<16x256xf32>
    %c0_57 = arith.constant 0 : index
    %c0_58 = arith.constant 0 : index
    %c0_59 = arith.constant 0 : index
    %91 = vector.load %arg10[%c0_57, %c0_58, %c0_59] : memref<9x1x256xf32, #tpu.memory_space<vmem>>, vector<1x1x256xf32>
    %92 = vector.shape_cast %91 : vector<1x1x256xf32> to vector<1x256xf32>
    %93 = vector.broadcast %92 : vector<1x256xf32> to vector<16x256xf32>
    %94 = arith.addf %90, %93 : vector<16x256xf32>
    %cst_60 = arith.constant 0.000000e+00 : f32
    %95 = vector.broadcast %cst_60 : f32 to vector<16x256xf32>
    %96 = arith.maximumf %94, %95 : vector<16x256xf32>
    %c0_61 = arith.constant 0 : index
    %c0_62 = arith.constant 0 : index
    %c0_63 = arith.constant 0 : index
    %97 = vector.load %arg11[%c0_61, %c0_62, %c0_63] : memref<9x256x24xf32, #tpu.memory_space<vmem>>, vector<1x256x24xf32>
    %98 = vector.shape_cast %97 : vector<1x256x24xf32> to vector<256x24xf32>
    %cst_64 = arith.constant dense<0.000000e+00> : vector<16x24xf32>
    %99 = tpu.matmul %96, %98, %cst_64 {dimension_numbers = #tpu.dot_dimension_numbers<[1], [0], [0], [1], [0, 0, 1, 1], [], []>} : vector<16x256xf32>, vector<256x24xf32>, vector<16x24xf32> -> vector<16x24xf32>
    %c0_65 = arith.constant 0 : index
    %c0_66 = arith.constant 0 : index
    %c0_67 = arith.constant 0 : index
    %100 = vector.load %arg12[%c0_65, %c0_66, %c0_67] : memref<9x1x24xf32, #tpu.memory_space<vmem>>, vector<1x1x24xf32>
    %101 = vector.shape_cast %100 : vector<1x1x24xf32> to vector<1x24xf32>
    %102 = vector.broadcast %101 : vector<1x24xf32> to vector<16x24xf32>
    %103 = arith.addf %99, %102 : vector<16x24xf32>
    %104 = vector.extract_strided_slice %103 {offsets = [0, 0], sizes = [8, 12], strides = [1, 1]} : vector<16x24xf32> to vector<8x12xf32>
    %105 = arith.subf %3, %104 : vector<8x12xf32>
    %106 = vector.extract_strided_slice %103 {offsets = [0, 12], sizes = [8, 12], strides = [1, 1]} : vector<16x24xf32> to vector<8x12xf32>
    %107 = arith.addf %6, %106 : vector<8x12xf32>
    %108 = vector.extract_strided_slice %103 {offsets = [8, 0], sizes = [8, 12], strides = [1, 1]} : vector<16x24xf32> to vector<8x12xf32>
    %109 = arith.subf %5, %108 : vector<8x12xf32>
    %110 = vector.extract_strided_slice %103 {offsets = [8, 12], sizes = [8, 12], strides = [1, 1]} : vector<16x24xf32> to vector<8x12xf32>
    %111 = arith.addf %7, %110 : vector<8x12xf32>
    %c1_68 = arith.constant 1 : index
    %c0_69 = arith.constant 0 : index
    %c0_70 = arith.constant 0 : index
    %112 = vector.load %arg5[%c1_68, %c0_69, %c0_70] : memref<9x1x128xf32, #tpu.memory_space<vmem>>, vector<1x1x128xf32>
    %113 = vector.shape_cast %112 : vector<1x1x128xf32> to vector<1x128xf32>
    %c1_71 = arith.constant 1 : index
    %c0_72 = arith.constant 0 : index
    %c0_73 = arith.constant 0 : index
    %c0_74 = arith.constant 0 : index
    %114 = vector.load %arg4[%c1_71, %c0_72, %c0_73, %c0_74] : memref<9x2x12x128xf32, #tpu.memory_space<vmem>>, vector<1x1x12x128xf32>
    %115 = vector.shape_cast %114 : vector<1x1x12x128xf32> to vector<12x128xf32>
    %cst_75 = arith.constant dense<0.000000e+00> : vector<8x128xf32>
    %116 = tpu.matmul %105, %115, %cst_75 {dimension_numbers = #tpu.dot_dimension_numbers<[1], [0], [0], [1], [0, 0, 1, 1], [], []>} : vector<8x12xf32>, vector<12x128xf32>, vector<8x128xf32> -> vector<8x128xf32>
    %117 = vector.broadcast %113 : vector<1x128xf32> to vector<8x128xf32>
    %118 = arith.addf %117, %116 : vector<8x128xf32>
    %c1_76 = arith.constant 1 : index
    %c1_77 = arith.constant 1 : index
    %c0_78 = arith.constant 0 : index
    %c0_79 = arith.constant 0 : index
    %119 = vector.load %arg4[%c1_76, %c1_77, %c0_78, %c0_79] : memref<9x2x12x128xf32, #tpu.memory_space<vmem>>, vector<1x1x12x128xf32>
    %120 = vector.shape_cast %119 : vector<1x1x12x128xf32> to vector<12x128xf32>
    %cst_80 = arith.constant dense<0.000000e+00> : vector<8x128xf32>
    %121 = tpu.matmul %109, %120, %cst_80 {dimension_numbers = #tpu.dot_dimension_numbers<[1], [0], [0], [1], [0, 0, 1, 1], [], []>} : vector<8x12xf32>, vector<12x128xf32>, vector<8x128xf32> -> vector<8x128xf32>
    %122 = arith.addf %118, %121 : vector<8x128xf32>
    %123 = vector.extract_strided_slice %122 {offsets = [0, 0], sizes = [8, 64], strides = [1, 1]} : vector<8x128xf32> to vector<8x64xf32>
    %124 = math.tanh %123 : vector<8x64xf32>
    %125 = vector.extract_strided_slice %122 {offsets = [0, 64], sizes = [8, 64], strides = [1, 1]} : vector<8x128xf32> to vector<8x64xf32>
    %126 = arith.negf %125 : vector<8x64xf32>
    %127 = math.exp %126 : vector<8x64xf32>
    %cst_81 = arith.constant 1.000000e+00 : f32
    %128 = vector.broadcast %cst_81 : f32 to vector<8x64xf32>
    %129 = arith.addf %128, %127 : vector<8x64xf32>
    %130 = arith.divf %128, %129 : vector<8x64xf32>
    %131 = arith.mulf %124, %130 : vector<8x64xf32>
    %cst_82 = arith.constant 1.000000e-01 : f32
    %132 = vector.broadcast %cst_82 : f32 to vector<8x64xf32>
    %133 = arith.mulf %132, %131 : vector<8x64xf32>
    %cst_83 = arith.constant dense<0.000000e+00> : vector<8x64xf32>
    %134 = tpu.matmul %0, %131, %cst_83 {dimension_numbers = #tpu.dot_dimension_numbers<[1], [0], [0], [1], [0, 0, 1, 1], [], []>} : vector<8x8xf32>, vector<8x64xf32>, vector<8x64xf32> -> vector<8x64xf32>
    %cst_84 = arith.constant 0.899999976 : f32
    %135 = vector.broadcast %cst_84 : f32 to vector<8x64xf32>
    %136 = arith.mulf %135, %134 : vector<8x64xf32>
    %137 = arith.addf %133, %136 : vector<8x64xf32>
    %cst_85 = arith.constant 1.000000e-01 : f32
    %138 = vector.broadcast %cst_85 : f32 to vector<8x64xf32>
    %139 = arith.mulf %138, %131 : vector<8x64xf32>
    %cst_86 = arith.constant dense<0.000000e+00> : vector<8x64xf32>
    %140 = tpu.matmul %1, %131, %cst_86 {dimension_numbers = #tpu.dot_dimension_numbers<[1], [0], [0], [1], [0, 0, 1, 1], [], []>} : vector<8x8xf32>, vector<8x64xf32>, vector<8x64xf32> -> vector<8x64xf32>
    %cst_87 = arith.constant 0.899999976 : f32
    %141 = vector.broadcast %cst_87 : f32 to vector<8x64xf32>
    %142 = arith.mulf %141, %140 : vector<8x64xf32>
    %143 = arith.addf %139, %142 : vector<8x64xf32>
    %cst_88 = arith.constant 1.000000e-01 : f32
    %144 = vector.broadcast %cst_88 : f32 to vector<8x64xf32>
    %145 = arith.mulf %144, %131 : vector<8x64xf32>
    %cst_89 = arith.constant dense<0.000000e+00> : vector<8x64xf32>
    %146 = tpu.matmul %0, %137, %cst_89 {dimension_numbers = #tpu.dot_dimension_numbers<[1], [0], [0], [1], [0, 0, 1, 1], [], []>} : vector<8x8xf32>, vector<8x64xf32>, vector<8x64xf32> -> vector<8x64xf32>
    %cst_90 = arith.constant 0.899999976 : f32
    %147 = vector.broadcast %cst_90 : f32 to vector<8x64xf32>
    %148 = arith.mulf %147, %146 : vector<8x64xf32>
    %149 = arith.addf %145, %148 : vector<8x64xf32>
    %cst_91 = arith.constant 1.000000e-01 : f32
    %150 = vector.broadcast %cst_91 : f32 to vector<8x64xf32>
    %151 = arith.mulf %150, %131 : vector<8x64xf32>
    %cst_92 = arith.constant dense<0.000000e+00> : vector<8x64xf32>
    %152 = tpu.matmul %1, %143, %cst_92 {dimension_numbers = #tpu.dot_dimension_numbers<[1], [0], [0], [1], [0, 0, 1, 1], [], []>} : vector<8x8xf32>, vector<8x64xf32>, vector<8x64xf32> -> vector<8x64xf32>
    %cst_93 = arith.constant 0.899999976 : f32
    %153 = vector.broadcast %cst_93 : f32 to vector<8x64xf32>
    %154 = arith.mulf %153, %152 : vector<8x64xf32>
    %155 = arith.addf %151, %154 : vector<8x64xf32>
    %c1_94 = arith.constant 1 : index
    %c0_95 = arith.constant 0 : index
    %c0_96 = arith.constant 0 : index
    %156 = vector.load %arg6[%c1_94, %c0_95, %c0_96] : memref<9x64x64xf32, #tpu.memory_space<vmem>>, vector<1x64x64xf32>
    %157 = vector.shape_cast %156 : vector<1x64x64xf32> to vector<64x64xf32>
    %cst_97 = arith.constant dense<0.000000e+00> : vector<8x64xf32>
    %158 = tpu.matmul %149, %157, %cst_97 {dimension_numbers = #tpu.dot_dimension_numbers<[1], [0], [0], [1], [0, 0, 1, 1], [], []>} : vector<8x64xf32>, vector<64x64xf32>, vector<8x64xf32> -> vector<8x64xf32>
    %c1_98 = arith.constant 1 : index
    %c0_99 = arith.constant 0 : index
    %c0_100 = arith.constant 0 : index
    %159 = vector.load %arg7[%c1_98, %c0_99, %c0_100] : memref<9x64x64xf32, #tpu.memory_space<vmem>>, vector<1x64x64xf32>
    %160 = vector.shape_cast %159 : vector<1x64x64xf32> to vector<64x64xf32>
    %cst_101 = arith.constant dense<0.000000e+00> : vector<8x64xf32>
    %161 = tpu.matmul %155, %160, %cst_101 {dimension_numbers = #tpu.dot_dimension_numbers<[1], [0], [0], [1], [0, 0, 1, 1], [], []>} : vector<8x64xf32>, vector<64x64xf32>, vector<8x64xf32> -> vector<8x64xf32>
    %162 = arith.addf %158, %161 : vector<8x64xf32>
    %c1_102 = arith.constant 1 : index
    %c0_103 = arith.constant 0 : index
    %c0_104 = arith.constant 0 : index
    %163 = vector.load %arg8[%c1_102, %c0_103, %c0_104] : memref<9x1x64xf32, #tpu.memory_space<vmem>>, vector<1x1x64xf32>
    %164 = vector.shape_cast %163 : vector<1x1x64xf32> to vector<1x64xf32>
    %165 = vector.broadcast %164 : vector<1x64xf32> to vector<8x64xf32>
    %166 = arith.addf %162, %165 : vector<8x64xf32>
    %167 = vector.shape_cast %166 : vector<8x64xf32> to vector<1x8x64xf32>
    %cst_105 = arith.constant dense<0.000000e+00> : vector<1xf32>
    %168 = vector.multi_reduction <add>, %167, %cst_105 [1, 2] : vector<1x8x64xf32> to vector<1xf32>
    %169 = vector.shape_cast %168 : vector<1xf32> to vector<1x1x1xf32>
    %170 = vector.extract %169[0, 0, 0] : f32 from vector<1x1x1xf32>
    %171 = vector.broadcast %170 : f32 to vector<1x1xf32>
    %cst_106 = arith.constant 5.120000e+02 : f32
    %172 = vector.broadcast %cst_106 : f32 to vector<1x1xf32>
    %173 = arith.divf %171, %172 : vector<1x1xf32>
    %174 = vector.broadcast %173 : vector<1x1xf32> to vector<8x64xf32>
    %175 = arith.subf %166, %174 : vector<8x64xf32>
    %176 = arith.mulf %175, %175 : vector<8x64xf32>
    %177 = vector.shape_cast %176 : vector<8x64xf32> to vector<1x8x64xf32>
    %cst_107 = arith.constant dense<0.000000e+00> : vector<1xf32>
    %178 = vector.multi_reduction <add>, %177, %cst_107 [1, 2] : vector<1x8x64xf32> to vector<1xf32>
    %179 = vector.shape_cast %178 : vector<1xf32> to vector<1x1x1xf32>
    %180 = vector.extract %179[0, 0, 0] : f32 from vector<1x1x1xf32>
    %181 = vector.broadcast %180 : f32 to vector<1x1xf32>
    %cst_108 = arith.constant 5.120000e+02 : f32
    %182 = vector.broadcast %cst_108 : f32 to vector<1x1xf32>
    %183 = arith.divf %181, %182 : vector<1x1xf32>
    %cst_109 = arith.constant 9.99999974E-6 : f32
    %184 = vector.broadcast %cst_109 : f32 to vector<1x1xf32>
    %185 = arith.addf %183, %184 : vector<1x1xf32>
    %186 = math.rsqrt %185 : vector<1x1xf32>
    %187 = vector.broadcast %186 : vector<1x1xf32> to vector<8x64xf32>
    %188 = arith.mulf %175, %187 : vector<8x64xf32>
    %189 = vector.extract_strided_slice %188 {offsets = [0, 0], sizes = [8, 32], strides = [1, 1]} : vector<8x64xf32> to vector<8x32xf32>
    %190 = vector.extract_strided_slice %188 {offsets = [0, 32], sizes = [8, 32], strides = [1, 1]} : vector<8x64xf32> to vector<8x32xf32>
    %191 = tpu.concatenate %189, %190 in 0 : vector<8x32xf32>, vector<8x32xf32> -> vector<16x32xf32>
    %c1_110 = arith.constant 1 : index
    %c0_111 = arith.constant 0 : index
    %c0_112 = arith.constant 0 : index
    %192 = vector.load %arg9[%c1_110, %c0_111, %c0_112] : memref<9x32x256xf32, #tpu.memory_space<vmem>>, vector<1x32x256xf32>
    %193 = vector.shape_cast %192 : vector<1x32x256xf32> to vector<32x256xf32>
    %cst_113 = arith.constant dense<0.000000e+00> : vector<16x256xf32>
    %194 = tpu.matmul %191, %193, %cst_113 {dimension_numbers = #tpu.dot_dimension_numbers<[1], [0], [0], [1], [0, 0, 1, 1], [], []>} : vector<16x32xf32>, vector<32x256xf32>, vector<16x256xf32> -> vector<16x256xf32>
    %c1_114 = arith.constant 1 : index
    %c0_115 = arith.constant 0 : index
    %c0_116 = arith.constant 0 : index
    %195 = vector.load %arg10[%c1_114, %c0_115, %c0_116] : memref<9x1x256xf32, #tpu.memory_space<vmem>>, vector<1x1x256xf32>
    %196 = vector.shape_cast %195 : vector<1x1x256xf32> to vector<1x256xf32>
    %197 = vector.broadcast %196 : vector<1x256xf32> to vector<16x256xf32>
    %198 = arith.addf %194, %197 : vector<16x256xf32>
    %cst_117 = arith.constant 0.000000e+00 : f32
    %199 = vector.broadcast %cst_117 : f32 to vector<16x256xf32>
    %200 = arith.maximumf %198, %199 : vector<16x256xf32>
    %c1_118 = arith.constant 1 : index
    %c0_119 = arith.constant 0 : index
    %c0_120 = arith.constant 0 : index
    %201 = vector.load %arg11[%c1_118, %c0_119, %c0_120] : memref<9x256x24xf32, #tpu.memory_space<vmem>>, vector<1x256x24xf32>
    %202 = vector.shape_cast %201 : vector<1x256x24xf32> to vector<256x24xf32>
    %cst_121 = arith.constant dense<0.000000e+00> : vector<16x24xf32>
    %203 = tpu.matmul %200, %202, %cst_121 {dimension_numbers = #tpu.dot_dimension_numbers<[1], [0], [0], [1], [0, 0, 1, 1], [], []>} : vector<16x256xf32>, vector<256x24xf32>, vector<16x24xf32> -> vector<16x24xf32>
    %c1_122 = arith.constant 1 : index
    %c0_123 = arith.constant 0 : index
    %c0_124 = arith.constant 0 : index
    %204 = vector.load %arg12[%c1_122, %c0_123, %c0_124] : memref<9x1x24xf32, #tpu.memory_space<vmem>>, vector<1x1x24xf32>
    %205 = vector.shape_cast %204 : vector<1x1x24xf32> to vector<1x24xf32>
    %206 = vector.broadcast %205 : vector<1x24xf32> to vector<16x24xf32>
    %207 = arith.addf %203, %206 : vector<16x24xf32>
    %208 = vector.extract_strided_slice %207 {offsets = [0, 0], sizes = [8, 12], strides = [1, 1]} : vector<16x24xf32> to vector<8x12xf32>
    %209 = arith.subf %105, %208 : vector<8x12xf32>
    %210 = vector.extract_strided_slice %207 {offsets = [0, 12], sizes = [8, 12], strides = [1, 1]} : vector<16x24xf32> to vector<8x12xf32>
    %211 = arith.addf %107, %210 : vector<8x12xf32>
    %212 = vector.extract_strided_slice %207 {offsets = [8, 0], sizes = [8, 12], strides = [1, 1]} : vector<16x24xf32> to vector<8x12xf32>
    %213 = arith.subf %109, %212 : vector<8x12xf32>
    %214 = vector.extract_strided_slice %207 {offsets = [8, 12], sizes = [8, 12], strides = [1, 1]} : vector<16x24xf32> to vector<8x12xf32>
    %215 = arith.addf %111, %214 : vector<8x12xf32>
    %c2 = arith.constant 2 : index
    %c0_125 = arith.constant 0 : index
    %c0_126 = arith.constant 0 : index
    %216 = vector.load %arg5[%c2, %c0_125, %c0_126] : memref<9x1x128xf32, #tpu.memory_space<vmem>>, vector<1x1x128xf32>
    %217 = vector.shape_cast %216 : vector<1x1x128xf32> to vector<1x128xf32>
    %c2_127 = arith.constant 2 : index
    %c0_128 = arith.constant 0 : index
    %c0_129 = arith.constant 0 : index
    %c0_130 = arith.constant 0 : index
    %218 = vector.load %arg4[%c2_127, %c0_128, %c0_129, %c0_130] : memref<9x2x12x128xf32, #tpu.memory_space<vmem>>, vector<1x1x12x128xf32>
    %219 = vector.shape_cast %218 : vector<1x1x12x128xf32> to vector<12x128xf32>
    %cst_131 = arith.constant dense<0.000000e+00> : vector<8x128xf32>
    %220 = tpu.matmul %209, %219, %cst_131 {dimension_numbers = #tpu.dot_dimension_numbers<[1], [0], [0], [1], [0, 0, 1, 1], [], []>} : vector<8x12xf32>, vector<12x128xf32>, vector<8x128xf32> -> vector<8x128xf32>
    %221 = vector.broadcast %217 : vector<1x128xf32> to vector<8x128xf32>
    %222 = arith.addf %221, %220 : vector<8x128xf32>
    %c2_132 = arith.constant 2 : index
    %c1_133 = arith.constant 1 : index
    %c0_134 = arith.constant 0 : index
    %c0_135 = arith.constant 0 : index
    %223 = vector.load %arg4[%c2_132, %c1_133, %c0_134, %c0_135] : memref<9x2x12x128xf32, #tpu.memory_space<vmem>>, vector<1x1x12x128xf32>
    %224 = vector.shape_cast %223 : vector<1x1x12x128xf32> to vector<12x128xf32>
    %cst_136 = arith.constant dense<0.000000e+00> : vector<8x128xf32>
    %225 = tpu.matmul %213, %224, %cst_136 {dimension_numbers = #tpu.dot_dimension_numbers<[1], [0], [0], [1], [0, 0, 1, 1], [], []>} : vector<8x12xf32>, vector<12x128xf32>, vector<8x128xf32> -> vector<8x128xf32>
    %226 = arith.addf %222, %225 : vector<8x128xf32>
    %227 = vector.extract_strided_slice %226 {offsets = [0, 0], sizes = [8, 64], strides = [1, 1]} : vector<8x128xf32> to vector<8x64xf32>
    %228 = math.tanh %227 : vector<8x64xf32>
    %229 = vector.extract_strided_slice %226 {offsets = [0, 64], sizes = [8, 64], strides = [1, 1]} : vector<8x128xf32> to vector<8x64xf32>
    %230 = arith.negf %229 : vector<8x64xf32>
    %231 = math.exp %230 : vector<8x64xf32>
    %cst_137 = arith.constant 1.000000e+00 : f32
    %232 = vector.broadcast %cst_137 : f32 to vector<8x64xf32>
    %233 = arith.addf %232, %231 : vector<8x64xf32>
    %234 = arith.divf %232, %233 : vector<8x64xf32>
    %235 = arith.mulf %228, %234 : vector<8x64xf32>
    %cst_138 = arith.constant 1.000000e-01 : f32
    %236 = vector.broadcast %cst_138 : f32 to vector<8x64xf32>
    %237 = arith.mulf %236, %235 : vector<8x64xf32>
    %cst_139 = arith.constant dense<0.000000e+00> : vector<8x64xf32>
    %238 = tpu.matmul %0, %235, %cst_139 {dimension_numbers = #tpu.dot_dimension_numbers<[1], [0], [0], [1], [0, 0, 1, 1], [], []>} : vector<8x8xf32>, vector<8x64xf32>, vector<8x64xf32> -> vector<8x64xf32>
    %cst_140 = arith.constant 0.899999976 : f32
    %239 = vector.broadcast %cst_140 : f32 to vector<8x64xf32>
    %240 = arith.mulf %239, %238 : vector<8x64xf32>
    %241 = arith.addf %237, %240 : vector<8x64xf32>
    %cst_141 = arith.constant 1.000000e-01 : f32
    %242 = vector.broadcast %cst_141 : f32 to vector<8x64xf32>
    %243 = arith.mulf %242, %235 : vector<8x64xf32>
    %cst_142 = arith.constant dense<0.000000e+00> : vector<8x64xf32>
    %244 = tpu.matmul %1, %235, %cst_142 {dimension_numbers = #tpu.dot_dimension_numbers<[1], [0], [0], [1], [0, 0, 1, 1], [], []>} : vector<8x8xf32>, vector<8x64xf32>, vector<8x64xf32> -> vector<8x64xf32>
    %cst_143 = arith.constant 0.899999976 : f32
    %245 = vector.broadcast %cst_143 : f32 to vector<8x64xf32>
    %246 = arith.mulf %245, %244 : vector<8x64xf32>
    %247 = arith.addf %243, %246 : vector<8x64xf32>
    %cst_144 = arith.constant 1.000000e-01 : f32
    %248 = vector.broadcast %cst_144 : f32 to vector<8x64xf32>
    %249 = arith.mulf %248, %235 : vector<8x64xf32>
    %cst_145 = arith.constant dense<0.000000e+00> : vector<8x64xf32>
    %250 = tpu.matmul %0, %241, %cst_145 {dimension_numbers = #tpu.dot_dimension_numbers<[1], [0], [0], [1], [0, 0, 1, 1], [], []>} : vector<8x8xf32>, vector<8x64xf32>, vector<8x64xf32> -> vector<8x64xf32>
    %cst_146 = arith.constant 0.899999976 : f32
    %251 = vector.broadcast %cst_146 : f32 to vector<8x64xf32>
    %252 = arith.mulf %251, %250 : vector<8x64xf32>
    %253 = arith.addf %249, %252 : vector<8x64xf32>
    %cst_147 = arith.constant 1.000000e-01 : f32
    %254 = vector.broadcast %cst_147 : f32 to vector<8x64xf32>
    %255 = arith.mulf %254, %235 : vector<8x64xf32>
    %cst_148 = arith.constant dense<0.000000e+00> : vector<8x64xf32>
    %256 = tpu.matmul %1, %247, %cst_148 {dimension_numbers = #tpu.dot_dimension_numbers<[1], [0], [0], [1], [0, 0, 1, 1], [], []>} : vector<8x8xf32>, vector<8x64xf32>, vector<8x64xf32> -> vector<8x64xf32>
    %cst_149 = arith.constant 0.899999976 : f32
    %257 = vector.broadcast %cst_149 : f32 to vector<8x64xf32>
    %258 = arith.mulf %257, %256 : vector<8x64xf32>
    %259 = arith.addf %255, %258 : vector<8x64xf32>
    %c2_150 = arith.constant 2 : index
    %c0_151 = arith.constant 0 : index
    %c0_152 = arith.constant 0 : index
    %260 = vector.load %arg6[%c2_150, %c0_151, %c0_152] : memref<9x64x64xf32, #tpu.memory_space<vmem>>, vector<1x64x64xf32>
    %261 = vector.shape_cast %260 : vector<1x64x64xf32> to vector<64x64xf32>
    %cst_153 = arith.constant dense<0.000000e+00> : vector<8x64xf32>
    %262 = tpu.matmul %253, %261, %cst_153 {dimension_numbers = #tpu.dot_dimension_numbers<[1], [0], [0], [1], [0, 0, 1, 1], [], []>} : vector<8x64xf32>, vector<64x64xf32>, vector<8x64xf32> -> vector<8x64xf32>
    %c2_154 = arith.constant 2 : index
    %c0_155 = arith.constant 0 : index
    %c0_156 = arith.constant 0 : index
    %263 = vector.load %arg7[%c2_154, %c0_155, %c0_156] : memref<9x64x64xf32, #tpu.memory_space<vmem>>, vector<1x64x64xf32>
    %264 = vector.shape_cast %263 : vector<1x64x64xf32> to vector<64x64xf32>
    %cst_157 = arith.constant dense<0.000000e+00> : vector<8x64xf32>
    %265 = tpu.matmul %259, %264, %cst_157 {dimension_numbers = #tpu.dot_dimension_numbers<[1], [0], [0], [1], [0, 0, 1, 1], [], []>} : vector<8x64xf32>, vector<64x64xf32>, vector<8x64xf32> -> vector<8x64xf32>
    %266 = arith.addf %262, %265 : vector<8x64xf32>
    %c2_158 = arith.constant 2 : index
    %c0_159 = arith.constant 0 : index
    %c0_160 = arith.constant 0 : index
    %267 = vector.load %arg8[%c2_158, %c0_159, %c0_160] : memref<9x1x64xf32, #tpu.memory_space<vmem>>, vector<1x1x64xf32>
    %268 = vector.shape_cast %267 : vector<1x1x64xf32> to vector<1x64xf32>
    %269 = vector.broadcast %268 : vector<1x64xf32> to vector<8x64xf32>
    %270 = arith.addf %266, %269 : vector<8x64xf32>
    %271 = vector.shape_cast %270 : vector<8x64xf32> to vector<1x8x64xf32>
    %cst_161 = arith.constant dense<0.000000e+00> : vector<1xf32>
    %272 = vector.multi_reduction <add>, %271, %cst_161 [1, 2] : vector<1x8x64xf32> to vector<1xf32>
    %273 = vector.shape_cast %272 : vector<1xf32> to vector<1x1x1xf32>
    %274 = vector.extract %273[0, 0, 0] : f32 from vector<1x1x1xf32>
    %275 = vector.broadcast %274 : f32 to vector<1x1xf32>
    %cst_162 = arith.constant 5.120000e+02 : f32
    %276 = vector.broadcast %cst_162 : f32 to vector<1x1xf32>
    %277 = arith.divf %275, %276 : vector<1x1xf32>
    %278 = vector.broadcast %277 : vector<1x1xf32> to vector<8x64xf32>
    %279 = arith.subf %270, %278 : vector<8x64xf32>
    %280 = arith.mulf %279, %279 : vector<8x64xf32>
    %281 = vector.shape_cast %280 : vector<8x64xf32> to vector<1x8x64xf32>
    %cst_163 = arith.constant dense<0.000000e+00> : vector<1xf32>
    %282 = vector.multi_reduction <add>, %281, %cst_163 [1, 2] : vector<1x8x64xf32> to vector<1xf32>
    %283 = vector.shape_cast %282 : vector<1xf32> to vector<1x1x1xf32>
    %284 = vector.extract %283[0, 0, 0] : f32 from vector<1x1x1xf32>
    %285 = vector.broadcast %284 : f32 to vector<1x1xf32>
    %cst_164 = arith.constant 5.120000e+02 : f32
    %286 = vector.broadcast %cst_164 : f32 to vector<1x1xf32>
    %287 = arith.divf %285, %286 : vector<1x1xf32>
    %cst_165 = arith.constant 9.99999974E-6 : f32
    %288 = vector.broadcast %cst_165 : f32 to vector<1x1xf32>
    %289 = arith.addf %287, %288 : vector<1x1xf32>
    %290 = math.rsqrt %289 : vector<1x1xf32>
    %291 = vector.broadcast %290 : vector<1x1xf32> to vector<8x64xf32>
    %292 = arith.mulf %279, %291 : vector<8x64xf32>
    %293 = vector.extract_strided_slice %292 {offsets = [0, 0], sizes = [8, 32], strides = [1, 1]} : vector<8x64xf32> to vector<8x32xf32>
    %294 = vector.extract_strided_slice %292 {offsets = [0, 32], sizes = [8, 32], strides = [1, 1]} : vector<8x64xf32> to vector<8x32xf32>
    %295 = tpu.concatenate %293, %294 in 0 : vector<8x32xf32>, vector<8x32xf32> -> vector<16x32xf32>
    %c2_166 = arith.constant 2 : index
    %c0_167 = arith.constant 0 : index
    %c0_168 = arith.constant 0 : index
    %296 = vector.load %arg9[%c2_166, %c0_167, %c0_168] : memref<9x32x256xf32, #tpu.memory_space<vmem>>, vector<1x32x256xf32>
    %297 = vector.shape_cast %296 : vector<1x32x256xf32> to vector<32x256xf32>
    %cst_169 = arith.constant dense<0.000000e+00> : vector<16x256xf32>
    %298 = tpu.matmul %295, %297, %cst_169 {dimension_numbers = #tpu.dot_dimension_numbers<[1], [0], [0], [1], [0, 0, 1, 1], [], []>} : vector<16x32xf32>, vector<32x256xf32>, vector<16x256xf32> -> vector<16x256xf32>
    %c2_170 = arith.constant 2 : index
    %c0_171 = arith.constant 0 : index
    %c0_172 = arith.constant 0 : index
    %299 = vector.load %arg10[%c2_170, %c0_171, %c0_172] : memref<9x1x256xf32, #tpu.memory_space<vmem>>, vector<1x1x256xf32>
    %300 = vector.shape_cast %299 : vector<1x1x256xf32> to vector<1x256xf32>
    %301 = vector.broadcast %300 : vector<1x256xf32> to vector<16x256xf32>
    %302 = arith.addf %298, %301 : vector<16x256xf32>
    %cst_173 = arith.constant 0.000000e+00 : f32
    %303 = vector.broadcast %cst_173 : f32 to vector<16x256xf32>
    %304 = arith.maximumf %302, %303 : vector<16x256xf32>
    %c2_174 = arith.constant 2 : index
    %c0_175 = arith.constant 0 : index
    %c0_176 = arith.constant 0 : index
    %305 = vector.load %arg11[%c2_174, %c0_175, %c0_176] : memref<9x256x24xf32, #tpu.memory_space<vmem>>, vector<1x256x24xf32>
    %306 = vector.shape_cast %305 : vector<1x256x24xf32> to vector<256x24xf32>
    %cst_177 = arith.constant dense<0.000000e+00> : vector<16x24xf32>
    %307 = tpu.matmul %304, %306, %cst_177 {dimension_numbers = #tpu.dot_dimension_numbers<[1], [0], [0], [1], [0, 0, 1, 1], [], []>} : vector<16x256xf32>, vector<256x24xf32>, vector<16x24xf32> -> vector<16x24xf32>
    %c2_178 = arith.constant 2 : index
    %c0_179 = arith.constant 0 : index
    %c0_180 = arith.constant 0 : index
    %308 = vector.load %arg12[%c2_178, %c0_179, %c0_180] : memref<9x1x24xf32, #tpu.memory_space<vmem>>, vector<1x1x24xf32>
    %309 = vector.shape_cast %308 : vector<1x1x24xf32> to vector<1x24xf32>
    %310 = vector.broadcast %309 : vector<1x24xf32> to vector<16x24xf32>
    %311 = arith.addf %307, %310 : vector<16x24xf32>
    %312 = vector.extract_strided_slice %311 {offsets = [0, 0], sizes = [8, 12], strides = [1, 1]} : vector<16x24xf32> to vector<8x12xf32>
    %313 = arith.subf %209, %312 : vector<8x12xf32>
    %314 = vector.extract_strided_slice %311 {offsets = [0, 12], sizes = [8, 12], strides = [1, 1]} : vector<16x24xf32> to vector<8x12xf32>
    %315 = arith.addf %211, %314 : vector<8x12xf32>
    %316 = vector.extract_strided_slice %311 {offsets = [8, 0], sizes = [8, 12], strides = [1, 1]} : vector<16x24xf32> to vector<8x12xf32>
    %317 = arith.subf %213, %316 : vector<8x12xf32>
    %318 = vector.extract_strided_slice %311 {offsets = [8, 12], sizes = [8, 12], strides = [1, 1]} : vector<16x24xf32> to vector<8x12xf32>
    %319 = arith.addf %215, %318 : vector<8x12xf32>
    %c3 = arith.constant 3 : index
    %c0_181 = arith.constant 0 : index
    %c0_182 = arith.constant 0 : index
    %320 = vector.load %arg5[%c3, %c0_181, %c0_182] : memref<9x1x128xf32, #tpu.memory_space<vmem>>, vector<1x1x128xf32>
    %321 = vector.shape_cast %320 : vector<1x1x128xf32> to vector<1x128xf32>
    %c3_183 = arith.constant 3 : index
    %c0_184 = arith.constant 0 : index
    %c0_185 = arith.constant 0 : index
    %c0_186 = arith.constant 0 : index
    %322 = vector.load %arg4[%c3_183, %c0_184, %c0_185, %c0_186] : memref<9x2x12x128xf32, #tpu.memory_space<vmem>>, vector<1x1x12x128xf32>
    %323 = vector.shape_cast %322 : vector<1x1x12x128xf32> to vector<12x128xf32>
    %cst_187 = arith.constant dense<0.000000e+00> : vector<8x128xf32>
    %324 = tpu.matmul %313, %323, %cst_187 {dimension_numbers = #tpu.dot_dimension_numbers<[1], [0], [0], [1], [0, 0, 1, 1], [], []>} : vector<8x12xf32>, vector<12x128xf32>, vector<8x128xf32> -> vector<8x128xf32>
    %325 = vector.broadcast %321 : vector<1x128xf32> to vector<8x128xf32>
    %326 = arith.addf %325, %324 : vector<8x128xf32>
    %c3_188 = arith.constant 3 : index
    %c1_189 = arith.constant 1 : index
    %c0_190 = arith.constant 0 : index
    %c0_191 = arith.constant 0 : index
    %327 = vector.load %arg4[%c3_188, %c1_189, %c0_190, %c0_191] : memref<9x2x12x128xf32, #tpu.memory_space<vmem>>, vector<1x1x12x128xf32>
    %328 = vector.shape_cast %327 : vector<1x1x12x128xf32> to vector<12x128xf32>
    %cst_192 = arith.constant dense<0.000000e+00> : vector<8x128xf32>
    %329 = tpu.matmul %317, %328, %cst_192 {dimension_numbers = #tpu.dot_dimension_numbers<[1], [0], [0], [1], [0, 0, 1, 1], [], []>} : vector<8x12xf32>, vector<12x128xf32>, vector<8x128xf32> -> vector<8x128xf32>
    %330 = arith.addf %326, %329 : vector<8x128xf32>
    %331 = vector.extract_strided_slice %330 {offsets = [0, 0], sizes = [8, 64], strides = [1, 1]} : vector<8x128xf32> to vector<8x64xf32>
    %332 = math.tanh %331 : vector<8x64xf32>
    %333 = vector.extract_strided_slice %330 {offsets = [0, 64], sizes = [8, 64], strides = [1, 1]} : vector<8x128xf32> to vector<8x64xf32>
    %334 = arith.negf %333 : vector<8x64xf32>
    %335 = math.exp %334 : vector<8x64xf32>
    %cst_193 = arith.constant 1.000000e+00 : f32
    %336 = vector.broadcast %cst_193 : f32 to vector<8x64xf32>
    %337 = arith.addf %336, %335 : vector<8x64xf32>
    %338 = arith.divf %336, %337 : vector<8x64xf32>
    %339 = arith.mulf %332, %338 : vector<8x64xf32>
    %cst_194 = arith.constant 1.000000e-01 : f32
    %340 = vector.broadcast %cst_194 : f32 to vector<8x64xf32>
    %341 = arith.mulf %340, %339 : vector<8x64xf32>
    %cst_195 = arith.constant dense<0.000000e+00> : vector<8x64xf32>
    %342 = tpu.matmul %0, %339, %cst_195 {dimension_numbers = #tpu.dot_dimension_numbers<[1], [0], [0], [1], [0, 0, 1, 1], [], []>} : vector<8x8xf32>, vector<8x64xf32>, vector<8x64xf32> -> vector<8x64xf32>
    %cst_196 = arith.constant 0.899999976 : f32
    %343 = vector.broadcast %cst_196 : f32 to vector<8x64xf32>
    %344 = arith.mulf %343, %342 : vector<8x64xf32>
    %345 = arith.addf %341, %344 : vector<8x64xf32>
    %cst_197 = arith.constant 1.000000e-01 : f32
    %346 = vector.broadcast %cst_197 : f32 to vector<8x64xf32>
    %347 = arith.mulf %346, %339 : vector<8x64xf32>
    %cst_198 = arith.constant dense<0.000000e+00> : vector<8x64xf32>
    %348 = tpu.matmul %1, %339, %cst_198 {dimension_numbers = #tpu.dot_dimension_numbers<[1], [0], [0], [1], [0, 0, 1, 1], [], []>} : vector<8x8xf32>, vector<8x64xf32>, vector<8x64xf32> -> vector<8x64xf32>
    %cst_199 = arith.constant 0.899999976 : f32
    %349 = vector.broadcast %cst_199 : f32 to vector<8x64xf32>
    %350 = arith.mulf %349, %348 : vector<8x64xf32>
    %351 = arith.addf %347, %350 : vector<8x64xf32>
    %cst_200 = arith.constant 1.000000e-01 : f32
    %352 = vector.broadcast %cst_200 : f32 to vector<8x64xf32>
    %353 = arith.mulf %352, %339 : vector<8x64xf32>
    %cst_201 = arith.constant dense<0.000000e+00> : vector<8x64xf32>
    %354 = tpu.matmul %0, %345, %cst_201 {dimension_numbers = #tpu.dot_dimension_numbers<[1], [0], [0], [1], [0, 0, 1, 1], [], []>} : vector<8x8xf32>, vector<8x64xf32>, vector<8x64xf32> -> vector<8x64xf32>
    %cst_202 = arith.constant 0.899999976 : f32
    %355 = vector.broadcast %cst_202 : f32 to vector<8x64xf32>
    %356 = arith.mulf %355, %354 : vector<8x64xf32>
    %357 = arith.addf %353, %356 : vector<8x64xf32>
    %cst_203 = arith.constant 1.000000e-01 : f32
    %358 = vector.broadcast %cst_203 : f32 to vector<8x64xf32>
    %359 = arith.mulf %358, %339 : vector<8x64xf32>
    %cst_204 = arith.constant dense<0.000000e+00> : vector<8x64xf32>
    %360 = tpu.matmul %1, %351, %cst_204 {dimension_numbers = #tpu.dot_dimension_numbers<[1], [0], [0], [1], [0, 0, 1, 1], [], []>} : vector<8x8xf32>, vector<8x64xf32>, vector<8x64xf32> -> vector<8x64xf32>
    %cst_205 = arith.constant 0.899999976 : f32
    %361 = vector.broadcast %cst_205 : f32 to vector<8x64xf32>
    %362 = arith.mulf %361, %360 : vector<8x64xf32>
    %363 = arith.addf %359, %362 : vector<8x64xf32>
    %c3_206 = arith.constant 3 : index
    %c0_207 = arith.constant 0 : index
    %c0_208 = arith.constant 0 : index
    %364 = vector.load %arg6[%c3_206, %c0_207, %c0_208] : memref<9x64x64xf32, #tpu.memory_space<vmem>>, vector<1x64x64xf32>
    %365 = vector.shape_cast %364 : vector<1x64x64xf32> to vector<64x64xf32>
    %cst_209 = arith.constant dense<0.000000e+00> : vector<8x64xf32>
    %366 = tpu.matmul %357, %365, %cst_209 {dimension_numbers = #tpu.dot_dimension_numbers<[1], [0], [0], [1], [0, 0, 1, 1], [], []>} : vector<8x64xf32>, vector<64x64xf32>, vector<8x64xf32> -> vector<8x64xf32>
    %c3_210 = arith.constant 3 : index
    %c0_211 = arith.constant 0 : index
    %c0_212 = arith.constant 0 : index
    %367 = vector.load %arg7[%c3_210, %c0_211, %c0_212] : memref<9x64x64xf32, #tpu.memory_space<vmem>>, vector<1x64x64xf32>
    %368 = vector.shape_cast %367 : vector<1x64x64xf32> to vector<64x64xf32>
    %cst_213 = arith.constant dense<0.000000e+00> : vector<8x64xf32>
    %369 = tpu.matmul %363, %368, %cst_213 {dimension_numbers = #tpu.dot_dimension_numbers<[1], [0], [0], [1], [0, 0, 1, 1], [], []>} : vector<8x64xf32>, vector<64x64xf32>, vector<8x64xf32> -> vector<8x64xf32>
    %370 = arith.addf %366, %369 : vector<8x64xf32>
    %c3_214 = arith.constant 3 : index
    %c0_215 = arith.constant 0 : index
    %c0_216 = arith.constant 0 : index
    %371 = vector.load %arg8[%c3_214, %c0_215, %c0_216] : memref<9x1x64xf32, #tpu.memory_space<vmem>>, vector<1x1x64xf32>
    %372 = vector.shape_cast %371 : vector<1x1x64xf32> to vector<1x64xf32>
    %373 = vector.broadcast %372 : vector<1x64xf32> to vector<8x64xf32>
    %374 = arith.addf %370, %373 : vector<8x64xf32>
    %375 = vector.shape_cast %374 : vector<8x64xf32> to vector<1x8x64xf32>
    %cst_217 = arith.constant dense<0.000000e+00> : vector<1xf32>
    %376 = vector.multi_reduction <add>, %375, %cst_217 [1, 2] : vector<1x8x64xf32> to vector<1xf32>
    %377 = vector.shape_cast %376 : vector<1xf32> to vector<1x1x1xf32>
    %378 = vector.extract %377[0, 0, 0] : f32 from vector<1x1x1xf32>
    %379 = vector.broadcast %378 : f32 to vector<1x1xf32>
    %cst_218 = arith.constant 5.120000e+02 : f32
    %380 = vector.broadcast %cst_218 : f32 to vector<1x1xf32>
    %381 = arith.divf %379, %380 : vector<1x1xf32>
    %382 = vector.broadcast %381 : vector<1x1xf32> to vector<8x64xf32>
    %383 = arith.subf %374, %382 : vector<8x64xf32>
    %384 = arith.mulf %383, %383 : vector<8x64xf32>
    %385 = vector.shape_cast %384 : vector<8x64xf32> to vector<1x8x64xf32>
    %cst_219 = arith.constant dense<0.000000e+00> : vector<1xf32>
    %386 = vector.multi_reduction <add>, %385, %cst_219 [1, 2] : vector<1x8x64xf32> to vector<1xf32>
    %387 = vector.shape_cast %386 : vector<1xf32> to vector<1x1x1xf32>
    %388 = vector.extract %387[0, 0, 0] : f32 from vector<1x1x1xf32>
    %389 = vector.broadcast %388 : f32 to vector<1x1xf32>
    %cst_220 = arith.constant 5.120000e+02 : f32
    %390 = vector.broadcast %cst_220 : f32 to vector<1x1xf32>
    %391 = arith.divf %389, %390 : vector<1x1xf32>
    %cst_221 = arith.constant 9.99999974E-6 : f32
    %392 = vector.broadcast %cst_221 : f32 to vector<1x1xf32>
    %393 = arith.addf %391, %392 : vector<1x1xf32>
    %394 = math.rsqrt %393 : vector<1x1xf32>
    %395 = vector.broadcast %394 : vector<1x1xf32> to vector<8x64xf32>
    %396 = arith.mulf %383, %395 : vector<8x64xf32>
    %397 = vector.extract_strided_slice %396 {offsets = [0, 0], sizes = [8, 32], strides = [1, 1]} : vector<8x64xf32> to vector<8x32xf32>
    %398 = vector.extract_strided_slice %396 {offsets = [0, 32], sizes = [8, 32], strides = [1, 1]} : vector<8x64xf32> to vector<8x32xf32>
    %399 = tpu.concatenate %397, %398 in 0 : vector<8x32xf32>, vector<8x32xf32> -> vector<16x32xf32>
    %c3_222 = arith.constant 3 : index
    %c0_223 = arith.constant 0 : index
    %c0_224 = arith.constant 0 : index
    %400 = vector.load %arg9[%c3_222, %c0_223, %c0_224] : memref<9x32x256xf32, #tpu.memory_space<vmem>>, vector<1x32x256xf32>
    %401 = vector.shape_cast %400 : vector<1x32x256xf32> to vector<32x256xf32>
    %cst_225 = arith.constant dense<0.000000e+00> : vector<16x256xf32>
    %402 = tpu.matmul %399, %401, %cst_225 {dimension_numbers = #tpu.dot_dimension_numbers<[1], [0], [0], [1], [0, 0, 1, 1], [], []>} : vector<16x32xf32>, vector<32x256xf32>, vector<16x256xf32> -> vector<16x256xf32>
    %c3_226 = arith.constant 3 : index
    %c0_227 = arith.constant 0 : index
    %c0_228 = arith.constant 0 : index
    %403 = vector.load %arg10[%c3_226, %c0_227, %c0_228] : memref<9x1x256xf32, #tpu.memory_space<vmem>>, vector<1x1x256xf32>
    %404 = vector.shape_cast %403 : vector<1x1x256xf32> to vector<1x256xf32>
    %405 = vector.broadcast %404 : vector<1x256xf32> to vector<16x256xf32>
    %406 = arith.addf %402, %405 : vector<16x256xf32>
    %cst_229 = arith.constant 0.000000e+00 : f32
    %407 = vector.broadcast %cst_229 : f32 to vector<16x256xf32>
    %408 = arith.maximumf %406, %407 : vector<16x256xf32>
    %c3_230 = arith.constant 3 : index
    %c0_231 = arith.constant 0 : index
    %c0_232 = arith.constant 0 : index
    %409 = vector.load %arg11[%c3_230, %c0_231, %c0_232] : memref<9x256x24xf32, #tpu.memory_space<vmem>>, vector<1x256x24xf32>
    %410 = vector.shape_cast %409 : vector<1x256x24xf32> to vector<256x24xf32>
    %cst_233 = arith.constant dense<0.000000e+00> : vector<16x24xf32>
    %411 = tpu.matmul %408, %410, %cst_233 {dimension_numbers = #tpu.dot_dimension_numbers<[1], [0], [0], [1], [0, 0, 1, 1], [], []>} : vector<16x256xf32>, vector<256x24xf32>, vector<16x24xf32> -> vector<16x24xf32>
    %c3_234 = arith.constant 3 : index
    %c0_235 = arith.constant 0 : index
    %c0_236 = arith.constant 0 : index
    %412 = vector.load %arg12[%c3_234, %c0_235, %c0_236] : memref<9x1x24xf32, #tpu.memory_space<vmem>>, vector<1x1x24xf32>
    %413 = vector.shape_cast %412 : vector<1x1x24xf32> to vector<1x24xf32>
    %414 = vector.broadcast %413 : vector<1x24xf32> to vector<16x24xf32>
    %415 = arith.addf %411, %414 : vector<16x24xf32>
    %416 = vector.extract_strided_slice %415 {offsets = [0, 0], sizes = [8, 12], strides = [1, 1]} : vector<16x24xf32> to vector<8x12xf32>
    %417 = arith.subf %313, %416 : vector<8x12xf32>
    %418 = vector.extract_strided_slice %415 {offsets = [0, 12], sizes = [8, 12], strides = [1, 1]} : vector<16x24xf32> to vector<8x12xf32>
    %419 = arith.addf %315, %418 : vector<8x12xf32>
    %420 = vector.extract_strided_slice %415 {offsets = [8, 0], sizes = [8, 12], strides = [1, 1]} : vector<16x24xf32> to vector<8x12xf32>
    %421 = arith.subf %317, %420 : vector<8x12xf32>
    %422 = vector.extract_strided_slice %415 {offsets = [8, 12], sizes = [8, 12], strides = [1, 1]} : vector<16x24xf32> to vector<8x12xf32>
    %423 = arith.addf %319, %422 : vector<8x12xf32>
    %c4 = arith.constant 4 : index
    %c0_237 = arith.constant 0 : index
    %c0_238 = arith.constant 0 : index
    %424 = vector.load %arg5[%c4, %c0_237, %c0_238] : memref<9x1x128xf32, #tpu.memory_space<vmem>>, vector<1x1x128xf32>
    %425 = vector.shape_cast %424 : vector<1x1x128xf32> to vector<1x128xf32>
    %c4_239 = arith.constant 4 : index
    %c0_240 = arith.constant 0 : index
    %c0_241 = arith.constant 0 : index
    %c0_242 = arith.constant 0 : index
    %426 = vector.load %arg4[%c4_239, %c0_240, %c0_241, %c0_242] : memref<9x2x12x128xf32, #tpu.memory_space<vmem>>, vector<1x1x12x128xf32>
    %427 = vector.shape_cast %426 : vector<1x1x12x128xf32> to vector<12x128xf32>
    %cst_243 = arith.constant dense<0.000000e+00> : vector<8x128xf32>
    %428 = tpu.matmul %417, %427, %cst_243 {dimension_numbers = #tpu.dot_dimension_numbers<[1], [0], [0], [1], [0, 0, 1, 1], [], []>} : vector<8x12xf32>, vector<12x128xf32>, vector<8x128xf32> -> vector<8x128xf32>
    %429 = vector.broadcast %425 : vector<1x128xf32> to vector<8x128xf32>
    %430 = arith.addf %429, %428 : vector<8x128xf32>
    %c4_244 = arith.constant 4 : index
    %c1_245 = arith.constant 1 : index
    %c0_246 = arith.constant 0 : index
    %c0_247 = arith.constant 0 : index
    %431 = vector.load %arg4[%c4_244, %c1_245, %c0_246, %c0_247] : memref<9x2x12x128xf32, #tpu.memory_space<vmem>>, vector<1x1x12x128xf32>
    %432 = vector.shape_cast %431 : vector<1x1x12x128xf32> to vector<12x128xf32>
    %cst_248 = arith.constant dense<0.000000e+00> : vector<8x128xf32>
    %433 = tpu.matmul %421, %432, %cst_248 {dimension_numbers = #tpu.dot_dimension_numbers<[1], [0], [0], [1], [0, 0, 1, 1], [], []>} : vector<8x12xf32>, vector<12x128xf32>, vector<8x128xf32> -> vector<8x128xf32>
    %434 = arith.addf %430, %433 : vector<8x128xf32>
    %435 = vector.extract_strided_slice %434 {offsets = [0, 0], sizes = [8, 64], strides = [1, 1]} : vector<8x128xf32> to vector<8x64xf32>
    %436 = math.tanh %435 : vector<8x64xf32>
    %437 = vector.extract_strided_slice %434 {offsets = [0, 64], sizes = [8, 64], strides = [1, 1]} : vector<8x128xf32> to vector<8x64xf32>
    %438 = arith.negf %437 : vector<8x64xf32>
    %439 = math.exp %438 : vector<8x64xf32>
    %cst_249 = arith.constant 1.000000e+00 : f32
    %440 = vector.broadcast %cst_249 : f32 to vector<8x64xf32>
    %441 = arith.addf %440, %439 : vector<8x64xf32>
    %442 = arith.divf %440, %441 : vector<8x64xf32>
    %443 = arith.mulf %436, %442 : vector<8x64xf32>
    %cst_250 = arith.constant 1.000000e-01 : f32
    %444 = vector.broadcast %cst_250 : f32 to vector<8x64xf32>
    %445 = arith.mulf %444, %443 : vector<8x64xf32>
    %cst_251 = arith.constant dense<0.000000e+00> : vector<8x64xf32>
    %446 = tpu.matmul %0, %443, %cst_251 {dimension_numbers = #tpu.dot_dimension_numbers<[1], [0], [0], [1], [0, 0, 1, 1], [], []>} : vector<8x8xf32>, vector<8x64xf32>, vector<8x64xf32> -> vector<8x64xf32>
    %cst_252 = arith.constant 0.899999976 : f32
    %447 = vector.broadcast %cst_252 : f32 to vector<8x64xf32>
    %448 = arith.mulf %447, %446 : vector<8x64xf32>
    %449 = arith.addf %445, %448 : vector<8x64xf32>
    %cst_253 = arith.constant 1.000000e-01 : f32
    %450 = vector.broadcast %cst_253 : f32 to vector<8x64xf32>
    %451 = arith.mulf %450, %443 : vector<8x64xf32>
    %cst_254 = arith.constant dense<0.000000e+00> : vector<8x64xf32>
    %452 = tpu.matmul %1, %443, %cst_254 {dimension_numbers = #tpu.dot_dimension_numbers<[1], [0], [0], [1], [0, 0, 1, 1], [], []>} : vector<8x8xf32>, vector<8x64xf32>, vector<8x64xf32> -> vector<8x64xf32>
    %cst_255 = arith.constant 0.899999976 : f32
    %453 = vector.broadcast %cst_255 : f32 to vector<8x64xf32>
    %454 = arith.mulf %453, %452 : vector<8x64xf32>
    %455 = arith.addf %451, %454 : vector<8x64xf32>
    %cst_256 = arith.constant 1.000000e-01 : f32
    %456 = vector.broadcast %cst_256 : f32 to vector<8x64xf32>
    %457 = arith.mulf %456, %443 : vector<8x64xf32>
    %cst_257 = arith.constant dense<0.000000e+00> : vector<8x64xf32>
    %458 = tpu.matmul %0, %449, %cst_257 {dimension_numbers = #tpu.dot_dimension_numbers<[1], [0], [0], [1], [0, 0, 1, 1], [], []>} : vector<8x8xf32>, vector<8x64xf32>, vector<8x64xf32> -> vector<8x64xf32>
    %cst_258 = arith.constant 0.899999976 : f32
    %459 = vector.broadcast %cst_258 : f32 to vector<8x64xf32>
    %460 = arith.mulf %459, %458 : vector<8x64xf32>
    %461 = arith.addf %457, %460 : vector<8x64xf32>
    %cst_259 = arith.constant 1.000000e-01 : f32
    %462 = vector.broadcast %cst_259 : f32 to vector<8x64xf32>
    %463 = arith.mulf %462, %443 : vector<8x64xf32>
    %cst_260 = arith.constant dense<0.000000e+00> : vector<8x64xf32>
    %464 = tpu.matmul %1, %455, %cst_260 {dimension_numbers = #tpu.dot_dimension_numbers<[1], [0], [0], [1], [0, 0, 1, 1], [], []>} : vector<8x8xf32>, vector<8x64xf32>, vector<8x64xf32> -> vector<8x64xf32>
    %cst_261 = arith.constant 0.899999976 : f32
    %465 = vector.broadcast %cst_261 : f32 to vector<8x64xf32>
    %466 = arith.mulf %465, %464 : vector<8x64xf32>
    %467 = arith.addf %463, %466 : vector<8x64xf32>
    %c4_262 = arith.constant 4 : index
    %c0_263 = arith.constant 0 : index
    %c0_264 = arith.constant 0 : index
    %468 = vector.load %arg6[%c4_262, %c0_263, %c0_264] : memref<9x64x64xf32, #tpu.memory_space<vmem>>, vector<1x64x64xf32>
    %469 = vector.shape_cast %468 : vector<1x64x64xf32> to vector<64x64xf32>
    %cst_265 = arith.constant dense<0.000000e+00> : vector<8x64xf32>
    %470 = tpu.matmul %461, %469, %cst_265 {dimension_numbers = #tpu.dot_dimension_numbers<[1], [0], [0], [1], [0, 0, 1, 1], [], []>} : vector<8x64xf32>, vector<64x64xf32>, vector<8x64xf32> -> vector<8x64xf32>
    %c4_266 = arith.constant 4 : index
    %c0_267 = arith.constant 0 : index
    %c0_268 = arith.constant 0 : index
    %471 = vector.load %arg7[%c4_266, %c0_267, %c0_268] : memref<9x64x64xf32, #tpu.memory_space<vmem>>, vector<1x64x64xf32>
    %472 = vector.shape_cast %471 : vector<1x64x64xf32> to vector<64x64xf32>
    %cst_269 = arith.constant dense<0.000000e+00> : vector<8x64xf32>
    %473 = tpu.matmul %467, %472, %cst_269 {dimension_numbers = #tpu.dot_dimension_numbers<[1], [0], [0], [1], [0, 0, 1, 1], [], []>} : vector<8x64xf32>, vector<64x64xf32>, vector<8x64xf32> -> vector<8x64xf32>
    %474 = arith.addf %470, %473 : vector<8x64xf32>
    %c4_270 = arith.constant 4 : index
    %c0_271 = arith.constant 0 : index
    %c0_272 = arith.constant 0 : index
    %475 = vector.load %arg8[%c4_270, %c0_271, %c0_272] : memref<9x1x64xf32, #tpu.memory_space<vmem>>, vector<1x1x64xf32>
    %476 = vector.shape_cast %475 : vector<1x1x64xf32> to vector<1x64xf32>
    %477 = vector.broadcast %476 : vector<1x64xf32> to vector<8x64xf32>
    %478 = arith.addf %474, %477 : vector<8x64xf32>
    %479 = vector.shape_cast %478 : vector<8x64xf32> to vector<1x8x64xf32>
    %cst_273 = arith.constant dense<0.000000e+00> : vector<1xf32>
    %480 = vector.multi_reduction <add>, %479, %cst_273 [1, 2] : vector<1x8x64xf32> to vector<1xf32>
    %481 = vector.shape_cast %480 : vector<1xf32> to vector<1x1x1xf32>
    %482 = vector.extract %481[0, 0, 0] : f32 from vector<1x1x1xf32>
    %483 = vector.broadcast %482 : f32 to vector<1x1xf32>
    %cst_274 = arith.constant 5.120000e+02 : f32
    %484 = vector.broadcast %cst_274 : f32 to vector<1x1xf32>
    %485 = arith.divf %483, %484 : vector<1x1xf32>
    %486 = vector.broadcast %485 : vector<1x1xf32> to vector<8x64xf32>
    %487 = arith.subf %478, %486 : vector<8x64xf32>
    %488 = arith.mulf %487, %487 : vector<8x64xf32>
    %489 = vector.shape_cast %488 : vector<8x64xf32> to vector<1x8x64xf32>
    %cst_275 = arith.constant dense<0.000000e+00> : vector<1xf32>
    %490 = vector.multi_reduction <add>, %489, %cst_275 [1, 2] : vector<1x8x64xf32> to vector<1xf32>
    %491 = vector.shape_cast %490 : vector<1xf32> to vector<1x1x1xf32>
    %492 = vector.extract %491[0, 0, 0] : f32 from vector<1x1x1xf32>
    %493 = vector.broadcast %492 : f32 to vector<1x1xf32>
    %cst_276 = arith.constant 5.120000e+02 : f32
    %494 = vector.broadcast %cst_276 : f32 to vector<1x1xf32>
    %495 = arith.divf %493, %494 : vector<1x1xf32>
    %cst_277 = arith.constant 9.99999974E-6 : f32
    %496 = vector.broadcast %cst_277 : f32 to vector<1x1xf32>
    %497 = arith.addf %495, %496 : vector<1x1xf32>
    %498 = math.rsqrt %497 : vector<1x1xf32>
    %499 = vector.broadcast %498 : vector<1x1xf32> to vector<8x64xf32>
    %500 = arith.mulf %487, %499 : vector<8x64xf32>
    %501 = vector.extract_strided_slice %500 {offsets = [0, 0], sizes = [8, 32], strides = [1, 1]} : vector<8x64xf32> to vector<8x32xf32>
    %502 = vector.extract_strided_slice %500 {offsets = [0, 32], sizes = [8, 32], strides = [1, 1]} : vector<8x64xf32> to vector<8x32xf32>
    %503 = tpu.concatenate %501, %502 in 0 : vector<8x32xf32>, vector<8x32xf32> -> vector<16x32xf32>
    %c4_278 = arith.constant 4 : index
    %c0_279 = arith.constant 0 : index
    %c0_280 = arith.constant 0 : index
    %504 = vector.load %arg9[%c4_278, %c0_279, %c0_280] : memref<9x32x256xf32, #tpu.memory_space<vmem>>, vector<1x32x256xf32>
    %505 = vector.shape_cast %504 : vector<1x32x256xf32> to vector<32x256xf32>
    %cst_281 = arith.constant dense<0.000000e+00> : vector<16x256xf32>
    %506 = tpu.matmul %503, %505, %cst_281 {dimension_numbers = #tpu.dot_dimension_numbers<[1], [0], [0], [1], [0, 0, 1, 1], [], []>} : vector<16x32xf32>, vector<32x256xf32>, vector<16x256xf32> -> vector<16x256xf32>
    %c4_282 = arith.constant 4 : index
    %c0_283 = arith.constant 0 : index
    %c0_284 = arith.constant 0 : index
    %507 = vector.load %arg10[%c4_282, %c0_283, %c0_284] : memref<9x1x256xf32, #tpu.memory_space<vmem>>, vector<1x1x256xf32>
    %508 = vector.shape_cast %507 : vector<1x1x256xf32> to vector<1x256xf32>
    %509 = vector.broadcast %508 : vector<1x256xf32> to vector<16x256xf32>
    %510 = arith.addf %506, %509 : vector<16x256xf32>
    %cst_285 = arith.constant 0.000000e+00 : f32
    %511 = vector.broadcast %cst_285 : f32 to vector<16x256xf32>
    %512 = arith.maximumf %510, %511 : vector<16x256xf32>
    %c4_286 = arith.constant 4 : index
    %c0_287 = arith.constant 0 : index
    %c0_288 = arith.constant 0 : index
    %513 = vector.load %arg11[%c4_286, %c0_287, %c0_288] : memref<9x256x24xf32, #tpu.memory_space<vmem>>, vector<1x256x24xf32>
    %514 = vector.shape_cast %513 : vector<1x256x24xf32> to vector<256x24xf32>
    %cst_289 = arith.constant dense<0.000000e+00> : vector<16x24xf32>
    %515 = tpu.matmul %512, %514, %cst_289 {dimension_numbers = #tpu.dot_dimension_numbers<[1], [0], [0], [1], [0, 0, 1, 1], [], []>} : vector<16x256xf32>, vector<256x24xf32>, vector<16x24xf32> -> vector<16x24xf32>
    %c4_290 = arith.constant 4 : index
    %c0_291 = arith.constant 0 : index
    %c0_292 = arith.constant 0 : index
    %516 = vector.load %arg12[%c4_290, %c0_291, %c0_292] : memref<9x1x24xf32, #tpu.memory_space<vmem>>, vector<1x1x24xf32>
    %517 = vector.shape_cast %516 : vector<1x1x24xf32> to vector<1x24xf32>
    %518 = vector.broadcast %517 : vector<1x24xf32> to vector<16x24xf32>
    %519 = arith.addf %515, %518 : vector<16x24xf32>
    %520 = vector.extract_strided_slice %519 {offsets = [0, 0], sizes = [8, 12], strides = [1, 1]} : vector<16x24xf32> to vector<8x12xf32>
    %521 = arith.subf %417, %520 : vector<8x12xf32>
    %522 = vector.extract_strided_slice %519 {offsets = [0, 12], sizes = [8, 12], strides = [1, 1]} : vector<16x24xf32> to vector<8x12xf32>
    %523 = arith.addf %419, %522 : vector<8x12xf32>
    %524 = vector.extract_strided_slice %519 {offsets = [8, 0], sizes = [8, 12], strides = [1, 1]} : vector<16x24xf32> to vector<8x12xf32>
    %525 = arith.subf %421, %524 : vector<8x12xf32>
    %526 = vector.extract_strided_slice %519 {offsets = [8, 12], sizes = [8, 12], strides = [1, 1]} : vector<16x24xf32> to vector<8x12xf32>
    %527 = arith.addf %423, %526 : vector<8x12xf32>
    %c5 = arith.constant 5 : index
    %c0_293 = arith.constant 0 : index
    %c0_294 = arith.constant 0 : index
    %528 = vector.load %arg5[%c5, %c0_293, %c0_294] : memref<9x1x128xf32, #tpu.memory_space<vmem>>, vector<1x1x128xf32>
    %529 = vector.shape_cast %528 : vector<1x1x128xf32> to vector<1x128xf32>
    %c5_295 = arith.constant 5 : index
    %c0_296 = arith.constant 0 : index
    %c0_297 = arith.constant 0 : index
    %c0_298 = arith.constant 0 : index
    %530 = vector.load %arg4[%c5_295, %c0_296, %c0_297, %c0_298] : memref<9x2x12x128xf32, #tpu.memory_space<vmem>>, vector<1x1x12x128xf32>
    %531 = vector.shape_cast %530 : vector<1x1x12x128xf32> to vector<12x128xf32>
    %cst_299 = arith.constant dense<0.000000e+00> : vector<8x128xf32>
    %532 = tpu.matmul %521, %531, %cst_299 {dimension_numbers = #tpu.dot_dimension_numbers<[1], [0], [0], [1], [0, 0, 1, 1], [], []>} : vector<8x12xf32>, vector<12x128xf32>, vector<8x128xf32> -> vector<8x128xf32>
    %533 = vector.broadcast %529 : vector<1x128xf32> to vector<8x128xf32>
    %534 = arith.addf %533, %532 : vector<8x128xf32>
    %c5_300 = arith.constant 5 : index
    %c1_301 = arith.constant 1 : index
    %c0_302 = arith.constant 0 : index
    %c0_303 = arith.constant 0 : index
    %535 = vector.load %arg4[%c5_300, %c1_301, %c0_302, %c0_303] : memref<9x2x12x128xf32, #tpu.memory_space<vmem>>, vector<1x1x12x128xf32>
    %536 = vector.shape_cast %535 : vector<1x1x12x128xf32> to vector<12x128xf32>
    %cst_304 = arith.constant dense<0.000000e+00> : vector<8x128xf32>
    %537 = tpu.matmul %525, %536, %cst_304 {dimension_numbers = #tpu.dot_dimension_numbers<[1], [0], [0], [1], [0, 0, 1, 1], [], []>} : vector<8x12xf32>, vector<12x128xf32>, vector<8x128xf32> -> vector<8x128xf32>
    %538 = arith.addf %534, %537 : vector<8x128xf32>
    %539 = vector.extract_strided_slice %538 {offsets = [0, 0], sizes = [8, 64], strides = [1, 1]} : vector<8x128xf32> to vector<8x64xf32>
    %540 = math.tanh %539 : vector<8x64xf32>
    %541 = vector.extract_strided_slice %538 {offsets = [0, 64], sizes = [8, 64], strides = [1, 1]} : vector<8x128xf32> to vector<8x64xf32>
    %542 = arith.negf %541 : vector<8x64xf32>
    %543 = math.exp %542 : vector<8x64xf32>
    %cst_305 = arith.constant 1.000000e+00 : f32
    %544 = vector.broadcast %cst_305 : f32 to vector<8x64xf32>
    %545 = arith.addf %544, %543 : vector<8x64xf32>
    %546 = arith.divf %544, %545 : vector<8x64xf32>
    %547 = arith.mulf %540, %546 : vector<8x64xf32>
    %cst_306 = arith.constant 1.000000e-01 : f32
    %548 = vector.broadcast %cst_306 : f32 to vector<8x64xf32>
    %549 = arith.mulf %548, %547 : vector<8x64xf32>
    %cst_307 = arith.constant dense<0.000000e+00> : vector<8x64xf32>
    %550 = tpu.matmul %0, %547, %cst_307 {dimension_numbers = #tpu.dot_dimension_numbers<[1], [0], [0], [1], [0, 0, 1, 1], [], []>} : vector<8x8xf32>, vector<8x64xf32>, vector<8x64xf32> -> vector<8x64xf32>
    %cst_308 = arith.constant 0.899999976 : f32
    %551 = vector.broadcast %cst_308 : f32 to vector<8x64xf32>
    %552 = arith.mulf %551, %550 : vector<8x64xf32>
    %553 = arith.addf %549, %552 : vector<8x64xf32>
    %cst_309 = arith.constant 1.000000e-01 : f32
    %554 = vector.broadcast %cst_309 : f32 to vector<8x64xf32>
    %555 = arith.mulf %554, %547 : vector<8x64xf32>
    %cst_310 = arith.constant dense<0.000000e+00> : vector<8x64xf32>
    %556 = tpu.matmul %1, %547, %cst_310 {dimension_numbers = #tpu.dot_dimension_numbers<[1], [0], [0], [1], [0, 0, 1, 1], [], []>} : vector<8x8xf32>, vector<8x64xf32>, vector<8x64xf32> -> vector<8x64xf32>
    %cst_311 = arith.constant 0.899999976 : f32
    %557 = vector.broadcast %cst_311 : f32 to vector<8x64xf32>
    %558 = arith.mulf %557, %556 : vector<8x64xf32>
    %559 = arith.addf %555, %558 : vector<8x64xf32>
    %cst_312 = arith.constant 1.000000e-01 : f32
    %560 = vector.broadcast %cst_312 : f32 to vector<8x64xf32>
    %561 = arith.mulf %560, %547 : vector<8x64xf32>
    %cst_313 = arith.constant dense<0.000000e+00> : vector<8x64xf32>
    %562 = tpu.matmul %0, %553, %cst_313 {dimension_numbers = #tpu.dot_dimension_numbers<[1], [0], [0], [1], [0, 0, 1, 1], [], []>} : vector<8x8xf32>, vector<8x64xf32>, vector<8x64xf32> -> vector<8x64xf32>
    %cst_314 = arith.constant 0.899999976 : f32
    %563 = vector.broadcast %cst_314 : f32 to vector<8x64xf32>
    %564 = arith.mulf %563, %562 : vector<8x64xf32>
    %565 = arith.addf %561, %564 : vector<8x64xf32>
    %cst_315 = arith.constant 1.000000e-01 : f32
    %566 = vector.broadcast %cst_315 : f32 to vector<8x64xf32>
    %567 = arith.mulf %566, %547 : vector<8x64xf32>
    %cst_316 = arith.constant dense<0.000000e+00> : vector<8x64xf32>
    %568 = tpu.matmul %1, %559, %cst_316 {dimension_numbers = #tpu.dot_dimension_numbers<[1], [0], [0], [1], [0, 0, 1, 1], [], []>} : vector<8x8xf32>, vector<8x64xf32>, vector<8x64xf32> -> vector<8x64xf32>
    %cst_317 = arith.constant 0.899999976 : f32
    %569 = vector.broadcast %cst_317 : f32 to vector<8x64xf32>
    %570 = arith.mulf %569, %568 : vector<8x64xf32>
    %571 = arith.addf %567, %570 : vector<8x64xf32>
    %c5_318 = arith.constant 5 : index
    %c0_319 = arith.constant 0 : index
    %c0_320 = arith.constant 0 : index
    %572 = vector.load %arg6[%c5_318, %c0_319, %c0_320] : memref<9x64x64xf32, #tpu.memory_space<vmem>>, vector<1x64x64xf32>
    %573 = vector.shape_cast %572 : vector<1x64x64xf32> to vector<64x64xf32>
    %cst_321 = arith.constant dense<0.000000e+00> : vector<8x64xf32>
    %574 = tpu.matmul %565, %573, %cst_321 {dimension_numbers = #tpu.dot_dimension_numbers<[1], [0], [0], [1], [0, 0, 1, 1], [], []>} : vector<8x64xf32>, vector<64x64xf32>, vector<8x64xf32> -> vector<8x64xf32>
    %c5_322 = arith.constant 5 : index
    %c0_323 = arith.constant 0 : index
    %c0_324 = arith.constant 0 : index
    %575 = vector.load %arg7[%c5_322, %c0_323, %c0_324] : memref<9x64x64xf32, #tpu.memory_space<vmem>>, vector<1x64x64xf32>
    %576 = vector.shape_cast %575 : vector<1x64x64xf32> to vector<64x64xf32>
    %cst_325 = arith.constant dense<0.000000e+00> : vector<8x64xf32>
    %577 = tpu.matmul %571, %576, %cst_325 {dimension_numbers = #tpu.dot_dimension_numbers<[1], [0], [0], [1], [0, 0, 1, 1], [], []>} : vector<8x64xf32>, vector<64x64xf32>, vector<8x64xf32> -> vector<8x64xf32>
    %578 = arith.addf %574, %577 : vector<8x64xf32>
    %c5_326 = arith.constant 5 : index
    %c0_327 = arith.constant 0 : index
    %c0_328 = arith.constant 0 : index
    %579 = vector.load %arg8[%c5_326, %c0_327, %c0_328] : memref<9x1x64xf32, #tpu.memory_space<vmem>>, vector<1x1x64xf32>
    %580 = vector.shape_cast %579 : vector<1x1x64xf32> to vector<1x64xf32>
    %581 = vector.broadcast %580 : vector<1x64xf32> to vector<8x64xf32>
    %582 = arith.addf %578, %581 : vector<8x64xf32>
    %583 = vector.shape_cast %582 : vector<8x64xf32> to vector<1x8x64xf32>
    %cst_329 = arith.constant dense<0.000000e+00> : vector<1xf32>
    %584 = vector.multi_reduction <add>, %583, %cst_329 [1, 2] : vector<1x8x64xf32> to vector<1xf32>
    %585 = vector.shape_cast %584 : vector<1xf32> to vector<1x1x1xf32>
    %586 = vector.extract %585[0, 0, 0] : f32 from vector<1x1x1xf32>
    %587 = vector.broadcast %586 : f32 to vector<1x1xf32>
    %cst_330 = arith.constant 5.120000e+02 : f32
    %588 = vector.broadcast %cst_330 : f32 to vector<1x1xf32>
    %589 = arith.divf %587, %588 : vector<1x1xf32>
    %590 = vector.broadcast %589 : vector<1x1xf32> to vector<8x64xf32>
    %591 = arith.subf %582, %590 : vector<8x64xf32>
    %592 = arith.mulf %591, %591 : vector<8x64xf32>
    %593 = vector.shape_cast %592 : vector<8x64xf32> to vector<1x8x64xf32>
    %cst_331 = arith.constant dense<0.000000e+00> : vector<1xf32>
    %594 = vector.multi_reduction <add>, %593, %cst_331 [1, 2] : vector<1x8x64xf32> to vector<1xf32>
    %595 = vector.shape_cast %594 : vector<1xf32> to vector<1x1x1xf32>
    %596 = vector.extract %595[0, 0, 0] : f32 from vector<1x1x1xf32>
    %597 = vector.broadcast %596 : f32 to vector<1x1xf32>
    %cst_332 = arith.constant 5.120000e+02 : f32
    %598 = vector.broadcast %cst_332 : f32 to vector<1x1xf32>
    %599 = arith.divf %597, %598 : vector<1x1xf32>
    %cst_333 = arith.constant 9.99999974E-6 : f32
    %600 = vector.broadcast %cst_333 : f32 to vector<1x1xf32>
    %601 = arith.addf %599, %600 : vector<1x1xf32>
    %602 = math.rsqrt %601 : vector<1x1xf32>
    %603 = vector.broadcast %602 : vector<1x1xf32> to vector<8x64xf32>
    %604 = arith.mulf %591, %603 : vector<8x64xf32>
    %605 = vector.extract_strided_slice %604 {offsets = [0, 0], sizes = [8, 32], strides = [1, 1]} : vector<8x64xf32> to vector<8x32xf32>
    %606 = vector.extract_strided_slice %604 {offsets = [0, 32], sizes = [8, 32], strides = [1, 1]} : vector<8x64xf32> to vector<8x32xf32>
    %607 = tpu.concatenate %605, %606 in 0 : vector<8x32xf32>, vector<8x32xf32> -> vector<16x32xf32>
    %c5_334 = arith.constant 5 : index
    %c0_335 = arith.constant 0 : index
    %c0_336 = arith.constant 0 : index
    %608 = vector.load %arg9[%c5_334, %c0_335, %c0_336] : memref<9x32x256xf32, #tpu.memory_space<vmem>>, vector<1x32x256xf32>
    %609 = vector.shape_cast %608 : vector<1x32x256xf32> to vector<32x256xf32>
    %cst_337 = arith.constant dense<0.000000e+00> : vector<16x256xf32>
    %610 = tpu.matmul %607, %609, %cst_337 {dimension_numbers = #tpu.dot_dimension_numbers<[1], [0], [0], [1], [0, 0, 1, 1], [], []>} : vector<16x32xf32>, vector<32x256xf32>, vector<16x256xf32> -> vector<16x256xf32>
    %c5_338 = arith.constant 5 : index
    %c0_339 = arith.constant 0 : index
    %c0_340 = arith.constant 0 : index
    %611 = vector.load %arg10[%c5_338, %c0_339, %c0_340] : memref<9x1x256xf32, #tpu.memory_space<vmem>>, vector<1x1x256xf32>
    %612 = vector.shape_cast %611 : vector<1x1x256xf32> to vector<1x256xf32>
    %613 = vector.broadcast %612 : vector<1x256xf32> to vector<16x256xf32>
    %614 = arith.addf %610, %613 : vector<16x256xf32>
    %cst_341 = arith.constant 0.000000e+00 : f32
    %615 = vector.broadcast %cst_341 : f32 to vector<16x256xf32>
    %616 = arith.maximumf %614, %615 : vector<16x256xf32>
    %c5_342 = arith.constant 5 : index
    %c0_343 = arith.constant 0 : index
    %c0_344 = arith.constant 0 : index
    %617 = vector.load %arg11[%c5_342, %c0_343, %c0_344] : memref<9x256x24xf32, #tpu.memory_space<vmem>>, vector<1x256x24xf32>
    %618 = vector.shape_cast %617 : vector<1x256x24xf32> to vector<256x24xf32>
    %cst_345 = arith.constant dense<0.000000e+00> : vector<16x24xf32>
    %619 = tpu.matmul %616, %618, %cst_345 {dimension_numbers = #tpu.dot_dimension_numbers<[1], [0], [0], [1], [0, 0, 1, 1], [], []>} : vector<16x256xf32>, vector<256x24xf32>, vector<16x24xf32> -> vector<16x24xf32>
    %c5_346 = arith.constant 5 : index
    %c0_347 = arith.constant 0 : index
    %c0_348 = arith.constant 0 : index
    %620 = vector.load %arg12[%c5_346, %c0_347, %c0_348] : memref<9x1x24xf32, #tpu.memory_space<vmem>>, vector<1x1x24xf32>
    %621 = vector.shape_cast %620 : vector<1x1x24xf32> to vector<1x24xf32>
    %622 = vector.broadcast %621 : vector<1x24xf32> to vector<16x24xf32>
    %623 = arith.addf %619, %622 : vector<16x24xf32>
    %624 = vector.extract_strided_slice %623 {offsets = [0, 0], sizes = [8, 12], strides = [1, 1]} : vector<16x24xf32> to vector<8x12xf32>
    %625 = arith.subf %521, %624 : vector<8x12xf32>
    %626 = vector.extract_strided_slice %623 {offsets = [0, 12], sizes = [8, 12], strides = [1, 1]} : vector<16x24xf32> to vector<8x12xf32>
    %627 = arith.addf %523, %626 : vector<8x12xf32>
    %628 = vector.extract_strided_slice %623 {offsets = [8, 0], sizes = [8, 12], strides = [1, 1]} : vector<16x24xf32> to vector<8x12xf32>
    %629 = arith.subf %525, %628 : vector<8x12xf32>
    %630 = vector.extract_strided_slice %623 {offsets = [8, 12], sizes = [8, 12], strides = [1, 1]} : vector<16x24xf32> to vector<8x12xf32>
    %631 = arith.addf %527, %630 : vector<8x12xf32>
    %c6 = arith.constant 6 : index
    %c0_349 = arith.constant 0 : index
    %c0_350 = arith.constant 0 : index
    %632 = vector.load %arg5[%c6, %c0_349, %c0_350] : memref<9x1x128xf32, #tpu.memory_space<vmem>>, vector<1x1x128xf32>
    %633 = vector.shape_cast %632 : vector<1x1x128xf32> to vector<1x128xf32>
    %c6_351 = arith.constant 6 : index
    %c0_352 = arith.constant 0 : index
    %c0_353 = arith.constant 0 : index
    %c0_354 = arith.constant 0 : index
    %634 = vector.load %arg4[%c6_351, %c0_352, %c0_353, %c0_354] : memref<9x2x12x128xf32, #tpu.memory_space<vmem>>, vector<1x1x12x128xf32>
    %635 = vector.shape_cast %634 : vector<1x1x12x128xf32> to vector<12x128xf32>
    %cst_355 = arith.constant dense<0.000000e+00> : vector<8x128xf32>
    %636 = tpu.matmul %625, %635, %cst_355 {dimension_numbers = #tpu.dot_dimension_numbers<[1], [0], [0], [1], [0, 0, 1, 1], [], []>} : vector<8x12xf32>, vector<12x128xf32>, vector<8x128xf32> -> vector<8x128xf32>
    %637 = vector.broadcast %633 : vector<1x128xf32> to vector<8x128xf32>
    %638 = arith.addf %637, %636 : vector<8x128xf32>
    %c6_356 = arith.constant 6 : index
    %c1_357 = arith.constant 1 : index
    %c0_358 = arith.constant 0 : index
    %c0_359 = arith.constant 0 : index
    %639 = vector.load %arg4[%c6_356, %c1_357, %c0_358, %c0_359] : memref<9x2x12x128xf32, #tpu.memory_space<vmem>>, vector<1x1x12x128xf32>
    %640 = vector.shape_cast %639 : vector<1x1x12x128xf32> to vector<12x128xf32>
    %cst_360 = arith.constant dense<0.000000e+00> : vector<8x128xf32>
    %641 = tpu.matmul %629, %640, %cst_360 {dimension_numbers = #tpu.dot_dimension_numbers<[1], [0], [0], [1], [0, 0, 1, 1], [], []>} : vector<8x12xf32>, vector<12x128xf32>, vector<8x128xf32> -> vector<8x128xf32>
    %642 = arith.addf %638, %641 : vector<8x128xf32>
    %643 = vector.extract_strided_slice %642 {offsets = [0, 0], sizes = [8, 64], strides = [1, 1]} : vector<8x128xf32> to vector<8x64xf32>
    %644 = math.tanh %643 : vector<8x64xf32>
    %645 = vector.extract_strided_slice %642 {offsets = [0, 64], sizes = [8, 64], strides = [1, 1]} : vector<8x128xf32> to vector<8x64xf32>
    %646 = arith.negf %645 : vector<8x64xf32>
    %647 = math.exp %646 : vector<8x64xf32>
    %cst_361 = arith.constant 1.000000e+00 : f32
    %648 = vector.broadcast %cst_361 : f32 to vector<8x64xf32>
    %649 = arith.addf %648, %647 : vector<8x64xf32>
    %650 = arith.divf %648, %649 : vector<8x64xf32>
    %651 = arith.mulf %644, %650 : vector<8x64xf32>
    %cst_362 = arith.constant 1.000000e-01 : f32
    %652 = vector.broadcast %cst_362 : f32 to vector<8x64xf32>
    %653 = arith.mulf %652, %651 : vector<8x64xf32>
    %cst_363 = arith.constant dense<0.000000e+00> : vector<8x64xf32>
    %654 = tpu.matmul %0, %651, %cst_363 {dimension_numbers = #tpu.dot_dimension_numbers<[1], [0], [0], [1], [0, 0, 1, 1], [], []>} : vector<8x8xf32>, vector<8x64xf32>, vector<8x64xf32> -> vector<8x64xf32>
    %cst_364 = arith.constant 0.899999976 : f32
    %655 = vector.broadcast %cst_364 : f32 to vector<8x64xf32>
    %656 = arith.mulf %655, %654 : vector<8x64xf32>
    %657 = arith.addf %653, %656 : vector<8x64xf32>
    %cst_365 = arith.constant 1.000000e-01 : f32
    %658 = vector.broadcast %cst_365 : f32 to vector<8x64xf32>
    %659 = arith.mulf %658, %651 : vector<8x64xf32>
    %cst_366 = arith.constant dense<0.000000e+00> : vector<8x64xf32>
    %660 = tpu.matmul %1, %651, %cst_366 {dimension_numbers = #tpu.dot_dimension_numbers<[1], [0], [0], [1], [0, 0, 1, 1], [], []>} : vector<8x8xf32>, vector<8x64xf32>, vector<8x64xf32> -> vector<8x64xf32>
    %cst_367 = arith.constant 0.899999976 : f32
    %661 = vector.broadcast %cst_367 : f32 to vector<8x64xf32>
    %662 = arith.mulf %661, %660 : vector<8x64xf32>
    %663 = arith.addf %659, %662 : vector<8x64xf32>
    %cst_368 = arith.constant 1.000000e-01 : f32
    %664 = vector.broadcast %cst_368 : f32 to vector<8x64xf32>
    %665 = arith.mulf %664, %651 : vector<8x64xf32>
    %cst_369 = arith.constant dense<0.000000e+00> : vector<8x64xf32>
    %666 = tpu.matmul %0, %657, %cst_369 {dimension_numbers = #tpu.dot_dimension_numbers<[1], [0], [0], [1], [0, 0, 1, 1], [], []>} : vector<8x8xf32>, vector<8x64xf32>, vector<8x64xf32> -> vector<8x64xf32>
    %cst_370 = arith.constant 0.899999976 : f32
    %667 = vector.broadcast %cst_370 : f32 to vector<8x64xf32>
    %668 = arith.mulf %667, %666 : vector<8x64xf32>
    %669 = arith.addf %665, %668 : vector<8x64xf32>
    %cst_371 = arith.constant 1.000000e-01 : f32
    %670 = vector.broadcast %cst_371 : f32 to vector<8x64xf32>
    %671 = arith.mulf %670, %651 : vector<8x64xf32>
    %cst_372 = arith.constant dense<0.000000e+00> : vector<8x64xf32>
    %672 = tpu.matmul %1, %663, %cst_372 {dimension_numbers = #tpu.dot_dimension_numbers<[1], [0], [0], [1], [0, 0, 1, 1], [], []>} : vector<8x8xf32>, vector<8x64xf32>, vector<8x64xf32> -> vector<8x64xf32>
    %cst_373 = arith.constant 0.899999976 : f32
    %673 = vector.broadcast %cst_373 : f32 to vector<8x64xf32>
    %674 = arith.mulf %673, %672 : vector<8x64xf32>
    %675 = arith.addf %671, %674 : vector<8x64xf32>
    %c6_374 = arith.constant 6 : index
    %c0_375 = arith.constant 0 : index
    %c0_376 = arith.constant 0 : index
    %676 = vector.load %arg6[%c6_374, %c0_375, %c0_376] : memref<9x64x64xf32, #tpu.memory_space<vmem>>, vector<1x64x64xf32>
    %677 = vector.shape_cast %676 : vector<1x64x64xf32> to vector<64x64xf32>
    %cst_377 = arith.constant dense<0.000000e+00> : vector<8x64xf32>
    %678 = tpu.matmul %669, %677, %cst_377 {dimension_numbers = #tpu.dot_dimension_numbers<[1], [0], [0], [1], [0, 0, 1, 1], [], []>} : vector<8x64xf32>, vector<64x64xf32>, vector<8x64xf32> -> vector<8x64xf32>
    %c6_378 = arith.constant 6 : index
    %c0_379 = arith.constant 0 : index
    %c0_380 = arith.constant 0 : index
    %679 = vector.load %arg7[%c6_378, %c0_379, %c0_380] : memref<9x64x64xf32, #tpu.memory_space<vmem>>, vector<1x64x64xf32>
    %680 = vector.shape_cast %679 : vector<1x64x64xf32> to vector<64x64xf32>
    %cst_381 = arith.constant dense<0.000000e+00> : vector<8x64xf32>
    %681 = tpu.matmul %675, %680, %cst_381 {dimension_numbers = #tpu.dot_dimension_numbers<[1], [0], [0], [1], [0, 0, 1, 1], [], []>} : vector<8x64xf32>, vector<64x64xf32>, vector<8x64xf32> -> vector<8x64xf32>
    %682 = arith.addf %678, %681 : vector<8x64xf32>
    %c6_382 = arith.constant 6 : index
    %c0_383 = arith.constant 0 : index
    %c0_384 = arith.constant 0 : index
    %683 = vector.load %arg8[%c6_382, %c0_383, %c0_384] : memref<9x1x64xf32, #tpu.memory_space<vmem>>, vector<1x1x64xf32>
    %684 = vector.shape_cast %683 : vector<1x1x64xf32> to vector<1x64xf32>
    %685 = vector.broadcast %684 : vector<1x64xf32> to vector<8x64xf32>
    %686 = arith.addf %682, %685 : vector<8x64xf32>
    %687 = vector.shape_cast %686 : vector<8x64xf32> to vector<1x8x64xf32>
    %cst_385 = arith.constant dense<0.000000e+00> : vector<1xf32>
    %688 = vector.multi_reduction <add>, %687, %cst_385 [1, 2] : vector<1x8x64xf32> to vector<1xf32>
    %689 = vector.shape_cast %688 : vector<1xf32> to vector<1x1x1xf32>
    %690 = vector.extract %689[0, 0, 0] : f32 from vector<1x1x1xf32>
    %691 = vector.broadcast %690 : f32 to vector<1x1xf32>
    %cst_386 = arith.constant 5.120000e+02 : f32
    %692 = vector.broadcast %cst_386 : f32 to vector<1x1xf32>
    %693 = arith.divf %691, %692 : vector<1x1xf32>
    %694 = vector.broadcast %693 : vector<1x1xf32> to vector<8x64xf32>
    %695 = arith.subf %686, %694 : vector<8x64xf32>
    %696 = arith.mulf %695, %695 : vector<8x64xf32>
    %697 = vector.shape_cast %696 : vector<8x64xf32> to vector<1x8x64xf32>
    %cst_387 = arith.constant dense<0.000000e+00> : vector<1xf32>
    %698 = vector.multi_reduction <add>, %697, %cst_387 [1, 2] : vector<1x8x64xf32> to vector<1xf32>
    %699 = vector.shape_cast %698 : vector<1xf32> to vector<1x1x1xf32>
    %700 = vector.extract %699[0, 0, 0] : f32 from vector<1x1x1xf32>
    %701 = vector.broadcast %700 : f32 to vector<1x1xf32>
    %cst_388 = arith.constant 5.120000e+02 : f32
    %702 = vector.broadcast %cst_388 : f32 to vector<1x1xf32>
    %703 = arith.divf %701, %702 : vector<1x1xf32>
    %cst_389 = arith.constant 9.99999974E-6 : f32
    %704 = vector.broadcast %cst_389 : f32 to vector<1x1xf32>
    %705 = arith.addf %703, %704 : vector<1x1xf32>
    %706 = math.rsqrt %705 : vector<1x1xf32>
    %707 = vector.broadcast %706 : vector<1x1xf32> to vector<8x64xf32>
    %708 = arith.mulf %695, %707 : vector<8x64xf32>
    %709 = vector.extract_strided_slice %708 {offsets = [0, 0], sizes = [8, 32], strides = [1, 1]} : vector<8x64xf32> to vector<8x32xf32>
    %710 = vector.extract_strided_slice %708 {offsets = [0, 32], sizes = [8, 32], strides = [1, 1]} : vector<8x64xf32> to vector<8x32xf32>
    %711 = tpu.concatenate %709, %710 in 0 : vector<8x32xf32>, vector<8x32xf32> -> vector<16x32xf32>
    %c6_390 = arith.constant 6 : index
    %c0_391 = arith.constant 0 : index
    %c0_392 = arith.constant 0 : index
    %712 = vector.load %arg9[%c6_390, %c0_391, %c0_392] : memref<9x32x256xf32, #tpu.memory_space<vmem>>, vector<1x32x256xf32>
    %713 = vector.shape_cast %712 : vector<1x32x256xf32> to vector<32x256xf32>
    %cst_393 = arith.constant dense<0.000000e+00> : vector<16x256xf32>
    %714 = tpu.matmul %711, %713, %cst_393 {dimension_numbers = #tpu.dot_dimension_numbers<[1], [0], [0], [1], [0, 0, 1, 1], [], []>} : vector<16x32xf32>, vector<32x256xf32>, vector<16x256xf32> -> vector<16x256xf32>
    %c6_394 = arith.constant 6 : index
    %c0_395 = arith.constant 0 : index
    %c0_396 = arith.constant 0 : index
    %715 = vector.load %arg10[%c6_394, %c0_395, %c0_396] : memref<9x1x256xf32, #tpu.memory_space<vmem>>, vector<1x1x256xf32>
    %716 = vector.shape_cast %715 : vector<1x1x256xf32> to vector<1x256xf32>
    %717 = vector.broadcast %716 : vector<1x256xf32> to vector<16x256xf32>
    %718 = arith.addf %714, %717 : vector<16x256xf32>
    %cst_397 = arith.constant 0.000000e+00 : f32
    %719 = vector.broadcast %cst_397 : f32 to vector<16x256xf32>
    %720 = arith.maximumf %718, %719 : vector<16x256xf32>
    %c6_398 = arith.constant 6 : index
    %c0_399 = arith.constant 0 : index
    %c0_400 = arith.constant 0 : index
    %721 = vector.load %arg11[%c6_398, %c0_399, %c0_400] : memref<9x256x24xf32, #tpu.memory_space<vmem>>, vector<1x256x24xf32>
    %722 = vector.shape_cast %721 : vector<1x256x24xf32> to vector<256x24xf32>
    %cst_401 = arith.constant dense<0.000000e+00> : vector<16x24xf32>
    %723 = tpu.matmul %720, %722, %cst_401 {dimension_numbers = #tpu.dot_dimension_numbers<[1], [0], [0], [1], [0, 0, 1, 1], [], []>} : vector<16x256xf32>, vector<256x24xf32>, vector<16x24xf32> -> vector<16x24xf32>
    %c6_402 = arith.constant 6 : index
    %c0_403 = arith.constant 0 : index
    %c0_404 = arith.constant 0 : index
    %724 = vector.load %arg12[%c6_402, %c0_403, %c0_404] : memref<9x1x24xf32, #tpu.memory_space<vmem>>, vector<1x1x24xf32>
    %725 = vector.shape_cast %724 : vector<1x1x24xf32> to vector<1x24xf32>
    %726 = vector.broadcast %725 : vector<1x24xf32> to vector<16x24xf32>
    %727 = arith.addf %723, %726 : vector<16x24xf32>
    %728 = vector.extract_strided_slice %727 {offsets = [0, 0], sizes = [8, 12], strides = [1, 1]} : vector<16x24xf32> to vector<8x12xf32>
    %729 = arith.subf %625, %728 : vector<8x12xf32>
    %730 = vector.extract_strided_slice %727 {offsets = [0, 12], sizes = [8, 12], strides = [1, 1]} : vector<16x24xf32> to vector<8x12xf32>
    %731 = arith.addf %627, %730 : vector<8x12xf32>
    %732 = vector.extract_strided_slice %727 {offsets = [8, 0], sizes = [8, 12], strides = [1, 1]} : vector<16x24xf32> to vector<8x12xf32>
    %733 = arith.subf %629, %732 : vector<8x12xf32>
    %734 = vector.extract_strided_slice %727 {offsets = [8, 12], sizes = [8, 12], strides = [1, 1]} : vector<16x24xf32> to vector<8x12xf32>
    %735 = arith.addf %631, %734 : vector<8x12xf32>
    %c7 = arith.constant 7 : index
    %c0_405 = arith.constant 0 : index
    %c0_406 = arith.constant 0 : index
    %736 = vector.load %arg5[%c7, %c0_405, %c0_406] : memref<9x1x128xf32, #tpu.memory_space<vmem>>, vector<1x1x128xf32>
    %737 = vector.shape_cast %736 : vector<1x1x128xf32> to vector<1x128xf32>
    %c7_407 = arith.constant 7 : index
    %c0_408 = arith.constant 0 : index
    %c0_409 = arith.constant 0 : index
    %c0_410 = arith.constant 0 : index
    %738 = vector.load %arg4[%c7_407, %c0_408, %c0_409, %c0_410] : memref<9x2x12x128xf32, #tpu.memory_space<vmem>>, vector<1x1x12x128xf32>
    %739 = vector.shape_cast %738 : vector<1x1x12x128xf32> to vector<12x128xf32>
    %cst_411 = arith.constant dense<0.000000e+00> : vector<8x128xf32>
    %740 = tpu.matmul %729, %739, %cst_411 {dimension_numbers = #tpu.dot_dimension_numbers<[1], [0], [0], [1], [0, 0, 1, 1], [], []>} : vector<8x12xf32>, vector<12x128xf32>, vector<8x128xf32> -> vector<8x128xf32>
    %741 = vector.broadcast %737 : vector<1x128xf32> to vector<8x128xf32>
    %742 = arith.addf %741, %740 : vector<8x128xf32>
    %c7_412 = arith.constant 7 : index
    %c1_413 = arith.constant 1 : index
    %c0_414 = arith.constant 0 : index
    %c0_415 = arith.constant 0 : index
    %743 = vector.load %arg4[%c7_412, %c1_413, %c0_414, %c0_415] : memref<9x2x12x128xf32, #tpu.memory_space<vmem>>, vector<1x1x12x128xf32>
    %744 = vector.shape_cast %743 : vector<1x1x12x128xf32> to vector<12x128xf32>
    %cst_416 = arith.constant dense<0.000000e+00> : vector<8x128xf32>
    %745 = tpu.matmul %733, %744, %cst_416 {dimension_numbers = #tpu.dot_dimension_numbers<[1], [0], [0], [1], [0, 0, 1, 1], [], []>} : vector<8x12xf32>, vector<12x128xf32>, vector<8x128xf32> -> vector<8x128xf32>
    %746 = arith.addf %742, %745 : vector<8x128xf32>
    %747 = vector.extract_strided_slice %746 {offsets = [0, 0], sizes = [8, 64], strides = [1, 1]} : vector<8x128xf32> to vector<8x64xf32>
    %748 = math.tanh %747 : vector<8x64xf32>
    %749 = vector.extract_strided_slice %746 {offsets = [0, 64], sizes = [8, 64], strides = [1, 1]} : vector<8x128xf32> to vector<8x64xf32>
    %750 = arith.negf %749 : vector<8x64xf32>
    %751 = math.exp %750 : vector<8x64xf32>
    %cst_417 = arith.constant 1.000000e+00 : f32
    %752 = vector.broadcast %cst_417 : f32 to vector<8x64xf32>
    %753 = arith.addf %752, %751 : vector<8x64xf32>
    %754 = arith.divf %752, %753 : vector<8x64xf32>
    %755 = arith.mulf %748, %754 : vector<8x64xf32>
    %cst_418 = arith.constant 1.000000e-01 : f32
    %756 = vector.broadcast %cst_418 : f32 to vector<8x64xf32>
    %757 = arith.mulf %756, %755 : vector<8x64xf32>
    %cst_419 = arith.constant dense<0.000000e+00> : vector<8x64xf32>
    %758 = tpu.matmul %0, %755, %cst_419 {dimension_numbers = #tpu.dot_dimension_numbers<[1], [0], [0], [1], [0, 0, 1, 1], [], []>} : vector<8x8xf32>, vector<8x64xf32>, vector<8x64xf32> -> vector<8x64xf32>
    %cst_420 = arith.constant 0.899999976 : f32
    %759 = vector.broadcast %cst_420 : f32 to vector<8x64xf32>
    %760 = arith.mulf %759, %758 : vector<8x64xf32>
    %761 = arith.addf %757, %760 : vector<8x64xf32>
    %cst_421 = arith.constant 1.000000e-01 : f32
    %762 = vector.broadcast %cst_421 : f32 to vector<8x64xf32>
    %763 = arith.mulf %762, %755 : vector<8x64xf32>
    %cst_422 = arith.constant dense<0.000000e+00> : vector<8x64xf32>
    %764 = tpu.matmul %1, %755, %cst_422 {dimension_numbers = #tpu.dot_dimension_numbers<[1], [0], [0], [1], [0, 0, 1, 1], [], []>} : vector<8x8xf32>, vector<8x64xf32>, vector<8x64xf32> -> vector<8x64xf32>
    %cst_423 = arith.constant 0.899999976 : f32
    %765 = vector.broadcast %cst_423 : f32 to vector<8x64xf32>
    %766 = arith.mulf %765, %764 : vector<8x64xf32>
    %767 = arith.addf %763, %766 : vector<8x64xf32>
    %cst_424 = arith.constant 1.000000e-01 : f32
    %768 = vector.broadcast %cst_424 : f32 to vector<8x64xf32>
    %769 = arith.mulf %768, %755 : vector<8x64xf32>
    %cst_425 = arith.constant dense<0.000000e+00> : vector<8x64xf32>
    %770 = tpu.matmul %0, %761, %cst_425 {dimension_numbers = #tpu.dot_dimension_numbers<[1], [0], [0], [1], [0, 0, 1, 1], [], []>} : vector<8x8xf32>, vector<8x64xf32>, vector<8x64xf32> -> vector<8x64xf32>
    %cst_426 = arith.constant 0.899999976 : f32
    %771 = vector.broadcast %cst_426 : f32 to vector<8x64xf32>
    %772 = arith.mulf %771, %770 : vector<8x64xf32>
    %773 = arith.addf %769, %772 : vector<8x64xf32>
    %cst_427 = arith.constant 1.000000e-01 : f32
    %774 = vector.broadcast %cst_427 : f32 to vector<8x64xf32>
    %775 = arith.mulf %774, %755 : vector<8x64xf32>
    %cst_428 = arith.constant dense<0.000000e+00> : vector<8x64xf32>
    %776 = tpu.matmul %1, %767, %cst_428 {dimension_numbers = #tpu.dot_dimension_numbers<[1], [0], [0], [1], [0, 0, 1, 1], [], []>} : vector<8x8xf32>, vector<8x64xf32>, vector<8x64xf32> -> vector<8x64xf32>
    %cst_429 = arith.constant 0.899999976 : f32
    %777 = vector.broadcast %cst_429 : f32 to vector<8x64xf32>
    %778 = arith.mulf %777, %776 : vector<8x64xf32>
    %779 = arith.addf %775, %778 : vector<8x64xf32>
    %c7_430 = arith.constant 7 : index
    %c0_431 = arith.constant 0 : index
    %c0_432 = arith.constant 0 : index
    %780 = vector.load %arg6[%c7_430, %c0_431, %c0_432] : memref<9x64x64xf32, #tpu.memory_space<vmem>>, vector<1x64x64xf32>
    %781 = vector.shape_cast %780 : vector<1x64x64xf32> to vector<64x64xf32>
    %cst_433 = arith.constant dense<0.000000e+00> : vector<8x64xf32>
    %782 = tpu.matmul %773, %781, %cst_433 {dimension_numbers = #tpu.dot_dimension_numbers<[1], [0], [0], [1], [0, 0, 1, 1], [], []>} : vector<8x64xf32>, vector<64x64xf32>, vector<8x64xf32> -> vector<8x64xf32>
    %c7_434 = arith.constant 7 : index
    %c0_435 = arith.constant 0 : index
    %c0_436 = arith.constant 0 : index
    %783 = vector.load %arg7[%c7_434, %c0_435, %c0_436] : memref<9x64x64xf32, #tpu.memory_space<vmem>>, vector<1x64x64xf32>
    %784 = vector.shape_cast %783 : vector<1x64x64xf32> to vector<64x64xf32>
    %cst_437 = arith.constant dense<0.000000e+00> : vector<8x64xf32>
    %785 = tpu.matmul %779, %784, %cst_437 {dimension_numbers = #tpu.dot_dimension_numbers<[1], [0], [0], [1], [0, 0, 1, 1], [], []>} : vector<8x64xf32>, vector<64x64xf32>, vector<8x64xf32> -> vector<8x64xf32>
    %786 = arith.addf %782, %785 : vector<8x64xf32>
    %c7_438 = arith.constant 7 : index
    %c0_439 = arith.constant 0 : index
    %c0_440 = arith.constant 0 : index
    %787 = vector.load %arg8[%c7_438, %c0_439, %c0_440] : memref<9x1x64xf32, #tpu.memory_space<vmem>>, vector<1x1x64xf32>
    %788 = vector.shape_cast %787 : vector<1x1x64xf32> to vector<1x64xf32>
    %789 = vector.broadcast %788 : vector<1x64xf32> to vector<8x64xf32>
    %790 = arith.addf %786, %789 : vector<8x64xf32>
    %791 = vector.shape_cast %790 : vector<8x64xf32> to vector<1x8x64xf32>
    %cst_441 = arith.constant dense<0.000000e+00> : vector<1xf32>
    %792 = vector.multi_reduction <add>, %791, %cst_441 [1, 2] : vector<1x8x64xf32> to vector<1xf32>
    %793 = vector.shape_cast %792 : vector<1xf32> to vector<1x1x1xf32>
    %794 = vector.extract %793[0, 0, 0] : f32 from vector<1x1x1xf32>
    %795 = vector.broadcast %794 : f32 to vector<1x1xf32>
    %cst_442 = arith.constant 5.120000e+02 : f32
    %796 = vector.broadcast %cst_442 : f32 to vector<1x1xf32>
    %797 = arith.divf %795, %796 : vector<1x1xf32>
    %798 = vector.broadcast %797 : vector<1x1xf32> to vector<8x64xf32>
    %799 = arith.subf %790, %798 : vector<8x64xf32>
    %800 = arith.mulf %799, %799 : vector<8x64xf32>
    %801 = vector.shape_cast %800 : vector<8x64xf32> to vector<1x8x64xf32>
    %cst_443 = arith.constant dense<0.000000e+00> : vector<1xf32>
    %802 = vector.multi_reduction <add>, %801, %cst_443 [1, 2] : vector<1x8x64xf32> to vector<1xf32>
    %803 = vector.shape_cast %802 : vector<1xf32> to vector<1x1x1xf32>
    %804 = vector.extract %803[0, 0, 0] : f32 from vector<1x1x1xf32>
    %805 = vector.broadcast %804 : f32 to vector<1x1xf32>
    %cst_444 = arith.constant 5.120000e+02 : f32
    %806 = vector.broadcast %cst_444 : f32 to vector<1x1xf32>
    %807 = arith.divf %805, %806 : vector<1x1xf32>
    %cst_445 = arith.constant 9.99999974E-6 : f32
    %808 = vector.broadcast %cst_445 : f32 to vector<1x1xf32>
    %809 = arith.addf %807, %808 : vector<1x1xf32>
    %810 = math.rsqrt %809 : vector<1x1xf32>
    %811 = vector.broadcast %810 : vector<1x1xf32> to vector<8x64xf32>
    %812 = arith.mulf %799, %811 : vector<8x64xf32>
    %813 = vector.extract_strided_slice %812 {offsets = [0, 0], sizes = [8, 32], strides = [1, 1]} : vector<8x64xf32> to vector<8x32xf32>
    %814 = vector.extract_strided_slice %812 {offsets = [0, 32], sizes = [8, 32], strides = [1, 1]} : vector<8x64xf32> to vector<8x32xf32>
    %815 = tpu.concatenate %813, %814 in 0 : vector<8x32xf32>, vector<8x32xf32> -> vector<16x32xf32>
    %c7_446 = arith.constant 7 : index
    %c0_447 = arith.constant 0 : index
    %c0_448 = arith.constant 0 : index
    %816 = vector.load %arg9[%c7_446, %c0_447, %c0_448] : memref<9x32x256xf32, #tpu.memory_space<vmem>>, vector<1x32x256xf32>
    %817 = vector.shape_cast %816 : vector<1x32x256xf32> to vector<32x256xf32>
    %cst_449 = arith.constant dense<0.000000e+00> : vector<16x256xf32>
    %818 = tpu.matmul %815, %817, %cst_449 {dimension_numbers = #tpu.dot_dimension_numbers<[1], [0], [0], [1], [0, 0, 1, 1], [], []>} : vector<16x32xf32>, vector<32x256xf32>, vector<16x256xf32> -> vector<16x256xf32>
    %c7_450 = arith.constant 7 : index
    %c0_451 = arith.constant 0 : index
    %c0_452 = arith.constant 0 : index
    %819 = vector.load %arg10[%c7_450, %c0_451, %c0_452] : memref<9x1x256xf32, #tpu.memory_space<vmem>>, vector<1x1x256xf32>
    %820 = vector.shape_cast %819 : vector<1x1x256xf32> to vector<1x256xf32>
    %821 = vector.broadcast %820 : vector<1x256xf32> to vector<16x256xf32>
    %822 = arith.addf %818, %821 : vector<16x256xf32>
    %cst_453 = arith.constant 0.000000e+00 : f32
    %823 = vector.broadcast %cst_453 : f32 to vector<16x256xf32>
    %824 = arith.maximumf %822, %823 : vector<16x256xf32>
    %c7_454 = arith.constant 7 : index
    %c0_455 = arith.constant 0 : index
    %c0_456 = arith.constant 0 : index
    %825 = vector.load %arg11[%c7_454, %c0_455, %c0_456] : memref<9x256x24xf32, #tpu.memory_space<vmem>>, vector<1x256x24xf32>
    %826 = vector.shape_cast %825 : vector<1x256x24xf32> to vector<256x24xf32>
    %cst_457 = arith.constant dense<0.000000e+00> : vector<16x24xf32>
    %827 = tpu.matmul %824, %826, %cst_457 {dimension_numbers = #tpu.dot_dimension_numbers<[1], [0], [0], [1], [0, 0, 1, 1], [], []>} : vector<16x256xf32>, vector<256x24xf32>, vector<16x24xf32> -> vector<16x24xf32>
    %c7_458 = arith.constant 7 : index
    %c0_459 = arith.constant 0 : index
    %c0_460 = arith.constant 0 : index
    %828 = vector.load %arg12[%c7_458, %c0_459, %c0_460] : memref<9x1x24xf32, #tpu.memory_space<vmem>>, vector<1x1x24xf32>
    %829 = vector.shape_cast %828 : vector<1x1x24xf32> to vector<1x24xf32>
    %830 = vector.broadcast %829 : vector<1x24xf32> to vector<16x24xf32>
    %831 = arith.addf %827, %830 : vector<16x24xf32>
    %832 = vector.extract_strided_slice %831 {offsets = [0, 0], sizes = [8, 12], strides = [1, 1]} : vector<16x24xf32> to vector<8x12xf32>
    %833 = arith.subf %729, %832 : vector<8x12xf32>
    %834 = vector.extract_strided_slice %831 {offsets = [0, 12], sizes = [8, 12], strides = [1, 1]} : vector<16x24xf32> to vector<8x12xf32>
    %835 = arith.addf %731, %834 : vector<8x12xf32>
    %836 = vector.extract_strided_slice %831 {offsets = [8, 0], sizes = [8, 12], strides = [1, 1]} : vector<16x24xf32> to vector<8x12xf32>
    %837 = arith.subf %733, %836 : vector<8x12xf32>
    %838 = vector.extract_strided_slice %831 {offsets = [8, 12], sizes = [8, 12], strides = [1, 1]} : vector<16x24xf32> to vector<8x12xf32>
    %839 = arith.addf %735, %838 : vector<8x12xf32>
    %c8 = arith.constant 8 : index
    %c0_461 = arith.constant 0 : index
    %c0_462 = arith.constant 0 : index
    %840 = vector.load %arg5[%c8, %c0_461, %c0_462] : memref<9x1x128xf32, #tpu.memory_space<vmem>>, vector<1x1x128xf32>
    %841 = vector.shape_cast %840 : vector<1x1x128xf32> to vector<1x128xf32>
    %c8_463 = arith.constant 8 : index
    %c0_464 = arith.constant 0 : index
    %c0_465 = arith.constant 0 : index
    %c0_466 = arith.constant 0 : index
    %842 = vector.load %arg4[%c8_463, %c0_464, %c0_465, %c0_466] : memref<9x2x12x128xf32, #tpu.memory_space<vmem>>, vector<1x1x12x128xf32>
    %843 = vector.shape_cast %842 : vector<1x1x12x128xf32> to vector<12x128xf32>
    %cst_467 = arith.constant dense<0.000000e+00> : vector<8x128xf32>
    %844 = tpu.matmul %833, %843, %cst_467 {dimension_numbers = #tpu.dot_dimension_numbers<[1], [0], [0], [1], [0, 0, 1, 1], [], []>} : vector<8x12xf32>, vector<12x128xf32>, vector<8x128xf32> -> vector<8x128xf32>
    %845 = vector.broadcast %841 : vector<1x128xf32> to vector<8x128xf32>
    %846 = arith.addf %845, %844 : vector<8x128xf32>
    %c8_468 = arith.constant 8 : index
    %c1_469 = arith.constant 1 : index
    %c0_470 = arith.constant 0 : index
    %c0_471 = arith.constant 0 : index
    %847 = vector.load %arg4[%c8_468, %c1_469, %c0_470, %c0_471] : memref<9x2x12x128xf32, #tpu.memory_space<vmem>>, vector<1x1x12x128xf32>
    %848 = vector.shape_cast %847 : vector<1x1x12x128xf32> to vector<12x128xf32>
    %cst_472 = arith.constant dense<0.000000e+00> : vector<8x128xf32>
    %849 = tpu.matmul %837, %848, %cst_472 {dimension_numbers = #tpu.dot_dimension_numbers<[1], [0], [0], [1], [0, 0, 1, 1], [], []>} : vector<8x12xf32>, vector<12x128xf32>, vector<8x128xf32> -> vector<8x128xf32>
    %850 = arith.addf %846, %849 : vector<8x128xf32>
    %851 = vector.extract_strided_slice %850 {offsets = [0, 0], sizes = [8, 64], strides = [1, 1]} : vector<8x128xf32> to vector<8x64xf32>
    %852 = math.tanh %851 : vector<8x64xf32>
    %853 = vector.extract_strided_slice %850 {offsets = [0, 64], sizes = [8, 64], strides = [1, 1]} : vector<8x128xf32> to vector<8x64xf32>
    %854 = arith.negf %853 : vector<8x64xf32>
    %855 = math.exp %854 : vector<8x64xf32>
    %cst_473 = arith.constant 1.000000e+00 : f32
    %856 = vector.broadcast %cst_473 : f32 to vector<8x64xf32>
    %857 = arith.addf %856, %855 : vector<8x64xf32>
    %858 = arith.divf %856, %857 : vector<8x64xf32>
    %859 = arith.mulf %852, %858 : vector<8x64xf32>
    %cst_474 = arith.constant 1.000000e-01 : f32
    %860 = vector.broadcast %cst_474 : f32 to vector<8x64xf32>
    %861 = arith.mulf %860, %859 : vector<8x64xf32>
    %cst_475 = arith.constant dense<0.000000e+00> : vector<8x64xf32>
    %862 = tpu.matmul %0, %859, %cst_475 {dimension_numbers = #tpu.dot_dimension_numbers<[1], [0], [0], [1], [0, 0, 1, 1], [], []>} : vector<8x8xf32>, vector<8x64xf32>, vector<8x64xf32> -> vector<8x64xf32>
    %cst_476 = arith.constant 0.899999976 : f32
    %863 = vector.broadcast %cst_476 : f32 to vector<8x64xf32>
    %864 = arith.mulf %863, %862 : vector<8x64xf32>
    %865 = arith.addf %861, %864 : vector<8x64xf32>
    %cst_477 = arith.constant 1.000000e-01 : f32
    %866 = vector.broadcast %cst_477 : f32 to vector<8x64xf32>
    %867 = arith.mulf %866, %859 : vector<8x64xf32>
    %cst_478 = arith.constant dense<0.000000e+00> : vector<8x64xf32>
    %868 = tpu.matmul %1, %859, %cst_478 {dimension_numbers = #tpu.dot_dimension_numbers<[1], [0], [0], [1], [0, 0, 1, 1], [], []>} : vector<8x8xf32>, vector<8x64xf32>, vector<8x64xf32> -> vector<8x64xf32>
    %cst_479 = arith.constant 0.899999976 : f32
    %869 = vector.broadcast %cst_479 : f32 to vector<8x64xf32>
    %870 = arith.mulf %869, %868 : vector<8x64xf32>
    %871 = arith.addf %867, %870 : vector<8x64xf32>
    %cst_480 = arith.constant 1.000000e-01 : f32
    %872 = vector.broadcast %cst_480 : f32 to vector<8x64xf32>
    %873 = arith.mulf %872, %859 : vector<8x64xf32>
    %cst_481 = arith.constant dense<0.000000e+00> : vector<8x64xf32>
    %874 = tpu.matmul %0, %865, %cst_481 {dimension_numbers = #tpu.dot_dimension_numbers<[1], [0], [0], [1], [0, 0, 1, 1], [], []>} : vector<8x8xf32>, vector<8x64xf32>, vector<8x64xf32> -> vector<8x64xf32>
    %cst_482 = arith.constant 0.899999976 : f32
    %875 = vector.broadcast %cst_482 : f32 to vector<8x64xf32>
    %876 = arith.mulf %875, %874 : vector<8x64xf32>
    %877 = arith.addf %873, %876 : vector<8x64xf32>
    %cst_483 = arith.constant 1.000000e-01 : f32
    %878 = vector.broadcast %cst_483 : f32 to vector<8x64xf32>
    %879 = arith.mulf %878, %859 : vector<8x64xf32>
    %cst_484 = arith.constant dense<0.000000e+00> : vector<8x64xf32>
    %880 = tpu.matmul %1, %871, %cst_484 {dimension_numbers = #tpu.dot_dimension_numbers<[1], [0], [0], [1], [0, 0, 1, 1], [], []>} : vector<8x8xf32>, vector<8x64xf32>, vector<8x64xf32> -> vector<8x64xf32>
    %cst_485 = arith.constant 0.899999976 : f32
    %881 = vector.broadcast %cst_485 : f32 to vector<8x64xf32>
    %882 = arith.mulf %881, %880 : vector<8x64xf32>
    %883 = arith.addf %879, %882 : vector<8x64xf32>
    %c8_486 = arith.constant 8 : index
    %c0_487 = arith.constant 0 : index
    %c0_488 = arith.constant 0 : index
    %884 = vector.load %arg6[%c8_486, %c0_487, %c0_488] : memref<9x64x64xf32, #tpu.memory_space<vmem>>, vector<1x64x64xf32>
    %885 = vector.shape_cast %884 : vector<1x64x64xf32> to vector<64x64xf32>
    %cst_489 = arith.constant dense<0.000000e+00> : vector<8x64xf32>
    %886 = tpu.matmul %877, %885, %cst_489 {dimension_numbers = #tpu.dot_dimension_numbers<[1], [0], [0], [1], [0, 0, 1, 1], [], []>} : vector<8x64xf32>, vector<64x64xf32>, vector<8x64xf32> -> vector<8x64xf32>
    %c8_490 = arith.constant 8 : index
    %c0_491 = arith.constant 0 : index
    %c0_492 = arith.constant 0 : index
    %887 = vector.load %arg7[%c8_490, %c0_491, %c0_492] : memref<9x64x64xf32, #tpu.memory_space<vmem>>, vector<1x64x64xf32>
    %888 = vector.shape_cast %887 : vector<1x64x64xf32> to vector<64x64xf32>
    %cst_493 = arith.constant dense<0.000000e+00> : vector<8x64xf32>
    %889 = tpu.matmul %883, %888, %cst_493 {dimension_numbers = #tpu.dot_dimension_numbers<[1], [0], [0], [1], [0, 0, 1, 1], [], []>} : vector<8x64xf32>, vector<64x64xf32>, vector<8x64xf32> -> vector<8x64xf32>
    %890 = arith.addf %886, %889 : vector<8x64xf32>
    %c8_494 = arith.constant 8 : index
    %c0_495 = arith.constant 0 : index
    %c0_496 = arith.constant 0 : index
    %891 = vector.load %arg8[%c8_494, %c0_495, %c0_496] : memref<9x1x64xf32, #tpu.memory_space<vmem>>, vector<1x1x64xf32>
    %892 = vector.shape_cast %891 : vector<1x1x64xf32> to vector<1x64xf32>
    %893 = vector.broadcast %892 : vector<1x64xf32> to vector<8x64xf32>
    %894 = arith.addf %890, %893 : vector<8x64xf32>
    %895 = vector.shape_cast %894 : vector<8x64xf32> to vector<1x8x64xf32>
    %cst_497 = arith.constant dense<0.000000e+00> : vector<1xf32>
    %896 = vector.multi_reduction <add>, %895, %cst_497 [1, 2] : vector<1x8x64xf32> to vector<1xf32>
    %897 = vector.shape_cast %896 : vector<1xf32> to vector<1x1x1xf32>
    %898 = vector.extract %897[0, 0, 0] : f32 from vector<1x1x1xf32>
    %899 = vector.broadcast %898 : f32 to vector<1x1xf32>
    %cst_498 = arith.constant 5.120000e+02 : f32
    %900 = vector.broadcast %cst_498 : f32 to vector<1x1xf32>
    %901 = arith.divf %899, %900 : vector<1x1xf32>
    %902 = vector.broadcast %901 : vector<1x1xf32> to vector<8x64xf32>
    %903 = arith.subf %894, %902 : vector<8x64xf32>
    %904 = arith.mulf %903, %903 : vector<8x64xf32>
    %905 = vector.shape_cast %904 : vector<8x64xf32> to vector<1x8x64xf32>
    %cst_499 = arith.constant dense<0.000000e+00> : vector<1xf32>
    %906 = vector.multi_reduction <add>, %905, %cst_499 [1, 2] : vector<1x8x64xf32> to vector<1xf32>
    %907 = vector.shape_cast %906 : vector<1xf32> to vector<1x1x1xf32>
    %908 = vector.extract %907[0, 0, 0] : f32 from vector<1x1x1xf32>
    %909 = vector.broadcast %908 : f32 to vector<1x1xf32>
    %cst_500 = arith.constant 5.120000e+02 : f32
    %910 = vector.broadcast %cst_500 : f32 to vector<1x1xf32>
    %911 = arith.divf %909, %910 : vector<1x1xf32>
    %cst_501 = arith.constant 9.99999974E-6 : f32
    %912 = vector.broadcast %cst_501 : f32 to vector<1x1xf32>
    %913 = arith.addf %911, %912 : vector<1x1xf32>
    %914 = math.rsqrt %913 : vector<1x1xf32>
    %915 = vector.broadcast %914 : vector<1x1xf32> to vector<8x64xf32>
    %916 = arith.mulf %903, %915 : vector<8x64xf32>
    %917 = vector.extract_strided_slice %916 {offsets = [0, 0], sizes = [8, 32], strides = [1, 1]} : vector<8x64xf32> to vector<8x32xf32>
    %918 = vector.extract_strided_slice %916 {offsets = [0, 32], sizes = [8, 32], strides = [1, 1]} : vector<8x64xf32> to vector<8x32xf32>
    %919 = tpu.concatenate %917, %918 in 0 : vector<8x32xf32>, vector<8x32xf32> -> vector<16x32xf32>
    %c8_502 = arith.constant 8 : index
    %c0_503 = arith.constant 0 : index
    %c0_504 = arith.constant 0 : index
    %920 = vector.load %arg9[%c8_502, %c0_503, %c0_504] : memref<9x32x256xf32, #tpu.memory_space<vmem>>, vector<1x32x256xf32>
    %921 = vector.shape_cast %920 : vector<1x32x256xf32> to vector<32x256xf32>
    %cst_505 = arith.constant dense<0.000000e+00> : vector<16x256xf32>
    %922 = tpu.matmul %919, %921, %cst_505 {dimension_numbers = #tpu.dot_dimension_numbers<[1], [0], [0], [1], [0, 0, 1, 1], [], []>} : vector<16x32xf32>, vector<32x256xf32>, vector<16x256xf32> -> vector<16x256xf32>
    %c8_506 = arith.constant 8 : index
    %c0_507 = arith.constant 0 : index
    %c0_508 = arith.constant 0 : index
    %923 = vector.load %arg10[%c8_506, %c0_507, %c0_508] : memref<9x1x256xf32, #tpu.memory_space<vmem>>, vector<1x1x256xf32>
    %924 = vector.shape_cast %923 : vector<1x1x256xf32> to vector<1x256xf32>
    %925 = vector.broadcast %924 : vector<1x256xf32> to vector<16x256xf32>
    %926 = arith.addf %922, %925 : vector<16x256xf32>
    %cst_509 = arith.constant 0.000000e+00 : f32
    %927 = vector.broadcast %cst_509 : f32 to vector<16x256xf32>
    %928 = arith.maximumf %926, %927 : vector<16x256xf32>
    %c8_510 = arith.constant 8 : index
    %c0_511 = arith.constant 0 : index
    %c0_512 = arith.constant 0 : index
    %929 = vector.load %arg11[%c8_510, %c0_511, %c0_512] : memref<9x256x24xf32, #tpu.memory_space<vmem>>, vector<1x256x24xf32>
    %930 = vector.shape_cast %929 : vector<1x256x24xf32> to vector<256x24xf32>
    %cst_513 = arith.constant dense<0.000000e+00> : vector<16x24xf32>
    %931 = tpu.matmul %928, %930, %cst_513 {dimension_numbers = #tpu.dot_dimension_numbers<[1], [0], [0], [1], [0, 0, 1, 1], [], []>} : vector<16x256xf32>, vector<256x24xf32>, vector<16x24xf32> -> vector<16x24xf32>
    %c8_514 = arith.constant 8 : index
    %c0_515 = arith.constant 0 : index
    %c0_516 = arith.constant 0 : index
    %932 = vector.load %arg12[%c8_514, %c0_515, %c0_516] : memref<9x1x24xf32, #tpu.memory_space<vmem>>, vector<1x1x24xf32>
    %933 = vector.shape_cast %932 : vector<1x1x24xf32> to vector<1x24xf32>
    %934 = vector.broadcast %933 : vector<1x24xf32> to vector<16x24xf32>
    %935 = arith.addf %931, %934 : vector<16x24xf32>
    %936 = vector.extract_strided_slice %935 {offsets = [0, 12], sizes = [8, 12], strides = [1, 1]} : vector<16x24xf32> to vector<8x12xf32>
    %937 = arith.addf %835, %936 : vector<8x12xf32>
    %938 = vector.extract_strided_slice %935 {offsets = [8, 12], sizes = [8, 12], strides = [1, 1]} : vector<16x24xf32> to vector<8x12xf32>
    %939 = arith.addf %839, %938 : vector<8x12xf32>
    %c0_517 = arith.constant 0 : index
    %c0_518 = arith.constant 0 : index
    %c0_519 = arith.constant 0 : index
    %c0_520 = arith.constant 0 : index
    %940 = vector.load %arg13[%c0_517, %c0_518, %c0_519, %c0_520] : memref<1x2x8x12xf32, #tpu.memory_space<vmem>>, vector<1x1x8x12xf32>
    %941 = vector.shape_cast %940 : vector<1x1x8x12xf32> to vector<8x12xf32>
    %942 = vector.shape_cast %937 : vector<8x12xf32> to vector<1x1x8x12xf32>
    tpu.vector_store %arg13[%c0_517, %c0_518, %c0_519, %c0_520], %942 {strides = array<i32>} : memref<1x2x8x12xf32, #tpu.memory_space<vmem>>, vector<1x1x8x12xf32>,
    %c0_521 = arith.constant 0 : index
    %c1_522 = arith.constant 1 : index
    %c0_523 = arith.constant 0 : index
    %c0_524 = arith.constant 0 : index
    %943 = vector.load %arg13[%c0_521, %c1_522, %c0_523, %c0_524] : memref<1x2x8x12xf32, #tpu.memory_space<vmem>>, vector<1x1x8x12xf32>
    %944 = vector.shape_cast %943 : vector<1x1x8x12xf32> to vector<8x12xf32>
    %945 = vector.shape_cast %939 : vector<8x12xf32> to vector<1x1x8x12xf32>
    tpu.vector_store %arg13[%c0_521, %c1_522, %c0_523, %c0_524], %945 {strides = array<i32>} : memref<1x2x8x12xf32, #tpu.memory_space<vmem>>, vector<1x1x8x12xf32>,
    return
  }
  func.func @transform_0(%arg0: i32) -> (i32, i32, i32, i32) {
    %c0_i32 = arith.constant 0 : i32
    %c0_i32_0 = arith.constant 0 : i32
    %c0_i32_1 = arith.constant 0 : i32
    %c0_i32_2 = arith.constant 0 : i32
    return %arg0, %c0_i32, %c0_i32_0, %c0_i32_1 : i32, i32, i32, i32
  }
  func.func @transform_1(%arg0: i32) -> (i32, i32) {
    %c0_i32 = arith.constant 0 : i32
    %c0_i32_0 = arith.constant 0 : i32
    %c0_i32_1 = arith.constant 0 : i32
    return %c0_i32, %c0_i32_0 : i32, i32
  }
  func.func @transform_2(%arg0: i32) -> (i32, i32) {
    %c0_i32 = arith.constant 0 : i32
    %c0_i32_0 = arith.constant 0 : i32
    %c0_i32_1 = arith.constant 0 : i32
    return %c0_i32, %c0_i32_0 : i32, i32
  }
  func.func @transform_3(%arg0: i32) -> (i32, i32, i32, i32) {
    %c0_i32 = arith.constant 0 : i32
    %c0_i32_0 = arith.constant 0 : i32
    %c0_i32_1 = arith.constant 0 : i32
    %c0_i32_2 = arith.constant 0 : i32
    %c0_i32_3 = arith.constant 0 : i32
    return %c0_i32, %c0_i32_0, %c0_i32_1, %c0_i32_2 : i32, i32, i32, i32
  }
  func.func @transform_4(%arg0: i32) -> (i32, i32, i32) {
    %c0_i32 = arith.constant 0 : i32
    %c0_i32_0 = arith.constant 0 : i32
    %c0_i32_1 = arith.constant 0 : i32
    %c0_i32_2 = arith.constant 0 : i32
    return %c0_i32, %c0_i32_0, %c0_i32_1 : i32, i32, i32
  }
  func.func @transform_5(%arg0: i32) -> (i32, i32, i32) {
    %c0_i32 = arith.constant 0 : i32
    %c0_i32_0 = arith.constant 0 : i32
    %c0_i32_1 = arith.constant 0 : i32
    %c0_i32_2 = arith.constant 0 : i32
    return %c0_i32, %c0_i32_0, %c0_i32_1 : i32, i32, i32
  }
  func.func @transform_6(%arg0: i32) -> (i32, i32, i32) {
    %c0_i32 = arith.constant 0 : i32
    %c0_i32_0 = arith.constant 0 : i32
    %c0_i32_1 = arith.constant 0 : i32
    %c0_i32_2 = arith.constant 0 : i32
    return %c0_i32, %c0_i32_0, %c0_i32_1 : i32, i32, i32
  }
  func.func @transform_7(%arg0: i32) -> (i32, i32, i32) {
    %c0_i32 = arith.constant 0 : i32
    %c0_i32_0 = arith.constant 0 : i32
    %c0_i32_1 = arith.constant 0 : i32
    %c0_i32_2 = arith.constant 0 : i32
    return %c0_i32, %c0_i32_0, %c0_i32_1 : i32, i32, i32
  }
  func.func @transform_8(%arg0: i32) -> (i32, i32, i32) {
    %c0_i32 = arith.constant 0 : i32
    %c0_i32_0 = arith.constant 0 : i32
    %c0_i32_1 = arith.constant 0 : i32
    %c0_i32_2 = arith.constant 0 : i32
    return %c0_i32, %c0_i32_0, %c0_i32_1 : i32, i32, i32
  }
  func.func @transform_9(%arg0: i32) -> (i32, i32, i32) {
    %c0_i32 = arith.constant 0 : i32
    %c0_i32_0 = arith.constant 0 : i32
    %c0_i32_1 = arith.constant 0 : i32
    %c0_i32_2 = arith.constant 0 : i32
    return %c0_i32, %c0_i32_0, %c0_i32_1 : i32, i32, i32
  }
  func.func @transform_10(%arg0: i32) -> (i32, i32, i32) {
    %c0_i32 = arith.constant 0 : i32
    %c0_i32_0 = arith.constant 0 : i32
    %c0_i32_1 = arith.constant 0 : i32
    %c0_i32_2 = arith.constant 0 : i32
    return %c0_i32, %c0_i32_0, %c0_i32_1 : i32, i32, i32
  }
  func.func @transform_11(%arg0: i32) -> (i32, i32, i32) {
    %c0_i32 = arith.constant 0 : i32
    %c0_i32_0 = arith.constant 0 : i32
    %c0_i32_1 = arith.constant 0 : i32
    %c0_i32_2 = arith.constant 0 : i32
    return %c0_i32, %c0_i32_0, %c0_i32_1 : i32, i32, i32
  }
  func.func @transform_12(%arg0: i32) -> (i32, i32, i32, i32) {
    %c0_i32 = arith.constant 0 : i32
    %c0_i32_0 = arith.constant 0 : i32
    %c0_i32_1 = arith.constant 0 : i32
    %c0_i32_2 = arith.constant 0 : i32
    return %arg0, %c0_i32, %c0_i32_0, %c0_i32_1 : i32, i32, i32, i32
  }
}

</mosaic_0001>

<bundles_post_ra>
// kernel: beats_ode2_forward.1
= control target key start
LH: loop header
LB: loop body
LE: loop exit
PB: predicated region body
PF: predicated region fallthrough
CT: control target
= control target key end

     0   :  { %s11432_s21 = smov 0   ;;  %s13896_s0 = inlined_call_operand.vmem [shape: f32[2,2,8,12], index: 0, kind: input, shape index: {}]   ;;  %s13897_s1 = inlined_call_operand.vmem [shape: f32[8,8], index: 1, kind: input, shape index: {}]   ;;  %s13898_s2 = inlined_call_operand.vmem [shape: f32[8,8], index: 2, kind: input, shape index: {}]   ;;  %s13899_s3 = inlined_call_operand.vmem [shape: f32[9,2,12,128], index: 3, kind: input, shape index: {}]   ;;  %s13900_s4 = inlined_call_operand.vmem [shape: f32[9,1,128], index: 4, kind: input, shape index: {}]   ;;  %s13901_s5 = inlined_call_operand.vmem [shape: f32[9,64,64], index: 5, kind: input, shape index: {}]   ;;  %s13902_s6 = inlined_call_operand.vmem [shape: f32[9,64,64], index: 6, kind: input, shape index: {}]   ;;  %s13903_s7 = inlined_call_operand.vmem [shape: f32[9,1,64], index: 7, kind: input, shape index: {}]   ;;  %s13904_s8 = inlined_call_operand.vmem [shape: f32[9,32,256], index: 8, kind: input, shape index: {}]   ;;  %s13905_s9 = inlined_call_operand.vmem [shape: f32[9,1,256], index: 9, kind: input, shape index: {}]   ;;  %s13906_s10 = inlined_call_operand.vmem [shape: f32[9,256,24], index: 10, kind: input, shape index: {}]   ;;  %s13907_s11 = inlined_call_operand.vmem [shape: f32[9,1,24], index: 11, kind: input, shape index: {}]   ;;  %s13908_s12 = inlined_call_operand.vmem [shape: f32[2,2,8,12], index: 12, kind: output, shape index: {}]  }
   0x1 LB: > { %s8595_s22 = sadd.s32 4294967295, %s11358_s21   ;;  %p8599_p0 = scmp.ge.s32.totalorder %s11358_s21, 1  ;;  %s11358_s21 = sphi %s11432_s21, %s22_s21  }
   0x2   : > { %p362_p1 = scmp.lt.s32.totalorder %s11358_s21, 3 }
   0x4   : > { %p363_p2 = pnand %p8599_p0, %p362_p1 }
   0x5   : > { %v420_v0 = vld [vmem:[%s13899_s3] sm:$0xff] (!%p363_p2)  ;;  %v421_v1 = vld [vmem:[%s13899_s3 + $0x8] sm:$0xf] (!%p363_p2)  ;;  %vm426_vm0 = vcmask (!%p363_p2), 1043456   ;;  %v11360_v2 = vmov (!%p363_p2), 0.0|0.0   ;;  %vm11361_vm1 = vmmov (!%p363_p2), 1  }
   0x6   : > { %366 = sbr.rel (%p363_p2) target bundleno = 18123 (0x46cb), region = 68  ;;  %10546 = vmatprep.subr.bf16.mxu0 (!%p363_p2), %v11360_v2  ;;  %v10547_v3 = vpack.c.bf16 (!%p363_p2), %v421_v1, %v420_v0  ;;  %vm11447_vm2 = vmpackc.low (!%p363_p2), %vm426_vm0, %vm11361_vm1  ;;  %p404_p3 = scmp.lt.s32.totalorder (!%p363_p2), %s8595_s22, 1  ;;  %vm11362_vm3 = vmmov (!%p363_p2), 0   ;;  %v11363_v5 = vmov (!%p363_p2), 0.0   ;;  %v8608_v6 = vld [vmem:[%s13899_s3 + $0x10] sm:$0xff] (!%p363_p2)  ;;  %vm422_vm4 = vcmask (!%p363_p2), 97280  }
   0x7   : > { %9902 = vmatprep.mubr.msk.f32.mxu0 (!%p363_p2), %vm11362_vm3, %v11363_v5  ;;  %v8609_v7 = vld [vmem:[%s13899_s3 + $0x18] sm:$0xf] (!%p363_p2)  ;;  %9912 = vmatprep.subr.mxu1 (!%p363_p2), %v11363_v5  ;;  %v8607_v11 = vld [vmem:[%s13900_s4] ss:$0 sm:$0xff] (!%p363_p2)  ;;  %s11364_s19 = smov (!%p363_p2), 64   ;;  %vm600_vm5 = vcmask (!%p363_p2), 64512  }
   0x8   : > { %10549 = vmatpush3.bf16.msk.msra.mxu0 (!%p363_p2), %vm11447_vm2, %v10547_v3  ;;  %9914 = vmatprep.mubr.msk.f32.mxu1 (!%p363_p2), %vm11362_vm3, %v11363_v5  ;;  %v10551_v8 = vpack.c.bf16 (!%p363_p2), %v8609_v7, %v8608_v6  ;;  %v11495_v22 = vld [vmem:[%s13897_s1] sm:$0xff] (!%p363_p2)  ;;  %v896_v25 = vld [vmem:[%s13901_s5 + $0x8] sm:$0xff] (!%p363_p2)  ;;  %v897_v27 = vld [vmem:[%s13901_s5 + $0x10] sm:$0xff] (!%p363_p2)  ;;  %vm911_vm6 = vcmask (!%p363_p2), 523264   ;;  %vm1119_vm7 = vcmask (!%p363_p2), 261120   ;;  %s11365_s30 = smov (!%p363_p2), 96  }
   0x9   : > { %10550 = vmatprep.subr.bf16.mxu0 (!%p363_p2), %v11360_v2  ;;  %v11505_v23 = vld [vmem:[%s13898_s2] sm:$0xff] (!%p363_p2)  ;;  %v898_v28 = vld [vmem:[%s13901_s5 + $0x18] sm:$0xff] (!%p363_p2)  ;;  %v900_v31 = vld [vmem:[%s13901_s5 + $0x28] sm:$0xff] (!%p363_p2) }
   0xa   : > { %v895_v24 = vld [vmem:[%s13901_s5] sm:$0xff] (!%p363_p2)  ;;  %v10570_v29 = vpack.c.bf16 (!%p363_p2), %v898_v28, %v897_v27  ;;  %v904_v40 = vld [vmem:[%s13902_s6 + $0x8] sm:$0xff] (!%p363_p2)  ;;  %v905_v45 = vld [vmem:[%s13902_s6 + $0x10] sm:$0xff] (!%p363_p2) }
   0xb   : > { %v10567_v26 = vpack.c.bf16 (!%p363_p2), %v896_v25, %v895_v24  ;;  %v899_v30 = vld [vmem:[%s13901_s5 + $0x20] sm:$0xff] (!%p363_p2)  ;;  %v906_v46 = vld [vmem:[%s13902_s6 + $0x18] sm:$0xff] (!%p363_p2)  ;;  %v908_v49 = vld [vmem:[%s13902_s6 + $0x28] sm:$0xff] (!%p363_p2) }
   0xc   : > { %v10573_v32 = vpack.c.bf16 (!%p363_p2), %v900_v31, %v899_v30  ;;  %v903_v39 = vld [vmem:[%s13902_s6] sm:$0xff] (!%p363_p2)  ;;  %v10558_v47 = vpack.c.bf16 (!%p363_p2), %v906_v46, %v905_v45  ;;  %v901_v50 = vld [vmem:[%s13901_s5 + $0x30] sm:$0xff] (!%p363_p2)  ;;  %v902_v52 = vld [vmem:[%s13901_s5 + $0x38] sm:$0xff] (!%p363_p2) }
   0xd   : > { %s13912_s22 = smov (!%p404_p3, %s8595_s22), 1  ;;  %v10555_v44 = vpack.c.bf16 %v904_v40, %v903_v39  ;;  %v907_v48 = vld [vmem:[%s13902_s6 + $0x20] sm:$0xff]  ;;  %v10576_v53 = vpack.c.bf16 %v902_v52, %v901_v50  ;;  %v909_v54 = vld [vmem:[%s13902_s6 + $0x30] sm:$0xff]  ;;  %v910_v55 = vld [vmem:[%s13902_s6 + $0x38] sm:$0xff] }
   0xe   : > { %s9266_s13 = sshll.u32 %s13912_s22, 4  ;;  %v10561_v51 = vpack.c.bf16 %v908_v49, %v907_v48  ;;  %v10564_v56 = vpack.c.bf16 %v910_v55, %v909_v54  ;;  %v8619_v7 = vld [vmem:[%s13903_s7] ss:$0 sm:$0xff]  ;;  %v1100_v28 = vld [vmem:[%s13904_s8 + $0x8] sm:$0xff]  ;;  %v1223_v55 = vld [vmem:[%s13906_s10 + $0x90] sm:$0xff] }
   0xf   : > { %s408_s16 = scalar_lea.vmem %s13896_s0, %s9266_s13  ;;  %v1099_v30 = vld [vmem:[%s13904_s8] sm:$0xff]  ;;  %v1206_v54 = vld [vmem:[%s13906_s10 + $0x8] sm:$0xff] }
  0x10   : > { %v11473_v9 = vld [vmem:[%s408_s16] sm:$0xff]  ;;  %v11482_v10 = vld [vmem:[%s408_s16 + $0x8] sm:$0xff] }
  0x11   : > { %9903 = vmatmul.mubr.msk.f32.vlgmr.msra.gmra.mrb[0].mxu0 %vm422_vm4, %v11473_v9  ;;  %v1221_v50 = vld [vmem:[%s13906_s10 + $0x80] sm:$0xff]  ;;  %v9188_v4 = vld [vmem:[%s13900_s4 + $0x8] ss:$0 sm:$0xff] }
  0x12   : > { %10553 = vmatpush3.bf16.msk.msra.mxu0 %vm11447_vm2, %v10551_v8  ;;  %9909 = vmatprep.mubr.msk.f32.mxu0 %vm11362_vm3, %v11363_v5  ;;  %v1205_v52 = vld [vmem:[%s13906_s10] sm:$0xff] }
  0x13   : > { %10566 = vmatprep.subr.bf16.mxu0 %v11360_v2 }
  0x19   : > { %9910 = vmatmul.mubr.msk.f32.vlgmr.msra.gmra.mrb[0].mxu0 %vm422_vm4, %v11482_v10 }
  0x1a   : > { %9967 = vmatprep.mubr.msk.f32.mxu0 %vm11362_vm3, %v11363_v5  ;;  %10568 = vmatpush3.bf16.msra.mxu0 %v10567_v26 }
  0x1b   : > { %10569 = vmatprep.subr.bf16.mxu0 %v11360_v2 }
  0x1e   : > { %10571 = vmatpush3.bf16.msra.mxu0 %v10570_v29  ;;  %v1102_v29 = vld [vmem:[%s13904_s8 + $0x18] sm:$0xff] }
  0x1f   : > { %10572 = vmatprep.subr.bf16.mxu0 %v11360_v2  ;;  %v10578_v31 = vpack.c.bf16 %v1102_v29, %v1100_v28  ;;  %v1215_v28 = vld [vmem:[%s13906_s10 + $0x50] sm:$0xff]  ;;  %v1216_v29 = vld [vmem:[%s13906_s10 + $0x58] sm:$0xff] }
  0x22   : > { %10574 = vmatpush3.bf16.msra.mxu0 %v10573_v32  ;;  %v1101_v32 = vld [vmem:[%s13904_s8 + $0x10] sm:$0xff] }
  0x23   : > { %10575 = vmatprep.subr.bf16.mxu0 %v11360_v2 }
  0x26   : > { %10577 = vmatpush3.bf16.msra.mxu0 %v10576_v53 }
  0xec   : > { %v582_v12 = vpop.f32.mrb[0].mxu0 }
  0xed   : > { %v11194_v13 = vadd.f32 %v8607_v11, %v582_v12  ;;  %v9911_v14 = vpop.f32.mrb[1].mxu0 }
  0xef   : > { %v8612_v15 = vmul.f32 -1.442695, %v11194_v13 }
  0xf1   : > { %11272 = vpow2.f32 %v8612_v15 }
  0xfb   : > { %v11273_v16 = vpop.eup %11272 }
  0xfc   : > { %v591_v17 = vadd.f32 1.0, %v11273_v16 }
  0xfe   : > { %11274 = vrcp.f32 %v591_v17 }
  0xff   : > { %11276 = vtanh.f32 %v11194_v13 }
 0x108   : > { %v11275_v18 = vpop.eup %11274 }
 0x109   : > { %595 = vrot.lane.b32.xlu0 %v11275_v18, %s11364_s19  ;;  %v11277_v19 = vpop.eup %11276 }
 0x17b   : > { %v596_v20 = vpop.permute.xlu0 %595 }
 0x17c   : > { %v598_v21 = vmul.f32 %v11277_v19, %v596_v20 }
 0x17e   : > { %9913 = vmatpush3.msra.mxu1 %v598_v21  ;;  %v599_v34 = vmul.f32 0.1, %v598_v21 }
 0x17f   : > { %9915 = vmatmul.mubr.msk.f32.vlgmr.msra.gmra.mrb[0].mxu1 %vm600_vm5, %v11495_v22  ;;  %9917 = vmatprep.subr.mxu1 %v11363_v5 }
 0x180   : > { %9918 = vmatpush3.msra.mxu1 %v598_v21  ;;  %9919 = vmatprep.mubr.msk.f32.mxu1 %vm11362_vm3, %v11363_v5 }
 0x181   : > { %9922 = vmatprep.subr.mxu1 %v11363_v5 }
 0x183   : > { %9920 = vmatmul.mubr.msk.f32.vlgmr.msra.gmra.mrb[2].mxu1 %vm600_vm5, %v11505_v23 }
 0x184   : > { %9924 = vmatprep.mubr.msk.f32.mxu1 %vm11362_vm3, %v11363_v5 }
 0x252   : > { %v670_v33 = vpop.f32.mrb[0].mxu1 }
 0x253   : > { %v674_v35 = vmul.f32 0.9, %v670_v33  ;;  %v9916_v36 = vpop.f32.mrb[1].mxu1  ;;  %v1104_v33 = vld [vmem:[%s13904_s8 + $0x28] sm:$0xff] }
 0x255   : > { %v675_v37 = vadd.f32 %v674_v35, %v599_v34  ;;  %v10580_v35 = vpack.c.bf16 %v1101_v32, %v1099_v30  ;;  %v1233_v30 = vld [vmem:[%s13906_s10 + $0xe0] sm:$0xff]  ;;  %v10608_v32 = vpack.c.bf16 %v1216_v29, %v1215_v28 }
 0x256   : > { %v745_v38 = vpop.f32.mrb[2].mxu1 }
 0x257   : > { %v749_v41 = vmul.f32 0.9, %v745_v38  ;;  %v9921_v42 = vpop.f32.mrb[3].mxu1  ;;  %9923 = vmatpush3.msra.mxu1 %v675_v37  ;;  %v1103_v37 = vld [vmem:[%s13904_s8 + $0x20] sm:$0xff]  ;;  %v1105_v38 = vld [vmem:[%s13904_s8 + $0x30] sm:$0xff] }
 0x258   : > { %9925 = vmatmul.mubr.msk.f32.vlgmr.msra.gmra.mrb[4].mxu1 %vm600_vm5, %v11495_v22  ;;  %9927 = vmatprep.subr.mxu1 %v11363_v5  ;;  %v10584_v39 = vpack.c.bf16 %v1105_v38, %v1103_v37  ;;  %v1235_v37 = vld [vmem:[%s13906_s10 + $0xf0] sm:$0xff]  ;;  %v1236_v38 = vld [vmem:[%s13906_s10 + $0xf8] sm:$0xff] }
 0x259   : > { %v750_v43 = vadd.f32 %v749_v41, %v599_v34  ;;  %9929 = vmatprep.mubr.msk.f32.mxu1 %vm11362_vm3, %v11363_v5 }
 0x25b   : > { %9928 = vmatpush3.msra.mxu1 %v750_v43 }
 0x25c   : > { %9930 = vmatmul.mubr.msk.f32.vlgmr.msra.gmra.mrb[6].mxu1 %vm600_vm5, %v11505_v23  ;;  %10554 = vmatprep.subr.bf16.mxu1 %v11360_v2 }
 0x25d   : > { %10556 = vmatpush3.bf16.msra.mxu1 %v10555_v44  ;;  %9948 = vmatprep.mubr.msk.f32.mxu1 %vm11362_vm3, %v11363_v5 }
 0x25e   : > { %10557 = vmatprep.subr.bf16.mxu1 %v11360_v2 }
 0x261   : > { %10559 = vmatpush3.bf16.msra.mxu1 %v10558_v47 }
 0x262   : > { %10560 = vmatprep.subr.bf16.mxu1 %v11360_v2 }
 0x265   : > { %10562 = vmatpush3.bf16.msra.mxu1 %v10561_v51  ;;  %v1222_v51 = vld [vmem:[%s13906_s10 + $0x88] sm:$0xff] }
 0x266   : > { %10563 = vmatprep.subr.bf16.mxu1 %v11360_v2  ;;  %v10586_v53 = vpack.c.bf16 %v1222_v51, %v1221_v50 }
 0x268   : > { %10587 = vmatprep.subr.bf16.mxu0 %v10586_v53 }
 0x269   : > { %10565 = vmatpush3.bf16.msra.mxu1 %v10564_v56  ;;  %v1224_v56 = vld [vmem:[%s13906_s10 + $0x98] sm:$0xff] }
 0x26a   : > { %10579 = vmatprep.subr.bf16.mxu1 %v10578_v31  ;;  %v1234_v31 = vld [vmem:[%s13906_s10 + $0xe8] sm:$0xff] }
 0x32b   : > { %v817_v57 = vpop.f32.mrb[4].mxu1 }
 0x32c   : > { %v821_v58 = vmul.f32 0.9, %v817_v57  ;;  %v9926_v59 = vpop.f32.mrb[5].mxu1  ;;  %v10588_v57 = vpack.c.bf16 %v1206_v54, %v1205_v52 }
 0x32d   : > { %v1207_v59 = vld [vmem:[%s13906_s10 + $0x10] sm:$0xff] }
 0x32e   : > { %v822_v60 = vadd.f32 %v821_v58, %v599_v34  ;;  %v10590_v58 = vpack.c.bf16 %v1224_v56, %v1223_v55 }
 0x32f   : > { %v889_v61 = vpop.f32.mrb[6].mxu1 }
 0x330   : > { %v893_v62 = vmul.f32 0.9, %v889_v61  ;;  %v9931_v63 = vpop.f32.mrb[7].mxu1  ;;  %9968 = vmatmul.mubr.msk.f32.vlgmr.msra.gmra.mrb[2].mxu0 %vm911_vm6, %v822_v60  ;;  %v1208_v60 = vld [vmem:[%s13906_s10 + $0x18] sm:$0xff]  ;;  %v1225_v61 = vld [vmem:[%s13906_s10 + $0xa0] sm:$0xff] }
 0x331   : > { %10589 = vmatpush3.bf16.msra.mxu0 %v10588_v57  ;;  %v10592_v63 = vpack.c.bf16 %v1208_v60, %v1207_v59  ;;  %v8624_v57 = vld [vmem:[%s13899_s3 + $0x20] sm:$0xff] }
 0x332   : > { %v894_v0 = vadd.f32 %v893_v62, %v599_v34  ;;  %v1106_v34 = vld [vmem:[%s13904_s8 + $0x38] sm:$0xff]  ;;  %v1226_v62 = vld [vmem:[%s13906_s10 + $0xa8] sm:$0xff]  ;;  %10591 = vmatprep.subr.bf16.mxu0 %v10590_v58 }
 0x333   : > { %v10582_v36 = vpack.c.bf16 %v1106_v34, %v1104_v33  ;;  %v10610_v33 = vpack.c.bf16 %v1234_v31, %v1233_v30  ;;  %v1217_v34 = vld [vmem:[%s13906_s10 + $0x60] sm:$0xff]  ;;  %v8625_v58 = vld [vmem:[%s13899_s3 + $0x28] sm:$0xf] }
 0x334   : > { %9949 = vmatmul.mubr.msk.f32.vlgmr.msra.gmra.mrb[8].mxu1 %vm911_vm6, %v894_v0  ;;  %v10594_v0 = vpack.c.bf16 %v1226_v62, %v1225_v61  ;;  %v10619_v59 = vpack.c.bf16 %v8625_v58, %v8624_v57  ;;  %v8651_v57 = vld [vmem:[%s13902_s6 + $0x68] sm:$0xff]  ;;  %v8644_v58 = vld [vmem:[%s13901_s5 + $0x70] sm:$0xff] }
 0x335   : > { %1188 = vmatprep.mubr.f32.mxu1 %v11363_v5  ;;  %10581 = vmatpush1.bf16.msra.mxu1 %v10580_v35  ;;  %v1218_v35 = vld [vmem:[%s13906_s10 + $0x68] sm:$0xff] }
 0x336   : > { %10583 = vmatprep.subr.bf16.mxu1 %v10582_v36  ;;  %10593 = vmatpush3.bf16.msra.mxu0 %v10592_v63  ;;  %v10612_v36 = vpack.c.bf16 %v1218_v35, %v1217_v34  ;;  %v8648_v35 = vld [vmem:[%s13902_s6 + $0x50] sm:$0xff] }
 0x337   : > { %10595 = vmatprep.subr.bf16.mxu0 %v10594_v0 }
 0x339   : > { %10585 = vmatpush1.bf16.msra.mxu1 %v10584_v39  ;;  %v10614_v39 = vpack.c.bf16 %v1236_v38, %v1235_v37 }
 0x33a   : > { %10618 = vmatprep.subr.bf16.mxu1 %v11360_v2 }
 0x403   : > { %v1054_v1 = vpop.f32.mrb[2].mxu0 }
 0x404   : > { %v9969_v3 = vpop.f32.mrb[3].mxu0 }
 0x405   : > { %v1210_v3 = vld [vmem:[%s13906_s10 + $0x28] sm:$0xff] }
 0x407   : > { %v981_v6 = vpop.f32.mrb[8].mxu1 }
 0x408   : > { %v1055_v8 = vadd.f32 %v1054_v1, %v981_v6  ;;  %v9950_v11 = vpop.f32.mrb[9].mxu1  ;;  %v1209_v1 = vld [vmem:[%s13906_s10 + $0x20] sm:$0xff]  ;;  %v1227_v6 = vld [vmem:[%s13906_s10 + $0xb0] sm:$0xff] }
 0x409   : > { %v1211_v11 = vld [vmem:[%s13906_s10 + $0x30] sm:$0xff] }
 0x40a   : > { %v1065_v12 = vadd.f32 %v8619_v7, %v1055_v8  ;;  %v1228_v7 = vld [vmem:[%s13906_s10 + $0xb8] sm:$0xff]  ;;  %v10596_v8 = vpack.c.bf16 %v1210_v3, %v1209_v1 }
 0x40c   : > { %v1066_v13 = vsel %vm911_vm6, %v1065_v12, 0.0  ;;  %10597 = vmatpush3.bf16.msra.mxu0 %v10596_v8 }
 0x40d   : > { %1067 = vadd.xlane.f32.xlu0 %v1066_v13 }
 0x49a   : > { %v1068_v14 = vpop.xlane.xlu0 %1067 }
 0x49b   : > { %v1069_v15 = vrot.slane %v1068_v14, 4 }
 0x49d   : > { %v1070_v16 = vadd.f32 %v1069_v15, %v1068_v14  ;;  %v10598_v14 = vpack.c.bf16 %v1228_v7, %v1227_v6  ;;  %v1229_v15 = vld [vmem:[%s13906_s10 + $0xc0] sm:$0xff] }
 0x49e   : > { %v8622_v6 = vld [vmem:[%s13907_s11] ss:$0 sm:$0xff] }
 0x49f   : > { %v1071_v17 = vrot.slane %v1070_v16, 2  ;;  %10599 = vmatprep.subr.bf16.mxu0 %v10598_v14 }
 0x4a1   : > { %v1072_v18 = vadd.f32 %v1071_v17, %v1070_v16  ;;  %v1230_v16 = vld [vmem:[%s13906_s10 + $0xc8] sm:$0xff] }
 0x4a3   : > { %v1073_v19 = vrot.slane %v1072_v18, 1 }
 0x4a5   : > { %v1074_v20 = vadd.f32 %v1073_v19, %v1072_v18  ;;  %v10602_v19 = vpack.c.bf16 %v1230_v16, %v1229_v15 }
 0x4a7   : > { %11221 = vpush %v1074_v20  ;;  %v1213_v20 = vld [vmem:[%s13906_s10 + $0x40] sm:$0xff] }
 0x4d8   : > { %s11222_s15 = spop %11221 }
 0x4d9   : > { %v1076_v21 = vstv %s11222_s15 }
 0x4da   : > { %v1078_v24 = vmul.f32 0.001953125, %v1076_v21  ;;  %v1214_v21 = vld [vmem:[%s13906_s10 + $0x48] sm:$0xff] }
 0x4dc   : > { %v11583_v25 = vsub.f32 %v1065_v12, %v1078_v24  ;;  %v1212_v12 = vld [vmem:[%s13906_s10 + $0x38] sm:$0xff]  ;;  %v1231_v24 = vld [vmem:[%s13906_s10 + $0xd0] sm:$0xff] }
 0x4dd   : > { %v10600_v18 = vpack.c.bf16 %v1212_v12, %v1211_v11  ;;  %v8629_v11 = vld [vmem:[%s13899_s3 + $0x30] sm:$0xff]  ;;  %v8630_v12 = vld [vmem:[%s13899_s3 + $0x38] sm:$0xf] }
 0x4de   : > { %v1080_v26 = vmul.f32 %v11583_v25, %v11583_v25  ;;  %v10623_v14 = vpack.c.bf16 %v8630_v12, %v8629_v11 }
 0x4df   : > { %10601 = vmatpush3.bf16.msra.mxu0 %v10600_v18 }
 0x4e0   : > { %v1081_v27 = vsel %vm911_vm6, %v1080_v26, 0.0  ;;  %v10604_v26 = vpack.c.bf16 %v1214_v21, %v1213_v20  ;;  %10603 = vmatprep.subr.bf16.mxu0 %v10602_v19  ;;  %v8628_v20 = vld [vmem:[%s13900_s4 + $0x1] ss:$0 sm:$0xff] }
 0x4e1   : > { %1082 = vadd.xlane.f32.xlu1 %v1081_v27 }
 0x4e3   : > { %10605 = vmatpush3.bf16.msra.mxu0 %v10604_v26 }
 0x56e   : > { %v1083_v40 = vpop.xlane.xlu1 %1082 }
 0x56f   : > { %v1084_v41 = vrot.slane %v1083_v40, 4 }
 0x571   : > { %v1085_v42 = vadd.f32 %v1084_v41, %v1083_v40  ;;  %v1219_v40 = vld [vmem:[%s13906_s10 + $0x70] sm:$0xff]  ;;  %v1220_v41 = vld [vmem:[%s13906_s10 + $0x78] sm:$0xff] }
 0x573   : > { %v1086_v43 = vrot.slane %v1085_v42, 2 }
 0x575   : > { %v1087_v44 = vadd.f32 %v1086_v43, %v1085_v42  ;;  %v10616_v42 = vpack.c.bf16 %v1220_v41, %v1219_v40 }
 0x577   : > { %v1088_v45 = vrot.slane %v1087_v44, 1 }
 0x579   : > { %v1089_v46 = vadd.f32 %v1088_v45, %v1087_v44  ;;  %v1109_v44 = vlaneseq }
 0x57b   : > { %11223 = vpush %v1089_v46  ;;  %v1110_v45 = vshrl.u32 %v1109_v44, 7  ;;  %v8638_v44 = vld [vmem:[%s13901_s5 + $0x40] sm:$0xff] }
 0x57d   : > { %v11717_v46 = vsub.s32 0, %v1110_v45 }
 0x5ac   : > { %s11224_s18 = spop %11223 }
 0x5ad   : > { %v1091_v47 = vstv %s11224_s18 }
 0x5ae   : > { %v1092_v48 = vmul.f32 0.001953125, %v1091_v47  ;;  %v1107_v47 = vld [vmem:[%s13905_s9] sm:$0x3] }
 0x5b0   : > { %v1093_v49 = vadd.f32 1e-05, %v1092_v48  ;;  %v11722_v48 = vsub.s32 1, %v1110_v45  ;;  %v8639_v45 = vld [vmem:[%s13901_s5 + $0x48] sm:$0xff] }
 0x5b2   : > { %11278 = vrsqrt.f32 %v1093_v49  ;;  %v1112_v49 = vrot.slane %v1107_v47, %v11717_v46  ;;  %v1116_v50 = vrot.slane %v1107_v47, %v11722_v48 }
 0x5bc   : > { %v11279_v13 = vpop.eup %11278 }
 0x5bd   : > { %v1095_v17 = vmul.f32 %v11279_v13, %v11583_v25  ;;  %v1232_v25 = vld [vmem:[%s13906_s10 + $0xd8] sm:$0xff] }
 0x5be   : > { %v10606_v27 = vpack.c.bf16 %v1232_v25, %v1231_v24 }
 0x5bf   : > { %1097 = vrot.lane.b32.xlu1 %v1095_v17, %s11365_s30  ;;  %8620 = vmatmul.mubr.msk.f32.vlgmr.msra.gmra.mrb[10].mxu1 %vm1119_vm7, %v1095_v17 }
 0x5c0   : > { %1194 = vmatprep.mubr.f32.mxu1 %v11363_v5  ;;  %10607 = vmatprep.subr.bf16.mxu0 %v10606_v27 }
 0x5c1   : > { %10609 = vmatpush3.bf16.msra.mxu0 %v10608_v32  ;;  %10621 = vmatpush3.bf16.msk.msra.mxu1 %vm11447_vm2, %v10619_v59  ;;  %v8646_v32 = vld [vmem:[%s13902_s6 + $0x40] sm:$0xff] }
 0x5c2   : > { %10611 = vmatprep.subr.bf16.mxu0 %v10610_v33  ;;  %10622 = vmatprep.subr.bf16.mxu1 %v11360_v2  ;;  %v8647_v33 = vld [vmem:[%s13902_s6 + $0x48] sm:$0xff] }
 0x5c3   : > { %v10627_v34 = vpack.c.bf16 %v8647_v33, %v8646_v32 }
 0x5c5   : > { %10613 = vmatpush3.bf16.msra.mxu0 %v10612_v36  ;;  %v8649_v36 = vld [vmem:[%s13902_s6 + $0x58] sm:$0xff] }
 0x5c6   : > { %10615 = vmatprep.subr.bf16.mxu0 %v10614_v39  ;;  %v10630_v37 = vpack.c.bf16 %v8649_v36, %v8648_v35 }
 0x5c9   : > { %10617 = vmatpush3.bf16.msra.mxu0 %v10616_v42 }
 0x5ca   : > { %10626 = vmatprep.subr.bf16.mxu0 %v11360_v2 }
 0x631   : > { %v1098_v43 = vpop.permute.xlu1 %1097 }
 0x632   : > { %8621 = vmatmul.mubr.msk.f32.gmra.mrb[12].mxu1 %vm1119_vm7, %v1098_v43 }
 0x633   : > { %9974 = vmatprep.mubr.msk.f32.mxu1 %vm11362_vm3, %v11363_v5 }
 0x692   : > { %v1190_v51 = vpop.f32.mrb[10].mxu1 }
 0x693   : > { %v1191_v52 = vadd.f32 %v1190_v51, %v1112_v49  ;;  %v1192_v53 = vpop.f32.mrb[11].mxu1  ;;  %v10639_v51 = vpack.c.bf16 %v8639_v45, %v8638_v44  ;;  %v8665_v44 = vld [vmem:[%s13904_s8 + $0x78] sm:$0xff] }
 0x694   : > { %v1193_v54 = vadd.f32 %v1192_v53, %v1116_v50  ;;  %v8641_v53 = vld [vmem:[%s13901_s5 + $0x58] sm:$0xff] }
 0x695   : > { %v1201_v56 = vmax.f32 %v1191_v52, 0.0  ;;  %v8640_v52 = vld [vmem:[%s13901_s5 + $0x50] sm:$0xff] }
 0x696   : > { %v1202_v55 = vmax.f32 %v1193_v54, 0.0  ;;  %v8642_v54 = vld [vmem:[%s13901_s5 + $0x60] sm:$0xff] }
 0x698   : > { %1308 = vmatprep.mubr.f32.mxu0 %v1202_v55  ;;  %v8643_v55 = vld [vmem:[%s13901_s5 + $0x68] sm:$0xff] }
 0x699   : > { %1309 = vmatmul.mubr.f32.vlgmr.msra.gmra.mrb[4].mxu0 %v1201_v56  ;;  %v10645_v56 = vpack.c.bf16 %v8643_v55, %v8642_v54 }
 0x69a   : > { %10628 = vmatpush3.bf16.msra.mxu0 %v10627_v34 }
 0x69b   : > { %10629 = vmatprep.subr.bf16.mxu0 %v11360_v2 }
 0x69e   : > { %10631 = vmatpush3.bf16.msra.mxu0 %v10630_v37 }
 0x69f   : > { %10632 = vmatprep.subr.bf16.mxu0 %v11360_v2 }
 0x705   : > { %v1196_v60 = vpop.f32.mrb[12].mxu1 }
 0x706   : > { %v1197_v61 = vadd.f32 %v1196_v60, %v1112_v49  ;;  %v1198_v62 = vpop.f32.mrb[13].mxu1  ;;  %v8645_v60 = vld [vmem:[%s13901_s5 + $0x78] sm:$0xff] }
 0x707   : > { %v1199_v63 = vadd.f32 %v1198_v62, %v1116_v50  ;;  %v8652_v62 = vld [vmem:[%s13902_s6 + $0x70] sm:$0xff] }
 0x708   : > { %v1203_v1 = vmax.f32 %v1197_v61, 0.0  ;;  %v10648_v61 = vpack.c.bf16 %v8645_v60, %v8644_v58  ;;  %v8685_v60 = vld [vmem:[%s13906_s10 + $0x180] sm:$0xff] }
 0x709   : > { %v1204_v0 = vmax.f32 %v1199_v63, 0.0  ;;  %v8653_v63 = vld [vmem:[%s13902_s6 + $0x78] sm:$0xff] }
 0x70b   : > { %1313 = vmatprep.mubr.f32.mxu0 %v1204_v0  ;;  %v10636_v0 = vpack.c.bf16 %v8653_v63, %v8652_v62  ;;  %v8669_v63 = vld [vmem:[%s13906_s10 + $0x100] sm:$0xff] }
 0x70c   : > { %1314 = vmatmul.mubr.f32.gmra.mrb[6].mxu0 %v1203_v1 }
 0x70d   : > { %10020 = vmatprep.mubr.msk.f32.mxu0 %vm11362_vm3, %v11363_v5 }
 0x76c   : > { %v9332_v3 = vpop.f32.mrb[4].mxu0 }
 0x76d   : > { %v9333_v7 = vpop.f32.mrb[5].mxu0 }
 0x76e   : > { %v9334_v8 = vadd.f32 %v9333_v7, %v9332_v3 }
 0x770   : > { %v11746_v13 = vadd.f32 %v9334_v8, %v8622_v6 }
 0x772   : > { %v11750_v15 = vsub.f32 %v11473_v9, %v11746_v13 }
 0x774   : > { %9975 = vmatmul.mubr.msk.f32.vlgmr.msra.gmra.mrb[14].mxu1 %vm422_vm4, %v11750_v15 }
 0x775   : > { %10625 = vmatpush3.bf16.msk.msra.mxu1 %vm11447_vm2, %v10623_v14  ;;  %9981 = vmatprep.mubr.msk.f32.mxu1 %vm11362_vm3, %v11363_v5 }
 0x776   : > { %9984 = vmatprep.subr.mxu1 %v11363_v5 }
 0x7df   : > { %v9335_v16 = vpop.f32.mrb[6].mxu0 }
 0x7e0   : > { %v9336_v17 = vpop.f32.mrb[7].mxu0 }
 0x7e1   : > { %v9337_v18 = vadd.f32 %v9336_v17, %v9335_v16 }
 0x7e3   : > { %v11759_v19 = vadd.f32 %v9337_v18, %v8622_v6 }
 0x7e5   : > { %v11763_v9 = vsub.f32 %v11482_v10, %v11759_v19 }
 0x7e7   : > { %9982 = vmatmul.mubr.msk.f32.vlgmr.msra.gmra.mrb[14].mxu1 %vm422_vm4, %v11763_v9 }
 0x7e8   : > { %9986 = vmatprep.mubr.msk.f32.mxu1 %vm11362_vm3, %v11363_v5 }
 0x8ba   : > { %v1486_v21 = vpop.f32.mrb[14].mxu1 }
 0x8bb   : > { %v11195_v24 = vadd.f32 %v8628_v20, %v1486_v21  ;;  %v9983_v25 = vpop.f32.mrb[15].mxu1  ;;  %v8657_v20 = vld [vmem:[%s13903_s7 + $0x1] ss:$0 sm:$0xff] }
 0x8bd   : > { %v8633_v26 = vmul.f32 -1.442695, %v11195_v24 }
 0x8bf   : > { %11280 = vpow2.f32 %v8633_v26 }
 0x8c9   : > { %v11281_v27 = vpop.eup %11280 }
 0x8ca   : > { %v1495_v28 = vadd.f32 1.0, %v11281_v27 }
 0x8cc   : > { %11282 = vrcp.f32 %v1495_v28 }
 0x8cd   : > { %11284 = vtanh.f32 %v11195_v24 }
 0x8d6   : > { %v11283_v10 = vpop.eup %11282 }
 0x8d7   : > { %1499 = vrot.lane.b32.xlu1 %v11283_v10, %s11364_s19  ;;  %v11285_v29 = vpop.eup %11284 }
 0x949   : > { %v1500_v30 = vpop.permute.xlu1 %1499 }
 0x94a   : > { %v1502_v31 = vmul.f32 %v11285_v29, %v1500_v30 }
 0x94c   : > { %9985 = vmatpush3.msra.mxu1 %v1502_v31  ;;  %v1503_v39 = vmul.f32 0.1, %v1502_v31 }
 0x94d   : > { %9987 = vmatmul.mubr.msk.f32.vlgmr.msra.gmra.mrb[16].mxu1 %vm600_vm5, %v11495_v22  ;;  %9989 = vmatprep.subr.mxu1 %v11363_v5 }
 0x94e   : > { %9990 = vmatpush3.msra.mxu1 %v1502_v31  ;;  %9991 = vmatprep.mubr.msk.f32.mxu1 %vm11362_vm3, %v11363_v5 }
 0x94f   : > { %9994 = vmatprep.subr.mxu1 %v11363_v5 }
 0x951   : > { %9992 = vmatmul.mubr.msk.f32.vlgmr.msra.gmra.mrb[18].mxu1 %vm600_vm5, %v11505_v23 }
 0x952   : > { %9996 = vmatprep.mubr.msk.f32.mxu1 %vm11362_vm3, %v11363_v5 }
 0xa20   : > { %v1570_v38 = vpop.f32.mrb[16].mxu1 }
 0xa21   : > { %v1574_v40 = vmul.f32 0.9, %v1570_v38  ;;  %v9988_v41 = vpop.f32.mrb[17].mxu1  ;;  %v8659_v38 = vld [vmem:[%s13904_s8 + $0x48] sm:$0xff] }
 0xa23   : > { %v1575_v42 = vadd.f32 %v1574_v40, %v1503_v39  ;;  %v8658_v40 = vld [vmem:[%s13904_s8 + $0x40] sm:$0xff] }
 0xa24   : > { %v1642_v43 = vpop.f32.mrb[18].mxu1 }
 0xa25   : > { %v1646_v47 = vmul.f32 0.9, %v1642_v43  ;;  %v9993_v49 = vpop.f32.mrb[19].mxu1  ;;  %9995 = vmatpush3.msra.mxu1 %v1575_v42  ;;  %v8660_v42 = vld [vmem:[%s13904_s8 + $0x50] sm:$0xff]  ;;  %v8663_v43 = vld [vmem:[%s13904_s8 + $0x68] sm:$0xff] }
 0xa26   : > { %9997 = vmatmul.mubr.msk.f32.vlgmr.msra.gmra.mrb[20].mxu1 %vm600_vm5, %v11495_v22  ;;  %9999 = vmatprep.subr.mxu1 %v11363_v5  ;;  %v10642_v22 = vpack.c.bf16 %v8641_v53, %v8640_v52  ;;  %v10652_v45 = vpack.c.bf16 %v8660_v42, %v8658_v40  ;;  %v8662_v49 = vld [vmem:[%s13904_s8 + $0x60] sm:$0xff]  ;;  %v8679_v40 = vld [vmem:[%s13906_s10 + $0x150] sm:$0xff] }
 0xa27   : > { %v1647_v50 = vadd.f32 %v1646_v47, %v1503_v39  ;;  %10001 = vmatprep.mubr.msk.f32.mxu1 %vm11362_vm3, %v11363_v5  ;;  %v10654_v47 = vpack.c.bf16 %v8665_v44, %v8663_v43  ;;  %v8697_v42 = vld [vmem:[%s13906_s10 + $0x1e0] sm:$0xff]  ;;  %v8698_v43 = vld [vmem:[%s13906_s10 + $0x1e8] sm:$0xff] }
 0xa29   : > { %10000 = vmatpush3.msra.mxu1 %v1647_v50  ;;  %v8664_v50 = vld [vmem:[%s13904_s8 + $0x70] sm:$0xff] }
 0xa2a   : > { %10002 = vmatmul.mubr.msk.f32.vlgmr.msra.gmra.mrb[22].mxu1 %vm600_vm5, %v11505_v23  ;;  %10638 = vmatprep.subr.bf16.mxu1 %v11360_v2  ;;  %v8650_v23 = vld [vmem:[%s13902_s6 + $0x60] sm:$0xff] }
 0xa2b   : > { %10640 = vmatpush3.bf16.msra.mxu1 %v10639_v51  ;;  %10039 = vmatprep.mubr.msk.f32.mxu1 %vm11362_vm3, %v11363_v5  ;;  %v10633_v59 = vpack.c.bf16 %v8651_v57, %v8650_v23  ;;  %v10656_v51 = vpack.c.bf16 %v8664_v50, %v8662_v49  ;;  %v8682_v49 = vld [vmem:[%s13906_s10 + $0x168] sm:$0xff] }
 0xa2c   : > { %10641 = vmatprep.subr.bf16.mxu1 %v11360_v2 }
 0xa2d   : > { %10634 = vmatpush3.bf16.msra.mxu0 %v10633_v59 }
 0xa2e   : > { %10635 = vmatprep.subr.bf16.mxu0 %v11360_v2 }
 0xa2f   : > { %10643 = vmatpush3.bf16.msra.mxu1 %v10642_v22 }
 0xa30   : > { %10644 = vmatprep.subr.bf16.mxu1 %v11360_v2 }
 0xa31   : > { %10637 = vmatpush3.bf16.msra.mxu0 %v10636_v0  ;;  %v8670_v0 = vld [vmem:[%s13906_s10 + $0x108] sm:$0xff] }
 0xa32   : > { %10690 = vmatprep.subr.bf16.mxu0 %v11360_v2 }
 0xa33   : > { %10646 = vmatpush3.bf16.msra.mxu1 %v10645_v56 }
 0xa34   : > { %10647 = vmatprep.subr.bf16.mxu1 %v11360_v2 }
 0xa37   : > { %10649 = vmatpush3.bf16.msra.mxu1 %v10648_v61  ;;  %v8686_v61 = vld [vmem:[%s13906_s10 + $0x188] sm:$0xff] }
 0xa38   : > { %v10658_v62 = vpack.c.bf16 %v8686_v61, %v8685_v60 }
 0xaf9   : > { %v1714_v1 = vpop.f32.mrb[20].mxu1 }
 0xafa   : > { %v1718_v3 = vmul.f32 0.9, %v1714_v1  ;;  %v9998_v6 = vpop.f32.mrb[21].mxu1  ;;  %v8687_v1 = vld [vmem:[%s13906_s10 + $0x190] sm:$0xff] }
 0xafc   : > { %v1719_v7 = vadd.f32 %v1718_v3, %v1503_v39  ;;  %v8688_v3 = vld [vmem:[%s13906_s10 + $0x198] sm:$0xff] }
 0xafd   : > { %v1786_v8 = vpop.f32.mrb[22].mxu1 }
 0xafe   : > { %v1790_v11 = vmul.f32 0.9, %v1786_v8  ;;  %v10003_v12 = vpop.f32.mrb[23].mxu1  ;;  %10040 = vmatmul.mubr.msk.f32.vlgmr.msra.gmra.mrb[24].mxu1 %vm911_vm6, %v1719_v7  ;;  %v10660_v7 = vpack.c.bf16 %v8670_v0, %v8669_v63 }
 0xaff   : > { %2087 = vmatprep.mubr.f32.mxu1 %v11363_v5  ;;  %v8671_v12 = vld [vmem:[%s13906_s10 + $0x110] sm:$0xff] }
 0xb00   : > { %v1791_v14 = vadd.f32 %v1790_v11, %v1503_v39  ;;  %v8661_v39 = vld [vmem:[%s13904_s8 + $0x58] sm:$0xff]  ;;  %v10662_v11 = vpack.c.bf16 %v8688_v3, %v8687_v1  ;;  %v8704_v1 = vld [vmem:[%s13899_s3 + $0x40] sm:$0xff]  ;;  %v8705_v3 = vld [vmem:[%s13899_s3 + $0x48] sm:$0xf] }
 0xb01   : > { %v10650_v41 = vpack.c.bf16 %v8661_v39, %v8659_v38 }
 0xb02   : > { %10021 = vmatmul.mubr.msk.f32.vlgmr.msra.gmra.mrb[8].mxu0 %vm911_vm6, %v1791_v14  ;;  %v8672_v14 = vld [vmem:[%s13906_s10 + $0x118] sm:$0xff] }
 0xb03   : > { %10046 = vmatprep.mubr.msk.f32.mxu0 %vm11362_vm3, %v11363_v5  ;;  %10651 = vmatprep.subr.bf16.mxu1 %v10650_v41  ;;  %v8680_v41 = vld [vmem:[%s13906_s10 + $0x158] sm:$0xff] }
 0xb04   : > { %10653 = vmatpush1.bf16.msra.mxu1 %v10652_v45  ;;  %v10680_v44 = vpack.c.bf16 %v8680_v41, %v8679_v40  ;;  %v10682_v45 = vpack.c.bf16 %v8698_v43, %v8697_v42  ;;  %v12038_v42 = vld [vmem:[%s13897_s1] sm:$0xff] }
 0xb05   : > { %10655 = vmatprep.subr.bf16.mxu1 %v10654_v47  ;;  %v8681_v47 = vld [vmem:[%s13906_s10 + $0x160] sm:$0xff] }
 0xb06   : > { %v10684_v50 = vpack.c.bf16 %v8682_v49, %v8681_v47  ;;  %v12049_v43 = vld [vmem:[%s13898_s2] sm:$0xff]  ;;  %v8728_v49 = vld [vmem:[%s13902_s6 + $0x90] sm:$0xff] }
 0xb08   : > { %10657 = vmatpush1.bf16.msra.mxu1 %v10656_v51  ;;  %v8699_v51 = vld [vmem:[%s13906_s10 + $0x1f0] sm:$0xff] }
 0xb09   : > { %10659 = vmatprep.subr.bf16.mxu1 %v10658_v62 }
 0xbd1   : > { %v1952_v16 = vpop.f32.mrb[24].mxu1 }
 0xbd2   : > { %v10041_v17 = vpop.f32.mrb[25].mxu1 }
 0xbd3   : > { %v8690_v17 = vld [vmem:[%s13906_s10 + $0x1a8] sm:$0xff] }
 0xbd5   : > { %v1879_v18 = vpop.f32.mrb[8].mxu0 }
 0xbd6   : > { %v1953_v21 = vadd.f32 %v1952_v16, %v1879_v18  ;;  %v10022_v24 = vpop.f32.mrb[9].mxu0  ;;  %v8689_v16 = vld [vmem:[%s13906_s10 + $0x1a0] sm:$0xff]  ;;  %v10664_v18 = vpack.c.bf16 %v8672_v14, %v8671_v12 }
 0xbd7   : > { %v8674_v24 = vld [vmem:[%s13906_s10 + $0x128] sm:$0xff] }
 0xbd8   : > { %v1964_v25 = vadd.f32 %v8657_v20, %v1953_v21  ;;  %v10666_v20 = vpack.c.bf16 %v8690_v17, %v8689_v16  ;;  %v8673_v21 = vld [vmem:[%s13906_s10 + $0x120] sm:$0xff] }
 0xbda   : > { %v1965_v26 = vsel %vm911_vm6, %v1964_v25, 0.0 }
 0xbdb   : > { %1966 = vadd.xlane.f32.xlu1 %v1965_v26  ;;  %v8692_v26 = vld [vmem:[%s13906_s10 + $0x1b8] sm:$0xff] }
 0xc68   : > { %v1967_v27 = vpop.xlane.xlu1 %1966 }
 0xc69   : > { %v1968_v28 = vrot.slane %v1967_v27, 4 }
 0xc6b   : > { %v1969_v10 = vadd.f32 %v1968_v28, %v1967_v27  ;;  %v10668_v27 = vpack.c.bf16 %v8674_v24, %v8673_v21  ;;  %v8709_v24 = vld [vmem:[%s13899_s3 + $0x50] sm:$0xff] }
 0xc6d   : > { %v1970_v29 = vrot.slane %v1969_v10, 2 }
 0xc6f   : > { %v1971_v30 = vadd.f32 %v1970_v29, %v1969_v10  ;;  %v8675_v10 = vld [vmem:[%s13906_s10 + $0x130] sm:$0xff]  ;;  %v8676_v29 = vld [vmem:[%s13906_s10 + $0x138] sm:$0xff] }
 0xc71   : > { %v1972_v31 = vrot.slane %v1971_v30, 1 }
 0xc73   : > { %v1973_v32 = vadd.f32 %v1972_v31, %v1971_v30  ;;  %v8693_v30 = vld [vmem:[%s13906_s10 + $0x1c0] sm:$0xff]  ;;  %v8694_v31 = vld [vmem:[%s13906_s10 + $0x1c8] sm:$0xff] }
 0xc75   : > { %11225 = vpush %v1973_v32  ;;  %v10672_v32 = vpack.c.bf16 %v8676_v29, %v8675_v10 }
 0xca6   : > { %s11226_s28 = spop %11225 }
 0xca7   : > { %v1975_v33 = vstv %s11226_s28 }
 0xca8   : > { %v1976_v34 = vmul.f32 0.001953125, %v1975_v33  ;;  %v10674_v33 = vpack.c.bf16 %v8694_v31, %v8693_v30 }
 0xcaa   : > { %v1977_v35 = vsub.f32 %v1964_v25, %v1976_v34  ;;  %v8691_v25 = vld [vmem:[%s13906_s10 + $0x1b0] sm:$0xff]  ;;  %v8677_v34 = vld [vmem:[%s13906_s10 + $0x140] sm:$0xff] }
 0xcab   : > { %v10670_v28 = vpack.c.bf16 %v8692_v26, %v8691_v25  ;;  %v8710_v25 = vld [vmem:[%s13899_s3 + $0x58] sm:$0xf] }
 0xcac   : > { %v1978_v36 = vmul.f32 %v1977_v35, %v1977_v35 }
 0xcae   : > { %v1979_v37 = vsel %vm911_vm6, %v1978_v36, 0.0  ;;  %v8695_v36 = vld [vmem:[%s13906_s10 + $0x1d0] sm:$0xff] }
 0xcaf   : > { %1980 = vadd.xlane.f32.xlu0 %v1979_v37  ;;  %v8696_v37 = vld [vmem:[%s13906_s10 + $0x1d8] sm:$0xff] }
 0xcb0   : > { %v10678_v39 = vpack.c.bf16 %v8696_v37, %v8695_v36 }
 0xd3c   : > { %v1981_v52 = vpop.xlane.xlu0 %1980 }
 0xd3d   : > { %v1982_v53 = vrot.slane %v1981_v52, 4 }
 0xd3f   : > { %v1983_v22 = vadd.f32 %v1982_v53, %v1981_v52  ;;  %v8700_v52 = vld [vmem:[%s13906_s10 + $0x1f8] sm:$0xff] }
 0xd40   : > { %v10686_v53 = vpack.c.bf16 %v8700_v52, %v8699_v51 }
 0xd41   : > { %v1984_v54 = vrot.slane %v1983_v22, 2 }
 0xd43   : > { %v1985_v55 = vadd.f32 %v1984_v54, %v1983_v22  ;;  %v8683_v22 = vld [vmem:[%s13906_s10 + $0x170] sm:$0xff]  ;;  %v8684_v54 = vld [vmem:[%s13906_s10 + $0x178] sm:$0xff] }
 0xd45   : > { %v1986_v56 = vrot.slane %v1985_v55, 1 }
 0xd47   : > { %v1987_v23 = vadd.f32 %v1986_v56, %v1985_v55  ;;  %v10688_v55 = vpack.c.bf16 %v8684_v54, %v8683_v22 }
 0xd49   : > { %11227 = vpush %v1987_v23  ;;  %v8666_v23 = vld [vmem:[%s13905_s9 + $0x2] sm:$0x3] }
 0xd7a   : > { %s11228_s16 = spop %11227 }
 0xd7b   : > { %v1989_v57 = vstv %s11228_s16 }
 0xd7c   : > { %v1990_v58 = vmul.f32 0.001953125, %v1989_v57  ;;  %v2012_v57 = vrot.slane %v8666_v23, %v11717_v46 }
 0xd7e   : > { %v1991_v59 = vadd.f32 1e-05, %v1990_v58  ;;  %v2016_v58 = vrot.slane %v8666_v23, %v11722_v48  ;;  %v8718_v23 = vld [vmem:[%s13901_s5 + $0x80] sm:$0xff] }
 0xd80   : > { %11286 = vrsqrt.f32 %v1991_v59 }
 0xd8a   : > { %v11287_v6 = vpop.eup %11286 }
 0xd8b   : > { %v1993_v8 = vmul.f32 %v11287_v6, %v1977_v35  ;;  %v8678_v35 = vld [vmem:[%s13906_s10 + $0x148] sm:$0xff]  ;;  %v10691_v6 = vpack.c.bf16 %v8705_v3, %v8704_v1  ;;  %v8722_v1 = vld [vmem:[%s13901_s5 + $0xa0] sm:$0xff] }
 0xd8c   : > { %v10676_v38 = vpack.c.bf16 %v8678_v35, %v8677_v34  ;;  %v8723_v3 = vld [vmem:[%s13901_s5 + $0xa8] sm:$0xff] }
 0xd8d   : > { %1995 = vrot.lane.b32.xlu0 %v1993_v8, %s11365_s30  ;;  %8667 = vmatmul.mubr.msk.f32.vlgmr.msra.gmra.mrb[26].mxu1 %vm1119_vm7, %v1993_v8 }
 0xd8e   : > { %2093 = vmatprep.mubr.f32.mxu1 %v11363_v5  ;;  %10661 = vmatpush3.bf16.msra.mxu1 %v10660_v7 }
 0xd8f   : > { %10663 = vmatprep.subr.bf16.mxu1 %v10662_v11  ;;  %10693 = vmatpush3.bf16.msk.msra.mxu0 %vm11447_vm2, %v10691_v6  ;;  %v10717_v6 = vpack.c.bf16 %v8723_v3, %v8722_v1 }
 0xd90   : > { %10694 = vmatprep.subr.bf16.mxu0 %v11360_v2 }
 0xd92   : > { %10665 = vmatpush3.bf16.msra.mxu1 %v10664_v18  ;;  %v8702_v18 = vld [vmem:[%s13907_s11 + $0x1] ss:$0 sm:$0xff] }
 0xd93   : > { %10667 = vmatprep.subr.bf16.mxu1 %v10666_v20 }
 0xd96   : > { %10669 = vmatpush3.bf16.msra.mxu1 %v10668_v27  ;;  %v10695_v27 = vpack.c.bf16 %v8710_v25, %v8709_v24 }
 0xd97   : > { %10671 = vmatprep.subr.bf16.mxu1 %v10670_v28 }
 0xd9a   : > { %10673 = vmatpush3.bf16.msra.mxu1 %v10672_v32  ;;  %v8708_v32 = vld [vmem:[%s13900_s4 + $0x2] ss:$0 sm:$0xff] }
 0xd9b   : > { %10675 = vmatprep.subr.bf16.mxu1 %v10674_v33 }
 0xd9e   : > { %10677 = vmatpush3.bf16.msra.mxu1 %v10676_v38 }
 0xd9f   : > { %10679 = vmatprep.subr.bf16.mxu1 %v10678_v39 }
 0xda2   : > { %10681 = vmatpush3.bf16.msra.mxu1 %v10680_v44  ;;  %v8726_v44 = vld [vmem:[%s13902_s6 + $0x80] sm:$0xff] }
 0xda3   : > { %10683 = vmatprep.subr.bf16.mxu1 %v10682_v45  ;;  %v8727_v45 = vld [vmem:[%s13902_s6 + $0x88] sm:$0xff] }
 0xda4   : > { %v10699_v47 = vpack.c.bf16 %v8727_v45, %v8726_v44 }
 0xda6   : > { %10685 = vmatpush3.bf16.msra.mxu1 %v10684_v50  ;;  %v8729_v50 = vld [vmem:[%s13902_s6 + $0x98] sm:$0xff] }
 0xda7   : > { %10687 = vmatprep.subr.bf16.mxu1 %v10686_v53  ;;  %v10702_v51 = vpack.c.bf16 %v8729_v50, %v8728_v49 }
 0xdaa   : > { %10689 = vmatpush3.bf16.msra.mxu1 %v10688_v55 }
 0xdab   : > { %10698 = vmatprep.subr.bf16.mxu1 %v11360_v2 }
 0xdff   : > { %v1996_v56 = vpop.permute.xlu0 %1995 }
 0xe00   : > { %8668 = vmatmul.mubr.msk.f32.gmra.mrb[28].mxu1 %vm1119_vm7, %v1996_v56 }
 0xe60   : > { %v2089_v59 = vpop.f32.mrb[26].mxu1 }
 0xe61   : > { %v2090_v60 = vadd.f32 %v2089_v59, %v2012_v57  ;;  %v2091_v61 = vpop.f32.mrb[27].mxu1 }
 0xe62   : > { %v2092_v62 = vadd.f32 %v2091_v61, %v2016_v58 }
 0xe63   : > { %v2100_v0 = vmax.f32 %v2090_v60, 0.0 }
 0xe64   : > { %v2101_v63 = vmax.f32 %v2092_v62, 0.0  ;;  %v8720_v62 = vld [vmem:[%s13901_s5 + $0x90] sm:$0xff] }
 0xe66   : > { %2209 = vmatprep.mubr.f32.mxu1 %v2101_v63  ;;  %v8721_v63 = vld [vmem:[%s13901_s5 + $0x98] sm:$0xff] }
 0xe67   : > { %2210 = vmatmul.mubr.f32.vlgmr.msra.gmra.mrb[30].mxu1 %v2100_v0  ;;  %v10714_v0 = vpack.c.bf16 %v8721_v63, %v8720_v62  ;;  %v8742_v63 = vld [vmem:[%s13904_s8 + $0xa0] sm:$0xff] }
 0xe68   : > { %10700 = vmatpush3.bf16.msra.mxu1 %v10699_v47 }
 0xe69   : > { %10701 = vmatprep.subr.bf16.mxu1 %v11360_v2 }
 0xe6c   : > { %10703 = vmatpush3.bf16.msra.mxu1 %v10702_v51 }
 0xe6d   : > { %10704 = vmatprep.subr.bf16.mxu1 %v11360_v2 }
 0xed3   : > { %v2095_v7 = vpop.f32.mrb[28].mxu1 }
 0xed4   : > { %v2096_v8 = vadd.f32 %v2095_v7, %v2012_v57  ;;  %v2097_v11 = vpop.f32.mrb[29].mxu1  ;;  %v8719_v57 = vld [vmem:[%s13901_s5 + $0x88] sm:$0xff]  ;;  %v8730_v7 = vld [vmem:[%s13902_s6 + $0xa0] sm:$0xff] }
 0xed5   : > { %v2098_v12 = vadd.f32 %v2097_v11, %v2016_v58  ;;  %v10711_v61 = vpack.c.bf16 %v8719_v57, %v8718_v23  ;;  %v8724_v11 = vld [vmem:[%s13901_s5 + $0xb0] sm:$0xff]  ;;  %v8738_v23 = vld [vmem:[%s13904_s8 + $0x80] sm:$0xff] }
 0xed6   : > { %v2102_v16 = vmax.f32 %v2096_v8, 0.0  ;;  %v8731_v8 = vld [vmem:[%s13902_s6 + $0xa8] sm:$0xff] }
 0xed7   : > { %v2103_v14 = vmax.f32 %v2098_v12, 0.0  ;;  %v10705_v12 = vpack.c.bf16 %v8731_v8, %v8730_v7 }
 0xed9   : > { %2214 = vmatprep.mubr.f32.mxu1 %v2103_v14  ;;  %v8725_v14 = vld [vmem:[%s13901_s5 + $0xb8] sm:$0xff]  ;;  %10706 = vmatpush3.bf16.msra.mxu1 %v10705_v12 }
 0xeda   : > { %2215 = vmatmul.mubr.f32.gmra.mrb[32].mxu1 %v2102_v16  ;;  %v10720_v16 = vpack.c.bf16 %v8725_v14, %v8724_v11  ;;  %10707 = vmatprep.subr.bf16.mxu1 %v11360_v2 }
 0xedb   : > { %10092 = vmatprep.mubr.msk.f32.mxu1 %vm11362_vm3, %v11363_v5 }
 0xf3a   : > { %v9402_v17 = vpop.f32.mrb[30].mxu1 }
 0xf3b   : > { %v9403_v20 = vpop.f32.mrb[31].mxu1 }
 0xf3c   : > { %v9404_v21 = vadd.f32 %v9403_v20, %v9402_v17  ;;  %v8732_v17 = vld [vmem:[%s13902_s6 + $0xb0] sm:$0xff] }
 0xf3e   : > { %v12008_v26 = vadd.f32 %v9404_v21, %v8702_v18 }
 0xf40   : > { %v12012_v28 = vsub.f32 %v11750_v15, %v12008_v26 }
 0xf42   : > { %10047 = vmatmul.mubr.msk.f32.vlgmr.msra.gmra.mrb[10].mxu0 %vm422_vm4, %v12012_v28 }
 0xf43   : > { %10697 = vmatpush3.bf16.msk.msra.mxu0 %vm11447_vm2, %v10695_v27  ;;  %10053 = vmatprep.mubr.msk.f32.mxu0 %vm11362_vm3, %v11363_v5 }
 0xf44   : > { %10056 = vmatprep.subr.mxu0 %v11363_v5 }
 0xfad   : > { %v9405_v10 = vpop.f32.mrb[32].mxu1 }
 0xfae   : > { %v9406_v29 = vpop.f32.mrb[33].mxu1 }
 0xfaf   : > { %v9407_v30 = vadd.f32 %v9406_v29, %v9405_v10 }
 0xfb1   : > { %v12021_v31 = vadd.f32 %v9407_v30, %v8702_v18  ;;  %v8733_v18 = vld [vmem:[%s13902_s6 + $0xb8] sm:$0xff] }
 0xfb2   : > { %v10708_v20 = vpack.c.bf16 %v8733_v18, %v8732_v17 }
 0xfb3   : > { %v12025_v15 = vsub.f32 %v11763_v9, %v12021_v31 }
 0xfb4   : > { %10709 = vmatpush3.bf16.msra.mxu1 %v10708_v20  ;;  %v8765_v20 = vld [vmem:[%s13906_s10 + $0x280] sm:$0xff] }
 0xfb5   : > { %10054 = vmatmul.mubr.msk.f32.vlgmr.msra.gmra.mrb[10].mxu0 %vm422_vm4, %v12025_v15 }
 0xfb6   : > { %10058 = vmatprep.mubr.msk.f32.mxu0 %vm11362_vm3, %v11363_v5 }
0x1088   : > { %v2387_v33 = vpop.f32.mrb[10].mxu0 }
0x1089   : > { %v11196_v34 = vadd.f32 %v8708_v32, %v2387_v33  ;;  %v10055_v35 = vpop.f32.mrb[11].mxu0 }
0x108b   : > { %v8713_v36 = vmul.f32 -1.442695, %v11196_v34 }
0x108d   : > { %11288 = vpow2.f32 %v8713_v36  ;;  %v8737_v36 = vld [vmem:[%s13903_s7 + $0x2] ss:$0 sm:$0xff] }
0x1097   : > { %v11289_v37 = vpop.eup %11288 }
0x1098   : > { %v2396_v38 = vadd.f32 1.0, %v11289_v37 }
0x109a   : > { %11290 = vrcp.f32 %v2396_v38 }
0x109b   : > { %11292 = vtanh.f32 %v11196_v34 }
0x10a4   : > { %v11291_v9 = vpop.eup %11290 }
0x10a5   : > { %2400 = vrot.lane.b32.xlu0 %v11291_v9, %s11364_s19  ;;  %v11293_v39 = vpop.eup %11292 }
0x1117   : > { %v2401_v40 = vpop.permute.xlu0 %2400 }
0x1118   : > { %v2403_v41 = vmul.f32 %v11293_v39, %v2401_v40 }
0x111a   : > { %10057 = vmatpush3.msra.mxu0 %v2403_v41  ;;  %v2404_v53 = vmul.f32 0.1, %v2403_v41 }
0x111b   : > { %10059 = vmatmul.mubr.msk.f32.vlgmr.msra.gmra.mrb[12].mxu0 %vm600_vm5, %v12038_v42  ;;  %10061 = vmatprep.subr.mxu0 %v11363_v5 }
0x111c   : > { %10062 = vmatpush3.msra.mxu0 %v2403_v41  ;;  %10063 = vmatprep.mubr.msk.f32.mxu0 %vm11362_vm3, %v11363_v5 }
0x111d   : > { %10066 = vmatprep.subr.mxu0 %v11363_v5 }
0x111f   : > { %10064 = vmatmul.mubr.msk.f32.vlgmr.msra.gmra.mrb[14].mxu0 %vm600_vm5, %v12049_v43 }
0x1120   : > { %10068 = vmatprep.mubr.msk.f32.mxu0 %vm11362_vm3, %v11363_v5 }
0x11ee   : > { %v2471_v52 = vpop.f32.mrb[12].mxu0 }
0x11ef   : > { %v2475_v22 = vmul.f32 0.9, %v2471_v52  ;;  %v10060_v54 = vpop.f32.mrb[13].mxu0 }
0x11f1   : > { %v2476_v55 = vadd.f32 %v2475_v22, %v2404_v53 }
0x11f2   : > { %v2543_v56 = vpop.f32.mrb[14].mxu0 }
0x11f3   : > { %v2547_v58 = vmul.f32 0.9, %v2543_v56  ;;  %v10065_v59 = vpop.f32.mrb[15].mxu0  ;;  %10067 = vmatpush3.msra.mxu0 %v2476_v55  ;;  %v8739_v55 = vld [vmem:[%s13904_s8 + $0x88] sm:$0xff]  ;;  %v8741_v56 = vld [vmem:[%s13904_s8 + $0x98] sm:$0xff] }
0x11f4   : > { %10069 = vmatmul.mubr.msk.f32.vlgmr.msra.gmra.mrb[16].mxu0 %vm600_vm5, %v12038_v42  ;;  %10071 = vmatprep.subr.mxu0 %v11363_v5  ;;  %v10722_v57 = vpack.c.bf16 %v8741_v56, %v8739_v55  ;;  %v8743_v59 = vld [vmem:[%s13904_s8 + $0xa8] sm:$0xff]  ;;  %v8757_v56 = vld [vmem:[%s13906_s10 + $0x240] sm:$0xff] }
0x11f5   : > { %v2548_v60 = vadd.f32 %v2547_v58, %v2404_v53  ;;  %10073 = vmatprep.mubr.msk.f32.mxu0 %vm11362_vm3, %v11363_v5  ;;  %v8740_v58 = vld [vmem:[%s13904_s8 + $0x90] sm:$0xff] }
0x11f6   : > { %10723 = vmatprep.subr.bf16.mxu1 %v10722_v57  ;;  %v8776_v57 = vld [vmem:[%s13906_s10 + $0x2d8] sm:$0xff] }
0x11f7   : > { %10072 = vmatpush3.msra.mxu0 %v2548_v60  ;;  %v8745_v60 = vld [vmem:[%s13904_s8 + $0xb8] sm:$0xff] }
0x11f8   : > { %10074 = vmatmul.mubr.msk.f32.vlgmr.msra.gmra.mrb[18].mxu0 %vm600_vm5, %v12049_v43  ;;  %10710 = vmatprep.subr.bf16.mxu0 %v11360_v2  ;;  %v10726_v62 = vpack.c.bf16 %v8745_v60, %v8743_v59  ;;  %v8759_v60 = vld [vmem:[%s13906_s10 + $0x250] sm:$0xff] }
0x11f9   : > { %10712 = vmatpush3.bf16.msra.mxu0 %v10711_v61  ;;  %10111 = vmatprep.mubr.msk.f32.mxu0 %vm11362_vm3, %v11363_v5  ;;  %v10724_v61 = vpack.c.bf16 %v8740_v58, %v8738_v23  ;;  %v8758_v23 = vld [vmem:[%s13906_s10 + $0x248] sm:$0xff] }
0x11fa   : > { %10713 = vmatprep.subr.bf16.mxu0 %v11360_v2  ;;  %v10748_v58 = vpack.c.bf16 %v8758_v23, %v8757_v56 }
0x11fd   : > { %10715 = vmatpush3.bf16.msra.mxu0 %v10714_v0  ;;  %v8744_v0 = vld [vmem:[%s13904_s8 + $0xb0] sm:$0xff] }
0x11fe   : > { %10716 = vmatprep.subr.bf16.mxu0 %v11360_v2  ;;  %v10728_v1 = vpack.c.bf16 %v8744_v0, %v8742_v63  ;;  %v8778_v63 = vld [vmem:[%s13906_s10 + $0x2e8] sm:$0xff] }
0x1201   : > { %10718 = vmatpush3.bf16.msra.mxu0 %v10717_v6 }
0x1202   : > { %10719 = vmatprep.subr.bf16.mxu0 %v11360_v2 }
0x1205   : > { %10721 = vmatpush3.bf16.msra.mxu0 %v10720_v16 }
0x12c7   : > { %v2615_v21 = vpop.f32.mrb[16].mxu0 }
0x12c8   : > { %v2619_v24 = vmul.f32 0.9, %v2615_v21  ;;  %v10070_v25 = vpop.f32.mrb[17].mxu0  ;;  %v8766_v21 = vld [vmem:[%s13906_s10 + $0x288] sm:$0xff] }
0x12c9   : > { %v10730_v25 = vpack.c.bf16 %v8766_v21, %v8765_v20  ;;  %v8746_v20 = vld [vmem:[%s13905_s9 + $0x4] sm:$0x3] }
0x12ca   : > { %v2620_v27 = vadd.f32 %v2619_v24, %v2404_v53  ;;  %v8749_v24 = vld [vmem:[%s13906_s10 + $0x200] sm:$0xff]  ;;  %v2913_v21 = vrot.slane %v8746_v20, %v11717_v46 }
0x12cb   : > { %v2687_v10 = vpop.f32.mrb[18].mxu0  ;;  %10731 = vmatprep.subr.bf16.mxu0 %v10730_v25 }
0x12cc   : > { %v2691_v29 = vmul.f32 0.9, %v2687_v10  ;;  %v10075_v30 = vpop.f32.mrb[19].mxu0  ;;  %10112 = vmatmul.mubr.msk.f32.vlgmr.msra.gmra.mrb[20].mxu0 %vm911_vm6, %v2620_v27  ;;  %v8750_v27 = vld [vmem:[%s13906_s10 + $0x208] sm:$0xff]  ;;  %v8767_v10 = vld [vmem:[%s13906_s10 + $0x290] sm:$0xff] }
0x12cd   : > { %v10732_v30 = vpack.c.bf16 %v8750_v27, %v8749_v24  ;;  %v2917_v24 = vrot.slane %v8746_v20, %v11722_v48 }
0x12ce   : > { %v2692_v32 = vadd.f32 %v2691_v29, %v2404_v53  ;;  %v8768_v29 = vld [vmem:[%s13906_s10 + $0x298] sm:$0xff] }
0x12cf   : > { %10733 = vmatpush3.bf16.msra.mxu0 %v10732_v30 }
0x12d0   : > { %10093 = vmatmul.mubr.msk.f32.vlgmr.msra.gmra.mrb[34].mxu1 %vm911_vm6, %v2692_v32  ;;  %v10734_v32 = vpack.c.bf16 %v8768_v29, %v8767_v10 }
0x12d1   : > { %2988 = vmatprep.mubr.f32.mxu1 %v11363_v5  ;;  %10725 = vmatpush1.bf16.msra.mxu1 %v10724_v61  ;;  %v8760_v61 = vld [vmem:[%s13906_s10 + $0x258] sm:$0xff] }
0x12d2   : > { %10727 = vmatprep.subr.bf16.mxu1 %v10726_v62  ;;  %10735 = vmatprep.subr.bf16.mxu0 %v10734_v32  ;;  %v8777_v62 = vld [vmem:[%s13906_s10 + $0x2e0] sm:$0xff]  ;;  %v10752_v0 = vpack.c.bf16 %v8760_v61, %v8759_v60 }
0x12d5   : > { %10729 = vmatpush1.bf16.msra.mxu1 %v10728_v1  ;;  %v10754_v1 = vpack.c.bf16 %v8778_v63, %v8777_v62 }
0x12d6   : > { %10762 = vmatprep.subr.bf16.mxu1 %v11360_v2 }
0x139f   : > { %v2853_v33 = vpop.f32.mrb[20].mxu0 }
0x13a0   : > { %v10113_v34 = vpop.f32.mrb[21].mxu0 }
0x13a1   : > { %v8752_v34 = vld [vmem:[%s13906_s10 + $0x218] sm:$0xff] }
0x13a3   : > { %v2780_v35 = vpop.f32.mrb[34].mxu1 }
0x13a4   : > { %v2854_v37 = vadd.f32 %v2853_v33, %v2780_v35  ;;  %v10094_v38 = vpop.f32.mrb[35].mxu1  ;;  %v8751_v33 = vld [vmem:[%s13906_s10 + $0x210] sm:$0xff]  ;;  %v8769_v35 = vld [vmem:[%s13906_s10 + $0x2a0] sm:$0xff] }
0x13a6   : > { %v2865_v9 = vadd.f32 %v8737_v36, %v2854_v37  ;;  %v8770_v36 = vld [vmem:[%s13906_s10 + $0x2a8] sm:$0xff]  ;;  %v10736_v37 = vpack.c.bf16 %v8752_v34, %v8751_v33  ;;  %v8784_v33 = vld [vmem:[%s13899_s3 + $0x60] sm:$0xff] }
0x13a7   : > { %v10738_v38 = vpack.c.bf16 %v8770_v36, %v8769_v35  ;;  %v8785_v34 = vld [vmem:[%s13899_s3 + $0x68] sm:$0xf] }
0x13a8   : > { %v2866_v39 = vsel %vm911_vm6, %v2865_v9, 0.0  ;;  %10737 = vmatpush3.bf16.msra.mxu0 %v10736_v37  ;;  %v10763_v35 = vpack.c.bf16 %v8785_v34, %v8784_v33  ;;  %v8801_v33 = vld [vmem:[%s13901_s5 + $0xd8] sm:$0xff]  ;;  %v8802_v34 = vld [vmem:[%s13901_s5 + $0xe0] sm:$0xff] }
0x13a9   : > { %2867 = vadd.xlane.f32.xlu1 %v2866_v39  ;;  %v8754_v39 = vld [vmem:[%s13906_s10 + $0x228] sm:$0xff]  ;;  %10739 = vmatprep.subr.bf16.mxu0 %v10738_v38 }
0x1436   : > { %v2868_v40 = vpop.xlane.xlu1 %2867 }
0x1437   : > { %v2869_v41 = vrot.slane %v2868_v40, 4 }
0x1439   : > { %v2870_v44 = vadd.f32 %v2869_v41, %v2868_v40  ;;  %v8771_v40 = vld [vmem:[%s13906_s10 + $0x2b0] sm:$0xff]  ;;  %v8772_v41 = vld [vmem:[%s13906_s10 + $0x2b8] sm:$0xff] }
0x143b   : > { %v2871_v45 = vrot.slane %v2870_v44, 2 }
0x143d   : > { %v2872_v47 = vadd.f32 %v2871_v45, %v2870_v44  ;;  %v8755_v45 = vld [vmem:[%s13906_s10 + $0x230] sm:$0xff] }
0x143f   : > { %v2873_v49 = vrot.slane %v2872_v47, 1 }
0x1441   : > { %v2874_v50 = vadd.f32 %v2873_v49, %v2872_v47  ;;  %v8756_v47 = vld [vmem:[%s13906_s10 + $0x238] sm:$0xff] }
0x1443   : > { %11229 = vpush %v2874_v50  ;;  %v10742_v50 = vpack.c.bf16 %v8772_v41, %v8771_v40 }
0x1474   : > { %s11230_s16 = spop %11229 }
0x1475   : > { %v2876_v51 = vstv %s11230_s16 }
0x1476   : > { %v2877_v52 = vmul.f32 0.001953125, %v2876_v51  ;;  %v8773_v51 = vld [vmem:[%s13906_s10 + $0x2c0] sm:$0xff] }
0x1478   : > { %v12126_v53 = vsub.f32 %v2865_v9, %v2877_v52  ;;  %v8753_v9 = vld [vmem:[%s13906_s10 + $0x220] sm:$0xff]  ;;  %v8774_v52 = vld [vmem:[%s13906_s10 + $0x2c8] sm:$0xff] }
0x1479   : > { %v10740_v44 = vpack.c.bf16 %v8754_v39, %v8753_v9  ;;  %v10746_v55 = vpack.c.bf16 %v8774_v52, %v8773_v51  ;;  %v2221_v51 = vadd.f32 %v12008_v26, %v11746_v13 }
0x147a   : > { %v2879_v22 = vmul.f32 %v12126_v53, %v12126_v53 }
0x147b   : > { %10741 = vmatpush3.bf16.msra.mxu0 %v10740_v44  ;;  %v8782_v44 = vld [vmem:[%s13907_s11 + $0x2] ss:$0 sm:$0xff] }
0x147c   : > { %v2880_v54 = vsel %vm911_vm6, %v2879_v22, 0.0  ;;  %10743 = vmatprep.subr.bf16.mxu0 %v10742_v50  ;;  %v8790_v50 = vld [vmem:[%s13899_s3 + $0x78] sm:$0xf] }
0x147d   : > { %2881 = vadd.xlane.f32.xlu0 %v2880_v54  ;;  %v10744_v54 = vpack.c.bf16 %v8756_v47, %v8755_v45 }
0x147f   : > { %10745 = vmatpush3.bf16.msra.mxu0 %v10744_v54 }
0x1480   : > { %10747 = vmatprep.subr.bf16.mxu0 %v10746_v55 }
0x1483   : > { %10749 = vmatpush3.bf16.msra.mxu0 %v10748_v58  ;;  %v8788_v58 = vld [vmem:[%s13900_s4 + $0x3] ss:$0 sm:$0xff] }
0x150a   : > { %v2882_v3 = vpop.xlane.xlu0 %2881 }
0x150b   : > { %v2883_v6 = vrot.slane %v2882_v3, 4 }
0x150d   : > { %v2884_v7 = vadd.f32 %v2883_v6, %v2882_v3  ;;  %v8761_v3 = vld [vmem:[%s13906_s10 + $0x260] sm:$0xff]  ;;  %v8762_v6 = vld [vmem:[%s13906_s10 + $0x268] sm:$0xff] }
0x150f   : > { %v2885_v8 = vrot.slane %v2884_v7, 2 }
0x1511   : > { %v2886_v11 = vadd.f32 %v2885_v8, %v2884_v7  ;;  %v10756_v7 = vpack.c.bf16 %v8762_v6, %v8761_v3  ;;  %v8779_v8 = vld [vmem:[%s13906_s10 + $0x2f0] sm:$0xff]  ;;  %v8806_v3 = vld [vmem:[%s13902_s6 + $0xc0] sm:$0xff]  ;;  %v8807_v6 = vld [vmem:[%s13902_s6 + $0xc8] sm:$0xff] }
0x1513   : > { %v2887_v12 = vrot.slane %v2886_v11, 1 }
0x1515   : > { %v2888_v14 = vadd.f32 %v2887_v12, %v2886_v11  ;;  %v8780_v11 = vld [vmem:[%s13906_s10 + $0x2f8] sm:$0xff] }
0x1516   : > { %v10758_v12 = vpack.c.bf16 %v8780_v11, %v8779_v8  ;;  %v8808_v8 = vld [vmem:[%s13902_s6 + $0xd0] sm:$0xff]  ;;  %v8809_v11 = vld [vmem:[%s13902_s6 + $0xd8] sm:$0xff] }
0x1517   : > { %11231 = vpush %v2888_v14  ;;  %v8763_v14 = vld [vmem:[%s13906_s10 + $0x270] sm:$0xff] }
0x1548   : > { %s11232_s23 = spop %11231 }
0x1549   : > { %v2890_v16 = vstv %s11232_s23 }
0x154a   : > { %v2891_v17 = vmul.f32 0.001953125, %v2890_v16  ;;  %v8764_v16 = vld [vmem:[%s13906_s10 + $0x278] sm:$0xff] }
0x154c   : > { %v2892_v18 = vadd.f32 1e-05, %v2891_v17  ;;  %v10760_v17 = vpack.c.bf16 %v8764_v16, %v8763_v14 }
0x154e   : > { %11294 = vrsqrt.f32 %v2892_v18 }
0x1558   : > { %v11295_v49 = vpop.eup %11294 }
0x1559   : > { %v2894_v22 = vmul.f32 %v11295_v49, %v12126_v53  ;;  %v8775_v53 = vld [vmem:[%s13906_s10 + $0x2d0] sm:$0xff] }
0x155a   : > { %v10750_v59 = vpack.c.bf16 %v8776_v57, %v8775_v53  ;;  %v8789_v49 = vld [vmem:[%s13899_s3 + $0x70] sm:$0xff] }
0x155b   : > { %2896 = vrot.lane.b32.xlu1 %v2894_v22, %s11365_s30  ;;  %8747 = vmatmul.mubr.msk.f32.vlgmr.msra.gmra.mrb[36].mxu1 %vm1119_vm7, %v2894_v22  ;;  %v10767_v22 = vpack.c.bf16 %v8790_v50, %v8789_v49 }
0x155c   : > { %2994 = vmatprep.mubr.f32.mxu1 %v11363_v5  ;;  %10751 = vmatprep.subr.bf16.mxu0 %v10750_v59 }
0x155d   : > { %10753 = vmatpush3.bf16.msra.mxu0 %v10752_v0  ;;  %10765 = vmatpush3.bf16.msk.msra.mxu1 %vm11447_vm2, %v10763_v35  ;;  %v8803_v35 = vld [vmem:[%s13901_s5 + $0xe8] sm:$0xff] }
0x155e   : > { %10755 = vmatprep.subr.bf16.mxu0 %v10754_v1  ;;  %10766 = vmatprep.subr.bf16.mxu1 %v11360_v2 }
0x1561   : > { %10757 = vmatpush3.bf16.msra.mxu0 %v10756_v7  ;;  %v10771_v7 = vpack.c.bf16 %v8807_v6, %v8806_v3 }
0x1562   : > { %10759 = vmatprep.subr.bf16.mxu0 %v10758_v12  ;;  %v10774_v12 = vpack.c.bf16 %v8809_v11, %v8808_v8 }
0x1565   : > { %10761 = vmatpush3.bf16.msra.mxu0 %v10760_v17 }
0x1566   : > { %10770 = vmatprep.subr.bf16.mxu0 %v11360_v2 }
0x15cd   : > { %v2897_v18 = vpop.permute.xlu1 %2896 }
0x15ce   : > { %8748 = vmatmul.mubr.msk.f32.gmra.mrb[38].mxu1 %vm1119_vm7, %v2897_v18 }
0x15cf   : > { %10118 = vmatprep.mubr.msk.f32.mxu1 %vm11362_vm3, %v11363_v5 }
0x162e   : > { %v2990_v25 = vpop.f32.mrb[36].mxu1 }
0x162f   : > { %v2991_v27 = vadd.f32 %v2990_v25, %v2913_v21  ;;  %v2992_v10 = vpop.f32.mrb[37].mxu1  ;;  %v8799_v25 = vld [vmem:[%s13901_s5 + $0xc8] sm:$0xff] }
0x1630   : > { %v2993_v29 = vadd.f32 %v2992_v10, %v2917_v24 }
0x1631   : > { %v3001_v32 = vmax.f32 %v2991_v27, 0.0 }
0x1632   : > { %v3002_v30 = vmax.f32 %v2993_v29, 0.0 }
0x1634   : > { %3110 = vmatprep.mubr.f32.mxu0 %v3002_v30 }
0x1635   : > { %3111 = vmatmul.mubr.f32.vlgmr.msra.gmra.mrb[22].mxu0 %v3001_v32  ;;  %v8800_v32 = vld [vmem:[%s13901_s5 + $0xd0] sm:$0xff] }
0x1636   : > { %10772 = vmatpush3.bf16.msra.mxu0 %v10771_v7 }
0x1637   : > { %10773 = vmatprep.subr.bf16.mxu0 %v11360_v2 }
0x163a   : > { %10775 = vmatpush3.bf16.msra.mxu0 %v10774_v12 }
0x163b   : > { %10776 = vmatprep.subr.bf16.mxu0 %v11360_v2 }
0x16a1   : > { %v2996_v36 = vpop.f32.mrb[38].mxu1 }
0x16a2   : > { %v2997_v37 = vadd.f32 %v2996_v36, %v2913_v21  ;;  %v2998_v38 = vpop.f32.mrb[39].mxu1  ;;  %v10789_v36 = vpack.c.bf16 %v8803_v35, %v8802_v34 }
0x16a3   : > { %v2999_v9 = vadd.f32 %v2998_v38, %v2917_v24  ;;  %v8798_v24 = vld [vmem:[%s13901_s5 + $0xc0] sm:$0xff]  ;;  %v8804_v38 = vld [vmem:[%s13901_s5 + $0xf0] sm:$0xff] }
0x16a4   : > { %v3003_v40 = vmax.f32 %v2997_v37, 0.0  ;;  %v10783_v30 = vpack.c.bf16 %v8799_v25, %v8798_v24  ;;  %v8811_v37 = vld [vmem:[%s13902_s6 + $0xe8] sm:$0xff]  ;;  %v8825_v24 = vld [vmem:[%s13904_s8 + $0xf8] sm:$0xff] }
0x16a5   : > { %v3004_v39 = vmax.f32 %v2999_v9, 0.0 }
0x16a7   : > { %3115 = vmatprep.mubr.f32.mxu0 %v3004_v39  ;;  %v8805_v39 = vld [vmem:[%s13901_s5 + $0xf8] sm:$0xff] }
0x16a8   : > { %3116 = vmatmul.mubr.f32.gmra.mrb[24].mxu0 %v3003_v40  ;;  %v10792_v40 = vpack.c.bf16 %v8805_v39, %v8804_v38  ;;  %v8845_v39 = vld [vmem:[%s13906_s10 + $0x380] sm:$0xff] }
0x16a9   : > { %10164 = vmatprep.mubr.msk.f32.mxu0 %vm11362_vm3, %v11363_v5 }
0x1708   : > { %v9472_v41 = vpop.f32.mrb[22].mxu0 }
0x1709   : > { %v9473_v45 = vpop.f32.mrb[23].mxu0 }
0x170a   : > { %v9474_v47 = vadd.f32 %v9473_v45, %v9472_v41  ;;  %v8812_v41 = vld [vmem:[%s13902_s6 + $0xf0] sm:$0xff] }
0x170c   : > { %v3113_v52 = vadd.f32 %v9474_v47, %v8782_v44 }
0x170e   : > { %v12288_v54 = vsub.f32 %v12012_v28, %v3113_v52  ;;  %v12290_v55 = vadd.f32 %v3113_v52, %v2221_v51  ;;  %v2223_v28 = vadd.f32 %v12021_v31, %v11759_v19 }
0x1710   : > { %10119 = vmatmul.mubr.msk.f32.vlgmr.msra.gmra.mrb[40].mxu1 %vm422_vm4, %v12288_v54 }
0x1711   : > { %10769 = vmatpush3.bf16.msk.msra.mxu1 %vm11447_vm2, %v10767_v22  ;;  %10125 = vmatprep.mubr.msk.f32.mxu1 %vm11362_vm3, %v11363_v5 }
0x1712   : > { %10128 = vmatprep.subr.mxu1 %v11363_v5 }
0x177b   : > { %v9475_v56 = vpop.f32.mrb[24].mxu0 }
0x177c   : > { %v9476_v13 = vpop.f32.mrb[25].mxu0 }
0x177d   : > { %v9477_v26 = vadd.f32 %v9476_v13, %v9475_v56 }
0x177f   : > { %v3118_v23 = vadd.f32 %v9477_v26, %v8782_v44  ;;  %v8813_v44 = vld [vmem:[%s13902_s6 + $0xf8] sm:$0xff] }
0x1780   : > { %v10780_v45 = vpack.c.bf16 %v8813_v44, %v8812_v41  ;;  %v8829_v41 = vld [vmem:[%s13906_s10 + $0x300] sm:$0xff] }
0x1781   : > { %v12302_v53 = vsub.f32 %v12025_v15, %v3118_v23  ;;  %v12304_v57 = vadd.f32 %v3118_v23, %v2223_v28 }
0x1783   : > { %10126 = vmatmul.mubr.msk.f32.vlgmr.msra.gmra.mrb[40].mxu1 %vm422_vm4, %v12302_v53 }
0x1784   : > { %10130 = vmatprep.mubr.msk.f32.mxu1 %vm11362_vm3, %v11363_v5 }
0x1856   : > { %v3288_v59 = vpop.f32.mrb[40].mxu1 }
0x1857   : > { %v11197_v60 = vadd.f32 %v8788_v58, %v3288_v59  ;;  %v10127_v61 = vpop.f32.mrb[41].mxu1  ;;  %v8817_v58 = vld [vmem:[%s13903_s7 + $0x3] ss:$0 sm:$0xff] }
0x1859   : > { %v8793_v19 = vmul.f32 -1.442695, %v11197_v60 }
0x185b   : > { %11296 = vpow2.f32 %v8793_v19 }
0x1865   : > { %v11297_v31 = vpop.eup %11296 }
0x1866   : > { %v3297_v15 = vadd.f32 1.0, %v11297_v31 }
0x1868   : > { %11298 = vrcp.f32 %v3297_v15 }
0x1869   : > { %11300 = vtanh.f32 %v11197_v60 }
0x1872   : > { %v11299_v62 = vpop.eup %11298 }
0x1873   : > { %3301 = vrot.lane.b32.xlu1 %v11299_v62, %s11364_s19  ;;  %v11301_v63 = vpop.eup %11300 }
0x18e5   : > { %v3302_v0 = vpop.permute.xlu1 %3301 }
0x18e6   : > { %v3304_v1 = vmul.f32 %v11301_v63, %v3302_v0 }
0x18e8   : > { %10129 = vmatpush3.msra.mxu1 %v3304_v1  ;;  %v3305_v16 = vmul.f32 0.1, %v3304_v1 }
0x18e9   : > { %10131 = vmatmul.mubr.msk.f32.vlgmr.msra.gmra.mrb[42].mxu1 %vm600_vm5, %v12038_v42  ;;  %10133 = vmatprep.subr.mxu1 %v11363_v5 }
0x18ea   : > { %10134 = vmatpush3.msra.mxu1 %v3304_v1  ;;  %10135 = vmatprep.mubr.msk.f32.mxu1 %vm11362_vm3, %v11363_v5 }
0x18eb   : > { %10138 = vmatprep.subr.mxu1 %v11363_v5 }
0x18ed   : > { %10136 = vmatmul.mubr.msk.f32.vlgmr.msra.gmra.mrb[44].mxu1 %vm600_vm5, %v12049_v43 }
0x18ee   : > { %10140 = vmatprep.mubr.msk.f32.mxu1 %vm11362_vm3, %v11363_v5 }
0x19bc   : > { %v3372_v14 = vpop.f32.mrb[42].mxu1 }
0x19bd   : > { %v3376_v17 = vmul.f32 0.9, %v3372_v14  ;;  %v10132_v18 = vpop.f32.mrb[43].mxu1  ;;  %v8819_v14 = vld [vmem:[%s13904_s8 + $0xc8] sm:$0xff] }
0x19bf   : > { %v3377_v20 = vadd.f32 %v3376_v17, %v3305_v16  ;;  %v8818_v17 = vld [vmem:[%s13904_s8 + $0xc0] sm:$0xff] }
0x19c0   : > { %v3444_v21 = vpop.f32.mrb[44].mxu1 }
0x19c1   : > { %v3448_v27 = vmul.f32 0.9, %v3444_v21  ;;  %v10137_v10 = vpop.f32.mrb[45].mxu1  ;;  %10139 = vmatpush3.msra.mxu1 %v3377_v20  ;;  %v8820_v20 = vld [vmem:[%s13904_s8 + $0xd0] sm:$0xff]  ;;  %v8823_v21 = vld [vmem:[%s13904_s8 + $0xe8] sm:$0xff] }
0x19c2   : > { %10141 = vmatmul.mubr.msk.f32.vlgmr.msra.gmra.mrb[46].mxu1 %vm600_vm5, %v12038_v42  ;;  %10143 = vmatprep.subr.mxu1 %v11363_v5  ;;  %v10786_v42 = vpack.c.bf16 %v8801_v33, %v8800_v32  ;;  %v10796_v25 = vpack.c.bf16 %v8820_v20, %v8818_v17  ;;  %v8822_v10 = vld [vmem:[%s13904_s8 + $0xe0] sm:$0xff]  ;;  %v8839_v17 = vld [vmem:[%s13906_s10 + $0x350] sm:$0xff] }
0x19c3   : > { %v3449_v29 = vadd.f32 %v3448_v27, %v3305_v16  ;;  %10145 = vmatprep.mubr.msk.f32.mxu1 %vm11362_vm3, %v11363_v5  ;;  %v10798_v27 = vpack.c.bf16 %v8825_v24, %v8823_v21  ;;  %v8857_v20 = vld [vmem:[%s13906_s10 + $0x3e0] sm:$0xff]  ;;  %v8858_v21 = vld [vmem:[%s13906_s10 + $0x3e8] sm:$0xff] }
0x19c5   : > { %10144 = vmatpush3.msra.mxu1 %v3449_v29  ;;  %v8824_v29 = vld [vmem:[%s13904_s8 + $0xf0] sm:$0xff] }
0x19c6   : > { %10146 = vmatmul.mubr.msk.f32.vlgmr.msra.gmra.mrb[48].mxu1 %vm600_vm5, %v12049_v43  ;;  %10782 = vmatprep.subr.bf16.mxu1 %v11360_v2  ;;  %v8810_v43 = vld [vmem:[%s13902_s6 + $0xe0] sm:$0xff] }
0x19c7   : > { %10784 = vmatpush3.bf16.msra.mxu1 %v10783_v30  ;;  %10183 = vmatprep.mubr.msk.f32.mxu1 %vm11362_vm3, %v11363_v5  ;;  %v10777_v9 = vpack.c.bf16 %v8811_v37, %v8810_v43  ;;  %v10800_v30 = vpack.c.bf16 %v8824_v29, %v8822_v10  ;;  %v8842_v10 = vld [vmem:[%s13906_s10 + $0x368] sm:$0xff] }
0x19c8   : > { %10785 = vmatprep.subr.bf16.mxu1 %v11360_v2 }
0x19c9   : > { %10778 = vmatpush3.bf16.msra.mxu0 %v10777_v9 }
0x19ca   : > { %10779 = vmatprep.subr.bf16.mxu0 %v11360_v2 }
0x19cb   : > { %10787 = vmatpush3.bf16.msra.mxu1 %v10786_v42 }
0x19cc   : > { %10788 = vmatprep.subr.bf16.mxu1 %v11360_v2 }
0x19cd   : > { %10781 = vmatpush3.bf16.msra.mxu0 %v10780_v45  ;;  %v8830_v45 = vld [vmem:[%s13906_s10 + $0x308] sm:$0xff] }
0x19cf   : > { %10790 = vmatpush3.bf16.msra.mxu1 %v10789_v36 }
0x19d0   : > { %10791 = vmatprep.subr.bf16.mxu1 %v11360_v2 }
0x19d3   : > { %10793 = vmatpush3.bf16.msra.mxu1 %v10792_v40  ;;  %v8846_v40 = vld [vmem:[%s13906_s10 + $0x388] sm:$0xff] }
0x19d4   : > { %v10802_v44 = vpack.c.bf16 %v8846_v40, %v8845_v39 }
0x19d6   : > { %10803 = vmatprep.subr.bf16.mxu1 %v10802_v44 }
0x1a95   : > { %v3516_v47 = vpop.f32.mrb[46].mxu1 }
0x1a96   : > { %v3520_v49 = vmul.f32 0.9, %v3516_v47  ;;  %v10142_v50 = vpop.f32.mrb[47].mxu1  ;;  %v8847_v47 = vld [vmem:[%s13906_s10 + $0x390] sm:$0xff] }
0x1a97   : > { %v10804_v50 = vpack.c.bf16 %v8830_v45, %v8829_v41 }
0x1a98   : > { %v3521_v51 = vadd.f32 %v3520_v49, %v3305_v16  ;;  %v8848_v49 = vld [vmem:[%s13906_s10 + $0x398] sm:$0xff] }
0x1a99   : > { %v3588_v52 = vpop.f32.mrb[48].mxu1 }
0x1a9a   : > { %v3592_v22 = vmul.f32 0.9, %v3588_v52  ;;  %v10147_v56 = vpop.f32.mrb[49].mxu1  ;;  %10184 = vmatmul.mubr.msk.f32.vlgmr.msra.gmra.mrb[50].mxu1 %vm911_vm6, %v3521_v51  ;;  %v10806_v51 = vpack.c.bf16 %v8848_v49, %v8847_v47  ;;  %v8831_v52 = vld [vmem:[%s13906_s10 + $0x310] sm:$0xff]  ;;  %v8864_v47 = vld [vmem:[%s13899_s3 + $0x80] sm:$0xff] }
0x1a9b   : > { %v8849_v56 = vld [vmem:[%s13906_s10 + $0x3a0] sm:$0xff]  ;;  %10805 = vmatpush3.bf16.msra.mxu1 %v10804_v50  ;;  %v8865_v49 = vld [vmem:[%s13899_s3 + $0x88] sm:$0xf] }
0x1a9c   : > { %v3593_v13 = vadd.f32 %v3592_v22, %v3305_v16  ;;  %v8821_v16 = vld [vmem:[%s13904_s8 + $0xd8] sm:$0xff]  ;;  %10807 = vmatprep.subr.bf16.mxu1 %v10806_v51  ;;  %v10835_v50 = vpack.c.bf16 %v8865_v49, %v8864_v47  ;;  %v8882_v47 = vld [vmem:[%s13901_s5 + $0x120] sm:$0xff]  ;;  %v8883_v49 = vld [vmem:[%s13901_s5 + $0x128] sm:$0xff] }
0x1a9d   : > { %v10794_v18 = vpack.c.bf16 %v8821_v16, %v8819_v14  ;;  %v8832_v22 = vld [vmem:[%s13906_s10 + $0x318] sm:$0xff] }
0x1a9e   : > { %10165 = vmatmul.mubr.msk.f32.vlgmr.msra.gmra.mrb[26].mxu0 %vm911_vm6, %v3593_v13  ;;  %v8850_v13 = vld [vmem:[%s13906_s10 + $0x3a8] sm:$0xff] }
0x1a9f   : > { %3889 = vmatprep.mubr.f32.mxu0 %v11363_v5  ;;  %10795 = vmatprep.subr.bf16.mxu0 %v10794_v18  ;;  %v8840_v18 = vld [vmem:[%s13906_s10 + $0x358] sm:$0xff] }
0x1aa0   : > { %10797 = vmatpush1.bf16.msra.mxu0 %v10796_v25  ;;  %v10824_v24 = vpack.c.bf16 %v8840_v18, %v8839_v17  ;;  %v10826_v25 = vpack.c.bf16 %v8858_v21, %v8857_v20  ;;  %v12584_v20 = vld [vmem:[%s13897_s1] sm:$0xff] }
0x1aa1   : > { %10799 = vmatprep.subr.bf16.mxu0 %v10798_v27  ;;  %v8841_v27 = vld [vmem:[%s13906_s10 + $0x360] sm:$0xff] }
0x1aa2   : > { %v10828_v29 = vpack.c.bf16 %v8842_v10, %v8841_v27  ;;  %v12595_v21 = vld [vmem:[%s13898_s2] sm:$0xff]  ;;  %v8888_v10 = vld [vmem:[%s13902_s6 + $0x110] sm:$0xff] }
0x1aa4   : > { %10801 = vmatpush1.bf16.msra.mxu0 %v10800_v30  ;;  %v8859_v30 = vld [vmem:[%s13906_s10 + $0x3f0] sm:$0xff] }
0x1aa5   : > { %10834 = vmatprep.subr.bf16.mxu0 %v11360_v2 }
0x1b6d   : > { %v3754_v26 = vpop.f32.mrb[50].mxu1 }
0x1b6e   : > { %v10185_v28 = vpop.f32.mrb[51].mxu1 }
0x1b6f   : > { %v10810_v28 = vpack.c.bf16 %v8850_v13, %v8849_v56 }
0x1b71   : > { %v3681_v23 = vpop.f32.mrb[26].mxu0 }
0x1b72   : > { %v3755_v59 = vadd.f32 %v3754_v26, %v3681_v23  ;;  %v10166_v60 = vpop.f32.mrb[27].mxu0  ;;  %v10808_v26 = vpack.c.bf16 %v8832_v22, %v8831_v52  ;;  %v8833_v23 = vld [vmem:[%s13906_s10 + $0x320] sm:$0xff] }
0x1b73   : > { %v8852_v60 = vld [vmem:[%s13906_s10 + $0x3b8] sm:$0xff] }
0x1b74   : > { %v3766_v61 = vadd.f32 %v8817_v58, %v3755_v59  ;;  %v8834_v58 = vld [vmem:[%s13906_s10 + $0x328] sm:$0xff]  ;;  %v8851_v59 = vld [vmem:[%s13906_s10 + $0x3b0] sm:$0xff]  ;;  %10809 = vmatpush3.bf16.msra.mxu1 %v10808_v26 }
0x1b75   : > { %10811 = vmatprep.subr.bf16.mxu1 %v10810_v28 }
0x1b76   : > { %v3767_v19 = vsel %vm911_vm6, %v3766_v61, 0.0 }
0x1b77   : > { %3768 = vadd.xlane.f32.xlu1 %v3767_v19  ;;  %v8835_v19 = vld [vmem:[%s13906_s10 + $0x330] sm:$0xff] }
0x1c04   : > { %v3769_v31 = vpop.xlane.xlu1 %3768 }
0x1c05   : > { %v3770_v15 = vrot.slane %v3769_v31, 4 }
0x1c07   : > { %v3771_v62 = vadd.f32 %v3770_v15, %v3769_v31  ;;  %v8836_v31 = vld [vmem:[%s13906_s10 + $0x338] sm:$0xff] }
0x1c09   : > { %v3772_v63 = vrot.slane %v3771_v62, 2 }
0x1c0b   : > { %v3773_v0 = vadd.f32 %v3772_v63, %v3771_v62  ;;  %v10814_v62 = vpack.c.bf16 %v8852_v60, %v8851_v59  ;;  %v8853_v63 = vld [vmem:[%s13906_s10 + $0x3c0] sm:$0xff]  ;;  %v8869_v60 = vld [vmem:[%s13899_s3 + $0x90] sm:$0xff] }
0x1c0d   : > { %v3774_v1 = vrot.slane %v3773_v0, 1 }
0x1c0f   : > { %v3775_v3 = vadd.f32 %v3774_v1, %v3773_v0  ;;  %v8854_v0 = vld [vmem:[%s13906_s10 + $0x3c8] sm:$0xff] }
0x1c11   : > { %11233 = vpush %v3775_v3  ;;  %v10816_v3 = vpack.c.bf16 %v8836_v31, %v8835_v19 }
0x1c42   : > { %s11234_s16 = spop %11233 }
0x1c43   : > { %v3777_v6 = vstv %s11234_s16 }
0x1c44   : > { %v3778_v7 = vmul.f32 0.001953125, %v3777_v6  ;;  %v10818_v6 = vpack.c.bf16 %v8854_v0, %v8853_v63 }
0x1c46   : > { %v12395_v8 = vsub.f32 %v3766_v61, %v3778_v7  ;;  %v10812_v61 = vpack.c.bf16 %v8834_v58, %v8833_v23  ;;  %v8837_v7 = vld [vmem:[%s13906_s10 + $0x340] sm:$0xff] }
0x1c47   : > { %v8862_v23 = vld [vmem:[%s13907_s11 + $0x3] ss:$0 sm:$0xff] }
0x1c48   : > { %v3780_v11 = vmul.f32 %v12395_v8, %v12395_v8  ;;  %10813 = vmatpush3.bf16.msra.mxu1 %v10812_v61  ;;  %v8870_v61 = vld [vmem:[%s13899_s3 + $0x98] sm:$0xf] }
0x1c49   : > { %10815 = vmatprep.subr.bf16.mxu1 %v10814_v62  ;;  %v10839_v31 = vpack.c.bf16 %v8870_v61, %v8869_v60 }
0x1c4a   : > { %v3781_v12 = vsel %vm911_vm6, %v3780_v11, 0.0  ;;  %v8838_v11 = vld [vmem:[%s13906_s10 + $0x348] sm:$0xff] }
0x1c4b   : > { %3782 = vadd.xlane.f32.xlu0 %v3781_v12  ;;  %v8856_v12 = vld [vmem:[%s13906_s10 + $0x3d8] sm:$0xff]  ;;  %v10820_v14 = vpack.c.bf16 %v8838_v11, %v8837_v7 }
0x1c4c   : > { %10817 = vmatpush3.bf16.msra.mxu1 %v10816_v3 }
0x1c4d   : > { %10819 = vmatprep.subr.bf16.mxu1 %v10818_v6  ;;  %v8868_v6 = vld [vmem:[%s13900_s4 + $0x4] ss:$0 sm:$0xff] }
0x1c50   : > { %10821 = vmatpush3.bf16.msra.mxu1 %v10820_v14 }
0x1cd8   : > { %v3783_v32 = vpop.xlane.xlu0 %3782 }
0x1cd9   : > { %v3784_v33 = vrot.slane %v3783_v32, 4 }
0x1cdb   : > { %v3785_v42 = vadd.f32 %v3784_v33, %v3783_v32  ;;  %v8860_v32 = vld [vmem:[%s13906_s10 + $0x3f8] sm:$0xff] }
0x1cdc   : > { %v10830_v33 = vpack.c.bf16 %v8860_v32, %v8859_v30 }
0x1cdd   : > { %v3786_v34 = vrot.slane %v3785_v42, 2 }
0x1cdf   : > { %v3787_v35 = vadd.f32 %v3786_v34, %v3785_v42  ;;  %v8843_v42 = vld [vmem:[%s13906_s10 + $0x370] sm:$0xff]  ;;  %v8844_v34 = vld [vmem:[%s13906_s10 + $0x378] sm:$0xff] }
0x1ce1   : > { %v3788_v36 = vrot.slane %v3787_v35, 1 }
0x1ce3   : > { %v3789_v43 = vadd.f32 %v3788_v36, %v3787_v35  ;;  %v10832_v35 = vpack.c.bf16 %v8844_v34, %v8843_v42 }
0x1ce5   : > { %11235 = vpush %v3789_v43  ;;  %v8826_v43 = vld [vmem:[%s13905_s9 + $0x6] sm:$0x3] }
0x1d16   : > { %s11236_s23 = spop %11235 }
0x1d17   : > { %v3791_v37 = vstv %s11236_s23 }
0x1d18   : > { %v3792_v38 = vmul.f32 0.001953125, %v3791_v37  ;;  %v3814_v37 = vrot.slane %v8826_v43, %v11717_v46 }
0x1d1a   : > { %v3793_v9 = vadd.f32 1e-05, %v3792_v38  ;;  %v3818_v38 = vrot.slane %v8826_v43, %v11722_v48  ;;  %v8878_v43 = vld [vmem:[%s13901_s5 + $0x100] sm:$0xff] }
0x1d1c   : > { %11302 = vrsqrt.f32 %v3793_v9 }
0x1d26   : > { %v11303_v15 = vpop.eup %11302 }
0x1d27   : > { %v3795_v1 = vmul.f32 %v11303_v15, %v12395_v8  ;;  %v8855_v8 = vld [vmem:[%s13906_s10 + $0x3d0] sm:$0xff] }
0x1d28   : > { %v10822_v16 = vpack.c.bf16 %v8856_v12, %v8855_v8 }
0x1d29   : > { %3797 = vrot.lane.b32.xlu0 %v3795_v1, %s11365_s30  ;;  %8827 = vmatmul.mubr.msk.f32.vlgmr.msra.gmra.mrb[28].mxu0 %vm1119_vm7, %v3795_v1 }
0x1d2a   : > { %3895 = vmatprep.mubr.f32.mxu0 %v11363_v5  ;;  %10823 = vmatprep.subr.bf16.mxu1 %v10822_v16 }
0x1d2b   : > { %10825 = vmatpush3.bf16.msra.mxu1 %v10824_v24  ;;  %10837 = vmatpush3.bf16.msk.msra.mxu0 %vm11447_vm2, %v10835_v50  ;;  %v8886_v24 = vld [vmem:[%s13902_s6 + $0x100] sm:$0xff]  ;;  %v10861_v50 = vpack.c.bf16 %v8883_v49, %v8882_v47 }
0x1d2c   : > { %10827 = vmatprep.subr.bf16.mxu1 %v10826_v25  ;;  %10838 = vmatprep.subr.bf16.mxu0 %v11360_v2  ;;  %v8887_v25 = vld [vmem:[%s13902_s6 + $0x108] sm:$0xff] }
0x1d2d   : > { %v10843_v27 = vpack.c.bf16 %v8887_v25, %v8886_v24 }
0x1d2f   : > { %10829 = vmatpush3.bf16.msra.mxu1 %v10828_v29  ;;  %v8889_v29 = vld [vmem:[%s13902_s6 + $0x118] sm:$0xff] }
0x1d30   : > { %10831 = vmatprep.subr.bf16.mxu1 %v10830_v33  ;;  %v10846_v30 = vpack.c.bf16 %v8889_v29, %v8888_v10 }
0x1d33   : > { %10833 = vmatpush3.bf16.msra.mxu1 %v10832_v35 }
0x1d34   : > { %10842 = vmatprep.subr.bf16.mxu1 %v11360_v2 }
0x1d9b   : > { %v3798_v36 = vpop.permute.xlu0 %3797 }
0x1d9c   : > { %8828 = vmatmul.mubr.msk.f32.gmra.mrb[30].mxu0 %vm1119_vm7, %v3798_v36 }
0x1d9d   : > { %10190 = vmatprep.mubr.msk.f32.mxu0 %vm11362_vm3, %v11363_v5 }
0x1dfc   : > { %v3891_v9 = vpop.f32.mrb[28].mxu0 }
0x1dfd   : > { %v3892_v39 = vadd.f32 %v3891_v9, %v3814_v37  ;;  %v3893_v40 = vpop.f32.mrb[29].mxu0 }
0x1dfe   : > { %v3894_v41 = vadd.f32 %v3893_v40, %v3818_v38 }
0x1dff   : > { %v3902_v45 = vmax.f32 %v3892_v39, 0.0 }
0x1e00   : > { %v3903_v44 = vmax.f32 %v3894_v41, 0.0  ;;  %v8880_v41 = vld [vmem:[%s13901_s5 + $0x110] sm:$0xff] }
0x1e02   : > { %4011 = vmatprep.mubr.f32.mxu1 %v3903_v44  ;;  %v8881_v44 = vld [vmem:[%s13901_s5 + $0x118] sm:$0xff] }
0x1e03   : > { %4012 = vmatmul.mubr.f32.vlgmr.msra.gmra.mrb[52].mxu1 %v3902_v45  ;;  %v10858_v45 = vpack.c.bf16 %v8881_v44, %v8880_v41  ;;  %v8904_v41 = vld [vmem:[%s13904_s8 + $0x130] sm:$0xff] }
0x1e04   : > { %10844 = vmatpush3.bf16.msra.mxu1 %v10843_v27 }
0x1e05   : > { %10845 = vmatprep.subr.bf16.mxu1 %v11360_v2 }
0x1e08   : > { %10847 = vmatpush3.bf16.msra.mxu1 %v10846_v30 }
0x1e09   : > { %10848 = vmatprep.subr.bf16.mxu1 %v11360_v2 }
0x1e6f   : > { %v3897_v51 = vpop.f32.mrb[30].mxu0 }
0x1e70   : > { %v3898_v52 = vadd.f32 %v3897_v51, %v3814_v37  ;;  %v3899_v22 = vpop.f32.mrb[31].mxu0  ;;  %v8879_v37 = vld [vmem:[%s13901_s5 + $0x108] sm:$0xff]  ;;  %v8890_v51 = vld [vmem:[%s13902_s6 + $0x120] sm:$0xff] }
0x1e71   : > { %v3900_v56 = vadd.f32 %v3899_v22, %v3818_v38  ;;  %v10855_v40 = vpack.c.bf16 %v8879_v37, %v8878_v43  ;;  %v8884_v22 = vld [vmem:[%s13901_s5 + $0x130] sm:$0xff]  ;;  %v8903_v37 = vld [vmem:[%s13904_s8 + $0x128] sm:$0xff] }
0x1e72   : > { %v3904_v26 = vmax.f32 %v3898_v52, 0.0  ;;  %v8891_v52 = vld [vmem:[%s13902_s6 + $0x128] sm:$0xff]  ;;  %v8900_v43 = vld [vmem:[%s13904_s8 + $0x110] sm:$0xff] }
0x1e73   : > { %v3905_v13 = vmax.f32 %v3900_v56, 0.0  ;;  %v10849_v56 = vpack.c.bf16 %v8891_v52, %v8890_v51 }
0x1e75   : > { %4016 = vmatprep.mubr.f32.mxu1 %v3905_v13  ;;  %v8885_v13 = vld [vmem:[%s13901_s5 + $0x138] sm:$0xff]  ;;  %10850 = vmatpush3.bf16.msra.mxu1 %v10849_v56 }
0x1e76   : > { %4017 = vmatmul.mubr.f32.gmra.mrb[54].mxu1 %v3904_v26  ;;  %v10864_v26 = vpack.c.bf16 %v8885_v13, %v8884_v22  ;;  %10851 = vmatprep.subr.bf16.mxu1 %v11360_v2 }
0x1e77   : > { %10236 = vmatprep.mubr.msk.f32.mxu1 %vm11362_vm3, %v11363_v5 }
0x1ed6   : > { %v9542_v28 = vpop.f32.mrb[52].mxu1 }
0x1ed7   : > { %v9543_v58 = vpop.f32.mrb[53].mxu1 }
0x1ed8   : > { %v9544_v59 = vadd.f32 %v9543_v58, %v9542_v28  ;;  %v8892_v28 = vld [vmem:[%s13902_s6 + $0x130] sm:$0xff] }
0x1eda   : > { %v4014_v19 = vadd.f32 %v9544_v59, %v8862_v23 }
0x1edc   : > { %v12555_v15 = vsub.f32 %v12288_v54, %v4014_v19  ;;  %v12558_v62 = vadd.f32 %v4014_v19, %v12290_v55 }
0x1ede   : > { %10191 = vmatmul.mubr.msk.f32.vlgmr.msra.gmra.mrb[32].mxu0 %vm422_vm4, %v12555_v15 }
0x1edf   : > { %10841 = vmatpush3.bf16.msk.msra.mxu0 %vm11447_vm2, %v10839_v31  ;;  %10197 = vmatprep.mubr.msk.f32.mxu0 %vm11362_vm3, %v11363_v5 }
0x1ee0   : > { %10200 = vmatprep.subr.mxu0 %v11363_v5 }
0x1f49   : > { %v9545_v63 = vpop.f32.mrb[54].mxu1 }
0x1f4a   : > { %v9546_v0 = vpop.f32.mrb[55].mxu1 }
0x1f4b   : > { %v9547_v1 = vadd.f32 %v9546_v0, %v9545_v63 }
0x1f4d   : > { %v4019_v3 = vadd.f32 %v9547_v1, %v8862_v23  ;;  %v8893_v23 = vld [vmem:[%s13902_s6 + $0x138] sm:$0xff] }
0x1f4e   : > { %v10852_v58 = vpack.c.bf16 %v8893_v23, %v8892_v28  ;;  %v8925_v28 = vld [vmem:[%s13906_s10 + $0x480] sm:$0xff]  ;;  %v8926_v23 = vld [vmem:[%s13906_s10 + $0x488] sm:$0xff] }
0x1f4f   : > { %v12568_v54 = vsub.f32 %v12302_v53, %v4019_v3  ;;  %v12571_v55 = vadd.f32 %v4019_v3, %v12304_v57 }
0x1f50   : > { %10853 = vmatpush3.bf16.msra.mxu1 %v10852_v58  ;;  %v8909_v58 = vld [vmem:[%s13906_s10 + $0x400] sm:$0xff] }
0x1f51   : > { %10198 = vmatmul.mubr.msk.f32.vlgmr.msra.gmra.mrb[32].mxu0 %vm422_vm4, %v12568_v54 }
0x1f52   : > { %10202 = vmatprep.mubr.msk.f32.mxu0 %vm11362_vm3, %v11363_v5 }
0x2024   : > { %v4189_v7 = vpop.f32.mrb[32].mxu0 }
0x2025   : > { %v11198_v11 = vadd.f32 %v8868_v6, %v4189_v7  ;;  %v10199_v8 = vpop.f32.mrb[33].mxu0 }
0x2027   : > { %v8873_v12 = vmul.f32 -1.442695, %v11198_v11 }
0x2029   : > { %11304 = vpow2.f32 %v8873_v12 }
0x2033   : > { %v11305_v53 = vpop.eup %11304 }
0x2034   : > { %v4198_v14 = vadd.f32 1.0, %v11305_v53 }
0x2036   : > { %11306 = vrcp.f32 %v4198_v14 }
0x2037   : > { %11308 = vtanh.f32 %v11198_v11  ;;  %v8897_v11 = vld [vmem:[%s13903_s7 + $0x4] ss:$0 sm:$0xff] }
0x2040   : > { %v11307_v57 = vpop.eup %11306 }
0x2041   : > { %4202 = vrot.lane.b32.xlu0 %v11307_v57, %s11364_s19  ;;  %v11309_v16 = vpop.eup %11308 }
0x20b3   : > { %v4203_v17 = vpop.permute.xlu0 %4202 }
0x20b4   : > { %v4205_v18 = vmul.f32 %v11309_v16, %v4203_v17 }
0x20b6   : > { %10201 = vmatpush3.msra.mxu0 %v4205_v18  ;;  %v4206_v33 = vmul.f32 0.1, %v4205_v18 }
0x20b7   : > { %10203 = vmatmul.mubr.msk.f32.vlgmr.msra.gmra.mrb[34].mxu0 %vm600_vm5, %v12584_v20  ;;  %10205 = vmatprep.subr.mxu0 %v11363_v5 }
0x20b8   : > { %10206 = vmatpush3.msra.mxu0 %v4205_v18  ;;  %10207 = vmatprep.mubr.msk.f32.mxu0 %vm11362_vm3, %v11363_v5 }
0x20b9   : > { %10210 = vmatprep.subr.mxu0 %v11363_v5 }
0x20bb   : > { %10208 = vmatmul.mubr.msk.f32.vlgmr.msra.gmra.mrb[36].mxu0 %vm600_vm5, %v12595_v21 }
0x20bc   : > { %10212 = vmatprep.mubr.msk.f32.mxu0 %vm11362_vm3, %v11363_v5 }
0x218a   : > { %v4273_v32 = vpop.f32.mrb[34].mxu0 }
0x218b   : > { %v4277_v42 = vmul.f32 0.9, %v4273_v32  ;;  %v10204_v34 = vpop.f32.mrb[35].mxu0 }
0x218c   : > { %v8901_v34 = vld [vmem:[%s13904_s8 + $0x118] sm:$0xff] }
0x218d   : > { %v4278_v35 = vadd.f32 %v4277_v42, %v4206_v33  ;;  %v8899_v42 = vld [vmem:[%s13904_s8 + $0x108] sm:$0xff] }
0x218e   : > { %v4345_v36 = vpop.f32.mrb[36].mxu0 }
0x218f   : > { %v4349_v38 = vmul.f32 0.9, %v4345_v36  ;;  %v10209_v9 = vpop.f32.mrb[37].mxu0  ;;  %10211 = vmatpush3.msra.mxu0 %v4278_v35  ;;  %v8898_v35 = vld [vmem:[%s13904_s8 + $0x100] sm:$0xff]  ;;  %v10866_v36 = vpack.c.bf16 %v8901_v34, %v8899_v42  ;;  %v8918_v42 = vld [vmem:[%s13906_s10 + $0x448] sm:$0xff]  ;;  %v8936_v34 = vld [vmem:[%s13906_s10 + $0x4d8] sm:$0xff] }
0x2190   : > { %10213 = vmatmul.mubr.msk.f32.vlgmr.msra.gmra.mrb[38].mxu0 %vm600_vm5, %v12584_v20  ;;  %10215 = vmatprep.subr.mxu0 %v11363_v5  ;;  %v10868_v9 = vpack.c.bf16 %v8900_v43, %v8898_v35  ;;  %v8919_v43 = vld [vmem:[%s13906_s10 + $0x450] sm:$0xff] }
0x2191   : > { %v4350_v39 = vadd.f32 %v4349_v38, %v4206_v33  ;;  %10217 = vmatprep.mubr.msk.f32.mxu0 %vm11362_vm3, %v11363_v5  ;;  %v8905_v38 = vld [vmem:[%s13904_s8 + $0x138] sm:$0xff]  ;;  %10867 = vmatprep.subr.bf16.mxu1 %v10866_v36 }
0x2193   : > { %10216 = vmatpush3.msra.mxu0 %v4350_v39  ;;  %v10870_v39 = vpack.c.bf16 %v8905_v38, %v8903_v37  ;;  %v8920_v37 = vld [vmem:[%s13906_s10 + $0x458] sm:$0xff]  ;;  %v8937_v38 = vld [vmem:[%s13906_s10 + $0x4e0] sm:$0xff] }
0x2194   : > { %10218 = vmatmul.mubr.msk.f32.vlgmr.msra.gmra.mrb[40].mxu0 %vm600_vm5, %v12595_v21  ;;  %10854 = vmatprep.subr.bf16.mxu0 %v11360_v2 }
0x2195   : > { %10856 = vmatpush3.bf16.msra.mxu0 %v10855_v40  ;;  %10255 = vmatprep.mubr.msk.f32.mxu0 %vm11362_vm3, %v11363_v5  ;;  %v8902_v40 = vld [vmem:[%s13904_s8 + $0x120] sm:$0xff] }
0x2196   : > { %10857 = vmatprep.subr.bf16.mxu0 %v11360_v2  ;;  %v10872_v44 = vpack.c.bf16 %v8904_v41, %v8902_v40  ;;  %v8921_v41 = vld [vmem:[%s13906_s10 + $0x460] sm:$0xff] }
0x2199   : > { %10859 = vmatpush3.bf16.msra.mxu0 %v10858_v45 }
0x219a   : > { %10860 = vmatprep.subr.bf16.mxu0 %v11360_v2 }
0x219d   : > { %10862 = vmatpush3.bf16.msra.mxu0 %v10861_v50 }
0x219e   : > { %10863 = vmatprep.subr.bf16.mxu0 %v11360_v2 }
0x21a1   : > { %10865 = vmatpush3.bf16.msra.mxu0 %v10864_v26 }
0x2263   : > { %v4417_v59 = vpop.f32.mrb[38].mxu0 }
0x2264   : > { %v4421_v60 = vmul.f32 0.9, %v4417_v59  ;;  %v10214_v61 = vpop.f32.mrb[39].mxu0  ;;  %v10874_v59 = vpack.c.bf16 %v8926_v23, %v8925_v28 }
0x2265   : > { %v8927_v61 = vld [vmem:[%s13906_s10 + $0x490] sm:$0xff] }
0x2266   : > { %v4422_v19 = vadd.f32 %v4421_v60, %v4206_v33  ;;  %v8910_v60 = vld [vmem:[%s13906_s10 + $0x408] sm:$0xff]  ;;  %10875 = vmatprep.subr.bf16.mxu0 %v10874_v59 }
0x2267   : > { %v4489_v31 = vpop.f32.mrb[40].mxu0 }
0x2268   : > { %v4493_v63 = vmul.f32 0.9, %v4489_v31  ;;  %v10219_v0 = vpop.f32.mrb[41].mxu0  ;;  %10256 = vmatmul.mubr.msk.f32.vlgmr.msra.gmra.mrb[42].mxu0 %vm911_vm6, %v4422_v19  ;;  %v8928_v19 = vld [vmem:[%s13906_s10 + $0x498] sm:$0xff]  ;;  %v10876_v31 = vpack.c.bf16 %v8910_v60, %v8909_v58 }
0x2269   : > { %v8911_v0 = vld [vmem:[%s13906_s10 + $0x410] sm:$0xff] }
0x226a   : > { %v4494_v1 = vadd.f32 %v4493_v63, %v4206_v33  ;;  %v10878_v63 = vpack.c.bf16 %v8928_v19, %v8927_v61  ;;  %10877 = vmatpush3.bf16.msra.mxu0 %v10876_v31  ;;  %v8944_v31 = vld [vmem:[%s13899_s3 + $0xa0] sm:$0xff] }
0x226c   : > { %10237 = vmatmul.mubr.msk.f32.vlgmr.msra.gmra.mrb[56].mxu1 %vm911_vm6, %v4494_v1  ;;  %v8912_v1 = vld [vmem:[%s13906_s10 + $0x418] sm:$0xff]  ;;  %10879 = vmatprep.subr.bf16.mxu0 %v10878_v63  ;;  %v8945_v63 = vld [vmem:[%s13899_s3 + $0xa8] sm:$0xf] }
0x226d   : > { %4790 = vmatprep.mubr.f32.mxu1 %v11363_v5  ;;  %10869 = vmatpush1.bf16.msra.mxu1 %v10868_v9  ;;  %v8938_v9 = vld [vmem:[%s13906_s10 + $0x4e8] sm:$0xff] }
0x226e   : > { %10871 = vmatprep.subr.bf16.mxu1 %v10870_v39  ;;  %v10896_v39 = vpack.c.bf16 %v8920_v37, %v8919_v43  ;;  %v10898_v40 = vpack.c.bf16 %v8938_v9, %v8937_v38 }
0x2271   : > { %10873 = vmatpush1.bf16.msra.mxu1 %v10872_v44  ;;  %v8922_v44 = vld [vmem:[%s13906_s10 + $0x468] sm:$0xff] }
0x2272   : > { %10906 = vmatprep.subr.bf16.mxu1 %v11360_v2 }
0x233b   : > { %v4655_v3 = vpop.f32.mrb[42].mxu0 }
0x233c   : > { %v10257_v6 = vpop.f32.mrb[43].mxu0 }
0x233d   : > { %v8930_v6 = vld [vmem:[%s13906_s10 + $0x4a8] sm:$0xff] }
0x233f   : > { %v4582_v7 = vpop.f32.mrb[56].mxu1 }
0x2340   : > { %v4656_v8 = vadd.f32 %v4655_v3, %v4582_v7  ;;  %v10238_v12 = vpop.f32.mrb[57].mxu1  ;;  %v8929_v3 = vld [vmem:[%s13906_s10 + $0x4a0] sm:$0xff]  ;;  %v10880_v7 = vpack.c.bf16 %v8912_v1, %v8911_v0  ;;  %v10907_v0 = vpack.c.bf16 %v8945_v63, %v8944_v31  ;;  %v8963_v31 = vld [vmem:[%s13901_s5 + $0x168] sm:$0xff] }
0x2341   : > { %v8914_v12 = vld [vmem:[%s13906_s10 + $0x428] sm:$0xff] }
0x2342   : > { %v4667_v53 = vadd.f32 %v8897_v11, %v4656_v8  ;;  %v10882_v11 = vpack.c.bf16 %v8930_v6, %v8929_v3  ;;  %v8913_v8 = vld [vmem:[%s13906_s10 + $0x420] sm:$0xff]  ;;  %10881 = vmatpush3.bf16.msra.mxu0 %v10880_v7 }
0x2344   : > { %v4668_v14 = vsel %vm911_vm6, %v4667_v53, 0.0  ;;  %10883 = vmatprep.subr.bf16.mxu0 %v10882_v11 }
0x2345   : > { %4669 = vadd.xlane.f32.xlu1 %v4668_v14  ;;  %v8932_v14 = vld [vmem:[%s13906_s10 + $0x4b8] sm:$0xff] }
0x23d2   : > { %v4670_v57 = vpop.xlane.xlu1 %4669 }
0x23d3   : > { %v4671_v16 = vrot.slane %v4670_v57, 4 }
0x23d5   : > { %v4672_v17 = vadd.f32 %v4671_v16, %v4670_v57  ;;  %v10884_v57 = vpack.c.bf16 %v8914_v12, %v8913_v8  ;;  %v8915_v16 = vld [vmem:[%s13906_s10 + $0x430] sm:$0xff] }
0x23d7   : > { %v4673_v18 = vrot.slane %v4672_v17, 2  ;;  %10885 = vmatpush3.bf16.msra.mxu0 %v10884_v57 }
0x23d9   : > { %v4674_v24 = vadd.f32 %v4673_v18, %v4672_v17  ;;  %v8916_v17 = vld [vmem:[%s13906_s10 + $0x438] sm:$0xff] }
0x23db   : > { %v4675_v25 = vrot.slane %v4674_v24, 1 }
0x23dd   : > { %v4676_v27 = vadd.f32 %v4675_v25, %v4674_v24  ;;  %v8933_v25 = vld [vmem:[%s13906_s10 + $0x4c0] sm:$0xff] }
0x23df   : > { %11237 = vpush %v4676_v27  ;;  %v8934_v27 = vld [vmem:[%s13906_s10 + $0x4c8] sm:$0xff] }
0x2410   : > { %s11238_s23 = spop %11237 }
0x2411   : > { %v4678_v10 = vstv %s11238_s23 }
0x2412   : > { %v4679_v29 = vmul.f32 0.001953125, %v4678_v10 }
0x2414   : > { %v12672_v30 = vsub.f32 %v4667_v53, %v4679_v29  ;;  %v8931_v53 = vld [vmem:[%s13906_s10 + $0x4b0] sm:$0xff]  ;;  %v10888_v29 = vpack.c.bf16 %v8916_v17, %v8915_v16  ;;  %v8950_v17 = vld [vmem:[%s13899_s3 + $0xb8] sm:$0xf] }
0x2415   : > { %v10886_v24 = vpack.c.bf16 %v8932_v14, %v8931_v53  ;;  %v8942_v53 = vld [vmem:[%s13907_s11 + $0x4] ss:$0 sm:$0xff]  ;;  %v8949_v16 = vld [vmem:[%s13899_s3 + $0xb0] sm:$0xff] }
0x2416   : > { %v4681_v32 = vmul.f32 %v12672_v30, %v12672_v30 }
0x2417   : > { %10887 = vmatprep.subr.bf16.mxu0 %v10886_v24  ;;  %v10911_v24 = vpack.c.bf16 %v8950_v17, %v8949_v16 }
0x2418   : > { %v4682_v33 = vsel %vm911_vm6, %v4681_v32, 0.0  ;;  %v10890_v32 = vpack.c.bf16 %v8934_v27, %v8933_v25  ;;  %10889 = vmatpush3.bf16.msra.mxu0 %v10888_v29 }
0x2419   : > { %4683 = vadd.xlane.f32.xlu0 %v4682_v33  ;;  %v8917_v33 = vld [vmem:[%s13906_s10 + $0x440] sm:$0xff] }
0x241a   : > { %v10892_v35 = vpack.c.bf16 %v8918_v42, %v8917_v33  ;;  %10891 = vmatprep.subr.bf16.mxu0 %v10890_v32  ;;  %v8948_v42 = vld [vmem:[%s13900_s4 + $0x5] ss:$0 sm:$0xff] }
0x241c   : > { %10893 = vmatpush3.bf16.msra.mxu0 %v10892_v35 }
0x24a6   : > { %v4684_v45 = vpop.xlane.xlu0 %4683 }
0x24a7   : > { %v4685_v47 = vrot.slane %v4684_v45, 4 }
0x24a9   : > { %v4686_v49 = vadd.f32 %v4685_v47, %v4684_v45  ;;  %v10900_v45 = vpack.c.bf16 %v8922_v44, %v8921_v41  ;;  %v8939_v47 = vld [vmem:[%s13906_s10 + $0x4f0] sm:$0xff] }
0x24aa   : > { %v8968_v44 = vld [vmem:[%s13902_s6 + $0x150] sm:$0xff] }
0x24ab   : > { %v4687_v50 = vrot.slane %v4686_v49, 2 }
0x24ad   : > { %v4688_v51 = vadd.f32 %v4687_v50, %v4686_v49  ;;  %v8940_v49 = vld [vmem:[%s13906_s10 + $0x4f8] sm:$0xff] }
0x24ae   : > { %v10902_v50 = vpack.c.bf16 %v8940_v49, %v8939_v47 }
0x24af   : > { %v4689_v52 = vrot.slane %v4688_v51, 1 }
0x24b1   : > { %v4690_v22 = vadd.f32 %v4689_v52, %v4688_v51  ;;  %v8923_v51 = vld [vmem:[%s13906_s10 + $0x470] sm:$0xff]  ;;  %v8924_v52 = vld [vmem:[%s13906_s10 + $0x478] sm:$0xff] }
0x24b3   : > { %11239 = vpush %v4690_v22  ;;  %v10904_v22 = vpack.c.bf16 %v8924_v52, %v8923_v51 }
0x24e4   : > { %s11240_s27 = spop %11239 }
0x24e5   : > { %v4692_v56 = vstv %s11240_s27 }
0x24e6   : > { %v4693_v13 = vmul.f32 0.001953125, %v4692_v56 }
0x24e8   : > { %v4694_v26 = vadd.f32 1e-05, %v4693_v13  ;;  %v8906_v13 = vld [vmem:[%s13905_s9 + $0x8] sm:$0x3] }
0x24e9   : > { %v4719_v28 = vrot.slane %v8906_v13, %v11722_v48 }
0x24ea   : > { %11310 = vrsqrt.f32 %v4694_v26  ;;  %v4715_v26 = vrot.slane %v8906_v13, %v11717_v46  ;;  %v8958_v13 = vld [vmem:[%s13901_s5 + $0x140] sm:$0xff] }
0x24f4   : > { %v11311_v18 = vpop.eup %11310 }
0x24f5   : > { %v4696_v10 = vmul.f32 %v11311_v18, %v12672_v30  ;;  %v8935_v30 = vld [vmem:[%s13906_s10 + $0x4d0] sm:$0xff] }
0x24f6   : > { %v10894_v36 = vpack.c.bf16 %v8936_v34, %v8935_v30 }
0x24f7   : > { %4698 = vrot.lane.b32.xlu1 %v4696_v10, %s11365_s30  ;;  %8907 = vmatmul.mubr.msk.f32.vlgmr.msra.gmra.mrb[58].mxu1 %vm1119_vm7, %v4696_v10 }
0x24f8   : > { %4796 = vmatprep.mubr.f32.mxu1 %v11363_v5  ;;  %10895 = vmatprep.subr.bf16.mxu0 %v10894_v36 }
0x24f9   : > { %10897 = vmatpush3.bf16.msra.mxu0 %v10896_v39  ;;  %10909 = vmatpush3.bf16.msk.msra.mxu1 %vm11447_vm2, %v10907_v0  ;;  %v8966_v39 = vld [vmem:[%s13902_s6 + $0x140] sm:$0xff]  ;;  %v8971_v0 = vld [vmem:[%s13902_s6 + $0x168] sm:$0xff] }
0x24fa   : > { %10899 = vmatprep.subr.bf16.mxu0 %v10898_v40  ;;  %10910 = vmatprep.subr.bf16.mxu1 %v11360_v2  ;;  %v8967_v40 = vld [vmem:[%s13902_s6 + $0x148] sm:$0xff] }
0x24fb   : > { %v10915_v41 = vpack.c.bf16 %v8967_v40, %v8966_v39 }
0x24fd   : > { %10901 = vmatpush3.bf16.msra.mxu0 %v10900_v45  ;;  %v8969_v45 = vld [vmem:[%s13902_s6 + $0x158] sm:$0xff] }
0x24fe   : > { %10903 = vmatprep.subr.bf16.mxu0 %v10902_v50  ;;  %v10918_v47 = vpack.c.bf16 %v8969_v45, %v8968_v44 }
0x2501   : > { %10905 = vmatpush3.bf16.msra.mxu0 %v10904_v22 }
0x2502   : > { %10914 = vmatprep.subr.bf16.mxu0 %v11360_v2 }
0x2569   : > { %v4699_v56 = vpop.permute.xlu1 %4698 }
0x256a   : > { %8908 = vmatmul.mubr.msk.f32.gmra.mrb[60].mxu1 %vm1119_vm7, %v4699_v56 }
0x256b   : > { %10262 = vmatprep.mubr.msk.f32.mxu1 %vm11362_vm3, %v11363_v5 }
0x25ca   : > { %v4792_v23 = vpop.f32.mrb[58].mxu1 }
0x25cb   : > { %v4793_v58 = vadd.f32 %v4792_v23, %v4715_v26  ;;  %v4794_v59 = vpop.f32.mrb[59].mxu1 }
0x25cc   : > { %v4795_v60 = vadd.f32 %v4794_v59, %v4719_v28 }
0x25cd   : > { %v4803_v19 = vmax.f32 %v4793_v58, 0.0 }
0x25ce   : > { %v4804_v61 = vmax.f32 %v4795_v60, 0.0  ;;  %v8960_v60 = vld [vmem:[%s13901_s5 + $0x150] sm:$0xff] }
0x25d0   : > { %4912 = vmatprep.mubr.f32.mxu0 %v4804_v61  ;;  %v8961_v61 = vld [vmem:[%s13901_s5 + $0x158] sm:$0xff] }
0x25d1   : > { %4913 = vmatmul.mubr.f32.vlgmr.msra.gmra.mrb[44].mxu0 %v4803_v19  ;;  %v8962_v19 = vld [vmem:[%s13901_s5 + $0x160] sm:$0xff] }
0x25d2   : > { %10916 = vmatpush3.bf16.msra.mxu0 %v10915_v41  ;;  %v10933_v63 = vpack.c.bf16 %v8963_v31, %v8962_v19 }
0x25d3   : > { %10917 = vmatprep.subr.bf16.mxu0 %v11360_v2 }
0x25d6   : > { %10919 = vmatpush3.bf16.msra.mxu0 %v10918_v47 }
0x25d7   : > { %10920 = vmatprep.subr.bf16.mxu0 %v11360_v2 }
0x263d   : > { %v4798_v1 = vpop.f32.mrb[60].mxu1 }
0x263e   : > { %v4799_v3 = vadd.f32 %v4798_v1, %v4715_v26  ;;  %v4800_v6 = vpop.f32.mrb[61].mxu1  ;;  %v8959_v26 = vld [vmem:[%s13901_s5 + $0x148] sm:$0xff]  ;;  %v8964_v1 = vld [vmem:[%s13901_s5 + $0x170] sm:$0xff] }
0x263f   : > { %v4801_v7 = vadd.f32 %v4800_v6, %v4719_v28  ;;  %v10927_v59 = vpack.c.bf16 %v8959_v26, %v8958_v13  ;;  %v8965_v6 = vld [vmem:[%s13901_s5 + $0x178] sm:$0xff] }
0x2640   : > { %v4805_v8 = vmax.f32 %v4799_v3, 0.0  ;;  %v8985_v13 = vld [vmem:[%s13904_s8 + $0x178] sm:$0xff] }
0x2641   : > { %v4806_v11 = vmax.f32 %v4801_v7, 0.0  ;;  %v10936_v7 = vpack.c.bf16 %v8965_v6, %v8964_v1  ;;  %v9005_v6 = vld [vmem:[%s13906_s10 + $0x580] sm:$0xff] }
0x2643   : > { %4917 = vmatprep.mubr.f32.mxu0 %v4806_v11  ;;  %v8972_v11 = vld [vmem:[%s13902_s6 + $0x170] sm:$0xff] }
0x2644   : > { %4918 = vmatmul.mubr.f32.gmra.mrb[46].mxu0 %v4805_v8  ;;  %v8973_v8 = vld [vmem:[%s13902_s6 + $0x178] sm:$0xff] }
0x2645   : > { %10308 = vmatprep.mubr.msk.f32.mxu0 %vm11362_vm3, %v11363_v5 }
0x26a4   : > { %v9612_v12 = vpop.f32.mrb[44].mxu0 }
0x26a5   : > { %v9613_v14 = vpop.f32.mrb[45].mxu0 }
0x26a6   : > { %v9614_v57 = vadd.f32 %v9613_v14, %v9612_v12  ;;  %v10924_v12 = vpack.c.bf16 %v8973_v8, %v8972_v11  ;;  %v8989_v11 = vld [vmem:[%s13906_s10 + $0x500] sm:$0xff] }
0x26a8   : > { %v4915_v18 = vadd.f32 %v9614_v57, %v8942_v53 }
0x26aa   : > { %v12832_v25 = vsub.f32 %v12555_v15, %v4915_v18  ;;  %v12835_v27 = vadd.f32 %v4915_v18, %v12558_v62 }
0x26ac   : > { %10263 = vmatmul.mubr.msk.f32.vlgmr.msra.gmra.mrb[62].mxu1 %vm422_vm4, %v12832_v25 }
0x26ad   : > { %10913 = vmatpush3.bf16.msk.msra.mxu1 %vm11447_vm2, %v10911_v24  ;;  %10269 = vmatprep.mubr.msk.f32.mxu1 %vm11362_vm3, %v11363_v5 }
0x26ae   : > { %10272 = vmatprep.subr.mxu1 %v11363_v5 }
0x2717   : > { %v9615_v10 = vpop.f32.mrb[46].mxu0 }
0x2718   : > { %v9616_v29 = vpop.f32.mrb[47].mxu0 }
0x2719   : > { %v9617_v32 = vadd.f32 %v9616_v29, %v9615_v10 }
0x271b   : > { %v4920_v33 = vadd.f32 %v9617_v32, %v8942_v53 }
0x271d   : > { %v12845_v15 = vsub.f32 %v12568_v54, %v4920_v33  ;;  %v12848_v62 = vadd.f32 %v4920_v33, %v12571_v55 }
0x271f   : > { %10270 = vmatmul.mubr.msk.f32.vlgmr.msra.gmra.mrb[62].mxu1 %vm422_vm4, %v12845_v15 }
0x2720   : > { %10274 = vmatprep.mubr.msk.f32.mxu1 %vm11362_vm3, %v11363_v5 }
0x27f2   : > { %v5090_v30 = vpop.f32.mrb[62].mxu1 }
0x27f3   : > { %v11199_v34 = vadd.f32 %v8948_v42, %v5090_v30  ;;  %v10271_v35 = vpop.f32.mrb[63].mxu1  ;;  %v8977_v42 = vld [vmem:[%s13903_s7 + $0x5] ss:$0 sm:$0xff] }
0x27f5   : > { %v8953_v36 = vmul.f32 -1.442695, %v11199_v34 }
0x27f7   : > { %11312 = vpow2.f32 %v8953_v36 }
0x2801   : > { %v11313_v54 = vpop.eup %11312 }
0x2802   : > { %v5099_v43 = vadd.f32 1.0, %v11313_v54 }
0x2804   : > { %11314 = vrcp.f32 %v5099_v43 }
0x2805   : > { %11316 = vtanh.f32 %v11199_v34 }
0x280e   : > { %v11315_v55 = vpop.eup %11314 }
0x280f   : > { %5103 = vrot.lane.b32.xlu1 %v11315_v55, %s11364_s19  ;;  %v11317_v37 = vpop.eup %11316 }
0x2881   : > { %v5104_v38 = vpop.permute.xlu1 %5103 }
0x2882   : > { %v5106_v9 = vmul.f32 %v11317_v37, %v5104_v38 }
0x2884   : > { %10273 = vmatpush3.msra.mxu1 %v5106_v9  ;;  %v5107_v50 = vmul.f32 0.1, %v5106_v9 }
0x2885   : > { %10275 = vmatmul.mubr.msk.f32.vlgmr.msra.gmra.mrb[64].mxu1 %vm600_vm5, %v12584_v20  ;;  %10277 = vmatprep.subr.mxu1 %v11363_v5 }
0x2886   : > { %10278 = vmatpush3.msra.mxu1 %v5106_v9  ;;  %10279 = vmatprep.mubr.msk.f32.mxu1 %vm11362_vm3, %v11363_v5 }
0x2887   : > { %10282 = vmatprep.subr.mxu1 %v11363_v5 }
0x2889   : > { %10280 = vmatmul.mubr.msk.f32.vlgmr.msra.gmra.mrb[66].mxu1 %vm600_vm5, %v12595_v21 }
0x288a   : > { %10284 = vmatprep.mubr.msk.f32.mxu1 %vm11362_vm3, %v11363_v5 }
0x2958   : > { %v5174_v49 = vpop.f32.mrb[64].mxu1 }
0x2959   : > { %v5178_v51 = vmul.f32 0.9, %v5174_v49  ;;  %v10276_v52 = vpop.f32.mrb[65].mxu1  ;;  %v8979_v49 = vld [vmem:[%s13904_s8 + $0x148] sm:$0xff] }
0x295b   : > { %v5179_v22 = vadd.f32 %v5178_v51, %v5107_v50  ;;  %v8978_v51 = vld [vmem:[%s13904_s8 + $0x140] sm:$0xff] }
0x295c   : > { %v5246_v56 = vpop.f32.mrb[66].mxu1 }
0x295d   : > { %v5250_v28 = vmul.f32 0.9, %v5246_v56  ;;  %v10281_v23 = vpop.f32.mrb[67].mxu1  ;;  %10283 = vmatpush3.msra.mxu1 %v5179_v22  ;;  %v8980_v22 = vld [vmem:[%s13904_s8 + $0x150] sm:$0xff]  ;;  %v8983_v56 = vld [vmem:[%s13904_s8 + $0x168] sm:$0xff] }
0x295e   : > { %10285 = vmatmul.mubr.msk.f32.vlgmr.msra.gmra.mrb[68].mxu1 %vm600_vm5, %v12584_v20  ;;  %10287 = vmatprep.subr.mxu1 %v11363_v5  ;;  %v10930_v20 = vpack.c.bf16 %v8961_v61, %v8960_v60  ;;  %v10940_v26 = vpack.c.bf16 %v8980_v22, %v8978_v51  ;;  %v8982_v23 = vld [vmem:[%s13904_s8 + $0x160] sm:$0xff]  ;;  %v8999_v51 = vld [vmem:[%s13906_s10 + $0x550] sm:$0xff] }
0x295f   : > { %v5251_v58 = vadd.f32 %v5250_v28, %v5107_v50  ;;  %10289 = vmatprep.mubr.msk.f32.mxu1 %vm11362_vm3, %v11363_v5  ;;  %v10942_v28 = vpack.c.bf16 %v8985_v13, %v8983_v56  ;;  %v9017_v22 = vld [vmem:[%s13906_s10 + $0x5e0] sm:$0xff]  ;;  %v9018_v56 = vld [vmem:[%s13906_s10 + $0x5e8] sm:$0xff] }
0x2961   : > { %10288 = vmatpush3.msra.mxu1 %v5251_v58  ;;  %v8984_v58 = vld [vmem:[%s13904_s8 + $0x170] sm:$0xff] }
0x2962   : > { %10290 = vmatmul.mubr.msk.f32.vlgmr.msra.gmra.mrb[70].mxu1 %vm600_vm5, %v12595_v21  ;;  %10926 = vmatprep.subr.bf16.mxu1 %v11360_v2  ;;  %v8970_v21 = vld [vmem:[%s13902_s6 + $0x160] sm:$0xff] }
0x2963   : > { %10928 = vmatpush3.bf16.msra.mxu1 %v10927_v59  ;;  %10327 = vmatprep.mubr.msk.f32.mxu1 %vm11362_vm3, %v11363_v5  ;;  %v10921_v3 = vpack.c.bf16 %v8971_v0, %v8970_v21  ;;  %v10944_v59 = vpack.c.bf16 %v8984_v58, %v8982_v23  ;;  %v9002_v23 = vld [vmem:[%s13906_s10 + $0x568] sm:$0xff] }
0x2964   : > { %10929 = vmatprep.subr.bf16.mxu1 %v11360_v2 }
0x2965   : > { %10922 = vmatpush3.bf16.msra.mxu0 %v10921_v3 }
0x2966   : > { %10923 = vmatprep.subr.bf16.mxu0 %v11360_v2 }
0x2967   : > { %10931 = vmatpush3.bf16.msra.mxu1 %v10930_v20 }
0x2968   : > { %10932 = vmatprep.subr.bf16.mxu1 %v11360_v2 }
0x2969   : > { %10925 = vmatpush3.bf16.msra.mxu0 %v10924_v12  ;;  %v8990_v12 = vld [vmem:[%s13906_s10 + $0x508] sm:$0xff] }
0x296b   : > { %10934 = vmatpush3.bf16.msra.mxu1 %v10933_v63 }
0x296c   : > { %10935 = vmatprep.subr.bf16.mxu1 %v11360_v2 }
0x296f   : > { %10937 = vmatpush3.bf16.msra.mxu1 %v10936_v7  ;;  %v9006_v7 = vld [vmem:[%s13906_s10 + $0x588] sm:$0xff] }
0x2970   : > { %v10946_v8 = vpack.c.bf16 %v9006_v7, %v9005_v6 }
0x2972   : > { %10947 = vmatprep.subr.bf16.mxu1 %v10946_v8 }
0x2a31   : > { %v5318_v53 = vpop.f32.mrb[68].mxu1 }
0x2a32   : > { %v5322_v14 = vmul.f32 0.9, %v5318_v53  ;;  %v10286_v57 = vpop.f32.mrb[69].mxu1  ;;  %v9007_v53 = vld [vmem:[%s13906_s10 + $0x590] sm:$0xff] }
0x2a33   : > { %v10948_v57 = vpack.c.bf16 %v8990_v12, %v8989_v11 }
0x2a34   : > { %v5323_v16 = vadd.f32 %v5322_v14, %v5107_v50  ;;  %v9008_v14 = vld [vmem:[%s13906_s10 + $0x598] sm:$0xff] }
0x2a35   : > { %v5390_v17 = vpop.f32.mrb[70].mxu1 }
0x2a36   : > { %v5394_v18 = vmul.f32 0.9, %v5390_v17  ;;  %v10291_v24 = vpop.f32.mrb[71].mxu1  ;;  %10328 = vmatmul.mubr.msk.f32.vlgmr.msra.gmra.mrb[72].mxu1 %vm911_vm6, %v5323_v16  ;;  %v10950_v16 = vpack.c.bf16 %v9008_v14, %v9007_v53  ;;  %v8991_v17 = vld [vmem:[%s13906_s10 + $0x510] sm:$0xff]  ;;  %v9024_v53 = vld [vmem:[%s13899_s3 + $0xc0] sm:$0xff] }
0x2a37   : > { %v9009_v24 = vld [vmem:[%s13906_s10 + $0x5a0] sm:$0xff]  ;;  %10949 = vmatpush3.bf16.msra.mxu1 %v10948_v57  ;;  %v9025_v14 = vld [vmem:[%s13899_s3 + $0xc8] sm:$0xf] }
0x2a38   : > { %v5395_v10 = vadd.f32 %v5394_v18, %v5107_v50  ;;  %v8981_v50 = vld [vmem:[%s13904_s8 + $0x158] sm:$0xff]  ;;  %10951 = vmatprep.subr.bf16.mxu1 %v10950_v16  ;;  %v10979_v57 = vpack.c.bf16 %v9025_v14, %v9024_v53  ;;  %v9042_v53 = vld [vmem:[%s13901_s5 + $0x1a0] sm:$0xff]  ;;  %v9043_v14 = vld [vmem:[%s13901_s5 + $0x1a8] sm:$0xff] }
0x2a39   : > { %v10938_v52 = vpack.c.bf16 %v8981_v50, %v8979_v49  ;;  %v8992_v18 = vld [vmem:[%s13906_s10 + $0x518] sm:$0xff] }
0x2a3a   : > { %10309 = vmatmul.mubr.msk.f32.vlgmr.msra.gmra.mrb[48].mxu0 %vm911_vm6, %v5395_v10  ;;  %v9010_v10 = vld [vmem:[%s13906_s10 + $0x5a8] sm:$0xff] }
0x2a3b   : > { %5691 = vmatprep.mubr.f32.mxu0 %v11363_v5  ;;  %10939 = vmatprep.subr.bf16.mxu0 %v10938_v52  ;;  %v9000_v52 = vld [vmem:[%s13906_s10 + $0x558] sm:$0xff] }
0x2a3c   : > { %10941 = vmatpush1.bf16.msra.mxu0 %v10940_v26  ;;  %v10968_v13 = vpack.c.bf16 %v9000_v52, %v8999_v51  ;;  %v10970_v26 = vpack.c.bf16 %v9018_v56, %v9017_v22  ;;  %v13128_v22 = vld [vmem:[%s13897_s1] sm:$0xff] }
0x2a3d   : > { %10943 = vmatprep.subr.bf16.mxu0 %v10942_v28  ;;  %v9001_v28 = vld [vmem:[%s13906_s10 + $0x560] sm:$0xff] }
0x2a3e   : > { %v10972_v58 = vpack.c.bf16 %v9002_v23, %v9001_v28  ;;  %v13139_v56 = vld [vmem:[%s13898_s2] sm:$0xff]  ;;  %v9048_v23 = vld [vmem:[%s13902_s6 + $0x190] sm:$0xff] }
0x2a40   : > { %10945 = vmatpush1.bf16.msra.mxu0 %v10944_v59  ;;  %v9019_v59 = vld [vmem:[%s13906_s10 + $0x5f0] sm:$0xff] }
0x2a41   : > { %10978 = vmatprep.subr.bf16.mxu0 %v11360_v2 }
0x2b09   : > { %v5556_v29 = vpop.f32.mrb[72].mxu1 }
0x2b0a   : > { %v10329_v32 = vpop.f32.mrb[73].mxu1 }
0x2b0b   : > { %v10954_v32 = vpack.c.bf16 %v9010_v10, %v9009_v24 }
0x2b0d   : > { %v5483_v33 = vpop.f32.mrb[48].mxu0 }
0x2b0e   : > { %v5557_v30 = vadd.f32 %v5556_v29, %v5483_v33  ;;  %v10310_v34 = vpop.f32.mrb[49].mxu0  ;;  %v10952_v29 = vpack.c.bf16 %v8992_v18, %v8991_v17  ;;  %v8993_v33 = vld [vmem:[%s13906_s10 + $0x520] sm:$0xff] }
0x2b0f   : > { %v9012_v34 = vld [vmem:[%s13906_s10 + $0x5b8] sm:$0xff] }
0x2b10   : > { %v5568_v35 = vadd.f32 %v8977_v42, %v5557_v30  ;;  %v8994_v42 = vld [vmem:[%s13906_s10 + $0x528] sm:$0xff]  ;;  %v9011_v30 = vld [vmem:[%s13906_s10 + $0x5b0] sm:$0xff]  ;;  %10953 = vmatpush3.bf16.msra.mxu1 %v10952_v29 }
0x2b11   : > { %10955 = vmatprep.subr.bf16.mxu1 %v10954_v32 }
0x2b12   : > { %v5569_v36 = vsel %vm911_vm6, %v5568_v35, 0.0 }
0x2b13   : > { %5570 = vadd.xlane.f32.xlu1 %v5569_v36  ;;  %v8995_v36 = vld [vmem:[%s13906_s10 + $0x530] sm:$0xff] }
0x2ba0   : > { %v5571_v54 = vpop.xlane.xlu1 %5570 }
0x2ba1   : > { %v5572_v43 = vrot.slane %v5571_v54, 4 }
0x2ba3   : > { %v5573_v55 = vadd.f32 %v5572_v43, %v5571_v54  ;;  %v8996_v54 = vld [vmem:[%s13906_s10 + $0x538] sm:$0xff] }
0x2ba5   : > { %v5574_v37 = vrot.slane %v5573_v55, 2 }
0x2ba7   : > { %v5575_v38 = vadd.f32 %v5574_v37, %v5573_v55  ;;  %v10958_v55 = vpack.c.bf16 %v9012_v34, %v9011_v30  ;;  %v9013_v37 = vld [vmem:[%s13906_s10 + $0x5c0] sm:$0xff]  ;;  %v9029_v34 = vld [vmem:[%s13899_s3 + $0xd0] sm:$0xff] }
0x2ba9   : > { %v5576_v9 = vrot.slane %v5575_v38, 1 }
0x2bab   : > { %v5577_v39 = vadd.f32 %v5576_v9, %v5575_v38  ;;  %v9014_v38 = vld [vmem:[%s13906_s10 + $0x5c8] sm:$0xff] }
0x2bad   : > { %11241 = vpush %v5577_v39  ;;  %v10960_v39 = vpack.c.bf16 %v8996_v54, %v8995_v36 }
0x2bde   : > { %s11242_s23 = spop %11241 }
0x2bdf   : > { %v5579_v40 = vstv %s11242_s23 }
0x2be0   : > { %v5580_v41 = vmul.f32 0.001953125, %v5579_v40  ;;  %v10962_v40 = vpack.c.bf16 %v9014_v38, %v9013_v37 }
0x2be2   : > { %v12939_v44 = vsub.f32 %v5568_v35, %v5580_v41  ;;  %v10956_v35 = vpack.c.bf16 %v8994_v42, %v8993_v33  ;;  %v8997_v41 = vld [vmem:[%s13906_s10 + $0x540] sm:$0xff] }
0x2be3   : > { %v9022_v33 = vld [vmem:[%s13907_s11 + $0x5] ss:$0 sm:$0xff] }
0x2be4   : > { %v5582_v45 = vmul.f32 %v12939_v44, %v12939_v44  ;;  %10957 = vmatpush3.bf16.msra.mxu1 %v10956_v35  ;;  %v9030_v35 = vld [vmem:[%s13899_s3 + $0xd8] sm:$0xf] }
0x2be5   : > { %10959 = vmatprep.subr.bf16.mxu1 %v10958_v55  ;;  %v10983_v54 = vpack.c.bf16 %v9030_v35, %v9029_v34 }
0x2be6   : > { %v5583_v47 = vsel %vm911_vm6, %v5582_v45, 0.0  ;;  %v8998_v45 = vld [vmem:[%s13906_s10 + $0x548] sm:$0xff] }
0x2be7   : > { %5584 = vadd.xlane.f32.xlu0 %v5583_v47  ;;  %v9016_v47 = vld [vmem:[%s13906_s10 + $0x5d8] sm:$0xff]  ;;  %v10964_v49 = vpack.c.bf16 %v8998_v45, %v8997_v41 }
0x2be8   : > { %10961 = vmatpush3.bf16.msra.mxu1 %v10960_v39 }
0x2be9   : > { %10963 = vmatprep.subr.bf16.mxu1 %v10962_v40  ;;  %v9028_v40 = vld [vmem:[%s13900_s4 + $0x6] ss:$0 sm:$0xff] }
0x2bec   : > { %10965 = vmatpush3.bf16.msra.mxu1 %v10964_v49 }
0x2c74   : > { %v5585_v60 = vpop.xlane.xlu0 %5584 }
0x2c75   : > { %v5586_v61 = vrot.slane %v5585_v60, 4 }
0x2c77   : > { %v5587_v20 = vadd.f32 %v5586_v61, %v5585_v60  ;;  %v9020_v60 = vld [vmem:[%s13906_s10 + $0x5f8] sm:$0xff] }
0x2c78   : > { %v10974_v61 = vpack.c.bf16 %v9020_v60, %v9019_v59 }
0x2c79   : > { %v5588_v19 = vrot.slane %v5587_v20, 2 }
0x2c7b   : > { %v5589_v31 = vadd.f32 %v5588_v19, %v5587_v20  ;;  %v9003_v20 = vld [vmem:[%s13906_s10 + $0x570] sm:$0xff]  ;;  %v9004_v19 = vld [vmem:[%s13906_s10 + $0x578] sm:$0xff] }
0x2c7d   : > { %v5590_v63 = vrot.slane %v5589_v31, 1 }
0x2c7f   : > { %v5591_v21 = vadd.f32 %v5590_v63, %v5589_v31  ;;  %v10976_v31 = vpack.c.bf16 %v9004_v19, %v9003_v20 }
0x2c81   : > { %11243 = vpush %v5591_v21  ;;  %v8986_v21 = vld [vmem:[%s13905_s9 + $0xa] sm:$0x3] }
0x2cb2   : > { %s11244_s27 = spop %11243 }
0x2cb3   : > { %v5593_v0 = vstv %s11244_s27 }
0x2cb4   : > { %v5594_v1 = vmul.f32 0.001953125, %v5593_v0  ;;  %v5616_v0 = vrot.slane %v8986_v21, %v11717_v46 }
0x2cb6   : > { %v5595_v3 = vadd.f32 1e-05, %v5594_v1  ;;  %v5620_v1 = vrot.slane %v8986_v21, %v11722_v48  ;;  %v9038_v21 = vld [vmem:[%s13901_s5 + $0x180] sm:$0xff] }
0x2cb8   : > { %11318 = vrsqrt.f32 %v5595_v3 }
0x2cc2   : > { %v11319_v43 = vpop.eup %11318 }
0x2cc3   : > { %v5597_v9 = vmul.f32 %v11319_v43, %v12939_v44  ;;  %v9015_v44 = vld [vmem:[%s13906_s10 + $0x5d0] sm:$0xff] }
0x2cc4   : > { %v10966_v50 = vpack.c.bf16 %v9016_v47, %v9015_v44 }
0x2cc5   : > { %5599 = vrot.lane.b32.xlu0 %v5597_v9, %s11365_s30  ;;  %8987 = vmatmul.mubr.msk.f32.vlgmr.msra.gmra.mrb[50].mxu0 %vm1119_vm7, %v5597_v9 }
0x2cc6   : > { %5697 = vmatprep.mubr.f32.mxu0 %v11363_v5  ;;  %10967 = vmatprep.subr.bf16.mxu1 %v10966_v50 }
0x2cc7   : > { %10969 = vmatpush3.bf16.msra.mxu1 %v10968_v13  ;;  %10981 = vmatpush3.bf16.msk.msra.mxu0 %vm11447_vm2, %v10979_v57  ;;  %v9046_v13 = vld [vmem:[%s13902_s6 + $0x180] sm:$0xff]  ;;  %v11005_v57 = vpack.c.bf16 %v9043_v14, %v9042_v53 }
0x2cc8   : > { %10971 = vmatprep.subr.bf16.mxu1 %v10970_v26  ;;  %10982 = vmatprep.subr.bf16.mxu0 %v11360_v2  ;;  %v9047_v26 = vld [vmem:[%s13902_s6 + $0x188] sm:$0xff] }
0x2cc9   : > { %v10987_v28 = vpack.c.bf16 %v9047_v26, %v9046_v13 }
0x2ccb   : > { %10973 = vmatpush3.bf16.msra.mxu1 %v10972_v58  ;;  %v9049_v58 = vld [vmem:[%s13902_s6 + $0x198] sm:$0xff] }
0x2ccc   : > { %10975 = vmatprep.subr.bf16.mxu1 %v10974_v61  ;;  %v10990_v59 = vpack.c.bf16 %v9049_v58, %v9048_v23 }
0x2ccf   : > { %10977 = vmatpush3.bf16.msra.mxu1 %v10976_v31 }
0x2cd0   : > { %10986 = vmatprep.subr.bf16.mxu1 %v11360_v2 }
0x2d37   : > { %v5600_v63 = vpop.permute.xlu0 %5599 }
0x2d38   : > { %8988 = vmatmul.mubr.msk.f32.gmra.mrb[52].mxu0 %vm1119_vm7, %v5600_v63 }
0x2d39   : > { %10334 = vmatprep.mubr.msk.f32.mxu0 %vm11362_vm3, %v11363_v5 }
0x2d98   : > { %v5693_v3 = vpop.f32.mrb[50].mxu0 }
0x2d99   : > { %v5694_v6 = vadd.f32 %v5693_v3, %v5616_v0  ;;  %v5695_v7 = vpop.f32.mrb[51].mxu0 }
0x2d9a   : > { %v5696_v11 = vadd.f32 %v5695_v7, %v5620_v1 }
0x2d9b   : > { %v5704_v12 = vmax.f32 %v5694_v6, 0.0 }
0x2d9c   : > { %v5705_v8 = vmax.f32 %v5696_v11, 0.0  ;;  %v9040_v11 = vld [vmem:[%s13901_s5 + $0x190] sm:$0xff] }
0x2d9e   : > { %5813 = vmatprep.mubr.f32.mxu1 %v5705_v8  ;;  %v9041_v8 = vld [vmem:[%s13901_s5 + $0x198] sm:$0xff] }
0x2d9f   : > { %5814 = vmatmul.mubr.f32.vlgmr.msra.gmra.mrb[74].mxu1 %v5704_v12  ;;  %v11002_v12 = vpack.c.bf16 %v9041_v8, %v9040_v11  ;;  %v9064_v11 = vld [vmem:[%s13904_s8 + $0x1b0] sm:$0xff] }
0x2da0   : > { %10988 = vmatpush3.bf16.msra.mxu1 %v10987_v28 }
0x2da1   : > { %10989 = vmatprep.subr.bf16.mxu1 %v11360_v2 }
0x2da4   : > { %10991 = vmatpush3.bf16.msra.mxu1 %v10990_v59 }
0x2da5   : > { %10992 = vmatprep.subr.bf16.mxu1 %v11360_v2 }
0x2e0b   : > { %v5699_v16 = vpop.f32.mrb[52].mxu0 }
0x2e0c   : > { %v5700_v17 = vadd.f32 %v5699_v16, %v5616_v0  ;;  %v5701_v18 = vpop.f32.mrb[53].mxu0  ;;  %v9039_v0 = vld [vmem:[%s13901_s5 + $0x188] sm:$0xff]  ;;  %v9050_v16 = vld [vmem:[%s13902_s6 + $0x1a0] sm:$0xff] }
0x2e0d   : > { %v5702_v24 = vadd.f32 %v5701_v18, %v5620_v1  ;;  %v10999_v7 = vpack.c.bf16 %v9039_v0, %v9038_v21  ;;  %v9044_v18 = vld [vmem:[%s13901_s5 + $0x1b0] sm:$0xff]  ;;  %v9063_v0 = vld [vmem:[%s13904_s8 + $0x1a8] sm:$0xff] }
0x2e0e   : > { %v5706_v29 = vmax.f32 %v5700_v17, 0.0  ;;  %v9051_v17 = vld [vmem:[%s13902_s6 + $0x1a8] sm:$0xff]  ;;  %v9060_v21 = vld [vmem:[%s13904_s8 + $0x190] sm:$0xff] }
0x2e0f   : > { %v5707_v10 = vmax.f32 %v5702_v24, 0.0  ;;  %v10993_v24 = vpack.c.bf16 %v9051_v17, %v9050_v16 }
0x2e11   : > { %5818 = vmatprep.mubr.f32.mxu1 %v5707_v10  ;;  %v9045_v10 = vld [vmem:[%s13901_s5 + $0x1b8] sm:$0xff]  ;;  %10994 = vmatpush3.bf16.msra.mxu1 %v10993_v24 }
0x2e12   : > { %5819 = vmatmul.mubr.f32.gmra.mrb[76].mxu1 %v5706_v29  ;;  %v11008_v29 = vpack.c.bf16 %v9045_v10, %v9044_v18  ;;  %10995 = vmatprep.subr.bf16.mxu1 %v11360_v2 }
0x2e13   : > { %10380 = vmatprep.mubr.msk.f32.mxu1 %vm11362_vm3, %v11363_v5 }
0x2e72   : > { %v9682_v32 = vpop.f32.mrb[74].mxu1 }
0x2e73   : > { %v9683_v42 = vpop.f32.mrb[75].mxu1 }
0x2e74   : > { %v9684_v30 = vadd.f32 %v9683_v42, %v9682_v32  ;;  %v9052_v32 = vld [vmem:[%s13902_s6 + $0x1b0] sm:$0xff] }
0x2e76   : > { %v5816_v36 = vadd.f32 %v9684_v30, %v9022_v33 }
0x2e78   : > { %v13099_v43 = vsub.f32 %v12832_v25, %v5816_v36  ;;  %v13102_v55 = vadd.f32 %v5816_v36, %v12835_v27 }
0x2e7a   : > { %10335 = vmatmul.mubr.msk.f32.vlgmr.msra.gmra.mrb[54].mxu0 %vm422_vm4, %v13099_v43 }
0x2e7b   : > { %10985 = vmatpush3.bf16.msk.msra.mxu0 %vm11447_vm2, %v10983_v54  ;;  %10341 = vmatprep.mubr.msk.f32.mxu0 %vm11362_vm3, %v11363_v5 }
0x2e7c   : > { %10344 = vmatprep.subr.mxu0 %v11363_v5 }
0x2ee5   : > { %v9685_v37 = vpop.f32.mrb[76].mxu1 }
0x2ee6   : > { %v9686_v38 = vpop.f32.mrb[77].mxu1 }
0x2ee7   : > { %v9687_v9 = vadd.f32 %v9686_v38, %v9685_v37 }
0x2ee9   : > { %v5821_v39 = vadd.f32 %v9687_v9, %v9022_v33  ;;  %v9053_v33 = vld [vmem:[%s13902_s6 + $0x1b8] sm:$0xff] }
0x2eea   : > { %v10996_v42 = vpack.c.bf16 %v9053_v33, %v9052_v32  ;;  %v9085_v32 = vld [vmem:[%s13906_s10 + $0x680] sm:$0xff]  ;;  %v9086_v33 = vld [vmem:[%s13906_s10 + $0x688] sm:$0xff] }
0x2eeb   : > { %v13112_v25 = vsub.f32 %v12845_v15, %v5821_v39  ;;  %v13115_v27 = vadd.f32 %v5821_v39, %v12848_v62 }
0x2eec   : > { %10997 = vmatpush3.bf16.msra.mxu1 %v10996_v42  ;;  %v9069_v42 = vld [vmem:[%s13906_s10 + $0x600] sm:$0xff] }
0x2eed   : > { %10342 = vmatmul.mubr.msk.f32.vlgmr.msra.gmra.mrb[54].mxu0 %vm422_vm4, %v13112_v25 }
0x2eee   : > { %10346 = vmatprep.mubr.msk.f32.mxu0 %vm11362_vm3, %v11363_v5 }
0x2fc0   : > { %v5991_v41 = vpop.f32.mrb[54].mxu0 }
0x2fc1   : > { %v11200_v45 = vadd.f32 %v9028_v40, %v5991_v41  ;;  %v10343_v44 = vpop.f32.mrb[55].mxu0 }
0x2fc3   : > { %v9033_v47 = vmul.f32 -1.442695, %v11200_v45 }
0x2fc5   : > { %11320 = vpow2.f32 %v9033_v47 }
0x2fcf   : > { %v11321_v15 = vpop.eup %11320 }
0x2fd0   : > { %v6000_v49 = vadd.f32 1.0, %v11321_v15 }
0x2fd2   : > { %11322 = vrcp.f32 %v6000_v49 }
0x2fd3   : > { %11324 = vtanh.f32 %v11200_v45  ;;  %v9057_v45 = vld [vmem:[%s13903_s7 + $0x6] ss:$0 sm:$0xff] }
0x2fdc   : > { %v11323_v62 = vpop.eup %11322 }
0x2fdd   : > { %6004 = vrot.lane.b32.xlu0 %v11323_v62, %s11364_s19  ;;  %v11325_v50 = vpop.eup %11324 }
0x304f   : > { %v6005_v51 = vpop.permute.xlu0 %6004 }
0x3050   : > { %v6007_v52 = vmul.f32 %v11325_v50, %v6005_v51 }
0x3052   : > { %10345 = vmatpush3.msra.mxu0 %v6007_v52  ;;  %v6008_v61 = vmul.f32 0.1, %v6007_v52 }
0x3053   : > { %10347 = vmatmul.mubr.msk.f32.vlgmr.msra.gmra.mrb[56].mxu0 %vm600_vm5, %v13128_v22  ;;  %10349 = vmatprep.subr.mxu0 %v11363_v5 }
0x3054   : > { %10350 = vmatpush3.msra.mxu0 %v6007_v52  ;;  %10351 = vmatprep.mubr.msk.f32.mxu0 %vm11362_vm3, %v11363_v5 }
0x3055   : > { %10354 = vmatprep.subr.mxu0 %v11363_v5 }
0x3057   : > { %10352 = vmatmul.mubr.msk.f32.vlgmr.msra.gmra.mrb[58].mxu0 %vm600_vm5, %v13139_v56 }
0x3058   : > { %10356 = vmatprep.mubr.msk.f32.mxu0 %vm11362_vm3, %v11363_v5 }
0x3126   : > { %v6075_v60 = vpop.f32.mrb[56].mxu0 }
0x3127   : > { %v6079_v20 = vmul.f32 0.9, %v6075_v60  ;;  %v10348_v19 = vpop.f32.mrb[57].mxu0 }
0x3128   : > { %v9061_v19 = vld [vmem:[%s13904_s8 + $0x198] sm:$0xff] }
0x3129   : > { %v6080_v31 = vadd.f32 %v6079_v20, %v6008_v61  ;;  %v9059_v20 = vld [vmem:[%s13904_s8 + $0x188] sm:$0xff] }
0x312a   : > { %v6147_v63 = vpop.f32.mrb[58].mxu0 }
0x312b   : > { %v6151_v1 = vmul.f32 0.9, %v6147_v63  ;;  %v10353_v3 = vpop.f32.mrb[59].mxu0  ;;  %10355 = vmatpush3.msra.mxu0 %v6080_v31  ;;  %v9058_v31 = vld [vmem:[%s13904_s8 + $0x180] sm:$0xff]  ;;  %v11010_v63 = vpack.c.bf16 %v9061_v19, %v9059_v20  ;;  %v9078_v20 = vld [vmem:[%s13906_s10 + $0x648] sm:$0xff]  ;;  %v9096_v19 = vld [vmem:[%s13906_s10 + $0x6d8] sm:$0xff] }
0x312c   : > { %10357 = vmatmul.mubr.msk.f32.vlgmr.msra.gmra.mrb[60].mxu0 %vm600_vm5, %v13128_v22  ;;  %10359 = vmatprep.subr.mxu0 %v11363_v5  ;;  %v11012_v3 = vpack.c.bf16 %v9060_v21, %v9058_v31  ;;  %v9079_v21 = vld [vmem:[%s13906_s10 + $0x650] sm:$0xff] }
0x312d   : > { %v6152_v6 = vadd.f32 %v6151_v1, %v6008_v61  ;;  %10361 = vmatprep.mubr.msk.f32.mxu0 %vm11362_vm3, %v11363_v5  ;;  %v9065_v1 = vld [vmem:[%s13904_s8 + $0x1b8] sm:$0xff]  ;;  %11011 = vmatprep.subr.bf16.mxu1 %v11010_v63 }
0x312f   : > { %10360 = vmatpush3.msra.mxu0 %v6152_v6  ;;  %v11014_v6 = vpack.c.bf16 %v9065_v1, %v9063_v0  ;;  %v9080_v0 = vld [vmem:[%s13906_s10 + $0x658] sm:$0xff]  ;;  %v9097_v1 = vld [vmem:[%s13906_s10 + $0x6e0] sm:$0xff] }
0x3130   : > { %10362 = vmatmul.mubr.msk.f32.vlgmr.msra.gmra.mrb[62].mxu0 %vm600_vm5, %v13139_v56  ;;  %10998 = vmatprep.subr.bf16.mxu0 %v11360_v2 }
0x3131   : > { %11000 = vmatpush3.bf16.msra.mxu0 %v10999_v7  ;;  %10399 = vmatprep.mubr.msk.f32.mxu0 %vm11362_vm3, %v11363_v5  ;;  %v9062_v7 = vld [vmem:[%s13904_s8 + $0x1a0] sm:$0xff] }
0x3132   : > { %11001 = vmatprep.subr.bf16.mxu0 %v11360_v2  ;;  %v11016_v8 = vpack.c.bf16 %v9064_v11, %v9062_v7  ;;  %v9081_v11 = vld [vmem:[%s13906_s10 + $0x660] sm:$0xff] }
0x3135   : > { %11003 = vmatpush3.bf16.msra.mxu0 %v11002_v12 }
0x3136   : > { %11004 = vmatprep.subr.bf16.mxu0 %v11360_v2 }
0x3139   : > { %11006 = vmatpush3.bf16.msra.mxu0 %v11005_v57 }
0x313a   : > { %11007 = vmatprep.subr.bf16.mxu0 %v11360_v2 }
0x313d   : > { %11009 = vmatpush3.bf16.msra.mxu0 %v11008_v29 }
0x31ff   : > { %v6219_v30 = vpop.f32.mrb[60].mxu0 }
0x3200   : > { %v6223_v34 = vmul.f32 0.9, %v6219_v30  ;;  %v10358_v35 = vpop.f32.mrb[61].mxu0  ;;  %v11018_v30 = vpack.c.bf16 %v9086_v33, %v9085_v32 }
0x3201   : > { %v9087_v35 = vld [vmem:[%s13906_s10 + $0x690] sm:$0xff] }
0x3202   : > { %v6224_v36 = vadd.f32 %v6223_v34, %v6008_v61  ;;  %v9070_v34 = vld [vmem:[%s13906_s10 + $0x608] sm:$0xff]  ;;  %11019 = vmatprep.subr.bf16.mxu0 %v11018_v30 }
0x3203   : > { %v6291_v54 = vpop.f32.mrb[62].mxu0 }
0x3204   : > { %v6295_v37 = vmul.f32 0.9, %v6291_v54  ;;  %v10363_v38 = vpop.f32.mrb[63].mxu0  ;;  %10400 = vmatmul.mubr.msk.f32.vlgmr.msra.gmra.mrb[64].mxu0 %vm911_vm6, %v6224_v36  ;;  %v9088_v36 = vld [vmem:[%s13906_s10 + $0x698] sm:$0xff]  ;;  %v11020_v54 = vpack.c.bf16 %v9070_v34, %v9069_v42 }
0x3205   : > { %v9071_v38 = vld [vmem:[%s13906_s10 + $0x610] sm:$0xff] }
0x3206   : > { %v6296_v9 = vadd.f32 %v6295_v37, %v6008_v61  ;;  %v11022_v37 = vpack.c.bf16 %v9088_v36, %v9087_v35  ;;  %11021 = vmatpush3.bf16.msra.mxu0 %v11020_v54  ;;  %v9104_v54 = vld [vmem:[%s13899_s3 + $0xe0] sm:$0xff] }
0x3208   : > { %10381 = vmatmul.mubr.msk.f32.vlgmr.msra.gmra.mrb[78].mxu1 %vm911_vm6, %v6296_v9  ;;  %v9072_v9 = vld [vmem:[%s13906_s10 + $0x618] sm:$0xff]  ;;  %11023 = vmatprep.subr.bf16.mxu0 %v11022_v37  ;;  %v9105_v37 = vld [vmem:[%s13899_s3 + $0xe8] sm:$0xf] }
0x3209   : > { %6592 = vmatprep.mubr.f32.mxu1 %v11363_v5  ;;  %11013 = vmatpush1.bf16.msra.mxu1 %v11012_v3  ;;  %v9098_v3 = vld [vmem:[%s13906_s10 + $0x6e8] sm:$0xff] }
0x320a   : > { %11015 = vmatprep.subr.bf16.mxu1 %v11014_v6  ;;  %v11040_v6 = vpack.c.bf16 %v9080_v0, %v9079_v21  ;;  %v11042_v7 = vpack.c.bf16 %v9098_v3, %v9097_v1 }
0x320d   : > { %11017 = vmatpush1.bf16.msra.mxu1 %v11016_v8  ;;  %v9082_v8 = vld [vmem:[%s13906_s10 + $0x668] sm:$0xff] }
0x320e   : > { %11050 = vmatprep.subr.bf16.mxu1 %v11360_v2 }
0x32d7   : > { %v6457_v39 = vpop.f32.mrb[64].mxu0 }
0x32d8   : > { %v10401_v40 = vpop.f32.mrb[65].mxu0 }
0x32d9   : > { %v9090_v40 = vld [vmem:[%s13906_s10 + $0x6a8] sm:$0xff] }
0x32db   : > { %v6384_v41 = vpop.f32.mrb[78].mxu1 }
0x32dc   : > { %v6458_v44 = vadd.f32 %v6457_v39, %v6384_v41  ;;  %v10382_v47 = vpop.f32.mrb[79].mxu1  ;;  %v9089_v39 = vld [vmem:[%s13906_s10 + $0x6a0] sm:$0xff]  ;;  %v11024_v41 = vpack.c.bf16 %v9072_v9, %v9071_v38  ;;  %v11051_v38 = vpack.c.bf16 %v9105_v37, %v9104_v54  ;;  %v9123_v54 = vld [vmem:[%s13901_s5 + $0x1e8] sm:$0xff] }
0x32dd   : > { %v9074_v47 = vld [vmem:[%s13906_s10 + $0x628] sm:$0xff] }
0x32de   : > { %v6469_v15 = vadd.f32 %v9057_v45, %v6458_v44  ;;  %v11026_v45 = vpack.c.bf16 %v9090_v40, %v9089_v39  ;;  %v9073_v44 = vld [vmem:[%s13906_s10 + $0x620] sm:$0xff]  ;;  %11025 = vmatpush3.bf16.msra.mxu0 %v11024_v41 }
0x32e0   : > { %v6470_v49 = vsel %vm911_vm6, %v6469_v15, 0.0  ;;  %11027 = vmatprep.subr.bf16.mxu0 %v11026_v45 }
0x32e1   : > { %6471 = vadd.xlane.f32.xlu1 %v6470_v49  ;;  %v9092_v49 = vld [vmem:[%s13906_s10 + $0x6b8] sm:$0xff] }
0x336e   : > { %v6472_v62 = vpop.xlane.xlu1 %6471 }
0x336f   : > { %v6473_v50 = vrot.slane %v6472_v62, 4 }
0x3371   : > { %v6474_v51 = vadd.f32 %v6473_v50, %v6472_v62  ;;  %v11028_v62 = vpack.c.bf16 %v9074_v47, %v9073_v44  ;;  %v9075_v50 = vld [vmem:[%s13906_s10 + $0x630] sm:$0xff] }
0x3373   : > { %v6475_v52 = vrot.slane %v6474_v51, 2  ;;  %11029 = vmatpush3.bf16.msra.mxu0 %v11028_v62 }
0x3375   : > { %v6476_v13 = vadd.f32 %v6475_v52, %v6474_v51  ;;  %v9076_v51 = vld [vmem:[%s13906_s10 + $0x638] sm:$0xff] }
0x3377   : > { %v6477_v26 = vrot.slane %v6476_v13, 1 }
0x3379   : > { %v6478_v28 = vadd.f32 %v6477_v26, %v6476_v13  ;;  %v9093_v26 = vld [vmem:[%s13906_s10 + $0x6c0] sm:$0xff] }
0x337b   : > { %11245 = vpush %v6478_v28  ;;  %v9094_v28 = vld [vmem:[%s13906_s10 + $0x6c8] sm:$0xff] }
0x33ac   : > { %s11246_s27 = spop %11245 }
0x33ad   : > { %v6480_v23 = vstv %s11246_s27 }
0x33ae   : > { %v6481_v58 = vmul.f32 0.001953125, %v6480_v23 }
0x33b0   : > { %v13216_v59 = vsub.f32 %v6469_v15, %v6481_v58  ;;  %v9091_v15 = vld [vmem:[%s13906_s10 + $0x6b0] sm:$0xff]  ;;  %v11032_v58 = vpack.c.bf16 %v9076_v51, %v9075_v50  ;;  %v9110_v51 = vld [vmem:[%s13899_s3 + $0xf8] sm:$0xf] }
0x33b1   : > { %v11030_v13 = vpack.c.bf16 %v9092_v49, %v9091_v15  ;;  %v9102_v15 = vld [vmem:[%s13907_s11 + $0x6] ss:$0 sm:$0xff]  ;;  %v9109_v50 = vld [vmem:[%s13899_s3 + $0xf0] sm:$0xff] }
0x33b2   : > { %v6483_v60 = vmul.f32 %v13216_v59, %v13216_v59 }
0x33b3   : > { %11031 = vmatprep.subr.bf16.mxu0 %v11030_v13  ;;  %v11055_v13 = vpack.c.bf16 %v9110_v51, %v9109_v50 }
0x33b4   : > { %v6484_v61 = vsel %vm911_vm6, %v6483_v60, 0.0  ;;  %v11034_v60 = vpack.c.bf16 %v9094_v28, %v9093_v26  ;;  %11033 = vmatpush3.bf16.msra.mxu0 %v11032_v58 }
0x33b5   : > { %6485 = vadd.xlane.f32.xlu0 %v6484_v61  ;;  %v9077_v61 = vld [vmem:[%s13906_s10 + $0x640] sm:$0xff] }
0x33b6   : > { %v11036_v31 = vpack.c.bf16 %v9078_v20, %v9077_v61  ;;  %11035 = vmatprep.subr.bf16.mxu0 %v11034_v60  ;;  %v9108_v20 = vld [vmem:[%s13900_s4 + $0x7] ss:$0 sm:$0xff] }
0x33b8   : > { %11037 = vmatpush3.bf16.msra.mxu0 %v11036_v31 }
0x3442   : > { %v6486_v12 = vpop.xlane.xlu0 %6485 }
0x3443   : > { %v6487_v53 = vrot.slane %v6486_v12, 4 }
0x3445   : > { %v6488_v14 = vadd.f32 %v6487_v53, %v6486_v12  ;;  %v11044_v12 = vpack.c.bf16 %v9082_v8, %v9081_v11  ;;  %v9099_v53 = vld [vmem:[%s13906_s10 + $0x6f0] sm:$0xff] }
0x3446   : > { %v9128_v8 = vld [vmem:[%s13902_s6 + $0x1d0] sm:$0xff] }
0x3447   : > { %v6489_v57 = vrot.slane %v6488_v14, 2 }
0x3449   : > { %v6490_v16 = vadd.f32 %v6489_v57, %v6488_v14  ;;  %v9100_v14 = vld [vmem:[%s13906_s10 + $0x6f8] sm:$0xff] }
0x344a   : > { %v11046_v57 = vpack.c.bf16 %v9100_v14, %v9099_v53 }
0x344b   : > { %v6491_v17 = vrot.slane %v6490_v16, 1 }
0x344d   : > { %v6492_v18 = vadd.f32 %v6491_v17, %v6490_v16  ;;  %v9083_v16 = vld [vmem:[%s13906_s10 + $0x670] sm:$0xff]  ;;  %v9084_v17 = vld [vmem:[%s13906_s10 + $0x678] sm:$0xff] }
0x344f   : > { %11247 = vpush %v6492_v18  ;;  %v11048_v18 = vpack.c.bf16 %v9084_v17, %v9083_v16 }
0x3480   : > { %s11248_s15 = spop %11247 }
0x3481   : > { %v6494_v24 = vstv %s11248_s15 }
0x3482   : > { %v6495_v10 = vmul.f32 0.001953125, %v6494_v24 }
0x3484   : > { %v6496_v29 = vadd.f32 1e-05, %v6495_v10  ;;  %v9066_v10 = vld [vmem:[%s13905_s9 + $0xc] sm:$0x3] }
0x3485   : > { %v6521_v32 = vrot.slane %v9066_v10, %v11722_v48 }
0x3486   : > { %11326 = vrsqrt.f32 %v6496_v29  ;;  %v6517_v29 = vrot.slane %v9066_v10, %v11717_v46  ;;  %v9118_v10 = vld [vmem:[%s13901_s5 + $0x1c0] sm:$0xff] }
0x3490   : > { %v11327_v52 = vpop.eup %11326 }
0x3491   : > { %v6498_v23 = vmul.f32 %v11327_v52, %v13216_v59  ;;  %v9095_v59 = vld [vmem:[%s13906_s10 + $0x6d0] sm:$0xff] }
0x3492   : > { %v11038_v63 = vpack.c.bf16 %v9096_v19, %v9095_v59 }
0x3493   : > { %6500 = vrot.lane.b32.xlu1 %v6498_v23, %s11365_s30  ;;  %9067 = vmatmul.mubr.msk.f32.vlgmr.msra.gmra.mrb[80].mxu1 %vm1119_vm7, %v6498_v23 }
0x3494   : > { %6598 = vmatprep.mubr.f32.mxu1 %v11363_v5  ;;  %11039 = vmatprep.subr.bf16.mxu0 %v11038_v63 }
0x3495   : > { %11041 = vmatpush3.bf16.msra.mxu0 %v11040_v6  ;;  %11053 = vmatpush3.bf16.msk.msra.mxu1 %vm11447_vm2, %v11051_v38  ;;  %v9126_v6 = vld [vmem:[%s13902_s6 + $0x1c0] sm:$0xff]  ;;  %v9131_v38 = vld [vmem:[%s13902_s6 + $0x1e8] sm:$0xff] }
0x3496   : > { %11043 = vmatprep.subr.bf16.mxu0 %v11042_v7  ;;  %11054 = vmatprep.subr.bf16.mxu1 %v11360_v2  ;;  %v9127_v7 = vld [vmem:[%s13902_s6 + $0x1c8] sm:$0xff] }
0x3497   : > { %v11059_v11 = vpack.c.bf16 %v9127_v7, %v9126_v6 }
0x3499   : > { %11045 = vmatpush3.bf16.msra.mxu0 %v11044_v12  ;;  %v9129_v12 = vld [vmem:[%s13902_s6 + $0x1d8] sm:$0xff] }
0x349a   : > { %11047 = vmatprep.subr.bf16.mxu0 %v11046_v57  ;;  %v11062_v53 = vpack.c.bf16 %v9129_v12, %v9128_v8 }
0x349d   : > { %11049 = vmatpush3.bf16.msra.mxu0 %v11048_v18 }
0x349e   : > { %11058 = vmatprep.subr.bf16.mxu0 %v11360_v2 }
0x3505   : > { %v6501_v24 = vpop.permute.xlu1 %6500 }
0x3506   : > { %9068 = vmatmul.mubr.msk.f32.gmra.mrb[82].mxu1 %vm1119_vm7, %v6501_v24 }
0x3507   : > { %10406 = vmatprep.mubr.msk.f32.mxu1 %vm11362_vm3, %v11363_v5 }
0x3566   : > { %v6594_v33 = vpop.f32.mrb[80].mxu1 }
0x3567   : > { %v6595_v42 = vadd.f32 %v6594_v33, %v6517_v29  ;;  %v6596_v30 = vpop.f32.mrb[81].mxu1 }
0x3568   : > { %v6597_v34 = vadd.f32 %v6596_v30, %v6521_v32 }
0x3569   : > { %v6605_v36 = vmax.f32 %v6595_v42, 0.0 }
0x356a   : > { %v6606_v35 = vmax.f32 %v6597_v34, 0.0  ;;  %v9120_v34 = vld [vmem:[%s13901_s5 + $0x1d0] sm:$0xff] }
0x356c   : > { %6714 = vmatprep.mubr.f32.mxu0 %v6606_v35  ;;  %v9121_v35 = vld [vmem:[%s13901_s5 + $0x1d8] sm:$0xff] }
0x356d   : > { %6715 = vmatmul.mubr.f32.vlgmr.msra.gmra.mrb[66].mxu0 %v6605_v36  ;;  %v9122_v36 = vld [vmem:[%s13901_s5 + $0x1e0] sm:$0xff] }
0x356e   : > { %11060 = vmatpush3.bf16.msra.mxu0 %v11059_v11  ;;  %v11077_v37 = vpack.c.bf16 %v9123_v54, %v9122_v36 }
0x356f   : > { %11061 = vmatprep.subr.bf16.mxu0 %v11360_v2 }
0x3572   : > { %11063 = vmatpush3.bf16.msra.mxu0 %v11062_v53 }
0x3573   : > { %11064 = vmatprep.subr.bf16.mxu0 %v11360_v2 }
0x35d9   : > { %v6600_v9 = vpop.f32.mrb[82].mxu1 }
0x35da   : > { %v6601_v39 = vadd.f32 %v6600_v9, %v6517_v29  ;;  %v6602_v40 = vpop.f32.mrb[83].mxu1  ;;  %v9119_v29 = vld [vmem:[%s13901_s5 + $0x1c8] sm:$0xff]  ;;  %v9124_v9 = vld [vmem:[%s13901_s5 + $0x1f0] sm:$0xff] }
0x35db   : > { %v6603_v41 = vadd.f32 %v6602_v40, %v6521_v32  ;;  %v11071_v30 = vpack.c.bf16 %v9119_v29, %v9118_v10  ;;  %v9125_v40 = vld [vmem:[%s13901_s5 + $0x1f8] sm:$0xff] }
0x35dc   : > { %v6607_v44 = vmax.f32 %v6601_v39, 0.0  ;;  %v9145_v10 = vld [vmem:[%s13904_s8 + $0x1f8] sm:$0xff] }
0x35dd   : > { %v6608_v45 = vmax.f32 %v6603_v41, 0.0  ;;  %v11080_v41 = vpack.c.bf16 %v9125_v40, %v9124_v9  ;;  %v9165_v40 = vld [vmem:[%s13906_s10 + $0x780] sm:$0xff] }
0x35df   : > { %6719 = vmatprep.mubr.f32.mxu0 %v6608_v45  ;;  %v9132_v45 = vld [vmem:[%s13902_s6 + $0x1f0] sm:$0xff] }
0x35e0   : > { %6720 = vmatmul.mubr.f32.gmra.mrb[68].mxu0 %v6607_v44  ;;  %v9133_v44 = vld [vmem:[%s13902_s6 + $0x1f8] sm:$0xff] }
0x35e1   : > { %10452 = vmatprep.mubr.msk.f32.mxu0 %vm11362_vm3, %v11363_v5 }
0x3640   : > { %v9752_v47 = vpop.f32.mrb[66].mxu0 }
0x3641   : > { %v9753_v49 = vpop.f32.mrb[67].mxu0 }
0x3642   : > { %v9754_v62 = vadd.f32 %v9753_v49, %v9752_v47  ;;  %v11068_v47 = vpack.c.bf16 %v9133_v44, %v9132_v45  ;;  %v9149_v45 = vld [vmem:[%s13906_s10 + $0x700] sm:$0xff] }
0x3644   : > { %v6717_v52 = vadd.f32 %v9754_v62, %v9102_v15 }
0x3646   : > { %v13376_v26 = vsub.f32 %v13099_v43, %v6717_v52  ;;  %v13379_v28 = vadd.f32 %v6717_v52, %v13102_v55 }
0x3648   : > { %10407 = vmatmul.mubr.msk.f32.vlgmr.msra.gmra.mrb[84].mxu1 %vm422_vm4, %v13376_v26 }
0x3649   : > { %11057 = vmatpush3.bf16.msk.msra.mxu1 %vm11447_vm2, %v11055_v13  ;;  %10413 = vmatprep.mubr.msk.f32.mxu1 %vm11362_vm3, %v11363_v5 }
0x364a   : > { %10416 = vmatprep.subr.mxu1 %v11363_v5 }
0x36b3   : > { %v9755_v23 = vpop.f32.mrb[68].mxu0 }
0x36b4   : > { %v9756_v58 = vpop.f32.mrb[69].mxu0 }
0x36b5   : > { %v9757_v60 = vadd.f32 %v9756_v58, %v9755_v23 }
0x36b7   : > { %v6722_v61 = vadd.f32 %v9757_v60, %v9102_v15 }
0x36b9   : > { %v13389_v43 = vsub.f32 %v13112_v25, %v6722_v61  ;;  %v13392_v55 = vadd.f32 %v6722_v61, %v13115_v27 }
0x36bb   : > { %10414 = vmatmul.mubr.msk.f32.vlgmr.msra.gmra.mrb[84].mxu1 %vm422_vm4, %v13389_v43 }
0x36bc   : > { %10418 = vmatprep.mubr.msk.f32.mxu1 %vm11362_vm3, %v11363_v5 }
0x378e   : > { %v6892_v59 = vpop.f32.mrb[84].mxu1 }
0x378f   : > { %v11201_v19 = vadd.f32 %v9108_v20, %v6892_v59  ;;  %v10415_v31 = vpop.f32.mrb[85].mxu1  ;;  %v9137_v20 = vld [vmem:[%s13903_s7 + $0x7] ss:$0 sm:$0xff] }
0x3791   : > { %v9113_v63 = vmul.f32 -1.442695, %v11201_v19 }
0x3793   : > { %11328 = vpow2.f32 %v9113_v63 }
0x379d   : > { %v11329_v25 = vpop.eup %11328 }
0x379e   : > { %v6901_v21 = vadd.f32 1.0, %v11329_v25 }
0x37a0   : > { %11330 = vrcp.f32 %v6901_v21 }
0x37a1   : > { %11332 = vtanh.f32 %v11201_v19 }
0x37aa   : > { %v11331_v27 = vpop.eup %11330 }
0x37ab   : > { %6905 = vrot.lane.b32.xlu1 %v11331_v27, %s11364_s19  ;;  %v11333_v0 = vpop.eup %11332 }
0x381d   : > { %v6906_v1 = vpop.permute.xlu1 %6905 }
0x381e   : > { %v6908_v3 = vmul.f32 %v11333_v0, %v6906_v1 }
0x3820   : > { %10417 = vmatpush3.msra.mxu1 %v6908_v3  ;;  %v6909_v57 = vmul.f32 0.1, %v6908_v3 }
0x3821   : > { %10419 = vmatmul.mubr.msk.f32.vlgmr.msra.gmra.mrb[86].mxu1 %vm600_vm5, %v13128_v22  ;;  %10421 = vmatprep.subr.mxu1 %v11363_v5 }
0x3822   : > { %10422 = vmatpush3.msra.mxu1 %v6908_v3  ;;  %10423 = vmatprep.mubr.msk.f32.mxu1 %vm11362_vm3, %v11363_v5 }
0x3823   : > { %10426 = vmatprep.subr.mxu1 %v11363_v5 }
0x3825   : > { %10424 = vmatmul.mubr.msk.f32.vlgmr.msra.gmra.mrb[88].mxu1 %vm600_vm5, %v13139_v56 }
0x3826   : > { %10428 = vmatprep.mubr.msk.f32.mxu1 %vm11362_vm3, %v11363_v5 }
0x38f4   : > { %v6976_v14 = vpop.f32.mrb[86].mxu1 }
0x38f5   : > { %v6980_v16 = vmul.f32 0.9, %v6976_v14  ;;  %v10420_v17 = vpop.f32.mrb[87].mxu1  ;;  %v9139_v14 = vld [vmem:[%s13904_s8 + $0x1c8] sm:$0xff] }
0x38f7   : > { %v6981_v18 = vadd.f32 %v6980_v16, %v6909_v57  ;;  %v9138_v16 = vld [vmem:[%s13904_s8 + $0x1c0] sm:$0xff] }
0x38f8   : > { %v7048_v24 = vpop.f32.mrb[88].mxu1 }
0x38f9   : > { %v7052_v32 = vmul.f32 0.9, %v7048_v24  ;;  %v10425_v33 = vpop.f32.mrb[89].mxu1  ;;  %10427 = vmatpush3.msra.mxu1 %v6981_v18  ;;  %v9140_v18 = vld [vmem:[%s13904_s8 + $0x1d0] sm:$0xff]  ;;  %v9143_v24 = vld [vmem:[%s13904_s8 + $0x1e8] sm:$0xff] }
0x38fa   : > { %10429 = vmatmul.mubr.msk.f32.vlgmr.msra.gmra.mrb[90].mxu1 %vm600_vm5, %v13128_v22  ;;  %10431 = vmatprep.subr.mxu1 %v11363_v5  ;;  %v11074_v22 = vpack.c.bf16 %v9121_v35, %v9120_v34  ;;  %v11084_v29 = vpack.c.bf16 %v9140_v18, %v9138_v16  ;;  %v9142_v33 = vld [vmem:[%s13904_s8 + $0x1e0] sm:$0xff]  ;;  %v9159_v16 = vld [vmem:[%s13906_s10 + $0x750] sm:$0xff] }
0x38fb   : > { %v7053_v42 = vadd.f32 %v7052_v32, %v6909_v57  ;;  %10433 = vmatprep.mubr.msk.f32.mxu1 %vm11362_vm3, %v11363_v5  ;;  %v11086_v32 = vpack.c.bf16 %v9145_v10, %v9143_v24  ;;  %v9177_v18 = vld [vmem:[%s13906_s10 + $0x7e0] sm:$0xff]  ;;  %v9178_v24 = vld [vmem:[%s13906_s10 + $0x7e8] sm:$0xff] }
0x38fd   : > { %10432 = vmatpush3.msra.mxu1 %v7053_v42  ;;  %v9144_v42 = vld [vmem:[%s13904_s8 + $0x1f0] sm:$0xff] }
0x38fe   : > { %10434 = vmatmul.mubr.msk.f32.vlgmr.msra.gmra.mrb[92].mxu1 %vm600_vm5, %v13139_v56  ;;  %11070 = vmatprep.subr.bf16.mxu1 %v11360_v2  ;;  %v9130_v56 = vld [vmem:[%s13902_s6 + $0x1e0] sm:$0xff] }
0x38ff   : > { %11072 = vmatpush3.bf16.msra.mxu1 %v11071_v30  ;;  %10471 = vmatprep.mubr.msk.f32.mxu1 %vm11362_vm3, %v11363_v5  ;;  %v11065_v39 = vpack.c.bf16 %v9131_v38, %v9130_v56  ;;  %v11088_v30 = vpack.c.bf16 %v9144_v42, %v9142_v33  ;;  %v9162_v33 = vld [vmem:[%s13906_s10 + $0x768] sm:$0xff] }
0x3900   : > { %11073 = vmatprep.subr.bf16.mxu1 %v11360_v2 }
0x3901   : > { %11066 = vmatpush3.bf16.msra.mxu0 %v11065_v39 }
0x3902   : > { %11067 = vmatprep.subr.bf16.mxu0 %v11360_v2 }
0x3903   : > { %11075 = vmatpush3.bf16.msra.mxu1 %v11074_v22 }
0x3904   : > { %11076 = vmatprep.subr.bf16.mxu1 %v11360_v2 }
0x3905   : > { %11069 = vmatpush3.bf16.msra.mxu0 %v11068_v47  ;;  %v9150_v47 = vld [vmem:[%s13906_s10 + $0x708] sm:$0xff] }
0x3907   : > { %11078 = vmatpush3.bf16.msra.mxu1 %v11077_v37 }
0x3908   : > { %11079 = vmatprep.subr.bf16.mxu1 %v11360_v2 }
0x390b   : > { %11081 = vmatpush3.bf16.msra.mxu1 %v11080_v41  ;;  %v9166_v41 = vld [vmem:[%s13906_s10 + $0x788] sm:$0xff] }
0x390c   : > { %v11090_v44 = vpack.c.bf16 %v9166_v41, %v9165_v40 }
0x390e   : > { %11091 = vmatprep.subr.bf16.mxu1 %v11090_v44 }
0x39cd   : > { %v7120_v15 = vpop.f32.mrb[90].mxu1 }
0x39ce   : > { %v7124_v49 = vmul.f32 0.9, %v7120_v15  ;;  %v10430_v62 = vpop.f32.mrb[91].mxu1  ;;  %v9167_v15 = vld [vmem:[%s13906_s10 + $0x790] sm:$0xff] }
0x39cf   : > { %v11092_v62 = vpack.c.bf16 %v9150_v47, %v9149_v45 }
0x39d0   : > { %v7125_v50 = vadd.f32 %v7124_v49, %v6909_v57  ;;  %v9168_v49 = vld [vmem:[%s13906_s10 + $0x798] sm:$0xff] }
0x39d1   : > { %v7192_v51 = vpop.f32.mrb[92].mxu1 }
0x39d2   : > { %v7196_v52 = vmul.f32 0.9, %v7192_v51  ;;  %v10435_v13 = vpop.f32.mrb[93].mxu1  ;;  %10472 = vmatmul.mubr.msk.f32.vlgmr.msra.gmra.mrb[94].mxu1 %vm911_vm6, %v7125_v50  ;;  %v11094_v50 = vpack.c.bf16 %v9168_v49, %v9167_v15  ;;  %v9151_v51 = vld [vmem:[%s13906_s10 + $0x710] sm:$0xff]  ;;  %v9184_v15 = vld [vmem:[%s13899_s3 + $0x100] sm:$0xff] }
0x39d3   : > { %v9169_v13 = vld [vmem:[%s13906_s10 + $0x7a0] sm:$0xff]  ;;  %11093 = vmatpush3.bf16.msra.mxu1 %v11092_v62  ;;  %v9185_v49 = vld [vmem:[%s13899_s3 + $0x108] sm:$0xf] }
0x39d4   : > { %v7197_v23 = vadd.f32 %v7196_v52, %v6909_v57  ;;  %v9141_v57 = vld [vmem:[%s13904_s8 + $0x1d8] sm:$0xff]  ;;  %11095 = vmatprep.subr.bf16.mxu1 %v11094_v50  ;;  %v11123_v62 = vpack.c.bf16 %v9185_v49, %v9184_v15  ;;  %v9203_v15 = vld [vmem:[%s13901_s5 + $0x228] sm:$0xff] }
0x39d5   : > { %v11082_v17 = vpack.c.bf16 %v9141_v57, %v9139_v14  ;;  %v9152_v52 = vld [vmem:[%s13906_s10 + $0x718] sm:$0xff] }
0x39d6   : > { %10453 = vmatmul.mubr.msk.f32.vlgmr.msra.gmra.mrb[70].mxu0 %vm911_vm6, %v7197_v23  ;;  %v9170_v23 = vld [vmem:[%s13906_s10 + $0x7a8] sm:$0xff] }
0x39d7   : > { %7493 = vmatprep.mubr.f32.mxu0 %v11363_v5  ;;  %11083 = vmatprep.subr.bf16.mxu0 %v11082_v17  ;;  %v9160_v17 = vld [vmem:[%s13906_s10 + $0x758] sm:$0xff] }
0x39d8   : > { %11085 = vmatpush1.bf16.msra.mxu0 %v11084_v29  ;;  %v11112_v10 = vpack.c.bf16 %v9160_v17, %v9159_v16  ;;  %v11114_v29 = vpack.c.bf16 %v9178_v24, %v9177_v18  ;;  %v11350_v17 = vld [vmem:[%s13897_s1] sm:$0xff] }
0x39d9   : > { %11087 = vmatprep.subr.bf16.mxu0 %v11086_v32  ;;  %v9161_v32 = vld [vmem:[%s13906_s10 + $0x760] sm:$0xff] }
0x39da   : > { %v11116_v42 = vpack.c.bf16 %v9162_v33, %v9161_v32  ;;  %v11351_v18 = vld [vmem:[%s13898_s2] sm:$0xff]  ;;  %v9208_v32 = vld [vmem:[%s13902_s6 + $0x210] sm:$0xff]  ;;  %v9209_v33 = vld [vmem:[%s13902_s6 + $0x218] sm:$0xff] }
0x39db   : > { %v9206_v24 = vld [vmem:[%s13902_s6 + $0x200] sm:$0xff] }
0x39dc   : > { %11089 = vmatpush1.bf16.msra.mxu0 %v11088_v30  ;;  %v9179_v30 = vld [vmem:[%s13906_s10 + $0x7f0] sm:$0xff] }
0x39dd   : > { %11122 = vmatprep.subr.bf16.mxu0 %v11360_v2 }
0x3aa5   : > { %v7358_v58 = vpop.f32.mrb[94].mxu1 }
0x3aa6   : > { %v10473_v60 = vpop.f32.mrb[95].mxu1 }
0x3aa7   : > { %v11098_v60 = vpack.c.bf16 %v9170_v23, %v9169_v13 }
0x3aa9   : > { %v7285_v61 = vpop.f32.mrb[70].mxu0 }
0x3aaa   : > { %v7359_v59 = vadd.f32 %v7358_v58, %v7285_v61  ;;  %v10454_v19 = vpop.f32.mrb[71].mxu0  ;;  %v11096_v58 = vpack.c.bf16 %v9152_v52, %v9151_v51  ;;  %v9153_v61 = vld [vmem:[%s13906_s10 + $0x720] sm:$0xff] }
0x3aab   : > { %v9172_v19 = vld [vmem:[%s13906_s10 + $0x7b8] sm:$0xff] }
0x3aac   : > { %v7370_v31 = vadd.f32 %v9137_v20, %v7359_v59  ;;  %v9154_v20 = vld [vmem:[%s13906_s10 + $0x728] sm:$0xff]  ;;  %v9171_v59 = vld [vmem:[%s13906_s10 + $0x7b0] sm:$0xff]  ;;  %11097 = vmatpush3.bf16.msra.mxu1 %v11096_v58 }
0x3aad   : > { %11099 = vmatprep.subr.bf16.mxu1 %v11098_v60 }
0x3aae   : > { %v7371_v63 = vsel %vm911_vm6, %v7370_v31, 0.0 }
0x3aaf   : > { %7372 = vadd.xlane.f32.xlu1 %v7371_v63  ;;  %v9155_v63 = vld [vmem:[%s13906_s10 + $0x730] sm:$0xff] }
0x3b3c   : > { %v7373_v25 = vpop.xlane.xlu1 %7372 }
0x3b3d   : > { %v7374_v21 = vrot.slane %v7373_v25, 4 }
0x3b3f   : > { %v7375_v27 = vadd.f32 %v7374_v21, %v7373_v25  ;;  %v9156_v25 = vld [vmem:[%s13906_s10 + $0x738] sm:$0xff] }
0x3b41   : > { %v7376_v0 = vrot.slane %v7375_v27, 2 }
0x3b43   : > { %v7377_v1 = vadd.f32 %v7376_v0, %v7375_v27  ;;  %v11102_v27 = vpack.c.bf16 %v9172_v19, %v9171_v59  ;;  %v9173_v0 = vld [vmem:[%s13906_s10 + $0x7c0] sm:$0xff]  ;;  %v9189_v19 = vld [vmem:[%s13899_s3 + $0x110] sm:$0xff] }
0x3b45   : > { %v7378_v3 = vrot.slane %v7377_v1, 1 }
0x3b47   : > { %v7379_v6 = vadd.f32 %v7378_v3, %v7377_v1  ;;  %v9174_v1 = vld [vmem:[%s13906_s10 + $0x7c8] sm:$0xff] }
0x3b49   : > { %11249 = vpush %v7379_v6  ;;  %v11104_v6 = vpack.c.bf16 %v9156_v25, %v9155_v63 }
0x3b7a   : > { %s11250_s27 = spop %11249 }
0x3b7b   : > { %v7381_v7 = vstv %s11250_s27 }
0x3b7c   : > { %v7382_v11 = vmul.f32 0.001953125, %v7381_v7  ;;  %v11106_v7 = vpack.c.bf16 %v9174_v1, %v9173_v0 }
0x3b7e   : > { %v13483_v8 = vsub.f32 %v7370_v31, %v7382_v11  ;;  %v11100_v31 = vpack.c.bf16 %v9154_v20, %v9153_v61  ;;  %v9157_v11 = vld [vmem:[%s13906_s10 + $0x740] sm:$0xff] }
0x3b7f   : > { %v9182_v61 = vld [vmem:[%s13907_s11 + $0x7] ss:$0 sm:$0xff] }
0x3b80   : > { %v7384_v12 = vmul.f32 %v13483_v8, %v13483_v8  ;;  %11101 = vmatpush3.bf16.msra.mxu1 %v11100_v31  ;;  %v9190_v31 = vld [vmem:[%s13899_s3 + $0x118] sm:$0xf] }
0x3b81   : > { %11103 = vmatprep.subr.bf16.mxu1 %v11102_v27  ;;  %v11127_v25 = vpack.c.bf16 %v9190_v31, %v9189_v19 }
0x3b82   : > { %v7385_v53 = vsel %vm911_vm6, %v7384_v12, 0.0  ;;  %v9158_v12 = vld [vmem:[%s13906_s10 + $0x748] sm:$0xff] }
0x3b83   : > { %7386 = vadd.xlane.f32.xlu0 %v7385_v53  ;;  %v9176_v53 = vld [vmem:[%s13906_s10 + $0x7d8] sm:$0xff]  ;;  %v11108_v14 = vpack.c.bf16 %v9158_v12, %v9157_v11 }
0x3b84   : > { %11105 = vmatpush3.bf16.msra.mxu1 %v11104_v6 }
0x3b85   : > { %11107 = vmatprep.subr.bf16.mxu1 %v11106_v7 }
0x3b88   : > { %11109 = vmatpush3.bf16.msra.mxu1 %v11108_v14 }
0x3c10   : > { %v7387_v34 = vpop.xlane.xlu0 %7386 }
0x3c11   : > { %v7388_v35 = vrot.slane %v7387_v34, 4 }
0x3c13   : > { %v7389_v22 = vadd.f32 %v7388_v35, %v7387_v34  ;;  %v9180_v34 = vld [vmem:[%s13906_s10 + $0x7f8] sm:$0xff] }
0x3c14   : > { %v11118_v35 = vpack.c.bf16 %v9180_v34, %v9179_v30 }
0x3c15   : > { %v7390_v36 = vrot.slane %v7389_v22, 2 }
0x3c17   : > { %v7391_v54 = vadd.f32 %v7390_v36, %v7389_v22  ;;  %v9163_v22 = vld [vmem:[%s13906_s10 + $0x770] sm:$0xff]  ;;  %v9164_v36 = vld [vmem:[%s13906_s10 + $0x778] sm:$0xff] }
0x3c19   : > { %v7392_v37 = vrot.slane %v7391_v54, 1 }
0x3c1b   : > { %v7393_v56 = vadd.f32 %v7392_v37, %v7391_v54  ;;  %v11120_v54 = vpack.c.bf16 %v9164_v36, %v9163_v22 }
0x3c1d   : > { %11251 = vpush %v7393_v56  ;;  %v9146_v56 = vld [vmem:[%s13905_s9 + $0xe] sm:$0x3] }
0x3c4e   : > { %s11252_s15 = spop %11251 }
0x3c4f   : > { %v7395_v38 = vstv %s11252_s15 }
0x3c50   : > { %v7396_v9 = vmul.f32 0.001953125, %v7395_v38  ;;  %v7418_v38 = vrot.slane %v9146_v56, %v11717_v46 }
0x3c52   : > { %v7397_v39 = vadd.f32 1e-05, %v7396_v9  ;;  %v7422_v9 = vrot.slane %v9146_v56, %v11722_v48  ;;  %v9199_v56 = vld [vmem:[%s13901_s5 + $0x208] sm:$0xff] }
0x3c54   : > { %11334 = vrsqrt.f32 %v7397_v39 }
0x3c5e   : > { %v11335_v21 = vpop.eup %11334 }
0x3c5f   : > { %v7399_v3 = vmul.f32 %v11335_v21, %v13483_v8  ;;  %v9175_v8 = vld [vmem:[%s13906_s10 + $0x7d0] sm:$0xff] }
0x3c60   : > { %v11110_v57 = vpack.c.bf16 %v9176_v53, %v9175_v8 }
0x3c61   : > { %7401 = vrot.lane.b32.xlu0 %v7399_v3, %s11365_s30  ;;  %9147 = vmatmul.mubr.msk.f32.vlgmr.msra.gmra.mrb[72].mxu0 %vm1119_vm7, %v7399_v3 }
0x3c62   : > { %7499 = vmatprep.mubr.f32.mxu0 %v11363_v5  ;;  %11111 = vmatprep.subr.bf16.mxu1 %v11110_v57 }
0x3c63   : > { %11113 = vmatpush3.bf16.msra.mxu1 %v11112_v10  ;;  %11125 = vmatpush3.bf16.msk.msra.mxu0 %vm11447_vm2, %v11123_v62  ;;  %v9207_v10 = vld [vmem:[%s13902_s6 + $0x208] sm:$0xff]  ;;  %v9210_v62 = vld [vmem:[%s13902_s6 + $0x220] sm:$0xff] }
0x3c64   : > { %11115 = vmatprep.subr.bf16.mxu1 %v11114_v29  ;;  %11126 = vmatprep.subr.bf16.mxu0 %v11360_v2  ;;  %v11131_v29 = vpack.c.bf16 %v9207_v10, %v9206_v24 }
0x3c67   : > { %11117 = vmatpush3.bf16.msra.mxu1 %v11116_v42  ;;  %v11134_v42 = vpack.c.bf16 %v9209_v33, %v9208_v32  ;;  %v9221_v32 = vld [vmem:[%s13904_s8 + $0x218] sm:$0xff]  ;;  %v9218_v33 = vld [vmem:[%s13904_s8 + $0x200] sm:$0xff] }
0x3c68   : > { %11119 = vmatprep.subr.bf16.mxu1 %v11118_v35 }
0x3c6b   : > { %11121 = vmatpush3.bf16.msra.mxu1 %v11120_v54 }
0x3c6c   : > { %11130 = vmatprep.subr.bf16.mxu1 %v11360_v2 }
0x3cd3   : > { %v7402_v37 = vpop.permute.xlu0 %7401 }
0x3cd4   : > { %9148 = vmatmul.mubr.msk.f32.gmra.mrb[74].mxu0 %vm1119_vm7, %v7402_v37  ;;  %v9198_v37 = vld [vmem:[%s13901_s5 + $0x200] sm:$0xff] }
0x3cd5   : > { %10478 = vmatprep.mubr.msk.f32.mxu0 %vm11362_vm3, %v11363_v5 }
0x3d34   : > { %v7495_v39 = vpop.f32.mrb[72].mxu0 }
0x3d35   : > { %v7496_v40 = vadd.f32 %v7495_v39, %v7418_v38  ;;  %v7497_v41 = vpop.f32.mrb[73].mxu0 }
0x3d36   : > { %v7498_v45 = vadd.f32 %v7497_v41, %v7422_v9  ;;  %v9200_v41 = vld [vmem:[%s13901_s5 + $0x210] sm:$0xff] }
0x3d37   : > { %v7506_v47 = vmax.f32 %v7496_v40, 0.0  ;;  %v11143_v40 = vpack.c.bf16 %v9199_v56, %v9198_v37  ;;  %v9224_v37 = vld [vmem:[%s13904_s8 + $0x230] sm:$0xff] }
0x3d38   : > { %v7507_v44 = vmax.f32 %v7498_v45, 0.0  ;;  %v9201_v45 = vld [vmem:[%s13901_s5 + $0x218] sm:$0xff] }
0x3d3a   : > { %7615 = vmatprep.mubr.f32.mxu1 %v7507_v44  ;;  %v11146_v44 = vpack.c.bf16 %v9201_v45, %v9200_v41 }
0x3d3b   : > { %7616 = vmatmul.mubr.f32.vlgmr.msra.gmra.mrb[96].mxu1 %v7506_v47  ;;  %v9202_v47 = vld [vmem:[%s13901_s5 + $0x220] sm:$0xff] }
0x3d3c   : > { %11132 = vmatpush3.bf16.msra.mxu1 %v11131_v29  ;;  %v11149_v49 = vpack.c.bf16 %v9203_v15, %v9202_v47  ;;  %v9219_v29 = vld [vmem:[%s13904_s8 + $0x208] sm:$0xff] }
0x3d3d   : > { %11133 = vmatprep.subr.bf16.mxu1 %v11360_v2 }
0x3d40   : > { %11135 = vmatpush3.bf16.msra.mxu1 %v11134_v42  ;;  %v11154_v42 = vpack.c.bf16 %v9221_v32, %v9219_v29  ;;  %v9258_v29 = vld [vmem:[%s13906_s10 + $0x8e8] sm:$0xff] }
0x3d41   : > { %11136 = vmatprep.subr.bf16.mxu1 %v11360_v2 }
0x3da7   : > { %v7501_v50 = vpop.f32.mrb[74].mxu0 }
0x3da8   : > { %v7502_v51 = vadd.f32 %v7501_v50, %v7418_v38  ;;  %v7503_v52 = vpop.f32.mrb[75].mxu0  ;;  %v9211_v50 = vld [vmem:[%s13902_s6 + $0x228] sm:$0xff] }
0x3da9   : > { %v7504_v13 = vadd.f32 %v7503_v52, %v7422_v9  ;;  %v11137_v52 = vpack.c.bf16 %v9211_v50, %v9210_v62  ;;  %v9245_v62 = vld [vmem:[%s13906_s10 + $0x880] sm:$0xff]  ;;  %v9246_v50 = vld [vmem:[%s13906_s10 + $0x888] sm:$0xff] }
0x3daa   : > { %v7508_v58 = vmax.f32 %v7502_v51, 0.0  ;;  %v9204_v51 = vld [vmem:[%s13901_s5 + $0x230] sm:$0xff] }
0x3dab   : > { %v7509_v23 = vmax.f32 %v7504_v13, 0.0  ;;  %v9205_v13 = vld [vmem:[%s13901_s5 + $0x238] sm:$0xff]  ;;  %11138 = vmatpush3.bf16.msra.mxu1 %v11137_v52  ;;  %v11162_v52 = vpack.c.bf16 %v9246_v50, %v9245_v62 }
0x3dac   : > { %11139 = vmatprep.subr.bf16.mxu1 %v11360_v2 }
0x3dad   : > { %7620 = vmatprep.mubr.f32.mxu1 %v7509_v23  ;;  %v11152_v23 = vpack.c.bf16 %v9205_v13, %v9204_v51  ;;  %v9229_v51 = vld [vmem:[%s13906_s10 + $0x800] sm:$0xff]  ;;  %v9230_v13 = vld [vmem:[%s13906_s10 + $0x808] sm:$0xff] }
0x3dae   : > { %7621 = vmatmul.mubr.f32.gmra.mrb[98].mxu1 %v7508_v58  ;;  %v9212_v58 = vld [vmem:[%s13902_s6 + $0x230] sm:$0xff] }
0x3daf   : > { %10524 = vmatprep.mubr.msk.f32.mxu1 %vm11362_vm3, %v11363_v5 }
0x3e0e   : > { %v9822_v60 = vpop.f32.mrb[96].mxu1 }
0x3e0f   : > { %v9823_v20 = vpop.f32.mrb[97].mxu1 }
0x3e10   : > { %v9824_v59 = vadd.f32 %v9823_v20, %v9822_v60  ;;  %v9213_v60 = vld [vmem:[%s13902_s6 + $0x238] sm:$0xff] }
0x3e12   : > { %v7618_v63 = vadd.f32 %v9824_v59, %v9182_v61 }
0x3e14   : > { %v7626_v21 = vsub.f32 %v13376_v26, %v7618_v63  ;;  %v13644_v27 = vadd.f32 %v7618_v63, %v13379_v28 }
0x3e16   : > { %10479 = vmatmul.mubr.msk.f32.vlgmr.msra.gmra.mrb[76].mxu0 %vm422_vm4, %v7626_v21 }
0x3e17   : > { %11129 = vmatpush3.bf16.msk.msra.mxu0 %vm11447_vm2, %v11127_v25  ;;  %10485 = vmatprep.mubr.msk.f32.mxu0 %vm11362_vm3, %v11363_v5 }
0x3e18   : > { %10488 = vmatprep.subr.mxu0 %v11363_v5 }
0x3e81   : > { %v9825_v0 = vpop.f32.mrb[98].mxu1 }
0x3e82   : > { %v9826_v1 = vpop.f32.mrb[99].mxu1 }
0x3e83   : > { %v9827_v3 = vadd.f32 %v9826_v1, %v9825_v0 }
0x3e85   : > { %v7623_v6 = vadd.f32 %v9827_v3, %v9182_v61  ;;  %v11140_v61 = vpack.c.bf16 %v9213_v60, %v9212_v58  ;;  %v9248_v58 = vld [vmem:[%s13906_s10 + $0x898] sm:$0xff]  ;;  %v11164_v60 = vpack.c.bf16 %v9230_v13, %v9229_v51 }
0x3e87   : > { %v7628_v7 = vsub.f32 %v13389_v43, %v7623_v6  ;;  %v13654_v26 = vadd.f32 %v7623_v6, %v13392_v55  ;;  %11141 = vmatpush3.bf16.msra.mxu1 %v11140_v61  ;;  %v9217_v6 = vld [vmem:[%s13903_s7 + $0x8] ss:$0 sm:$0xff] }
0x3e88   : > { %11155 = vmatprep.subr.bf16.mxu1 %v11154_v42  ;;  %v9241_v42 = vld [vmem:[%s13906_s10 + $0x860] sm:$0xff] }
0x3e89   : > { %10486 = vmatmul.mubr.msk.f32.vlgmr.msra.gmra.mrb[76].mxu0 %vm422_vm4, %v7628_v7 }
0x3e8a   : > { %10490 = vmatprep.mubr.msk.f32.mxu0 %vm11362_vm3, %v11363_v5 }
0x3f5c   : > { %v7793_v28 = vpop.f32.mrb[76].mxu0 }
0x3f5d   : > { %v11202_v11 = vadd.f32 %v9188_v4, %v7793_v28  ;;  %v10487_v12 = vpop.f32.mrb[77].mxu0 }
0x3f5f   : > { %v9193_v8 = vmul.f32 -1.442695, %v11202_v11 }
0x3f61   : > { %11336 = vpow2.f32 %v9193_v8 }
0x3f6b   : > { %v11337_v53 = vpop.eup %11336 }
0x3f6c   : > { %v7802_v14 = vadd.f32 1.0, %v11337_v53 }
0x3f6e   : > { %11338 = vrcp.f32 %v7802_v14 }
0x3f6f   : > { %11340 = vtanh.f32 %v11202_v11 }
0x3f78   : > { %v11339_v43 = vpop.eup %11338 }
0x3f79   : > { %7806 = vrot.lane.b32.xlu0 %v11339_v43, %s11364_s19  ;;  %v11341_v55 = vpop.eup %11340 }
0x3feb   : > { %v7807_v57 = vpop.permute.xlu0 %7806 }
0x3fec   : > { %v7809_v16 = vmul.f32 %v11341_v55, %v7807_v57 }
0x3fee   : > { %10489 = vmatpush3.msra.mxu0 %v7809_v16  ;;  %v7810_v34 = vmul.f32 0.1, %v7809_v16 }
0x3fef   : > { %10491 = vmatmul.mubr.msk.f32.vlgmr.msra.gmra.mrb[78].mxu0 %vm600_vm5, %v11350_v17  ;;  %10493 = vmatprep.subr.mxu0 %v11363_v5 }
0x3ff0   : > { %10494 = vmatpush3.msra.mxu0 %v7809_v16  ;;  %10495 = vmatprep.mubr.msk.f32.mxu0 %vm11362_vm3, %v11363_v5 }
0x3ff1   : > { %10498 = vmatprep.subr.mxu0 %v11363_v5 }
0x3ff3   : > { %10496 = vmatmul.mubr.msk.f32.vlgmr.msra.gmra.mrb[80].mxu0 %vm600_vm5, %v11351_v18 }
0x3ff4   : > { %10500 = vmatprep.mubr.msk.f32.mxu0 %vm11362_vm3, %v11363_v5 }
0x40c2   : > { %v7877_v30 = vpop.f32.mrb[78].mxu0 }
0x40c3   : > { %v7881_v35 = vmul.f32 0.9, %v7877_v30  ;;  %v10492_v22 = vpop.f32.mrb[79].mxu0  ;;  %v9220_v30 = vld [vmem:[%s13904_s8 + $0x210] sm:$0xff] }
0x40c4   : > { %v11156_v22 = vpack.c.bf16 %v9220_v30, %v9218_v33  ;;  %v9242_v30 = vld [vmem:[%s13906_s10 + $0x868] sm:$0xff] }
0x40c5   : > { %v7882_v36 = vadd.f32 %v7881_v35, %v7810_v34  ;;  %v9225_v35 = vld [vmem:[%s13904_s8 + $0x238] sm:$0xff] }
0x40c6   : > { %v7949_v54 = vpop.f32.mrb[80].mxu0 }
0x40c7   : > { %v7953_v38 = vmul.f32 0.9, %v7949_v54  ;;  %v10497_v9 = vpop.f32.mrb[81].mxu0  ;;  %10499 = vmatpush3.msra.mxu0 %v7882_v36  ;;  %v9222_v54 = vld [vmem:[%s13904_s8 + $0x220] sm:$0xff] }
0x40c8   : > { %10501 = vmatmul.mubr.msk.f32.vlgmr.msra.gmra.mrb[82].mxu0 %vm600_vm5, %v11350_v17  ;;  %10503 = vmatprep.subr.mxu0 %v11363_v5  ;;  %v11160_v56 = vpack.c.bf16 %v9224_v37, %v9222_v54  ;;  %v9243_v54 = vld [vmem:[%s13906_s10 + $0x870] sm:$0xff]  ;;  %v9244_v37 = vld [vmem:[%s13906_s10 + $0x878] sm:$0xff] }
0x40c9   : > { %v7954_v39 = vadd.f32 %v7953_v38, %v7810_v34  ;;  %10505 = vmatprep.mubr.msk.f32.mxu0 %vm11362_vm3, %v11363_v5 }
0x40cb   : > { %10504 = vmatpush3.msra.mxu0 %v7954_v39 }
0x40cc   : > { %10506 = vmatmul.mubr.msk.f32.vlgmr.msra.gmra.mrb[84].mxu0 %vm600_vm5, %v11351_v18  ;;  %11142 = vmatprep.subr.bf16.mxu0 %v11360_v2 }
0x40cd   : > { %11144 = vmatpush3.bf16.msra.mxu0 %v11143_v40  ;;  %10543 = vmatprep.mubr.msk.f32.mxu0 %vm11362_vm3, %v11363_v5 }
0x40ce   : > { %11145 = vmatprep.subr.bf16.mxu0 %v11360_v2 }
0x40d1   : > { %11147 = vmatpush3.bf16.msra.mxu0 %v11146_v44 }
0x40d2   : > { %11148 = vmatprep.subr.bf16.mxu0 %v11360_v2 }
0x40d5   : > { %11150 = vmatpush3.bf16.msra.mxu0 %v11149_v49 }
0x40d6   : > { %11151 = vmatprep.subr.bf16.mxu0 %v11360_v2 }
0x40d9   : > { %11153 = vmatpush3.bf16.msra.mxu0 %v11152_v23  ;;  %v9247_v23 = vld [vmem:[%s13906_s10 + $0x890] sm:$0xff] }
0x40da   : > { %v11166_v61 = vpack.c.bf16 %v9248_v58, %v9247_v23  ;;  %11163 = vmatprep.subr.bf16.mxu0 %v11162_v52 }
0x419b   : > { %v8021_v20 = vpop.f32.mrb[82].mxu0 }
0x419c   : > { %v8025_v59 = vmul.f32 0.9, %v8021_v20  ;;  %v10502_v19 = vpop.f32.mrb[83].mxu0  ;;  %v9231_v20 = vld [vmem:[%s13906_s10 + $0x810] sm:$0xff] }
0x419d   : > { %v9249_v19 = vld [vmem:[%s13906_s10 + $0x8a0] sm:$0xff] }
0x419e   : > { %v8026_v31 = vadd.f32 %v8025_v59, %v7810_v34  ;;  %v9232_v59 = vld [vmem:[%s13906_s10 + $0x818] sm:$0xff] }
0x419f   : > { %v8093_v63 = vpop.f32.mrb[84].mxu0 }
0x41a0   : > { %v8097_v25 = vmul.f32 0.9, %v8093_v63  ;;  %10544 = vmatmul.mubr.msk.f32.vlgmr.msra.gmra.mrb[86].mxu0 %vm911_vm6, %v8026_v31  ;;  %v10507_v21 = vpop.f32.mrb[85].mxu0  ;;  %v9250_v31 = vld [vmem:[%s13906_s10 + $0x8a8] sm:$0xff]  ;;  %v11168_v63 = vpack.c.bf16 %v9232_v59, %v9231_v20 }
0x41a1   : > { %11165 = vmatpush3.bf16.msra.mxu0 %v11164_v60  ;;  %v9233_v21 = vld [vmem:[%s13906_s10 + $0x820] sm:$0xff] }
0x41a2   : > { %v8098_v2 = vadd.f32 %v8097_v25, %v7810_v34  ;;  %v9223_v34 = vld [vmem:[%s13904_s8 + $0x228] sm:$0xff]  ;;  %11167 = vmatprep.subr.bf16.mxu0 %v11166_v61  ;;  %v11170_v25 = vpack.c.bf16 %v9250_v31, %v9249_v19 }
0x41a3   : > { %v11158_v36 = vpack.c.bf16 %v9225_v35, %v9223_v34  ;;  %v11188_v34 = vpack.c.bf16 %v9242_v30, %v9241_v42  ;;  %v9259_v35 = vld [vmem:[%s13906_s10 + $0x8f0] sm:$0xff] }
0x41a4   : > { %10525 = vmatmul.mubr.msk.f32.vlgmr.msra.gmra.mrb[100].mxu1 %vm911_vm6, %v8098_v2  ;;  %v9234_v2 = vld [vmem:[%s13906_s10 + $0x828] sm:$0xff] }
0x41a5   : > { %8394 = vmatprep.mubr.f32.mxu1 %v11363_v5  ;;  %11157 = vmatpush1.bf16.msra.mxu1 %v11156_v22  ;;  %v9260_v22 = vld [vmem:[%s13906_s10 + $0x8f8] sm:$0xff] }
0x41a6   : > { %11159 = vmatprep.subr.bf16.mxu1 %v11158_v36  ;;  %11169 = vmatpush3.bf16.msra.mxu0 %v11168_v63  ;;  %v11190_v36 = vpack.c.bf16 %v9260_v22, %v9259_v35 }
0x41a7   : > { %11171 = vmatprep.subr.bf16.mxu0 %v11170_v25 }
0x41a9   : > { %11161 = vmatpush1.bf16.msra.mxu1 %v11160_v56  ;;  %v11192_v56 = vpack.c.bf16 %v9244_v37, %v9243_v54 }
0x4273   : > { %v8259_v0 = vpop.f32.mrb[86].mxu0 }
0x4274   : > { %v10545_v1 = vpop.f32.mrb[87].mxu0 }
0x4275   : > { %v9252_v1 = vld [vmem:[%s13906_s10 + $0x8b8] sm:$0xff] }
0x4277   : > { %v8186_v3 = vpop.f32.mrb[100].mxu1 }
0x4278   : > { %v8260_v7 = vadd.f32 %v8259_v0, %v8186_v3  ;;  %v10526_v4 = vpop.f32.mrb[101].mxu1  ;;  %v9251_v0 = vld [vmem:[%s13906_s10 + $0x8b0] sm:$0xff]  ;;  %v11172_v3 = vpack.c.bf16 %v9234_v2, %v9233_v21 }
0x427a   : > { %v8271_v28 = vadd.f32 %v9217_v6, %v8260_v7  ;;  %v9235_v6 = vld [vmem:[%s13906_s10 + $0x830] sm:$0xff]  ;;  %v9236_v7 = vld [vmem:[%s13906_s10 + $0x838] sm:$0xff]  ;;  %11173 = vmatpush3.bf16.msra.mxu0 %v11172_v3 }
0x427c   : > { %v8272_v11 = vsel %vm911_vm6, %v8271_v28, 0.0 }
0x427d   : > { %8273 = vadd.xlane.f32.xlu1 %v8272_v11  ;;  %v9253_v11 = vld [vmem:[%s13906_s10 + $0x8c0] sm:$0xff] }
0x430a   : > { %v8274_v12 = vpop.xlane.xlu1 %8273 }
0x430b   : > { %v8275_v8 = vrot.slane %v8274_v12, 4 }
0x430d   : > { %v8276_v53 = vadd.f32 %v8275_v8, %v8274_v12  ;;  %v9254_v12 = vld [vmem:[%s13906_s10 + $0x8c8] sm:$0xff] }
0x430f   : > { %v8277_v14 = vrot.slane %v8276_v53, 2 }
0x4311   : > { %v8278_v43 = vadd.f32 %v8277_v14, %v8276_v53  ;;  %v11176_v53 = vpack.c.bf16 %v9236_v7, %v9235_v6  ;;  %v11178_v14 = vpack.c.bf16 %v9254_v12, %v9253_v11 }
0x4313   : > { %v8279_v55 = vrot.slane %v8278_v43, 1 }
0x4315   : > { %v8280_v57 = vadd.f32 %v8279_v55, %v8278_v43  ;;  %v9237_v43 = vld [vmem:[%s13906_s10 + $0x840] sm:$0xff]  ;;  %v9238_v55 = vld [vmem:[%s13906_s10 + $0x848] sm:$0xff] }
0x4317   : > { %11253 = vpush %v8280_v57  ;;  %v9255_v57 = vld [vmem:[%s13906_s10 + $0x8d0] sm:$0xff] }
0x4348   : > { %s11254_s28 = spop %11253 }
0x4349   : > { %v8282_v16 = vstv %s11254_s28  ;;  %s11366_s28 = smov 116  }
0x434a   : > { %v8283_v17 = vmul.f32 0.001953125, %v8282_v16  ;;  %v9256_v16 = vld [vmem:[%s13906_s10 + $0x8d8] sm:$0xff] }
0x434c   : > { %v13746_v18 = vsub.f32 %v8271_v28, %v8283_v17  ;;  %v11174_v28 = vpack.c.bf16 %v9252_v1, %v9251_v0  ;;  %v11180_v17 = vpack.c.bf16 %v9238_v55, %v9237_v43 }
0x434e   : > { %v8285_v24 = vmul.f32 %v13746_v18, %v13746_v18  ;;  %11175 = vmatprep.subr.bf16.mxu0 %v11174_v28 }
0x434f   : > { %11177 = vmatpush3.bf16.msra.mxu0 %v11176_v53 }
0x4350   : > { %v8286_v10 = vsel %vm911_vm6, %v8285_v24, 0.0  ;;  %11179 = vmatprep.subr.bf16.mxu0 %v11178_v14  ;;  %v9239_v24 = vld [vmem:[%s13906_s10 + $0x850] sm:$0xff] }
0x4351   : > { %8287 = vadd.xlane.f32.xlu0 %v8286_v10  ;;  %v9257_v10 = vld [vmem:[%s13906_s10 + $0x8e0] sm:$0xff] }
0x4352   : > { %v11186_v33 = vpack.c.bf16 %v9258_v29, %v9257_v10 }
0x4353   : > { %11181 = vmatpush3.bf16.msra.mxu0 %v11180_v17 }
0x43de   : > { %v8288_v38 = vpop.xlane.xlu0 %8287 }
0x43df   : > { %v8289_v9 = vrot.slane %v8288_v38, 4 }
0x43e1   : > { %v8290_v39 = vadd.f32 %v8289_v9, %v8288_v38  ;;  %v9226_v9 = vld [vmem:[%s13905_s9 + $0x10] sm:$0x3] }
0x43e3   : > { %v8291_v40 = vrot.slane %v8290_v39, 2 }
0x43e5   : > { %v8292_v41 = vadd.f32 %v8291_v40, %v8290_v39  ;;  %v8319_v39 = vrot.slane %v9226_v9, %v11717_v46  ;;  %v8323_v40 = vrot.slane %v9226_v9, %v11722_v48  ;;  %v9262_v48 = vld [vmem:[%s13907_s11 + $0x8] ss:$0 sm:$0xff] }
0x43e7   : > { %v8293_v45 = vrot.slane %v8292_v41, 1 }
0x43e9   : > { %v8294_v44 = vadd.f32 %v8293_v45, %v8292_v41 }
0x43eb   : > { %11255 = vpush %v8294_v44 }
0x441c   : > { %s11256_s15 = spop %11255 }
0x441d   : > { %v8296_v47 = vstv %s11256_s15  ;;  %s413_s15 = scalar_lea.vmem %s13908_s12, %s9266_s13 }
0x441e   : > { %v8297_v15 = vmul.f32 0.001953125, %v8296_v47 }
0x4420   : > { %v8298_v49 = vadd.f32 1e-05, %v8297_v15 }
0x4422   : > { %11342 = vrsqrt.f32 %v8298_v49 }
0x442c   : > { %v11343_v4 = vpop.eup %11342 }
0x442d   : > { %v8300_v8 = vmul.f32 %v11343_v4, %v13746_v18  ;;  %v11182_v18 = vpack.c.bf16 %v9256_v16, %v9255_v57 }
0x442f   : > { %8302 = vrot.lane.b32.xlu1 %v8300_v8, %s11365_s30  ;;  %9227 = vmatmul.mubr.msk.f32.vlgmr.msra.gmra.mrb[102].mxu1 %vm1119_vm7, %v8300_v8 }
0x4430   : > { %8400 = vmatprep.mubr.f32.mxu1 %v11363_v5  ;;  %v9240_v5 = vld [vmem:[%s13906_s10 + $0x858] sm:$0xff]  ;;  %11183 = vmatprep.subr.bf16.mxu0 %v11182_v18 }
0x4431   : > { %v11184_v32 = vpack.c.bf16 %v9240_v5, %v9239_v24 }
0x4433   : > { %11185 = vmatpush3.bf16.msra.mxu0 %v11184_v32 }
0x4434   : > { %11187 = vmatprep.subr.bf16.mxu0 %v11186_v33 }
0x4437   : > { %11189 = vmatpush3.bf16.msra.mxu0 %v11188_v34 }
0x4438   : > { %11191 = vmatprep.subr.bf16.mxu0 %v11190_v36 }
0x443b   : > { %11193 = vmatpush3.bf16.msra.mxu0 %v11192_v56 }
0x44a1   : > { %v8303_v38 = vpop.permute.xlu1 %8302 }
0x44a2   : > { %9228 = vmatmul.mubr.msk.f32.gmra.mrb[104].mxu1 %vm1119_vm7, %v8303_v38 }
0x4502   : > { %v8396_v41 = vpop.f32.mrb[102].mxu1 }
0x4503   : > { %v8397_v45 = vadd.f32 %v8396_v41, %v8319_v39  ;;  %v8398_v44 = vpop.f32.mrb[103].mxu1 }
0x4504   : > { %v8399_v47 = vadd.f32 %v8398_v44, %v8323_v40 }
0x4505   : > { %v8407_v49 = vmax.f32 %v8397_v45, 0.0 }
0x4506   : > { %v8408_v15 = vmax.f32 %v8399_v47, 0.0 }
0x4508   : > { %8516 = vmatprep.mubr.f32.mxu0 %v8408_v15 }
0x4509   : > { %8517 = vmatmul.mubr.f32.vlgmr.msra.gmra.mrb[88].mxu0 %v8407_v49 }
0x4575   : > { %v8402_v62 = vpop.f32.mrb[104].mxu1 }
0x4576   : > { %v8403_v50 = vadd.f32 %v8402_v62, %v8319_v39  ;;  %v8404_v51 = vpop.f32.mrb[105].mxu1 }
0x4577   : > { %v8405_v52 = vadd.f32 %v8404_v51, %v8323_v40 }
0x4578   : > { %v8409_v23 = vmax.f32 %v8403_v50, 0.0 }
0x4579   : > { %v8410_v13 = vmax.f32 %v8405_v52, 0.0 }
0x457b   : > { %8521 = vmatprep.mubr.f32.mxu0 %v8410_v13 }
0x457c   : > { %8522 = vmatmul.mubr.f32.gmra.mrb[90].mxu0 %v8409_v23 }
0x45dc   : > { %v9892_v46 = vpop.f32.mrb[88].mxu0 }
0x45dd   : > { %v9893_v58 = vpop.f32.mrb[89].mxu0 }
0x45de   : > { %v9894_v60 = vadd.f32 %v9893_v58, %v9892_v46 }
0x45e0   : > { %v8519_v61 = vadd.f32 %v9894_v60, %v9262_v48 }
0x45e2   : > { %v8527_v20 = vadd.f32 %v8519_v61, %v13644_v27 }
0x45e4   : > { %8530 = vrot.lane.b32.xlu1 %v8527_v20, %s11366_s28 }
0x464f   : > { %v9895_v59 = vpop.f32.mrb[90].mxu0 }
0x4650   : > { %v9896_v19 = vpop.f32.mrb[91].mxu0 }
0x4651   : > { %v9897_v31 = vadd.f32 %v9896_v19, %v9895_v59 }
0x4653   : > { %v8524_v63 = vadd.f32 %v9897_v31, %v9262_v48 }
0x4655   : > { %v8528_v25 = vadd.f32 %v8524_v63, %v13654_v26 }
0x4656   : > { %v8531_v21 = vpop.permute.xlu1 %8530 }
0x4657   : > { %8533 = vst.msk [vmem:[%s413_s15] sm:$0xff] %vm422_vm4, %v8531_v21  ;;  %8535 = vrot.lane.b32.xlu1 %v8528_v25, %s11366_s28 }
0x46c9   : > { %v8536_v2 = vpop.permute.xlu1 %8535 }
0x46ca   : > { %9263 = vst.msk [vmem:[%s413_s15 + $0x8] sm:$0xff] %vm422_vm4, %v8536_v2 }
0x46cb PF: > { %s22_s21 = sadd.s32 1, %s11358_s21  }
0x46cc   : > { %p19_p4 = scmp.ge.s32.totalorder %s22_s21, 4  }
0x46ce   :  { %21 = sbr.rel (!%p19_p4) target bundleno = 1 (0x1), region = 181 }

</bundles_post_ra>
